<compile_context>
chip_gen: v7x
topology: tpu7x:2x2x1
jax: 0.10.0
libtpu: 0.0.40
codegen_flags: <defaults>
</compile_context>

<pallas_src>
import functools

import jax
import jax.numpy as jnp
from jax import lax
from jax.experimental import pallas as pl
from jax.experimental.pallas import tpu as pltpu


# --------------------------------------------------------------------------
# Fused latent-resolution kernel: conv1 (3x3, bias) + full residual stack
# --------------------------------------------------------------------------
def _latent_stack_kernel(xp_ref, w1_ref, b1_ref, w3_ref, wp_ref, o_ref, xs_ref,
                         *, H, W, L, cdt):
    Cin = xp_ref.shape[-1]
    Ch = o_ref.shape[-1]

    # ---- _conv_1 : 3x3, pad 1, with bias (9 shifted VMEM views, f32 acc) ----
    acc = jnp.zeros((H * W, Ch), jnp.float32)
    for k in range(9):
        kh, kw = k // 3, k % 3
        v = xp_ref[0, pl.ds(kh, H), pl.ds(kw, W), :].reshape(H * W, Cin)
        acc = acc + jnp.dot(v, w1_ref[k, :, :],
                            preferred_element_type=jnp.float32)
    acc = acc + b1_ref[...]

    # running activation kept in a zero-bordered VMEM scratch (never in HBM)
    xs_ref[...] = jnp.zeros_like(xs_ref)
    xs_ref[pl.ds(1, H), pl.ds(1, W), :] = acc.reshape(H, W, Ch).astype(cdt)

    # ---- residual stack: x <- x + Conv1x1(relu(Conv3x3(relu(x)))) ----------
    for i in range(L):
        Cr = w3_ref.shape[-1]
        acc3 = jnp.zeros((H * W, Cr), jnp.float32)
        for k in range(9):
            kh, kw = k // 3, k % 3
            # ReLU fused on the shifted view (zero border stays zero)
            v = jnp.maximum(xs_ref[pl.ds(kh, H), pl.ds(kw, W), :], 0.0)
            acc3 = acc3 + jnp.dot(v.reshape(H * W, Ch), w3_ref[i, k, :, :],
                                  preferred_element_type=jnp.float32)
        h = jnp.maximum(acc3, 0.0).astype(cdt)            # res-hidden, VMEM only
        dx = jnp.dot(h, wp_ref[i, :, :], preferred_element_type=jnp.float32)
        xint = xs_ref[pl.ds(1, H), pl.ds(1, W), :].astype(jnp.float32)
        xnew = xint.reshape(H * W, Ch) + dx
        xs_ref[pl.ds(1, H), pl.ds(1, W), :] = xnew.reshape(H, W, Ch).astype(cdt)

    # ---- ResidualStack's final ReLU; emit the zero-padded map directly so the
    #      first deconv needs no extra XLA pad pass --------------------------
    o_ref[0] = jnp.maximum(xs_ref[...], 0.0).astype(o_ref.dtype)


def latent_stack(xp, conv1_w, conv1_b, res_w3, res_w1, *, out_dtype,
                 compute_dtype):
    """xp: (N, H+2, W+2, Cin) zero-padded NHWC input.
       Returns (N, H+2, W+2, Ch): relu(residual_stack(conv1(x))), zero-padded."""
    N, Hp, Wp, Cin = xp.shape
    H, W = Hp - 2, Wp - 2
    Ch = conv1_w.shape[0]
    L = len(res_w3)

    w1k = jnp.transpose(conv1_w, (2, 3, 1, 0)).reshape(9, Cin, Ch)
    w1k = w1k.astype(compute_dtype)
    b1 = conv1_b.astype(jnp.float32).reshape(1, Ch)
    if L:
        w3k = jnp.stack([jnp.transpose(w, (2, 3, 1, 0)).reshape(9, Ch, -1)
                         for w in res_w3], axis=0).astype(compute_dtype)
        wpk = jnp.stack([jnp.transpose(w[:, :, 0, 0], (1, 0))
                         for w in res_w1], axis=0).astype(compute_dtype)
    else:  # dummies so the pallas_call signature is stable
        w3k = jnp.zeros((1, 9, Ch, 1), compute_dtype)
        wpk = jnp.zeros((1, 1, Ch), compute_dtype)
    xp = xp.astype(compute_dtype)

    kernel = functools.partial(_latent_stack_kernel, H=H, W=W, L=L,
                               cdt=compute_dtype)
    return pl.pallas_call(
        kernel,
        out_shape=jax.ShapeDtypeStruct((N, Hp, Wp, Ch), out_dtype),
        grid_spec=pltpu.PrefetchScalarGridSpec(
            num_scalar_prefetch=0,
            grid=(N,),
            in_specs=[
                pl.BlockSpec((1, Hp, Wp, Cin), lambda n: (n, 0, 0, 0)),
                pl.BlockSpec(w1k.shape, lambda n: (0, 0, 0)),
                pl.BlockSpec(b1.shape, lambda n: (0, 0)),
                pl.BlockSpec(w3k.shape, lambda n: (0, 0, 0, 0)),
                pl.BlockSpec(wpk.shape, lambda n: (0, 0, 0)),
            ],
            out_specs=pl.BlockSpec((1, Hp, Wp, Ch), lambda n: (n, 0, 0, 0)),
            scratch_shapes=[pltpu.VMEM((Hp, Wp, Ch), compute_dtype)],
        ),
        compiler_params=pltpu.CompilerParams(
            dimension_semantics=("parallel",)),
    )(xp, w1k, b1, w3k, wpk)


# --------------------------------------------------------------------------
# Fused ConvTranspose2d(kernel=4, stride=2, padding=1) (sub-pixel, 4 parities
# in one kernel, parity-packed output layout -> free reshape to NHWC)
# --------------------------------------------------------------------------
def _deconv_kernel(xp_ref, w_ref, b_ref, o_ref, *, th, W, Cout, relu_out):
    t = pl.program_id(1)
    r0 = pl.multiple_of(t * th, th)
    bias = b_ref[...]
    Cin = xp_ref.shape[-1]
    for a in (0, 1):                  # output row parity
        halves = []
        for c in (0, 1):              # output col parity
            acc = jnp.zeros((th * W, Cout), jnp.float32)
            for dh in (0, 1):
                for dw in (0, 1):
                    v = xp_ref[0, pl.ds(r0 + dh + a, th), pl.ds(dw + c, W), :]
                    k = ((a * 2 + c) * 2 + dh) * 2 + dw
                    acc = acc + jnp.dot(v.reshape(th * W, Cin), w_ref[k, :, :],
                                        preferred_element_type=jnp.float32)
            acc = acc + bias
            if relu_out:
                acc = jnp.maximum(acc, 0.0)
            halves.append(acc.reshape(th, W, Cout))
        z = jnp.concatenate(halves, axis=-1)              # (th, W, 2*Cout)
        o_ref[0, :, a, :, :] = z.astype(o_ref.dtype)


def _pick_row_tile(H, W, lane_width, itemsize, n_batch, target_bytes=4 << 20):
    """Largest divisor of H whose output block fits ~target_bytes; if batch==1,
       force >= 2 row tiles so both v7x TensorCores get work."""
    cap = max(1, target_bytes // max(1, 2 * W * lane_width * itemsize))
    best = 1
    for t in range(1, H + 1):
        if H % t == 0 and t <= cap:
            best = t
    if n_batch == 1 and best == H and H > 1:
        divs = [t for t in range(1, H) if H % t == 0]
        if divs:
            best = max(divs)
    return best


def conv_transpose2d_s2k4p1(xp, w_iohw, bias, *, relu_out, out_dtype,
                            compute_dtype):
    """xp: (N, H+2, W+2, Cin) zero-padded NHWC input (already ReLU'd as needed).
       w_iohw: (Cin, Cout, 4, 4).  Returns (N, 2H, 2W, Cout)."""
    N, Hp, Wp, Cin = xp.shape
    H, W = Hp - 2, Wp - 2
    Cin_w, Cout, K, _ = w_iohw.shape
    assert K == 4 and Cin_w == Cin

    # tap weights: index k = ((a*2+c)*2+dh)*2+dw  ->  kernel element (3-a-2dh, 3-c-2dw)
    taps = []
    for a in (0, 1):
        for c in (0, 1):
            for dh in (0, 1):
                for dw in (0, 1):
                    taps.append(w_iohw[:, :, 3 - a - 2 * dh, 3 - c - 2 * dw])
    wk = jnp.stack(taps, axis=0).astype(compute_dtype)          # (16, Cin, Cout)
    b = bias.astype(jnp.float32).reshape(1, Cout)
    xp = xp.astype(compute_dtype)

    th = _pick_row_tile(H, W, 2 * Cout, jnp.dtype(out_dtype).itemsize, N)
    nt = H // th
    kernel = functools.partial(_deconv_kernel, th=th, W=W, Cout=Cout,
                               relu_out=relu_out)
    out = pl.pallas_call(
        kernel,
        out_shape=jax.ShapeDtypeStruct((N, H, 2, W, 2 * Cout), out_dtype),
        grid_spec=pltpu.PrefetchScalarGridSpec(
            num_scalar_prefetch=0,
            grid=(N, nt),
            in_specs=[
                # whole padded image stays VMEM-resident across row tiles
                pl.BlockSpec((1, Hp, Wp, Cin), lambda n, t: (n, 0, 0, 0)),
                pl.BlockSpec(wk.shape, lambda n, t: (0, 0, 0)),
                pl.BlockSpec(b.shape, lambda n, t: (0, 0)),
            ],
            out_specs=pl.BlockSpec((1, th, 2, W, 2 * Cout),
                                   lambda n, t: (n, t, 0, 0, 0)),
        ),
        compiler_params=pltpu.CompilerParams(
            dimension_semantics=("parallel", "parallel")),
    )(xp, wk, b)
    # parity-packed (N, H, 2, W, 2*Cout) -> (N, 2H, 2W, Cout): free metadata reshape
    return out.reshape(N, 2 * H, 2 * W, Cout)


# --------------------------------------------------------------------------
# Decoder forward (Pallas path).  Input/output are NCHW like PyTorch.
# --------------------------------------------------------------------------
def decoder_forward(params, x_nchw, compute_dtype=jnp.bfloat16):
    x = jnp.transpose(x_nchw, (0, 2, 3, 1)).astype(compute_dtype)   # NCHW->NHWC
    xp = jnp.pad(x, ((0, 0), (1, 1), (1, 1), (0, 0)))               # tiny (latent res)

    # conv1 + full residual stack (incl. final ReLU) fused into ONE kernel;
    # result comes back zero-padded so it feeds _conv_trans_1 directly.
    xs = latent_stack(xp, params["conv1_w"], params["conv1_b"],
                      [w3 for w3, _ in params["res"]],
                      [w1 for _, w1 in params["res"]],
                      out_dtype=compute_dtype, compute_dtype=compute_dtype)

    # _conv_trans_1 with fused ReLU (lane width 2*Cout = 128 for the real model)
    x1 = conv_transpose2d_s2k4p1(xs, params["ct1_w"], params["ct1_b"],
                                 relu_out=True, out_dtype=compute_dtype,
                                 compute_dtype=compute_dtype)        # (N,2H,2W,C1)

    # TODO(synk): this zero-pad is one extra HBM round trip of the mid-size
    # activation; removing it needs boundary masking inside the deconv kernel.
    x1p = jnp.pad(x1, ((0, 0), (1, 1), (1, 1), (0, 0)))

    # _conv_trans_2 : true output channels (no 128 padding), f32 result
    x2 = conv_transpose2d_s2k4p1(x1p, params["ct2_w"], params["ct2_b"],
                                 relu_out=False, out_dtype=jnp.float32,
                                 compute_dtype=compute_dtype)        # (N,4H,4W,Cout)
    return jnp.transpose(x2, (0, 3, 1, 2))                           # NHWC -> NCHW


# --------------------------------------------------------------------------
# Pure-JAX (lax) reference with PyTorch semantics, for validation
# --------------------------------------------------------------------------
def _ref_conv2d(x, w, b, pad):
    out = lax.conv_general_dilated(x, w, (1, 1), [(pad, pad), (pad, pad)],
                                   dimension_numbers=("NCHW", "OIHW", "NCHW"))
    if b is not None:
        out = out + b[None, :, None, None]
    return out


def _ref_conv_transpose2d(x, w, b, stride=2, pad=1):
    K = w.shape[-1]
    w_oihw = jnp.transpose(jnp.flip(w, axis=(2, 3)), (1, 0, 2, 3))
    p = K - 1 - pad
    out = lax.conv_general_dilated(x, w_oihw, (1, 1), [(p, p), (p, p)],
                                   lhs_dilation=(stride, stride),
                                   dimension_numbers=("NCHW", "OIHW", "NCHW"))
    return out + b[None, :, None, None]


def decoder_reference(params, x):
    x = _ref_conv2d(x, params["conv1_w"], params["conv1_b"], pad=1)
    for w3, w1 in params["res"]:
        h = jax.nn.relu(x)
        h = _ref_conv2d(h, w3, None, pad=1)
        h = jax.nn.relu(h)
        h = _ref_conv2d(h, w1, None, pad=0)
        x = x + h
    x = jax.nn.relu(x)
    x = jax.nn.relu(_ref_conv_transpose2d(x, params["ct1_w"], params["ct1_b"]))
    return _ref_conv_transpose2d(x, params["ct2_w"], params["ct2_b"])


# --------------------------------------------------------------------------
# Deterministic parameter init (shapes match the PyTorch __init__)
# --------------------------------------------------------------------------
def init_params(key, in_ch, num_hiddens, num_res_layers, num_res_hiddens, out_ch):
    n_keys = 6 + 2 * num_res_layers
    keys = jax.random.split(key, n_keys)
    w = lambda k, s: 0.1 * jax.random.normal(k, s, jnp.float32)
    params = {
        "conv1_w": w(keys[0], (num_hiddens, in_ch, 3, 3)),
        "conv1_b": w(keys[1], (num_hiddens,)),
        "res": [],
        "ct1_w": w(keys[2], (num_hiddens, num_hiddens // 2, 4, 4)),   # IOHW
        "ct1_b": w(keys[3], (num_hiddens // 2,)),
        "ct2_w": w(keys[4], (num_hiddens // 2, out_ch, 4, 4)),        # IOHW
        "ct2_b": w(keys[5], (out_ch,)),
    }
    for i in range(num_res_layers):
        w3 = w(keys[6 + 2 * i], (num_res_hiddens, num_hiddens, 3, 3))  # no bias
        w1 = w(keys[7 + 2 * i], (num_hiddens, num_res_hiddens, 1, 1))  # no bias
        params["res"].append((w3, w1))
    return params


if __name__ == "__main__":
    # small synthetic config
    batch, in_ch, spatial = 2, 4, 8
    num_hiddens, num_res_layers, num_res_hiddens, out_ch = 32, 2, 8, 3

    key = jax.random.PRNGKey(0)
    k_params, k_x = jax.random.split(key)
    params = init_params(k_params, in_ch, num_hiddens,
                         num_res_layers, num_res_hiddens, out_ch)
    x = jax.random.normal(k_x, (batch, in_ch, spatial, spatial), jnp.float32)

    # fp32 path: bit-faithful to the PyTorch fp32 semantics (1e-4 check)
    fwd_f32 = jax.jit(functools.partial(decoder_forward,
                                        compute_dtype=jnp.float32))
    out = jax.block_until_ready(fwd_f32(params, x))
    ref = jax.block_until_ready(decoder_reference(params, x))
    assert out.shape == (batch, out_ch, 4 * spatial, 4 * spatial), out.shape
    assert jnp.allclose(out, ref, rtol=1e-4, atol=1e-4), \
        float(jnp.max(jnp.abs(out - ref)))

    # bf16 fast path (MXU-native, halved HBM traffic); smoke run only since
    # bf16 storage intentionally trades the 1e-4 tolerance for speed.
    fwd_bf16 = jax.jit(functools.partial(decoder_forward,
                                         compute_dtype=jnp.bfloat16))
    out_bf = jax.block_until_ready(fwd_bf16(params, x))
    assert out_bf.shape == out.shape and bool(jnp.all(jnp.isfinite(out_bf)))

    print("KERNEL_OK")
</pallas_src>

<mosaic_0001>
module attributes {stable_mosaic.version = 11 : i64} {
  func.func @_latent_stack_kernel(%arg0: i32, %arg1: memref<1x10x10x4xf32, #tpu.memory_space<vmem>>, %arg2: memref<9x4x32xf32, #tpu.memory_space<vmem>>, %arg3: memref<1x32xf32, #tpu.memory_space<vmem>>, %arg4: memref<2x9x32x8xf32, #tpu.memory_space<vmem>>, %arg5: memref<2x8x32xf32, #tpu.memory_space<vmem>>, %arg6: memref<1x10x10x32xf32, #tpu.memory_space<vmem>>, %arg7: memref<10x10x32xf32, #tpu.memory_space<vmem>>) attributes {dimension_semantics = [#tpu.dimension_semantics<parallel>], iteration_bounds = array<i64: 2>, scalar_prefetch = 0 : i64, scratch_operands = 1 : i64, tpu.core_type = #tpu.core_type<tc>, window_params = [{transform_indices = @transform_0, window_bounds = array<i64: 1, 10, 10, 4>}, {pipeline_mode = #tpu.pipeline_mode<synchronous>, transform_indices = @transform_1, window_bounds = array<i64: 9, 4, 32>}, {pipeline_mode = #tpu.pipeline_mode<synchronous>, transform_indices = @transform_2, window_bounds = array<i64: 1, 32>}, {pipeline_mode = #tpu.pipeline_mode<synchronous>, transform_indices = @transform_3, window_bounds = array<i64: 2, 9, 32, 8>}, {pipeline_mode = #tpu.pipeline_mode<synchronous>, transform_indices = @transform_4, window_bounds = array<i64: 2, 8, 32>}, {transform_indices = @transform_5, window_bounds = array<i64: 1, 10, 10, 32>}]} {
    %cst = arith.constant 0.000000e+00 : f32
    %0 = vector.broadcast %cst : f32 to vector<64x32xf32>
    %c0 = arith.constant 0 : index
    %c0_0 = arith.constant 0 : index
    %c0_1 = arith.constant 0 : index
    %c0_2 = arith.constant 0 : index
    %1 = vector.load %arg1[%c0, %c0_0, %c0_1, %c0_2] : memref<1x10x10x4xf32, #tpu.memory_space<vmem>>, vector<1x8x8x4xf32>
    %2 = vector.shape_cast %1 : vector<1x8x8x4xf32> to vector<8x8x4xf32>
    %3 = vector.shape_cast %2 : vector<8x8x4xf32> to vector<64x4xf32>
    %c0_3 = arith.constant 0 : index
    %c0_4 = arith.constant 0 : index
    %c0_5 = arith.constant 0 : index
    %4 = vector.load %arg2[%c0_3, %c0_4, %c0_5] : memref<9x4x32xf32, #tpu.memory_space<vmem>>, vector<1x4x32xf32>
    %5 = vector.shape_cast %4 : vector<1x4x32xf32> to vector<4x32xf32>
    %cst_6 = arith.constant dense<0.000000e+00> : vector<64x32xf32>
    %6 = tpu.matmul %3, %5, %cst_6 {dimension_numbers = #tpu.dot_dimension_numbers<[1], [0], [0], [1], [0, 0, 1, 1], [], []>} : vector<64x4xf32>, vector<4x32xf32>, vector<64x32xf32> -> vector<64x32xf32>
    %7 = arith.addf %0, %6 : vector<64x32xf32>
    %c0_7 = arith.constant 0 : index
    %c0_8 = arith.constant 0 : index
    %c1 = arith.constant 1 : index
    %c0_9 = arith.constant 0 : index
    %8 = vector.load %arg1[%c0_7, %c0_8, %c1, %c0_9] : memref<1x10x10x4xf32, #tpu.memory_space<vmem>>, vector<1x8x8x4xf32>
    %9 = vector.shape_cast %8 : vector<1x8x8x4xf32> to vector<8x8x4xf32>
    %10 = vector.shape_cast %9 : vector<8x8x4xf32> to vector<64x4xf32>
    %c1_10 = arith.constant 1 : index
    %c0_11 = arith.constant 0 : index
    %c0_12 = arith.constant 0 : index
    %11 = vector.load %arg2[%c1_10, %c0_11, %c0_12] : memref<9x4x32xf32, #tpu.memory_space<vmem>>, vector<1x4x32xf32>
    %12 = vector.shape_cast %11 : vector<1x4x32xf32> to vector<4x32xf32>
    %cst_13 = arith.constant dense<0.000000e+00> : vector<64x32xf32>
    %13 = tpu.matmul %10, %12, %cst_13 {dimension_numbers = #tpu.dot_dimension_numbers<[1], [0], [0], [1], [0, 0, 1, 1], [], []>} : vector<64x4xf32>, vector<4x32xf32>, vector<64x32xf32> -> vector<64x32xf32>
    %14 = arith.addf %7, %13 : vector<64x32xf32>
    %c0_14 = arith.constant 0 : index
    %c0_15 = arith.constant 0 : index
    %c2 = arith.constant 2 : index
    %c0_16 = arith.constant 0 : index
    %15 = vector.load %arg1[%c0_14, %c0_15, %c2, %c0_16] : memref<1x10x10x4xf32, #tpu.memory_space<vmem>>, vector<1x8x8x4xf32>
    %16 = vector.shape_cast %15 : vector<1x8x8x4xf32> to vector<8x8x4xf32>
    %17 = vector.shape_cast %16 : vector<8x8x4xf32> to vector<64x4xf32>
    %c2_17 = arith.constant 2 : index
    %c0_18 = arith.constant 0 : index
    %c0_19 = arith.constant 0 : index
    %18 = vector.load %arg2[%c2_17, %c0_18, %c0_19] : memref<9x4x32xf32, #tpu.memory_space<vmem>>, vector<1x4x32xf32>
    %19 = vector.shape_cast %18 : vector<1x4x32xf32> to vector<4x32xf32>
    %cst_20 = arith.constant dense<0.000000e+00> : vector<64x32xf32>
    %20 = tpu.matmul %17, %19, %cst_20 {dimension_numbers = #tpu.dot_dimension_numbers<[1], [0], [0], [1], [0, 0, 1, 1], [], []>} : vector<64x4xf32>, vector<4x32xf32>, vector<64x32xf32> -> vector<64x32xf32>
    %21 = arith.addf %14, %20 : vector<64x32xf32>
    %c0_21 = arith.constant 0 : index
    %c1_22 = arith.constant 1 : index
    %c0_23 = arith.constant 0 : index
    %c0_24 = arith.constant 0 : index
    %22 = vector.load %arg1[%c0_21, %c1_22, %c0_23, %c0_24] : memref<1x10x10x4xf32, #tpu.memory_space<vmem>>, vector<1x8x8x4xf32>
    %23 = vector.shape_cast %22 : vector<1x8x8x4xf32> to vector<8x8x4xf32>
    %24 = vector.shape_cast %23 : vector<8x8x4xf32> to vector<64x4xf32>
    %c3 = arith.constant 3 : index
    %c0_25 = arith.constant 0 : index
    %c0_26 = arith.constant 0 : index
    %25 = vector.load %arg2[%c3, %c0_25, %c0_26] : memref<9x4x32xf32, #tpu.memory_space<vmem>>, vector<1x4x32xf32>
    %26 = vector.shape_cast %25 : vector<1x4x32xf32> to vector<4x32xf32>
    %cst_27 = arith.constant dense<0.000000e+00> : vector<64x32xf32>
    %27 = tpu.matmul %24, %26, %cst_27 {dimension_numbers = #tpu.dot_dimension_numbers<[1], [0], [0], [1], [0, 0, 1, 1], [], []>} : vector<64x4xf32>, vector<4x32xf32>, vector<64x32xf32> -> vector<64x32xf32>
    %28 = arith.addf %21, %27 : vector<64x32xf32>
    %c0_28 = arith.constant 0 : index
    %c1_29 = arith.constant 1 : index
    %c1_30 = arith.constant 1 : index
    %c0_31 = arith.constant 0 : index
    %29 = vector.load %arg1[%c0_28, %c1_29, %c1_30, %c0_31] : memref<1x10x10x4xf32, #tpu.memory_space<vmem>>, vector<1x8x8x4xf32>
    %30 = vector.shape_cast %29 : vector<1x8x8x4xf32> to vector<8x8x4xf32>
    %31 = vector.shape_cast %30 : vector<8x8x4xf32> to vector<64x4xf32>
    %c4 = arith.constant 4 : index
    %c0_32 = arith.constant 0 : index
    %c0_33 = arith.constant 0 : index
    %32 = vector.load %arg2[%c4, %c0_32, %c0_33] : memref<9x4x32xf32, #tpu.memory_space<vmem>>, vector<1x4x32xf32>
    %33 = vector.shape_cast %32 : vector<1x4x32xf32> to vector<4x32xf32>
    %cst_34 = arith.constant dense<0.000000e+00> : vector<64x32xf32>
    %34 = tpu.matmul %31, %33, %cst_34 {dimension_numbers = #tpu.dot_dimension_numbers<[1], [0], [0], [1], [0, 0, 1, 1], [], []>} : vector<64x4xf32>, vector<4x32xf32>, vector<64x32xf32> -> vector<64x32xf32>
    %35 = arith.addf %28, %34 : vector<64x32xf32>
    %c0_35 = arith.constant 0 : index
    %c1_36 = arith.constant 1 : index
    %c2_37 = arith.constant 2 : index
    %c0_38 = arith.constant 0 : index
    %36 = vector.load %arg1[%c0_35, %c1_36, %c2_37, %c0_38] : memref<1x10x10x4xf32, #tpu.memory_space<vmem>>, vector<1x8x8x4xf32>
    %37 = vector.shape_cast %36 : vector<1x8x8x4xf32> to vector<8x8x4xf32>
    %38 = vector.shape_cast %37 : vector<8x8x4xf32> to vector<64x4xf32>
    %c5 = arith.constant 5 : index
    %c0_39 = arith.constant 0 : index
    %c0_40 = arith.constant 0 : index
    %39 = vector.load %arg2[%c5, %c0_39, %c0_40] : memref<9x4x32xf32, #tpu.memory_space<vmem>>, vector<1x4x32xf32>
    %40 = vector.shape_cast %39 : vector<1x4x32xf32> to vector<4x32xf32>
    %cst_41 = arith.constant dense<0.000000e+00> : vector<64x32xf32>
    %41 = tpu.matmul %38, %40, %cst_41 {dimension_numbers = #tpu.dot_dimension_numbers<[1], [0], [0], [1], [0, 0, 1, 1], [], []>} : vector<64x4xf32>, vector<4x32xf32>, vector<64x32xf32> -> vector<64x32xf32>
    %42 = arith.addf %35, %41 : vector<64x32xf32>
    %c0_42 = arith.constant 0 : index
    %c2_43 = arith.constant 2 : index
    %c0_44 = arith.constant 0 : index
    %c0_45 = arith.constant 0 : index
    %43 = vector.load %arg1[%c0_42, %c2_43, %c0_44, %c0_45] : memref<1x10x10x4xf32, #tpu.memory_space<vmem>>, vector<1x8x8x4xf32>
    %44 = vector.shape_cast %43 : vector<1x8x8x4xf32> to vector<8x8x4xf32>
    %45 = vector.shape_cast %44 : vector<8x8x4xf32> to vector<64x4xf32>
    %c6 = arith.constant 6 : index
    %c0_46 = arith.constant 0 : index
    %c0_47 = arith.constant 0 : index
    %46 = vector.load %arg2[%c6, %c0_46, %c0_47] : memref<9x4x32xf32, #tpu.memory_space<vmem>>, vector<1x4x32xf32>
    %47 = vector.shape_cast %46 : vector<1x4x32xf32> to vector<4x32xf32>
    %cst_48 = arith.constant dense<0.000000e+00> : vector<64x32xf32>
    %48 = tpu.matmul %45, %47, %cst_48 {dimension_numbers = #tpu.dot_dimension_numbers<[1], [0], [0], [1], [0, 0, 1, 1], [], []>} : vector<64x4xf32>, vector<4x32xf32>, vector<64x32xf32> -> vector<64x32xf32>
    %49 = arith.addf %42, %48 : vector<64x32xf32>
    %c0_49 = arith.constant 0 : index
    %c2_50 = arith.constant 2 : index
    %c1_51 = arith.constant 1 : index
    %c0_52 = arith.constant 0 : index
    %50 = vector.load %arg1[%c0_49, %c2_50, %c1_51, %c0_52] : memref<1x10x10x4xf32, #tpu.memory_space<vmem>>, vector<1x8x8x4xf32>
    %51 = vector.shape_cast %50 : vector<1x8x8x4xf32> to vector<8x8x4xf32>
    %52 = vector.shape_cast %51 : vector<8x8x4xf32> to vector<64x4xf32>
    %c7 = arith.constant 7 : index
    %c0_53 = arith.constant 0 : index
    %c0_54 = arith.constant 0 : index
    %53 = vector.load %arg2[%c7, %c0_53, %c0_54] : memref<9x4x32xf32, #tpu.memory_space<vmem>>, vector<1x4x32xf32>
    %54 = vector.shape_cast %53 : vector<1x4x32xf32> to vector<4x32xf32>
    %cst_55 = arith.constant dense<0.000000e+00> : vector<64x32xf32>
    %55 = tpu.matmul %52, %54, %cst_55 {dimension_numbers = #tpu.dot_dimension_numbers<[1], [0], [0], [1], [0, 0, 1, 1], [], []>} : vector<64x4xf32>, vector<4x32xf32>, vector<64x32xf32> -> vector<64x32xf32>
    %56 = arith.addf %49, %55 : vector<64x32xf32>
    %c0_56 = arith.constant 0 : index
    %c2_57 = arith.constant 2 : index
    %c2_58 = arith.constant 2 : index
    %c0_59 = arith.constant 0 : index
    %57 = vector.load %arg1[%c0_56, %c2_57, %c2_58, %c0_59] : memref<1x10x10x4xf32, #tpu.memory_space<vmem>>, vector<1x8x8x4xf32>
    %58 = vector.shape_cast %57 : vector<1x8x8x4xf32> to vector<8x8x4xf32>
    %59 = vector.shape_cast %58 : vector<8x8x4xf32> to vector<64x4xf32>
    %c8 = arith.constant 8 : index
    %c0_60 = arith.constant 0 : index
    %c0_61 = arith.constant 0 : index
    %60 = vector.load %arg2[%c8, %c0_60, %c0_61] : memref<9x4x32xf32, #tpu.memory_space<vmem>>, vector<1x4x32xf32>
    %61 = vector.shape_cast %60 : vector<1x4x32xf32> to vector<4x32xf32>
    %cst_62 = arith.constant dense<0.000000e+00> : vector<64x32xf32>
    %62 = tpu.matmul %59, %61, %cst_62 {dimension_numbers = #tpu.dot_dimension_numbers<[1], [0], [0], [1], [0, 0, 1, 1], [], []>} : vector<64x4xf32>, vector<4x32xf32>, vector<64x32xf32> -> vector<64x32xf32>
    %63 = arith.addf %56, %62 : vector<64x32xf32>
    %c0_63 = arith.constant 0 : index
    %c0_64 = arith.constant 0 : index
    %64 = vector.load %arg3[%c0_63, %c0_64] : memref<1x32xf32, #tpu.memory_space<vmem>>, vector<1x32xf32>
    %65 = vector.broadcast %64 : vector<1x32xf32> to vector<64x32xf32>
    %66 = arith.addf %63, %65 : vector<64x32xf32>
    %cst_65 = arith.constant 0.000000e+00 : f32
    %67 = vector.broadcast %cst_65 : f32 to vector<10x10x32xf32>
    %c0_66 = arith.constant 0 : index
    %c0_67 = arith.constant 0 : index
    %c0_68 = arith.constant 0 : index
    %68 = vector.load %arg7[%c0_66, %c0_67, %c0_68] : memref<10x10x32xf32, #tpu.memory_space<vmem>>, vector<10x10x32xf32>
    tpu.vector_store %arg7[%c0_66, %c0_67, %c0_68], %67 {strides = array<i32>} : memref<10x10x32xf32, #tpu.memory_space<vmem>>, vector<10x10x32xf32>,
    %69 = vector.shape_cast %66 : vector<64x32xf32> to vector<8x8x32xf32>
    %c1_69 = arith.constant 1 : index
    %c1_70 = arith.constant 1 : index
    %c0_71 = arith.constant 0 : index
    %70 = vector.load %arg7[%c1_69, %c1_70, %c0_71] : memref<10x10x32xf32, #tpu.memory_space<vmem>>, vector<8x8x32xf32>
    tpu.vector_store %arg7[%c1_69, %c1_70, %c0_71], %69 {strides = array<i32>} : memref<10x10x32xf32, #tpu.memory_space<vmem>>, vector<8x8x32xf32>,
    %cst_72 = arith.constant 0.000000e+00 : f32
    %71 = vector.broadcast %cst_72 : f32 to vector<64x8xf32>
    %c0_73 = arith.constant 0 : index
    %c0_74 = arith.constant 0 : index
    %c0_75 = arith.constant 0 : index
    %72 = vector.load %arg7[%c0_73, %c0_74, %c0_75] : memref<10x10x32xf32, #tpu.memory_space<vmem>>, vector<8x8x32xf32>
    %cst_76 = arith.constant 0.000000e+00 : f32
    %73 = vector.broadcast %cst_76 : f32 to vector<8x8x32xf32>
    %74 = arith.maximumf %72, %73 : vector<8x8x32xf32>
    %75 = vector.shape_cast %74 : vector<8x8x32xf32> to vector<64x32xf32>
    %c0_77 = arith.constant 0 : index
    %c0_78 = arith.constant 0 : index
    %c0_79 = arith.constant 0 : index
    %c0_80 = arith.constant 0 : index
    %76 = vector.load %arg4[%c0_77, %c0_78, %c0_79, %c0_80] : memref<2x9x32x8xf32, #tpu.memory_space<vmem>>, vector<1x1x32x8xf32>
    %77 = vector.shape_cast %76 : vector<1x1x32x8xf32> to vector<32x8xf32>
    %cst_81 = arith.constant dense<0.000000e+00> : vector<64x8xf32>
    %78 = tpu.matmul %75, %77, %cst_81 {dimension_numbers = #tpu.dot_dimension_numbers<[1], [0], [0], [1], [0, 0, 1, 1], [], []>} : vector<64x32xf32>, vector<32x8xf32>, vector<64x8xf32> -> vector<64x8xf32>
    %79 = arith.addf %71, %78 : vector<64x8xf32>
    %c0_82 = arith.constant 0 : index
    %c1_83 = arith.constant 1 : index
    %c0_84 = arith.constant 0 : index
    %80 = vector.load %arg7[%c0_82, %c1_83, %c0_84] : memref<10x10x32xf32, #tpu.memory_space<vmem>>, vector<8x8x32xf32>
    %cst_85 = arith.constant 0.000000e+00 : f32
    %81 = vector.broadcast %cst_85 : f32 to vector<8x8x32xf32>
    %82 = arith.maximumf %80, %81 : vector<8x8x32xf32>
    %83 = vector.shape_cast %82 : vector<8x8x32xf32> to vector<64x32xf32>
    %c0_86 = arith.constant 0 : index
    %c1_87 = arith.constant 1 : index
    %c0_88 = arith.constant 0 : index
    %c0_89 = arith.constant 0 : index
    %84 = vector.load %arg4[%c0_86, %c1_87, %c0_88, %c0_89] : memref<2x9x32x8xf32, #tpu.memory_space<vmem>>, vector<1x1x32x8xf32>
    %85 = vector.shape_cast %84 : vector<1x1x32x8xf32> to vector<32x8xf32>
    %cst_90 = arith.constant dense<0.000000e+00> : vector<64x8xf32>
    %86 = tpu.matmul %83, %85, %cst_90 {dimension_numbers = #tpu.dot_dimension_numbers<[1], [0], [0], [1], [0, 0, 1, 1], [], []>} : vector<64x32xf32>, vector<32x8xf32>, vector<64x8xf32> -> vector<64x8xf32>
    %87 = arith.addf %79, %86 : vector<64x8xf32>
    %c0_91 = arith.constant 0 : index
    %c2_92 = arith.constant 2 : index
    %c0_93 = arith.constant 0 : index
    %88 = vector.load %arg7[%c0_91, %c2_92, %c0_93] : memref<10x10x32xf32, #tpu.memory_space<vmem>>, vector<8x8x32xf32>
    %cst_94 = arith.constant 0.000000e+00 : f32
    %89 = vector.broadcast %cst_94 : f32 to vector<8x8x32xf32>
    %90 = arith.maximumf %88, %89 : vector<8x8x32xf32>
    %91 = vector.shape_cast %90 : vector<8x8x32xf32> to vector<64x32xf32>
    %c0_95 = arith.constant 0 : index
    %c2_96 = arith.constant 2 : index
    %c0_97 = arith.constant 0 : index
    %c0_98 = arith.constant 0 : index
    %92 = vector.load %arg4[%c0_95, %c2_96, %c0_97, %c0_98] : memref<2x9x32x8xf32, #tpu.memory_space<vmem>>, vector<1x1x32x8xf32>
    %93 = vector.shape_cast %92 : vector<1x1x32x8xf32> to vector<32x8xf32>
    %cst_99 = arith.constant dense<0.000000e+00> : vector<64x8xf32>
    %94 = tpu.matmul %91, %93, %cst_99 {dimension_numbers = #tpu.dot_dimension_numbers<[1], [0], [0], [1], [0, 0, 1, 1], [], []>} : vector<64x32xf32>, vector<32x8xf32>, vector<64x8xf32> -> vector<64x8xf32>
    %95 = arith.addf %87, %94 : vector<64x8xf32>
    %c1_100 = arith.constant 1 : index
    %c0_101 = arith.constant 0 : index
    %c0_102 = arith.constant 0 : index
    %96 = vector.load %arg7[%c1_100, %c0_101, %c0_102] : memref<10x10x32xf32, #tpu.memory_space<vmem>>, vector<8x8x32xf32>
    %cst_103 = arith.constant 0.000000e+00 : f32
    %97 = vector.broadcast %cst_103 : f32 to vector<8x8x32xf32>
    %98 = arith.maximumf %96, %97 : vector<8x8x32xf32>
    %99 = vector.shape_cast %98 : vector<8x8x32xf32> to vector<64x32xf32>
    %c0_104 = arith.constant 0 : index
    %c3_105 = arith.constant 3 : index
    %c0_106 = arith.constant 0 : index
    %c0_107 = arith.constant 0 : index
    %100 = vector.load %arg4[%c0_104, %c3_105, %c0_106, %c0_107] : memref<2x9x32x8xf32, #tpu.memory_space<vmem>>, vector<1x1x32x8xf32>
    %101 = vector.shape_cast %100 : vector<1x1x32x8xf32> to vector<32x8xf32>
    %cst_108 = arith.constant dense<0.000000e+00> : vector<64x8xf32>
    %102 = tpu.matmul %99, %101, %cst_108 {dimension_numbers = #tpu.dot_dimension_numbers<[1], [0], [0], [1], [0, 0, 1, 1], [], []>} : vector<64x32xf32>, vector<32x8xf32>, vector<64x8xf32> -> vector<64x8xf32>
    %103 = arith.addf %95, %102 : vector<64x8xf32>
    %c1_109 = arith.constant 1 : index
    %c1_110 = arith.constant 1 : index
    %c0_111 = arith.constant 0 : index
    %104 = vector.load %arg7[%c1_109, %c1_110, %c0_111] : memref<10x10x32xf32, #tpu.memory_space<vmem>>, vector<8x8x32xf32>
    %cst_112 = arith.constant 0.000000e+00 : f32
    %105 = vector.broadcast %cst_112 : f32 to vector<8x8x32xf32>
    %106 = arith.maximumf %104, %105 : vector<8x8x32xf32>
    %107 = vector.shape_cast %106 : vector<8x8x32xf32> to vector<64x32xf32>
    %c0_113 = arith.constant 0 : index
    %c4_114 = arith.constant 4 : index
    %c0_115 = arith.constant 0 : index
    %c0_116 = arith.constant 0 : index
    %108 = vector.load %arg4[%c0_113, %c4_114, %c0_115, %c0_116] : memref<2x9x32x8xf32, #tpu.memory_space<vmem>>, vector<1x1x32x8xf32>
    %109 = vector.shape_cast %108 : vector<1x1x32x8xf32> to vector<32x8xf32>
    %cst_117 = arith.constant dense<0.000000e+00> : vector<64x8xf32>
    %110 = tpu.matmul %107, %109, %cst_117 {dimension_numbers = #tpu.dot_dimension_numbers<[1], [0], [0], [1], [0, 0, 1, 1], [], []>} : vector<64x32xf32>, vector<32x8xf32>, vector<64x8xf32> -> vector<64x8xf32>
    %111 = arith.addf %103, %110 : vector<64x8xf32>
    %c1_118 = arith.constant 1 : index
    %c2_119 = arith.constant 2 : index
    %c0_120 = arith.constant 0 : index
    %112 = vector.load %arg7[%c1_118, %c2_119, %c0_120] : memref<10x10x32xf32, #tpu.memory_space<vmem>>, vector<8x8x32xf32>
    %cst_121 = arith.constant 0.000000e+00 : f32
    %113 = vector.broadcast %cst_121 : f32 to vector<8x8x32xf32>
    %114 = arith.maximumf %112, %113 : vector<8x8x32xf32>
    %115 = vector.shape_cast %114 : vector<8x8x32xf32> to vector<64x32xf32>
    %c0_122 = arith.constant 0 : index
    %c5_123 = arith.constant 5 : index
    %c0_124 = arith.constant 0 : index
    %c0_125 = arith.constant 0 : index
    %116 = vector.load %arg4[%c0_122, %c5_123, %c0_124, %c0_125] : memref<2x9x32x8xf32, #tpu.memory_space<vmem>>, vector<1x1x32x8xf32>
    %117 = vector.shape_cast %116 : vector<1x1x32x8xf32> to vector<32x8xf32>
    %cst_126 = arith.constant dense<0.000000e+00> : vector<64x8xf32>
    %118 = tpu.matmul %115, %117, %cst_126 {dimension_numbers = #tpu.dot_dimension_numbers<[1], [0], [0], [1], [0, 0, 1, 1], [], []>} : vector<64x32xf32>, vector<32x8xf32>, vector<64x8xf32> -> vector<64x8xf32>
    %119 = arith.addf %111, %118 : vector<64x8xf32>
    %c2_127 = arith.constant 2 : index
    %c0_128 = arith.constant 0 : index
    %c0_129 = arith.constant 0 : index
    %120 = vector.load %arg7[%c2_127, %c0_128, %c0_129] : memref<10x10x32xf32, #tpu.memory_space<vmem>>, vector<8x8x32xf32>
    %cst_130 = arith.constant 0.000000e+00 : f32
    %121 = vector.broadcast %cst_130 : f32 to vector<8x8x32xf32>
    %122 = arith.maximumf %120, %121 : vector<8x8x32xf32>
    %123 = vector.shape_cast %122 : vector<8x8x32xf32> to vector<64x32xf32>
    %c0_131 = arith.constant 0 : index
    %c6_132 = arith.constant 6 : index
    %c0_133 = arith.constant 0 : index
    %c0_134 = arith.constant 0 : index
    %124 = vector.load %arg4[%c0_131, %c6_132, %c0_133, %c0_134] : memref<2x9x32x8xf32, #tpu.memory_space<vmem>>, vector<1x1x32x8xf32>
    %125 = vector.shape_cast %124 : vector<1x1x32x8xf32> to vector<32x8xf32>
    %cst_135 = arith.constant dense<0.000000e+00> : vector<64x8xf32>
    %126 = tpu.matmul %123, %125, %cst_135 {dimension_numbers = #tpu.dot_dimension_numbers<[1], [0], [0], [1], [0, 0, 1, 1], [], []>} : vector<64x32xf32>, vector<32x8xf32>, vector<64x8xf32> -> vector<64x8xf32>
    %127 = arith.addf %119, %126 : vector<64x8xf32>
    %c2_136 = arith.constant 2 : index
    %c1_137 = arith.constant 1 : index
    %c0_138 = arith.constant 0 : index
    %128 = vector.load %arg7[%c2_136, %c1_137, %c0_138] : memref<10x10x32xf32, #tpu.memory_space<vmem>>, vector<8x8x32xf32>
    %cst_139 = arith.constant 0.000000e+00 : f32
    %129 = vector.broadcast %cst_139 : f32 to vector<8x8x32xf32>
    %130 = arith.maximumf %128, %129 : vector<8x8x32xf32>
    %131 = vector.shape_cast %130 : vector<8x8x32xf32> to vector<64x32xf32>
    %c0_140 = arith.constant 0 : index
    %c7_141 = arith.constant 7 : index
    %c0_142 = arith.constant 0 : index
    %c0_143 = arith.constant 0 : index
    %132 = vector.load %arg4[%c0_140, %c7_141, %c0_142, %c0_143] : memref<2x9x32x8xf32, #tpu.memory_space<vmem>>, vector<1x1x32x8xf32>
    %133 = vector.shape_cast %132 : vector<1x1x32x8xf32> to vector<32x8xf32>
    %cst_144 = arith.constant dense<0.000000e+00> : vector<64x8xf32>
    %134 = tpu.matmul %131, %133, %cst_144 {dimension_numbers = #tpu.dot_dimension_numbers<[1], [0], [0], [1], [0, 0, 1, 1], [], []>} : vector<64x32xf32>, vector<32x8xf32>, vector<64x8xf32> -> vector<64x8xf32>
    %135 = arith.addf %127, %134 : vector<64x8xf32>
    %c2_145 = arith.constant 2 : index
    %c2_146 = arith.constant 2 : index
    %c0_147 = arith.constant 0 : index
    %136 = vector.load %arg7[%c2_145, %c2_146, %c0_147] : memref<10x10x32xf32, #tpu.memory_space<vmem>>, vector<8x8x32xf32>
    %cst_148 = arith.constant 0.000000e+00 : f32
    %137 = vector.broadcast %cst_148 : f32 to vector<8x8x32xf32>
    %138 = arith.maximumf %136, %137 : vector<8x8x32xf32>
    %139 = vector.shape_cast %138 : vector<8x8x32xf32> to vector<64x32xf32>
    %c0_149 = arith.constant 0 : index
    %c8_150 = arith.constant 8 : index
    %c0_151 = arith.constant 0 : index
    %c0_152 = arith.constant 0 : index
    %140 = vector.load %arg4[%c0_149, %c8_150, %c0_151, %c0_152] : memref<2x9x32x8xf32, #tpu.memory_space<vmem>>, vector<1x1x32x8xf32>
    %141 = vector.shape_cast %140 : vector<1x1x32x8xf32> to vector<32x8xf32>
    %cst_153 = arith.constant dense<0.000000e+00> : vector<64x8xf32>
    %142 = tpu.matmul %139, %141, %cst_153 {dimension_numbers = #tpu.dot_dimension_numbers<[1], [0], [0], [1], [0, 0, 1, 1], [], []>} : vector<64x32xf32>, vector<32x8xf32>, vector<64x8xf32> -> vector<64x8xf32>
    %143 = arith.addf %135, %142 : vector<64x8xf32>
    %cst_154 = arith.constant 0.000000e+00 : f32
    %144 = vector.broadcast %cst_154 : f32 to vector<64x8xf32>
    %145 = arith.maximumf %143, %144 : vector<64x8xf32>
    %c0_155 = arith.constant 0 : index
    %c0_156 = arith.constant 0 : index
    %c0_157 = arith.constant 0 : index
    %146 = vector.load %arg5[%c0_155, %c0_156, %c0_157] : memref<2x8x32xf32, #tpu.memory_space<vmem>>, vector<1x8x32xf32>
    %147 = vector.shape_cast %146 : vector<1x8x32xf32> to vector<8x32xf32>
    %cst_158 = arith.constant dense<0.000000e+00> : vector<64x32xf32>
    %148 = tpu.matmul %145, %147, %cst_158 {dimension_numbers = #tpu.dot_dimension_numbers<[1], [0], [0], [1], [0, 0, 1, 1], [], []>} : vector<64x8xf32>, vector<8x32xf32>, vector<64x32xf32> -> vector<64x32xf32>
    %c1_159 = arith.constant 1 : index
    %c1_160 = arith.constant 1 : index
    %c0_161 = arith.constant 0 : index
    %149 = vector.load %arg7[%c1_159, %c1_160, %c0_161] : memref<10x10x32xf32, #tpu.memory_space<vmem>>, vector<8x8x32xf32>
    %150 = vector.shape_cast %149 : vector<8x8x32xf32> to vector<64x32xf32>
    %151 = arith.addf %150, %148 : vector<64x32xf32>
    %152 = vector.shape_cast %151 : vector<64x32xf32> to vector<8x8x32xf32>
    %c1_162 = arith.constant 1 : index
    %c1_163 = arith.constant 1 : index
    %c0_164 = arith.constant 0 : index
    %153 = vector.load %arg7[%c1_162, %c1_163, %c0_164] : memref<10x10x32xf32, #tpu.memory_space<vmem>>, vector<8x8x32xf32>
    tpu.vector_store %arg7[%c1_162, %c1_163, %c0_164], %152 {strides = array<i32>} : memref<10x10x32xf32, #tpu.memory_space<vmem>>, vector<8x8x32xf32>,
    %cst_165 = arith.constant 0.000000e+00 : f32
    %154 = vector.broadcast %cst_165 : f32 to vector<64x8xf32>
    %c0_166 = arith.constant 0 : index
    %c0_167 = arith.constant 0 : index
    %c0_168 = arith.constant 0 : index
    %155 = vector.load %arg7[%c0_166, %c0_167, %c0_168] : memref<10x10x32xf32, #tpu.memory_space<vmem>>, vector<8x8x32xf32>
    %cst_169 = arith.constant 0.000000e+00 : f32
    %156 = vector.broadcast %cst_169 : f32 to vector<8x8x32xf32>
    %157 = arith.maximumf %155, %156 : vector<8x8x32xf32>
    %158 = vector.shape_cast %157 : vector<8x8x32xf32> to vector<64x32xf32>
    %c1_170 = arith.constant 1 : index
    %c0_171 = arith.constant 0 : index
    %c0_172 = arith.constant 0 : index
    %c0_173 = arith.constant 0 : index
    %159 = vector.load %arg4[%c1_170, %c0_171, %c0_172, %c0_173] : memref<2x9x32x8xf32, #tpu.memory_space<vmem>>, vector<1x1x32x8xf32>
    %160 = vector.shape_cast %159 : vector<1x1x32x8xf32> to vector<32x8xf32>
    %cst_174 = arith.constant dense<0.000000e+00> : vector<64x8xf32>
    %161 = tpu.matmul %158, %160, %cst_174 {dimension_numbers = #tpu.dot_dimension_numbers<[1], [0], [0], [1], [0, 0, 1, 1], [], []>} : vector<64x32xf32>, vector<32x8xf32>, vector<64x8xf32> -> vector<64x8xf32>
    %162 = arith.addf %154, %161 : vector<64x8xf32>
    %c0_175 = arith.constant 0 : index
    %c1_176 = arith.constant 1 : index
    %c0_177 = arith.constant 0 : index
    %163 = vector.load %arg7[%c0_175, %c1_176, %c0_177] : memref<10x10x32xf32, #tpu.memory_space<vmem>>, vector<8x8x32xf32>
    %cst_178 = arith.constant 0.000000e+00 : f32
    %164 = vector.broadcast %cst_178 : f32 to vector<8x8x32xf32>
    %165 = arith.maximumf %163, %164 : vector<8x8x32xf32>
    %166 = vector.shape_cast %165 : vector<8x8x32xf32> to vector<64x32xf32>
    %c1_179 = arith.constant 1 : index
    %c1_180 = arith.constant 1 : index
    %c0_181 = arith.constant 0 : index
    %c0_182 = arith.constant 0 : index
    %167 = vector.load %arg4[%c1_179, %c1_180, %c0_181, %c0_182] : memref<2x9x32x8xf32, #tpu.memory_space<vmem>>, vector<1x1x32x8xf32>
    %168 = vector.shape_cast %167 : vector<1x1x32x8xf32> to vector<32x8xf32>
    %cst_183 = arith.constant dense<0.000000e+00> : vector<64x8xf32>
    %169 = tpu.matmul %166, %168, %cst_183 {dimension_numbers = #tpu.dot_dimension_numbers<[1], [0], [0], [1], [0, 0, 1, 1], [], []>} : vector<64x32xf32>, vector<32x8xf32>, vector<64x8xf32> -> vector<64x8xf32>
    %170 = arith.addf %162, %169 : vector<64x8xf32>
    %c0_184 = arith.constant 0 : index
    %c2_185 = arith.constant 2 : index
    %c0_186 = arith.constant 0 : index
    %171 = vector.load %arg7[%c0_184, %c2_185, %c0_186] : memref<10x10x32xf32, #tpu.memory_space<vmem>>, vector<8x8x32xf32>
    %cst_187 = arith.constant 0.000000e+00 : f32
    %172 = vector.broadcast %cst_187 : f32 to vector<8x8x32xf32>
    %173 = arith.maximumf %171, %172 : vector<8x8x32xf32>
    %174 = vector.shape_cast %173 : vector<8x8x32xf32> to vector<64x32xf32>
    %c1_188 = arith.constant 1 : index
    %c2_189 = arith.constant 2 : index
    %c0_190 = arith.constant 0 : index
    %c0_191 = arith.constant 0 : index
    %175 = vector.load %arg4[%c1_188, %c2_189, %c0_190, %c0_191] : memref<2x9x32x8xf32, #tpu.memory_space<vmem>>, vector<1x1x32x8xf32>
    %176 = vector.shape_cast %175 : vector<1x1x32x8xf32> to vector<32x8xf32>
    %cst_192 = arith.constant dense<0.000000e+00> : vector<64x8xf32>
    %177 = tpu.matmul %174, %176, %cst_192 {dimension_numbers = #tpu.dot_dimension_numbers<[1], [0], [0], [1], [0, 0, 1, 1], [], []>} : vector<64x32xf32>, vector<32x8xf32>, vector<64x8xf32> -> vector<64x8xf32>
    %178 = arith.addf %170, %177 : vector<64x8xf32>
    %c1_193 = arith.constant 1 : index
    %c0_194 = arith.constant 0 : index
    %c0_195 = arith.constant 0 : index
    %179 = vector.load %arg7[%c1_193, %c0_194, %c0_195] : memref<10x10x32xf32, #tpu.memory_space<vmem>>, vector<8x8x32xf32>
    %cst_196 = arith.constant 0.000000e+00 : f32
    %180 = vector.broadcast %cst_196 : f32 to vector<8x8x32xf32>
    %181 = arith.maximumf %179, %180 : vector<8x8x32xf32>
    %182 = vector.shape_cast %181 : vector<8x8x32xf32> to vector<64x32xf32>
    %c1_197 = arith.constant 1 : index
    %c3_198 = arith.constant 3 : index
    %c0_199 = arith.constant 0 : index
    %c0_200 = arith.constant 0 : index
    %183 = vector.load %arg4[%c1_197, %c3_198, %c0_199, %c0_200] : memref<2x9x32x8xf32, #tpu.memory_space<vmem>>, vector<1x1x32x8xf32>
    %184 = vector.shape_cast %183 : vector<1x1x32x8xf32> to vector<32x8xf32>
    %cst_201 = arith.constant dense<0.000000e+00> : vector<64x8xf32>
    %185 = tpu.matmul %182, %184, %cst_201 {dimension_numbers = #tpu.dot_dimension_numbers<[1], [0], [0], [1], [0, 0, 1, 1], [], []>} : vector<64x32xf32>, vector<32x8xf32>, vector<64x8xf32> -> vector<64x8xf32>
    %186 = arith.addf %178, %185 : vector<64x8xf32>
    %c1_202 = arith.constant 1 : index
    %c1_203 = arith.constant 1 : index
    %c0_204 = arith.constant 0 : index
    %187 = vector.load %arg7[%c1_202, %c1_203, %c0_204] : memref<10x10x32xf32, #tpu.memory_space<vmem>>, vector<8x8x32xf32>
    %cst_205 = arith.constant 0.000000e+00 : f32
    %188 = vector.broadcast %cst_205 : f32 to vector<8x8x32xf32>
    %189 = arith.maximumf %187, %188 : vector<8x8x32xf32>
    %190 = vector.shape_cast %189 : vector<8x8x32xf32> to vector<64x32xf32>
    %c1_206 = arith.constant 1 : index
    %c4_207 = arith.constant 4 : index
    %c0_208 = arith.constant 0 : index
    %c0_209 = arith.constant 0 : index
    %191 = vector.load %arg4[%c1_206, %c4_207, %c0_208, %c0_209] : memref<2x9x32x8xf32, #tpu.memory_space<vmem>>, vector<1x1x32x8xf32>
    %192 = vector.shape_cast %191 : vector<1x1x32x8xf32> to vector<32x8xf32>
    %cst_210 = arith.constant dense<0.000000e+00> : vector<64x8xf32>
    %193 = tpu.matmul %190, %192, %cst_210 {dimension_numbers = #tpu.dot_dimension_numbers<[1], [0], [0], [1], [0, 0, 1, 1], [], []>} : vector<64x32xf32>, vector<32x8xf32>, vector<64x8xf32> -> vector<64x8xf32>
    %194 = arith.addf %186, %193 : vector<64x8xf32>
    %c1_211 = arith.constant 1 : index
    %c2_212 = arith.constant 2 : index
    %c0_213 = arith.constant 0 : index
    %195 = vector.load %arg7[%c1_211, %c2_212, %c0_213] : memref<10x10x32xf32, #tpu.memory_space<vmem>>, vector<8x8x32xf32>
    %cst_214 = arith.constant 0.000000e+00 : f32
    %196 = vector.broadcast %cst_214 : f32 to vector<8x8x32xf32>
    %197 = arith.maximumf %195, %196 : vector<8x8x32xf32>
    %198 = vector.shape_cast %197 : vector<8x8x32xf32> to vector<64x32xf32>
    %c1_215 = arith.constant 1 : index
    %c5_216 = arith.constant 5 : index
    %c0_217 = arith.constant 0 : index
    %c0_218 = arith.constant 0 : index
    %199 = vector.load %arg4[%c1_215, %c5_216, %c0_217, %c0_218] : memref<2x9x32x8xf32, #tpu.memory_space<vmem>>, vector<1x1x32x8xf32>
    %200 = vector.shape_cast %199 : vector<1x1x32x8xf32> to vector<32x8xf32>
    %cst_219 = arith.constant dense<0.000000e+00> : vector<64x8xf32>
    %201 = tpu.matmul %198, %200, %cst_219 {dimension_numbers = #tpu.dot_dimension_numbers<[1], [0], [0], [1], [0, 0, 1, 1], [], []>} : vector<64x32xf32>, vector<32x8xf32>, vector<64x8xf32> -> vector<64x8xf32>
    %202 = arith.addf %194, %201 : vector<64x8xf32>
    %c2_220 = arith.constant 2 : index
    %c0_221 = arith.constant 0 : index
    %c0_222 = arith.constant 0 : index
    %203 = vector.load %arg7[%c2_220, %c0_221, %c0_222] : memref<10x10x32xf32, #tpu.memory_space<vmem>>, vector<8x8x32xf32>
    %cst_223 = arith.constant 0.000000e+00 : f32
    %204 = vector.broadcast %cst_223 : f32 to vector<8x8x32xf32>
    %205 = arith.maximumf %203, %204 : vector<8x8x32xf32>
    %206 = vector.shape_cast %205 : vector<8x8x32xf32> to vector<64x32xf32>
    %c1_224 = arith.constant 1 : index
    %c6_225 = arith.constant 6 : index
    %c0_226 = arith.constant 0 : index
    %c0_227 = arith.constant 0 : index
    %207 = vector.load %arg4[%c1_224, %c6_225, %c0_226, %c0_227] : memref<2x9x32x8xf32, #tpu.memory_space<vmem>>, vector<1x1x32x8xf32>
    %208 = vector.shape_cast %207 : vector<1x1x32x8xf32> to vector<32x8xf32>
    %cst_228 = arith.constant dense<0.000000e+00> : vector<64x8xf32>
    %209 = tpu.matmul %206, %208, %cst_228 {dimension_numbers = #tpu.dot_dimension_numbers<[1], [0], [0], [1], [0, 0, 1, 1], [], []>} : vector<64x32xf32>, vector<32x8xf32>, vector<64x8xf32> -> vector<64x8xf32>
    %210 = arith.addf %202, %209 : vector<64x8xf32>
    %c2_229 = arith.constant 2 : index
    %c1_230 = arith.constant 1 : index
    %c0_231 = arith.constant 0 : index
    %211 = vector.load %arg7[%c2_229, %c1_230, %c0_231] : memref<10x10x32xf32, #tpu.memory_space<vmem>>, vector<8x8x32xf32>
    %cst_232 = arith.constant 0.000000e+00 : f32
    %212 = vector.broadcast %cst_232 : f32 to vector<8x8x32xf32>
    %213 = arith.maximumf %211, %212 : vector<8x8x32xf32>
    %214 = vector.shape_cast %213 : vector<8x8x32xf32> to vector<64x32xf32>
    %c1_233 = arith.constant 1 : index
    %c7_234 = arith.constant 7 : index
    %c0_235 = arith.constant 0 : index
    %c0_236 = arith.constant 0 : index
    %215 = vector.load %arg4[%c1_233, %c7_234, %c0_235, %c0_236] : memref<2x9x32x8xf32, #tpu.memory_space<vmem>>, vector<1x1x32x8xf32>
    %216 = vector.shape_cast %215 : vector<1x1x32x8xf32> to vector<32x8xf32>
    %cst_237 = arith.constant dense<0.000000e+00> : vector<64x8xf32>
    %217 = tpu.matmul %214, %216, %cst_237 {dimension_numbers = #tpu.dot_dimension_numbers<[1], [0], [0], [1], [0, 0, 1, 1], [], []>} : vector<64x32xf32>, vector<32x8xf32>, vector<64x8xf32> -> vector<64x8xf32>
    %218 = arith.addf %210, %217 : vector<64x8xf32>
    %c2_238 = arith.constant 2 : index
    %c2_239 = arith.constant 2 : index
    %c0_240 = arith.constant 0 : index
    %219 = vector.load %arg7[%c2_238, %c2_239, %c0_240] : memref<10x10x32xf32, #tpu.memory_space<vmem>>, vector<8x8x32xf32>
    %cst_241 = arith.constant 0.000000e+00 : f32
    %220 = vector.broadcast %cst_241 : f32 to vector<8x8x32xf32>
    %221 = arith.maximumf %219, %220 : vector<8x8x32xf32>
    %222 = vector.shape_cast %221 : vector<8x8x32xf32> to vector<64x32xf32>
    %c1_242 = arith.constant 1 : index
    %c8_243 = arith.constant 8 : index
    %c0_244 = arith.constant 0 : index
    %c0_245 = arith.constant 0 : index
    %223 = vector.load %arg4[%c1_242, %c8_243, %c0_244, %c0_245] : memref<2x9x32x8xf32, #tpu.memory_space<vmem>>, vector<1x1x32x8xf32>
    %224 = vector.shape_cast %223 : vector<1x1x32x8xf32> to vector<32x8xf32>
    %cst_246 = arith.constant dense<0.000000e+00> : vector<64x8xf32>
    %225 = tpu.matmul %222, %224, %cst_246 {dimension_numbers = #tpu.dot_dimension_numbers<[1], [0], [0], [1], [0, 0, 1, 1], [], []>} : vector<64x32xf32>, vector<32x8xf32>, vector<64x8xf32> -> vector<64x8xf32>
    %226 = arith.addf %218, %225 : vector<64x8xf32>
    %cst_247 = arith.constant 0.000000e+00 : f32
    %227 = vector.broadcast %cst_247 : f32 to vector<64x8xf32>
    %228 = arith.maximumf %226, %227 : vector<64x8xf32>
    %c1_248 = arith.constant 1 : index
    %c0_249 = arith.constant 0 : index
    %c0_250 = arith.constant 0 : index
    %229 = vector.load %arg5[%c1_248, %c0_249, %c0_250] : memref<2x8x32xf32, #tpu.memory_space<vmem>>, vector<1x8x32xf32>
    %230 = vector.shape_cast %229 : vector<1x8x32xf32> to vector<8x32xf32>
    %cst_251 = arith.constant dense<0.000000e+00> : vector<64x32xf32>
    %231 = tpu.matmul %228, %230, %cst_251 {dimension_numbers = #tpu.dot_dimension_numbers<[1], [0], [0], [1], [0, 0, 1, 1], [], []>} : vector<64x8xf32>, vector<8x32xf32>, vector<64x32xf32> -> vector<64x32xf32>
    %c1_252 = arith.constant 1 : index
    %c1_253 = arith.constant 1 : index
    %c0_254 = arith.constant 0 : index
    %232 = vector.load %arg7[%c1_252, %c1_253, %c0_254] : memref<10x10x32xf32, #tpu.memory_space<vmem>>, vector<8x8x32xf32>
    %233 = vector.shape_cast %232 : vector<8x8x32xf32> to vector<64x32xf32>
    %234 = arith.addf %233, %231 : vector<64x32xf32>
    %235 = vector.shape_cast %234 : vector<64x32xf32> to vector<8x8x32xf32>
    %c1_255 = arith.constant 1 : index
    %c1_256 = arith.constant 1 : index
    %c0_257 = arith.constant 0 : index
    %236 = vector.load %arg7[%c1_255, %c1_256, %c0_257] : memref<10x10x32xf32, #tpu.memory_space<vmem>>, vector<8x8x32xf32>
    tpu.vector_store %arg7[%c1_255, %c1_256, %c0_257], %235 {strides = array<i32>} : memref<10x10x32xf32, #tpu.memory_space<vmem>>, vector<8x8x32xf32>,
    %c0_258 = arith.constant 0 : index
    %c0_259 = arith.constant 0 : index
    %c0_260 = arith.constant 0 : index
    %237 = vector.load %arg7[%c0_258, %c0_259, %c0_260] : memref<10x10x32xf32, #tpu.memory_space<vmem>>, vector<10x10x32xf32>
    %cst_261 = arith.constant 0.000000e+00 : f32
    %238 = vector.broadcast %cst_261 : f32 to vector<10x10x32xf32>
    %239 = arith.maximumf %237, %238 : vector<10x10x32xf32>
    %c0_262 = arith.constant 0 : index
    %c0_263 = arith.constant 0 : index
    %c0_264 = arith.constant 0 : index
    %c0_265 = arith.constant 0 : index
    %240 = vector.load %arg6[%c0_262, %c0_263, %c0_264, %c0_265] : memref<1x10x10x32xf32, #tpu.memory_space<vmem>>, vector<1x10x10x32xf32>
    %241 = vector.shape_cast %240 : vector<1x10x10x32xf32> to vector<10x10x32xf32>
    %242 = vector.shape_cast %239 : vector<10x10x32xf32> to vector<1x10x10x32xf32>
    tpu.vector_store %arg6[%c0_262, %c0_263, %c0_264, %c0_265], %242 {strides = array<i32>} : memref<1x10x10x32xf32, #tpu.memory_space<vmem>>, vector<1x10x10x32xf32>,
    return
  }
  func.func @transform_0(%arg0: i32) -> (i32, i32, i32, i32) {
    %c0_i32 = arith.constant 0 : i32
    %c0_i32_0 = arith.constant 0 : i32
    %c0_i32_1 = arith.constant 0 : i32
    %c0_i32_2 = arith.constant 0 : i32
    return %arg0, %c0_i32, %c0_i32_0, %c0_i32_1 : i32, i32, i32, i32
  }
  func.func @transform_1(%arg0: i32) -> (i32, i32, i32) {
    %c0_i32 = arith.constant 0 : i32
    %c0_i32_0 = arith.constant 0 : i32
    %c0_i32_1 = arith.constant 0 : i32
    %c0_i32_2 = arith.constant 0 : i32
    return %c0_i32, %c0_i32_0, %c0_i32_1 : i32, i32, i32
  }
  func.func @transform_2(%arg0: i32) -> (i32, i32) {
    %c0_i32 = arith.constant 0 : i32
    %c0_i32_0 = arith.constant 0 : i32
    %c0_i32_1 = arith.constant 0 : i32
    return %c0_i32, %c0_i32_0 : i32, i32
  }
  func.func @transform_3(%arg0: i32) -> (i32, i32, i32, i32) {
    %c0_i32 = arith.constant 0 : i32
    %c0_i32_0 = arith.constant 0 : i32
    %c0_i32_1 = arith.constant 0 : i32
    %c0_i32_2 = arith.constant 0 : i32
    %c0_i32_3 = arith.constant 0 : i32
    return %c0_i32, %c0_i32_0, %c0_i32_1, %c0_i32_2 : i32, i32, i32, i32
  }
  func.func @transform_4(%arg0: i32) -> (i32, i32, i32) {
    %c0_i32 = arith.constant 0 : i32
    %c0_i32_0 = arith.constant 0 : i32
    %c0_i32_1 = arith.constant 0 : i32
    %c0_i32_2 = arith.constant 0 : i32
    return %c0_i32, %c0_i32_0, %c0_i32_1 : i32, i32, i32
  }
  func.func @transform_5(%arg0: i32) -> (i32, i32, i32, i32) {
    %c0_i32 = arith.constant 0 : i32
    %c0_i32_0 = arith.constant 0 : i32
    %c0_i32_1 = arith.constant 0 : i32
    %c0_i32_2 = arith.constant 0 : i32
    return %arg0, %c0_i32, %c0_i32_0, %c0_i32_1 : i32, i32, i32, i32
  }
}

module attributes {stable_mosaic.version = 11 : i64} {
  func.func @_deconv_kernel(%arg0: i32, %arg1: i32, %arg2: memref<1x10x10x32xf32, #tpu.memory_space<vmem>>, %arg3: memref<16x32x16xf32, #tpu.memory_space<vmem>>, %arg4: memref<1x16xf32, #tpu.memory_space<vmem>>, %arg5: memref<1x8x2x8x32xf32, #tpu.memory_space<vmem>>) attributes {dimension_semantics = [#tpu.dimension_semantics<parallel>, #tpu.dimension_semantics<parallel>], iteration_bounds = array<i64: 2, 1>, scalar_prefetch = 0 : i64, scratch_operands = 0 : i64, tpu.core_type = #tpu.core_type<tc>, window_params = [{transform_indices = @transform_0, window_bounds = array<i64: 1, 10, 10, 32>}, {pipeline_mode = #tpu.pipeline_mode<synchronous>, transform_indices = @transform_1, window_bounds = array<i64: 16, 32, 16>}, {pipeline_mode = #tpu.pipeline_mode<synchronous>, transform_indices = @transform_2, window_bounds = array<i64: 1, 16>}, {transform_indices = @transform_3, window_bounds = array<i64: 1, 8, 2, 8, 32>}]} {
    %c8_i32 = arith.constant 8 : i32
    %0 = arith.muli %arg1, %c8_i32 : i32
    %1 = tpu.assume_multiple %0, 8 : i32
    %c0 = arith.constant 0 : index
    %c0_0 = arith.constant 0 : index
    %2 = vector.load %arg4[%c0, %c0_0] : memref<1x16xf32, #tpu.memory_space<vmem>>, vector<1x16xf32>
    %cst = arith.constant 0.000000e+00 : f32
    %3 = vector.broadcast %cst : f32 to vector<64x16xf32>
    %c0_i32 = arith.constant 0 : i32
    %4 = arith.addi %1, %c0_i32 : i32
    %c0_i32_1 = arith.constant 0 : i32
    %5 = arith.addi %4, %c0_i32_1 : i32
    %c0_2 = arith.constant 0 : index
    %6 = arith.index_cast %5 : i32 to index
    %c0_3 = arith.constant 0 : index
    %c0_4 = arith.constant 0 : index
    %7 = vector.load %arg2[%c0_2, %6, %c0_3, %c0_4] : memref<1x10x10x32xf32, #tpu.memory_space<vmem>>, vector<1x8x8x32xf32>
    %8 = vector.shape_cast %7 : vector<1x8x8x32xf32> to vector<8x8x32xf32>
    %9 = vector.shape_cast %8 : vector<8x8x32xf32> to vector<64x32xf32>
    %c0_5 = arith.constant 0 : index
    %c0_6 = arith.constant 0 : index
    %c0_7 = arith.constant 0 : index
    %10 = vector.load %arg3[%c0_5, %c0_6, %c0_7] : memref<16x32x16xf32, #tpu.memory_space<vmem>>, vector<1x32x16xf32>
    %11 = vector.shape_cast %10 : vector<1x32x16xf32> to vector<32x16xf32>
    %cst_8 = arith.constant dense<0.000000e+00> : vector<64x16xf32>
    %12 = tpu.matmul %9, %11, %cst_8 {dimension_numbers = #tpu.dot_dimension_numbers<[1], [0], [0], [1], [0, 0, 1, 1], [], []>} : vector<64x32xf32>, vector<32x16xf32>, vector<64x16xf32> -> vector<64x16xf32>
    %13 = arith.addf %3, %12 : vector<64x16xf32>
    %c0_i32_9 = arith.constant 0 : i32
    %14 = arith.addi %1, %c0_i32_9 : i32
    %c0_i32_10 = arith.constant 0 : i32
    %15 = arith.addi %14, %c0_i32_10 : i32
    %c0_11 = arith.constant 0 : index
    %16 = arith.index_cast %15 : i32 to index
    %c1 = arith.constant 1 : index
    %c0_12 = arith.constant 0 : index
    %17 = vector.load %arg2[%c0_11, %16, %c1, %c0_12] : memref<1x10x10x32xf32, #tpu.memory_space<vmem>>, vector<1x8x8x32xf32>
    %18 = vector.shape_cast %17 : vector<1x8x8x32xf32> to vector<8x8x32xf32>
    %19 = vector.shape_cast %18 : vector<8x8x32xf32> to vector<64x32xf32>
    %c1_13 = arith.constant 1 : index
    %c0_14 = arith.constant 0 : index
    %c0_15 = arith.constant 0 : index
    %20 = vector.load %arg3[%c1_13, %c0_14, %c0_15] : memref<16x32x16xf32, #tpu.memory_space<vmem>>, vector<1x32x16xf32>
    %21 = vector.shape_cast %20 : vector<1x32x16xf32> to vector<32x16xf32>
    %cst_16 = arith.constant dense<0.000000e+00> : vector<64x16xf32>
    %22 = tpu.matmul %19, %21, %cst_16 {dimension_numbers = #tpu.dot_dimension_numbers<[1], [0], [0], [1], [0, 0, 1, 1], [], []>} : vector<64x32xf32>, vector<32x16xf32>, vector<64x16xf32> -> vector<64x16xf32>
    %23 = arith.addf %13, %22 : vector<64x16xf32>
    %c1_i32 = arith.constant 1 : i32
    %24 = arith.addi %1, %c1_i32 : i32
    %c0_i32_17 = arith.constant 0 : i32
    %25 = arith.addi %24, %c0_i32_17 : i32
    %c0_18 = arith.constant 0 : index
    %26 = arith.index_cast %25 : i32 to index
    %c0_19 = arith.constant 0 : index
    %c0_20 = arith.constant 0 : index
    %27 = vector.load %arg2[%c0_18, %26, %c0_19, %c0_20] : memref<1x10x10x32xf32, #tpu.memory_space<vmem>>, vector<1x8x8x32xf32>
    %28 = vector.shape_cast %27 : vector<1x8x8x32xf32> to vector<8x8x32xf32>
    %29 = vector.shape_cast %28 : vector<8x8x32xf32> to vector<64x32xf32>
    %c2 = arith.constant 2 : index
    %c0_21 = arith.constant 0 : index
    %c0_22 = arith.constant 0 : index
    %30 = vector.load %arg3[%c2, %c0_21, %c0_22] : memref<16x32x16xf32, #tpu.memory_space<vmem>>, vector<1x32x16xf32>
    %31 = vector.shape_cast %30 : vector<1x32x16xf32> to vector<32x16xf32>
    %cst_23 = arith.constant dense<0.000000e+00> : vector<64x16xf32>
    %32 = tpu.matmul %29, %31, %cst_23 {dimension_numbers = #tpu.dot_dimension_numbers<[1], [0], [0], [1], [0, 0, 1, 1], [], []>} : vector<64x32xf32>, vector<32x16xf32>, vector<64x16xf32> -> vector<64x16xf32>
    %33 = arith.addf %23, %32 : vector<64x16xf32>
    %c1_i32_24 = arith.constant 1 : i32
    %34 = arith.addi %1, %c1_i32_24 : i32
    %c0_i32_25 = arith.constant 0 : i32
    %35 = arith.addi %34, %c0_i32_25 : i32
    %c0_26 = arith.constant 0 : index
    %36 = arith.index_cast %35 : i32 to index
    %c1_27 = arith.constant 1 : index
    %c0_28 = arith.constant 0 : index
    %37 = vector.load %arg2[%c0_26, %36, %c1_27, %c0_28] : memref<1x10x10x32xf32, #tpu.memory_space<vmem>>, vector<1x8x8x32xf32>
    %38 = vector.shape_cast %37 : vector<1x8x8x32xf32> to vector<8x8x32xf32>
    %39 = vector.shape_cast %38 : vector<8x8x32xf32> to vector<64x32xf32>
    %c3 = arith.constant 3 : index
    %c0_29 = arith.constant 0 : index
    %c0_30 = arith.constant 0 : index
    %40 = vector.load %arg3[%c3, %c0_29, %c0_30] : memref<16x32x16xf32, #tpu.memory_space<vmem>>, vector<1x32x16xf32>
    %41 = vector.shape_cast %40 : vector<1x32x16xf32> to vector<32x16xf32>
    %cst_31 = arith.constant dense<0.000000e+00> : vector<64x16xf32>
    %42 = tpu.matmul %39, %41, %cst_31 {dimension_numbers = #tpu.dot_dimension_numbers<[1], [0], [0], [1], [0, 0, 1, 1], [], []>} : vector<64x32xf32>, vector<32x16xf32>, vector<64x16xf32> -> vector<64x16xf32>
    %43 = arith.addf %33, %42 : vector<64x16xf32>
    %44 = vector.broadcast %2 : vector<1x16xf32> to vector<64x16xf32>
    %45 = arith.addf %43, %44 : vector<64x16xf32>
    %cst_32 = arith.constant 0.000000e+00 : f32
    %46 = vector.broadcast %cst_32 : f32 to vector<64x16xf32>
    %47 = arith.maximumf %45, %46 : vector<64x16xf32>
    %48 = vector.shape_cast %47 : vector<64x16xf32> to vector<8x8x16xf32>
    %cst_33 = arith.constant 0.000000e+00 : f32
    %49 = vector.broadcast %cst_33 : f32 to vector<64x16xf32>
    %c0_i32_34 = arith.constant 0 : i32
    %50 = arith.addi %1, %c0_i32_34 : i32
    %c0_i32_35 = arith.constant 0 : i32
    %51 = arith.addi %50, %c0_i32_35 : i32
    %c0_36 = arith.constant 0 : index
    %52 = arith.index_cast %51 : i32 to index
    %c1_37 = arith.constant 1 : index
    %c0_38 = arith.constant 0 : index
    %53 = vector.load %arg2[%c0_36, %52, %c1_37, %c0_38] : memref<1x10x10x32xf32, #tpu.memory_space<vmem>>, vector<1x8x8x32xf32>
    %54 = vector.shape_cast %53 : vector<1x8x8x32xf32> to vector<8x8x32xf32>
    %55 = vector.shape_cast %54 : vector<8x8x32xf32> to vector<64x32xf32>
    %c4 = arith.constant 4 : index
    %c0_39 = arith.constant 0 : index
    %c0_40 = arith.constant 0 : index
    %56 = vector.load %arg3[%c4, %c0_39, %c0_40] : memref<16x32x16xf32, #tpu.memory_space<vmem>>, vector<1x32x16xf32>
    %57 = vector.shape_cast %56 : vector<1x32x16xf32> to vector<32x16xf32>
    %cst_41 = arith.constant dense<0.000000e+00> : vector<64x16xf32>
    %58 = tpu.matmul %55, %57, %cst_41 {dimension_numbers = #tpu.dot_dimension_numbers<[1], [0], [0], [1], [0, 0, 1, 1], [], []>} : vector<64x32xf32>, vector<32x16xf32>, vector<64x16xf32> -> vector<64x16xf32>
    %59 = arith.addf %49, %58 : vector<64x16xf32>
    %c0_i32_42 = arith.constant 0 : i32
    %60 = arith.addi %1, %c0_i32_42 : i32
    %c0_i32_43 = arith.constant 0 : i32
    %61 = arith.addi %60, %c0_i32_43 : i32
    %c0_44 = arith.constant 0 : index
    %62 = arith.index_cast %61 : i32 to index
    %c2_45 = arith.constant 2 : index
    %c0_46 = arith.constant 0 : index
    %63 = vector.load %arg2[%c0_44, %62, %c2_45, %c0_46] : memref<1x10x10x32xf32, #tpu.memory_space<vmem>>, vector<1x8x8x32xf32>
    %64 = vector.shape_cast %63 : vector<1x8x8x32xf32> to vector<8x8x32xf32>
    %65 = vector.shape_cast %64 : vector<8x8x32xf32> to vector<64x32xf32>
    %c5 = arith.constant 5 : index
    %c0_47 = arith.constant 0 : index
    %c0_48 = arith.constant 0 : index
    %66 = vector.load %arg3[%c5, %c0_47, %c0_48] : memref<16x32x16xf32, #tpu.memory_space<vmem>>, vector<1x32x16xf32>
    %67 = vector.shape_cast %66 : vector<1x32x16xf32> to vector<32x16xf32>
    %cst_49 = arith.constant dense<0.000000e+00> : vector<64x16xf32>
    %68 = tpu.matmul %65, %67, %cst_49 {dimension_numbers = #tpu.dot_dimension_numbers<[1], [0], [0], [1], [0, 0, 1, 1], [], []>} : vector<64x32xf32>, vector<32x16xf32>, vector<64x16xf32> -> vector<64x16xf32>
    %69 = arith.addf %59, %68 : vector<64x16xf32>
    %c1_i32_50 = arith.constant 1 : i32
    %70 = arith.addi %1, %c1_i32_50 : i32
    %c0_i32_51 = arith.constant 0 : i32
    %71 = arith.addi %70, %c0_i32_51 : i32
    %c0_52 = arith.constant 0 : index
    %72 = arith.index_cast %71 : i32 to index
    %c1_53 = arith.constant 1 : index
    %c0_54 = arith.constant 0 : index
    %73 = vector.load %arg2[%c0_52, %72, %c1_53, %c0_54] : memref<1x10x10x32xf32, #tpu.memory_space<vmem>>, vector<1x8x8x32xf32>
    %74 = vector.shape_cast %73 : vector<1x8x8x32xf32> to vector<8x8x32xf32>
    %75 = vector.shape_cast %74 : vector<8x8x32xf32> to vector<64x32xf32>
    %c6 = arith.constant 6 : index
    %c0_55 = arith.constant 0 : index
    %c0_56 = arith.constant 0 : index
    %76 = vector.load %arg3[%c6, %c0_55, %c0_56] : memref<16x32x16xf32, #tpu.memory_space<vmem>>, vector<1x32x16xf32>
    %77 = vector.shape_cast %76 : vector<1x32x16xf32> to vector<32x16xf32>
    %cst_57 = arith.constant dense<0.000000e+00> : vector<64x16xf32>
    %78 = tpu.matmul %75, %77, %cst_57 {dimension_numbers = #tpu.dot_dimension_numbers<[1], [0], [0], [1], [0, 0, 1, 1], [], []>} : vector<64x32xf32>, vector<32x16xf32>, vector<64x16xf32> -> vector<64x16xf32>
    %79 = arith.addf %69, %78 : vector<64x16xf32>
    %c1_i32_58 = arith.constant 1 : i32
    %80 = arith.addi %1, %c1_i32_58 : i32
    %c0_i32_59 = arith.constant 0 : i32
    %81 = arith.addi %80, %c0_i32_59 : i32
    %c0_60 = arith.constant 0 : index
    %82 = arith.index_cast %81 : i32 to index
    %c2_61 = arith.constant 2 : index
    %c0_62 = arith.constant 0 : index
    %83 = vector.load %arg2[%c0_60, %82, %c2_61, %c0_62] : memref<1x10x10x32xf32, #tpu.memory_space<vmem>>, vector<1x8x8x32xf32>
    %84 = vector.shape_cast %83 : vector<1x8x8x32xf32> to vector<8x8x32xf32>
    %85 = vector.shape_cast %84 : vector<8x8x32xf32> to vector<64x32xf32>
    %c7 = arith.constant 7 : index
    %c0_63 = arith.constant 0 : index
    %c0_64 = arith.constant 0 : index
    %86 = vector.load %arg3[%c7, %c0_63, %c0_64] : memref<16x32x16xf32, #tpu.memory_space<vmem>>, vector<1x32x16xf32>
    %87 = vector.shape_cast %86 : vector<1x32x16xf32> to vector<32x16xf32>
    %cst_65 = arith.constant dense<0.000000e+00> : vector<64x16xf32>
    %88 = tpu.matmul %85, %87, %cst_65 {dimension_numbers = #tpu.dot_dimension_numbers<[1], [0], [0], [1], [0, 0, 1, 1], [], []>} : vector<64x32xf32>, vector<32x16xf32>, vector<64x16xf32> -> vector<64x16xf32>
    %89 = arith.addf %79, %88 : vector<64x16xf32>
    %90 = vector.broadcast %2 : vector<1x16xf32> to vector<64x16xf32>
    %91 = arith.addf %89, %90 : vector<64x16xf32>
    %cst_66 = arith.constant 0.000000e+00 : f32
    %92 = vector.broadcast %cst_66 : f32 to vector<64x16xf32>
    %93 = arith.maximumf %91, %92 : vector<64x16xf32>
    %94 = vector.shape_cast %93 : vector<64x16xf32> to vector<8x8x16xf32>
    %95 = tpu.concatenate %48, %94 in 2 : vector<8x8x16xf32>, vector<8x8x16xf32> -> vector<8x8x32xf32>
    %c0_67 = arith.constant 0 : index
    %c0_68 = arith.constant 0 : index
    %c0_69 = arith.constant 0 : index
    %c0_70 = arith.constant 0 : index
    %c0_71 = arith.constant 0 : index
    %96 = vector.load %arg5[%c0_67, %c0_68, %c0_69, %c0_70, %c0_71] : memref<1x8x2x8x32xf32, #tpu.memory_space<vmem>>, vector<1x8x1x8x32xf32>
    %97 = vector.shape_cast %96 : vector<1x8x1x8x32xf32> to vector<8x8x32xf32>
    %98 = vector.shape_cast %95 : vector<8x8x32xf32> to vector<1x8x1x8x32xf32>
    tpu.vector_store %arg5[%c0_67, %c0_68, %c0_69, %c0_70, %c0_71], %98 {strides = array<i32>} : memref<1x8x2x8x32xf32, #tpu.memory_space<vmem>>, vector<1x8x1x8x32xf32>,
    %cst_72 = arith.constant 0.000000e+00 : f32
    %99 = vector.broadcast %cst_72 : f32 to vector<64x16xf32>
    %c0_i32_73 = arith.constant 0 : i32
    %100 = arith.addi %1, %c0_i32_73 : i32
    %c1_i32_74 = arith.constant 1 : i32
    %101 = arith.addi %100, %c1_i32_74 : i32
    %c0_75 = arith.constant 0 : index
    %102 = arith.index_cast %101 : i32 to index
    %c0_76 = arith.constant 0 : index
    %c0_77 = arith.constant 0 : index
    %103 = vector.load %arg2[%c0_75, %102, %c0_76, %c0_77] : memref<1x10x10x32xf32, #tpu.memory_space<vmem>>, vector<1x8x8x32xf32>
    %104 = vector.shape_cast %103 : vector<1x8x8x32xf32> to vector<8x8x32xf32>
    %105 = vector.shape_cast %104 : vector<8x8x32xf32> to vector<64x32xf32>
    %c8 = arith.constant 8 : index
    %c0_78 = arith.constant 0 : index
    %c0_79 = arith.constant 0 : index
    %106 = vector.load %arg3[%c8, %c0_78, %c0_79] : memref<16x32x16xf32, #tpu.memory_space<vmem>>, vector<1x32x16xf32>
    %107 = vector.shape_cast %106 : vector<1x32x16xf32> to vector<32x16xf32>
    %cst_80 = arith.constant dense<0.000000e+00> : vector<64x16xf32>
    %108 = tpu.matmul %105, %107, %cst_80 {dimension_numbers = #tpu.dot_dimension_numbers<[1], [0], [0], [1], [0, 0, 1, 1], [], []>} : vector<64x32xf32>, vector<32x16xf32>, vector<64x16xf32> -> vector<64x16xf32>
    %109 = arith.addf %99, %108 : vector<64x16xf32>
    %c0_i32_81 = arith.constant 0 : i32
    %110 = arith.addi %1, %c0_i32_81 : i32
    %c1_i32_82 = arith.constant 1 : i32
    %111 = arith.addi %110, %c1_i32_82 : i32
    %c0_83 = arith.constant 0 : index
    %112 = arith.index_cast %111 : i32 to index
    %c1_84 = arith.constant 1 : index
    %c0_85 = arith.constant 0 : index
    %113 = vector.load %arg2[%c0_83, %112, %c1_84, %c0_85] : memref<1x10x10x32xf32, #tpu.memory_space<vmem>>, vector<1x8x8x32xf32>
    %114 = vector.shape_cast %113 : vector<1x8x8x32xf32> to vector<8x8x32xf32>
    %115 = vector.shape_cast %114 : vector<8x8x32xf32> to vector<64x32xf32>
    %c9 = arith.constant 9 : index
    %c0_86 = arith.constant 0 : index
    %c0_87 = arith.constant 0 : index
    %116 = vector.load %arg3[%c9, %c0_86, %c0_87] : memref<16x32x16xf32, #tpu.memory_space<vmem>>, vector<1x32x16xf32>
    %117 = vector.shape_cast %116 : vector<1x32x16xf32> to vector<32x16xf32>
    %cst_88 = arith.constant dense<0.000000e+00> : vector<64x16xf32>
    %118 = tpu.matmul %115, %117, %cst_88 {dimension_numbers = #tpu.dot_dimension_numbers<[1], [0], [0], [1], [0, 0, 1, 1], [], []>} : vector<64x32xf32>, vector<32x16xf32>, vector<64x16xf32> -> vector<64x16xf32>
    %119 = arith.addf %109, %118 : vector<64x16xf32>
    %c1_i32_89 = arith.constant 1 : i32
    %120 = arith.addi %1, %c1_i32_89 : i32
    %c1_i32_90 = arith.constant 1 : i32
    %121 = arith.addi %120, %c1_i32_90 : i32
    %c0_91 = arith.constant 0 : index
    %122 = arith.index_cast %121 : i32 to index
    %c0_92 = arith.constant 0 : index
    %c0_93 = arith.constant 0 : index
    %123 = vector.load %arg2[%c0_91, %122, %c0_92, %c0_93] : memref<1x10x10x32xf32, #tpu.memory_space<vmem>>, vector<1x8x8x32xf32>
    %124 = vector.shape_cast %123 : vector<1x8x8x32xf32> to vector<8x8x32xf32>
    %125 = vector.shape_cast %124 : vector<8x8x32xf32> to vector<64x32xf32>
    %c10 = arith.constant 10 : index
    %c0_94 = arith.constant 0 : index
    %c0_95 = arith.constant 0 : index
    %126 = vector.load %arg3[%c10, %c0_94, %c0_95] : memref<16x32x16xf32, #tpu.memory_space<vmem>>, vector<1x32x16xf32>
    %127 = vector.shape_cast %126 : vector<1x32x16xf32> to vector<32x16xf32>
    %cst_96 = arith.constant dense<0.000000e+00> : vector<64x16xf32>
    %128 = tpu.matmul %125, %127, %cst_96 {dimension_numbers = #tpu.dot_dimension_numbers<[1], [0], [0], [1], [0, 0, 1, 1], [], []>} : vector<64x32xf32>, vector<32x16xf32>, vector<64x16xf32> -> vector<64x16xf32>
    %129 = arith.addf %119, %128 : vector<64x16xf32>
    %c1_i32_97 = arith.constant 1 : i32
    %130 = arith.addi %1, %c1_i32_97 : i32
    %c1_i32_98 = arith.constant 1 : i32
    %131 = arith.addi %130, %c1_i32_98 : i32
    %c0_99 = arith.constant 0 : index
    %132 = arith.index_cast %131 : i32 to index
    %c1_100 = arith.constant 1 : index
    %c0_101 = arith.constant 0 : index
    %133 = vector.load %arg2[%c0_99, %132, %c1_100, %c0_101] : memref<1x10x10x32xf32, #tpu.memory_space<vmem>>, vector<1x8x8x32xf32>
    %134 = vector.shape_cast %133 : vector<1x8x8x32xf32> to vector<8x8x32xf32>
    %135 = vector.shape_cast %134 : vector<8x8x32xf32> to vector<64x32xf32>
    %c11 = arith.constant 11 : index
    %c0_102 = arith.constant 0 : index
    %c0_103 = arith.constant 0 : index
    %136 = vector.load %arg3[%c11, %c0_102, %c0_103] : memref<16x32x16xf32, #tpu.memory_space<vmem>>, vector<1x32x16xf32>
    %137 = vector.shape_cast %136 : vector<1x32x16xf32> to vector<32x16xf32>
    %cst_104 = arith.constant dense<0.000000e+00> : vector<64x16xf32>
    %138 = tpu.matmul %135, %137, %cst_104 {dimension_numbers = #tpu.dot_dimension_numbers<[1], [0], [0], [1], [0, 0, 1, 1], [], []>} : vector<64x32xf32>, vector<32x16xf32>, vector<64x16xf32> -> vector<64x16xf32>
    %139 = arith.addf %129, %138 : vector<64x16xf32>
    %140 = vector.broadcast %2 : vector<1x16xf32> to vector<64x16xf32>
    %141 = arith.addf %139, %140 : vector<64x16xf32>
    %cst_105 = arith.constant 0.000000e+00 : f32
    %142 = vector.broadcast %cst_105 : f32 to vector<64x16xf32>
    %143 = arith.maximumf %141, %142 : vector<64x16xf32>
    %144 = vector.shape_cast %143 : vector<64x16xf32> to vector<8x8x16xf32>
    %cst_106 = arith.constant 0.000000e+00 : f32
    %145 = vector.broadcast %cst_106 : f32 to vector<64x16xf32>
    %c0_i32_107 = arith.constant 0 : i32
    %146 = arith.addi %1, %c0_i32_107 : i32
    %c1_i32_108 = arith.constant 1 : i32
    %147 = arith.addi %146, %c1_i32_108 : i32
    %c0_109 = arith.constant 0 : index
    %148 = arith.index_cast %147 : i32 to index
    %c1_110 = arith.constant 1 : index
    %c0_111 = arith.constant 0 : index
    %149 = vector.load %arg2[%c0_109, %148, %c1_110, %c0_111] : memref<1x10x10x32xf32, #tpu.memory_space<vmem>>, vector<1x8x8x32xf32>
    %150 = vector.shape_cast %149 : vector<1x8x8x32xf32> to vector<8x8x32xf32>
    %151 = vector.shape_cast %150 : vector<8x8x32xf32> to vector<64x32xf32>
    %c12 = arith.constant 12 : index
    %c0_112 = arith.constant 0 : index
    %c0_113 = arith.constant 0 : index
    %152 = vector.load %arg3[%c12, %c0_112, %c0_113] : memref<16x32x16xf32, #tpu.memory_space<vmem>>, vector<1x32x16xf32>
    %153 = vector.shape_cast %152 : vector<1x32x16xf32> to vector<32x16xf32>
    %cst_114 = arith.constant dense<0.000000e+00> : vector<64x16xf32>
    %154 = tpu.matmul %151, %153, %cst_114 {dimension_numbers = #tpu.dot_dimension_numbers<[1], [0], [0], [1], [0, 0, 1, 1], [], []>} : vector<64x32xf32>, vector<32x16xf32>, vector<64x16xf32> -> vector<64x16xf32>
    %155 = arith.addf %145, %154 : vector<64x16xf32>
    %c0_i32_115 = arith.constant 0 : i32
    %156 = arith.addi %1, %c0_i32_115 : i32
    %c1_i32_116 = arith.constant 1 : i32
    %157 = arith.addi %156, %c1_i32_116 : i32
    %c0_117 = arith.constant 0 : index
    %158 = arith.index_cast %157 : i32 to index
    %c2_118 = arith.constant 2 : index
    %c0_119 = arith.constant 0 : index
    %159 = vector.load %arg2[%c0_117, %158, %c2_118, %c0_119] : memref<1x10x10x32xf32, #tpu.memory_space<vmem>>, vector<1x8x8x32xf32>
    %160 = vector.shape_cast %159 : vector<1x8x8x32xf32> to vector<8x8x32xf32>
    %161 = vector.shape_cast %160 : vector<8x8x32xf32> to vector<64x32xf32>
    %c13 = arith.constant 13 : index
    %c0_120 = arith.constant 0 : index
    %c0_121 = arith.constant 0 : index
    %162 = vector.load %arg3[%c13, %c0_120, %c0_121] : memref<16x32x16xf32, #tpu.memory_space<vmem>>, vector<1x32x16xf32>
    %163 = vector.shape_cast %162 : vector<1x32x16xf32> to vector<32x16xf32>
    %cst_122 = arith.constant dense<0.000000e+00> : vector<64x16xf32>
    %164 = tpu.matmul %161, %163, %cst_122 {dimension_numbers = #tpu.dot_dimension_numbers<[1], [0], [0], [1], [0, 0, 1, 1], [], []>} : vector<64x32xf32>, vector<32x16xf32>, vector<64x16xf32> -> vector<64x16xf32>
    %165 = arith.addf %155, %164 : vector<64x16xf32>
    %c1_i32_123 = arith.constant 1 : i32
    %166 = arith.addi %1, %c1_i32_123 : i32
    %c1_i32_124 = arith.constant 1 : i32
    %167 = arith.addi %166, %c1_i32_124 : i32
    %c0_125 = arith.constant 0 : index
    %168 = arith.index_cast %167 : i32 to index
    %c1_126 = arith.constant 1 : index
    %c0_127 = arith.constant 0 : index
    %169 = vector.load %arg2[%c0_125, %168, %c1_126, %c0_127] : memref<1x10x10x32xf32, #tpu.memory_space<vmem>>, vector<1x8x8x32xf32>
    %170 = vector.shape_cast %169 : vector<1x8x8x32xf32> to vector<8x8x32xf32>
    %171 = vector.shape_cast %170 : vector<8x8x32xf32> to vector<64x32xf32>
    %c14 = arith.constant 14 : index
    %c0_128 = arith.constant 0 : index
    %c0_129 = arith.constant 0 : index
    %172 = vector.load %arg3[%c14, %c0_128, %c0_129] : memref<16x32x16xf32, #tpu.memory_space<vmem>>, vector<1x32x16xf32>
    %173 = vector.shape_cast %172 : vector<1x32x16xf32> to vector<32x16xf32>
    %cst_130 = arith.constant dense<0.000000e+00> : vector<64x16xf32>
    %174 = tpu.matmul %171, %173, %cst_130 {dimension_numbers = #tpu.dot_dimension_numbers<[1], [0], [0], [1], [0, 0, 1, 1], [], []>} : vector<64x32xf32>, vector<32x16xf32>, vector<64x16xf32> -> vector<64x16xf32>
    %175 = arith.addf %165, %174 : vector<64x16xf32>
    %c1_i32_131 = arith.constant 1 : i32
    %176 = arith.addi %1, %c1_i32_131 : i32
    %c1_i32_132 = arith.constant 1 : i32
    %177 = arith.addi %176, %c1_i32_132 : i32
    %c0_133 = arith.constant 0 : index
    %178 = arith.index_cast %177 : i32 to index
    %c2_134 = arith.constant 2 : index
    %c0_135 = arith.constant 0 : index
    %179 = vector.load %arg2[%c0_133, %178, %c2_134, %c0_135] : memref<1x10x10x32xf32, #tpu.memory_space<vmem>>, vector<1x8x8x32xf32>
    %180 = vector.shape_cast %179 : vector<1x8x8x32xf32> to vector<8x8x32xf32>
    %181 = vector.shape_cast %180 : vector<8x8x32xf32> to vector<64x32xf32>
    %c15 = arith.constant 15 : index
    %c0_136 = arith.constant 0 : index
    %c0_137 = arith.constant 0 : index
    %182 = vector.load %arg3[%c15, %c0_136, %c0_137] : memref<16x32x16xf32, #tpu.memory_space<vmem>>, vector<1x32x16xf32>
    %183 = vector.shape_cast %182 : vector<1x32x16xf32> to vector<32x16xf32>
    %cst_138 = arith.constant dense<0.000000e+00> : vector<64x16xf32>
    %184 = tpu.matmul %181, %183, %cst_138 {dimension_numbers = #tpu.dot_dimension_numbers<[1], [0], [0], [1], [0, 0, 1, 1], [], []>} : vector<64x32xf32>, vector<32x16xf32>, vector<64x16xf32> -> vector<64x16xf32>
    %185 = arith.addf %175, %184 : vector<64x16xf32>
    %186 = vector.broadcast %2 : vector<1x16xf32> to vector<64x16xf32>
    %187 = arith.addf %185, %186 : vector<64x16xf32>
    %cst_139 = arith.constant 0.000000e+00 : f32
    %188 = vector.broadcast %cst_139 : f32 to vector<64x16xf32>
    %189 = arith.maximumf %187, %188 : vector<64x16xf32>
    %190 = vector.shape_cast %189 : vector<64x16xf32> to vector<8x8x16xf32>
    %191 = tpu.concatenate %144, %190 in 2 : vector<8x8x16xf32>, vector<8x8x16xf32> -> vector<8x8x32xf32>
    %c0_140 = arith.constant 0 : index
    %c0_141 = arith.constant 0 : index
    %c1_142 = arith.constant 1 : index
    %c0_143 = arith.constant 0 : index
    %c0_144 = arith.constant 0 : index
    %192 = vector.load %arg5[%c0_140, %c0_141, %c1_142, %c0_143, %c0_144] : memref<1x8x2x8x32xf32, #tpu.memory_space<vmem>>, vector<1x8x1x8x32xf32>
    %193 = vector.shape_cast %192 : vector<1x8x1x8x32xf32> to vector<8x8x32xf32>
    %194 = vector.shape_cast %191 : vector<8x8x32xf32> to vector<1x8x1x8x32xf32>
    tpu.vector_store %arg5[%c0_140, %c0_141, %c1_142, %c0_143, %c0_144], %194 {strides = array<i32>} : memref<1x8x2x8x32xf32, #tpu.memory_space<vmem>>, vector<1x8x1x8x32xf32>,
    return
  }
  func.func @transform_0(%arg0: i32, %arg1: i32) -> (i32, i32, i32, i32) {
    %c0_i32 = arith.constant 0 : i32
    %c0_i32_0 = arith.constant 0 : i32
    %c0_i32_1 = arith.constant 0 : i32
    %c0_i32_2 = arith.constant 0 : i32
    return %arg0, %c0_i32, %c0_i32_0, %c0_i32_1 : i32, i32, i32, i32
  }
  func.func @transform_1(%arg0: i32, %arg1: i32) -> (i32, i32, i32) {
    %c0_i32 = arith.constant 0 : i32
    %c0_i32_0 = arith.constant 0 : i32
    %c0_i32_1 = arith.constant 0 : i32
    %c0_i32_2 = arith.constant 0 : i32
    return %c0_i32, %c0_i32_0, %c0_i32_1 : i32, i32, i32
  }
  func.func @transform_2(%arg0: i32, %arg1: i32) -> (i32, i32) {
    %c0_i32 = arith.constant 0 : i32
    %c0_i32_0 = arith.constant 0 : i32
    %c0_i32_1 = arith.constant 0 : i32
    return %c0_i32, %c0_i32_0 : i32, i32
  }
  func.func @transform_3(%arg0: i32, %arg1: i32) -> (i32, i32, i32, i32, i32) {
    %c0_i32 = arith.constant 0 : i32
    %c0_i32_0 = arith.constant 0 : i32
    %c0_i32_1 = arith.constant 0 : i32
    %c0_i32_2 = arith.constant 0 : i32
    return %arg0, %arg1, %c0_i32, %c0_i32_0, %c0_i32_1 : i32, i32, i32, i32, i32
  }
}

module attributes {stable_mosaic.version = 11 : i64} {
  func.func @_deconv_kernel(%arg0: i32, %arg1: i32, %arg2: memref<1x18x18x16xf32, #tpu.memory_space<vmem>>, %arg3: memref<16x16x3xf32, #tpu.memory_space<vmem>>, %arg4: memref<1x3xf32, #tpu.memory_space<vmem>>, %arg5: memref<1x16x2x16x6xf32, #tpu.memory_space<vmem>>) attributes {dimension_semantics = [#tpu.dimension_semantics<parallel>, #tpu.dimension_semantics<parallel>], iteration_bounds = array<i64: 2, 1>, scalar_prefetch = 0 : i64, scratch_operands = 0 : i64, tpu.core_type = #tpu.core_type<tc>, window_params = [{transform_indices = @transform_0, window_bounds = array<i64: 1, 18, 18, 16>}, {pipeline_mode = #tpu.pipeline_mode<synchronous>, transform_indices = @transform_1, window_bounds = array<i64: 16, 16, 3>}, {pipeline_mode = #tpu.pipeline_mode<synchronous>, transform_indices = @transform_2, window_bounds = array<i64: 1, 3>}, {transform_indices = @transform_3, window_bounds = array<i64: 1, 16, 2, 16, 6>}]} {
    %c16_i32 = arith.constant 16 : i32
    %0 = arith.muli %arg1, %c16_i32 : i32
    %1 = tpu.assume_multiple %0, 16 : i32
    %c0 = arith.constant 0 : index
    %c0_0 = arith.constant 0 : index
    %2 = vector.load %arg4[%c0, %c0_0] : memref<1x3xf32, #tpu.memory_space<vmem>>, vector<1x3xf32>
    %cst = arith.constant 0.000000e+00 : f32
    %3 = vector.broadcast %cst : f32 to vector<256x3xf32>
    %c0_i32 = arith.constant 0 : i32
    %4 = arith.addi %1, %c0_i32 : i32
    %c0_i32_1 = arith.constant 0 : i32
    %5 = arith.addi %4, %c0_i32_1 : i32
    %c0_2 = arith.constant 0 : index
    %6 = arith.index_cast %5 : i32 to index
    %c0_3 = arith.constant 0 : index
    %c0_4 = arith.constant 0 : index
    %7 = vector.load %arg2[%c0_2, %6, %c0_3, %c0_4] : memref<1x18x18x16xf32, #tpu.memory_space<vmem>>, vector<1x16x16x16xf32>
    %8 = vector.shape_cast %7 : vector<1x16x16x16xf32> to vector<16x16x16xf32>
    %9 = vector.shape_cast %8 : vector<16x16x16xf32> to vector<256x16xf32>
    %c0_5 = arith.constant 0 : index
    %c0_6 = arith.constant 0 : index
    %c0_7 = arith.constant 0 : index
    %10 = vector.load %arg3[%c0_5, %c0_6, %c0_7] : memref<16x16x3xf32, #tpu.memory_space<vmem>>, vector<1x16x3xf32>
    %11 = vector.shape_cast %10 : vector<1x16x3xf32> to vector<16x3xf32>
    %cst_8 = arith.constant dense<0.000000e+00> : vector<256x3xf32>
    %12 = tpu.matmul %9, %11, %cst_8 {dimension_numbers = #tpu.dot_dimension_numbers<[1], [0], [0], [1], [0, 0, 1, 1], [], []>} : vector<256x16xf32>, vector<16x3xf32>, vector<256x3xf32> -> vector<256x3xf32>
    %13 = arith.addf %3, %12 : vector<256x3xf32>
    %c0_i32_9 = arith.constant 0 : i32
    %14 = arith.addi %1, %c0_i32_9 : i32
    %c0_i32_10 = arith.constant 0 : i32
    %15 = arith.addi %14, %c0_i32_10 : i32
    %c0_11 = arith.constant 0 : index
    %16 = arith.index_cast %15 : i32 to index
    %c1 = arith.constant 1 : index
    %c0_12 = arith.constant 0 : index
    %17 = vector.load %arg2[%c0_11, %16, %c1, %c0_12] : memref<1x18x18x16xf32, #tpu.memory_space<vmem>>, vector<1x16x16x16xf32>
    %18 = vector.shape_cast %17 : vector<1x16x16x16xf32> to vector<16x16x16xf32>
    %19 = vector.shape_cast %18 : vector<16x16x16xf32> to vector<256x16xf32>
    %c1_13 = arith.constant 1 : index
    %c0_14 = arith.constant 0 : index
    %c0_15 = arith.constant 0 : index
    %20 = vector.load %arg3[%c1_13, %c0_14, %c0_15] : memref<16x16x3xf32, #tpu.memory_space<vmem>>, vector<1x16x3xf32>
    %21 = vector.shape_cast %20 : vector<1x16x3xf32> to vector<16x3xf32>
    %cst_16 = arith.constant dense<0.000000e+00> : vector<256x3xf32>
    %22 = tpu.matmul %19, %21, %cst_16 {dimension_numbers = #tpu.dot_dimension_numbers<[1], [0], [0], [1], [0, 0, 1, 1], [], []>} : vector<256x16xf32>, vector<16x3xf32>, vector<256x3xf32> -> vector<256x3xf32>
    %23 = arith.addf %13, %22 : vector<256x3xf32>
    %c1_i32 = arith.constant 1 : i32
    %24 = arith.addi %1, %c1_i32 : i32
    %c0_i32_17 = arith.constant 0 : i32
    %25 = arith.addi %24, %c0_i32_17 : i32
    %c0_18 = arith.constant 0 : index
    %26 = arith.index_cast %25 : i32 to index
    %c0_19 = arith.constant 0 : index
    %c0_20 = arith.constant 0 : index
    %27 = vector.load %arg2[%c0_18, %26, %c0_19, %c0_20] : memref<1x18x18x16xf32, #tpu.memory_space<vmem>>, vector<1x16x16x16xf32>
    %28 = vector.shape_cast %27 : vector<1x16x16x16xf32> to vector<16x16x16xf32>
    %29 = vector.shape_cast %28 : vector<16x16x16xf32> to vector<256x16xf32>
    %c2 = arith.constant 2 : index
    %c0_21 = arith.constant 0 : index
    %c0_22 = arith.constant 0 : index
    %30 = vector.load %arg3[%c2, %c0_21, %c0_22] : memref<16x16x3xf32, #tpu.memory_space<vmem>>, vector<1x16x3xf32>
    %31 = vector.shape_cast %30 : vector<1x16x3xf32> to vector<16x3xf32>
    %cst_23 = arith.constant dense<0.000000e+00> : vector<256x3xf32>
    %32 = tpu.matmul %29, %31, %cst_23 {dimension_numbers = #tpu.dot_dimension_numbers<[1], [0], [0], [1], [0, 0, 1, 1], [], []>} : vector<256x16xf32>, vector<16x3xf32>, vector<256x3xf32> -> vector<256x3xf32>
    %33 = arith.addf %23, %32 : vector<256x3xf32>
    %c1_i32_24 = arith.constant 1 : i32
    %34 = arith.addi %1, %c1_i32_24 : i32
    %c0_i32_25 = arith.constant 0 : i32
    %35 = arith.addi %34, %c0_i32_25 : i32
    %c0_26 = arith.constant 0 : index
    %36 = arith.index_cast %35 : i32 to index
    %c1_27 = arith.constant 1 : index
    %c0_28 = arith.constant 0 : index
    %37 = vector.load %arg2[%c0_26, %36, %c1_27, %c0_28] : memref<1x18x18x16xf32, #tpu.memory_space<vmem>>, vector<1x16x16x16xf32>
    %38 = vector.shape_cast %37 : vector<1x16x16x16xf32> to vector<16x16x16xf32>
    %39 = vector.shape_cast %38 : vector<16x16x16xf32> to vector<256x16xf32>
    %c3 = arith.constant 3 : index
    %c0_29 = arith.constant 0 : index
    %c0_30 = arith.constant 0 : index
    %40 = vector.load %arg3[%c3, %c0_29, %c0_30] : memref<16x16x3xf32, #tpu.memory_space<vmem>>, vector<1x16x3xf32>
    %41 = vector.shape_cast %40 : vector<1x16x3xf32> to vector<16x3xf32>
    %cst_31 = arith.constant dense<0.000000e+00> : vector<256x3xf32>
    %42 = tpu.matmul %39, %41, %cst_31 {dimension_numbers = #tpu.dot_dimension_numbers<[1], [0], [0], [1], [0, 0, 1, 1], [], []>} : vector<256x16xf32>, vector<16x3xf32>, vector<256x3xf32> -> vector<256x3xf32>
    %43 = arith.addf %33, %42 : vector<256x3xf32>
    %44 = vector.broadcast %2 : vector<1x3xf32> to vector<256x3xf32>
    %45 = arith.addf %43, %44 : vector<256x3xf32>
    %46 = vector.shape_cast %45 : vector<256x3xf32> to vector<16x16x3xf32>
    %cst_32 = arith.constant 0.000000e+00 : f32
    %47 = vector.broadcast %cst_32 : f32 to vector<256x3xf32>
    %c0_i32_33 = arith.constant 0 : i32
    %48 = arith.addi %1, %c0_i32_33 : i32
    %c0_i32_34 = arith.constant 0 : i32
    %49 = arith.addi %48, %c0_i32_34 : i32
    %c0_35 = arith.constant 0 : index
    %50 = arith.index_cast %49 : i32 to index
    %c1_36 = arith.constant 1 : index
    %c0_37 = arith.constant 0 : index
    %51 = vector.load %arg2[%c0_35, %50, %c1_36, %c0_37] : memref<1x18x18x16xf32, #tpu.memory_space<vmem>>, vector<1x16x16x16xf32>
    %52 = vector.shape_cast %51 : vector<1x16x16x16xf32> to vector<16x16x16xf32>
    %53 = vector.shape_cast %52 : vector<16x16x16xf32> to vector<256x16xf32>
    %c4 = arith.constant 4 : index
    %c0_38 = arith.constant 0 : index
    %c0_39 = arith.constant 0 : index
    %54 = vector.load %arg3[%c4, %c0_38, %c0_39] : memref<16x16x3xf32, #tpu.memory_space<vmem>>, vector<1x16x3xf32>
    %55 = vector.shape_cast %54 : vector<1x16x3xf32> to vector<16x3xf32>
    %cst_40 = arith.constant dense<0.000000e+00> : vector<256x3xf32>
    %56 = tpu.matmul %53, %55, %cst_40 {dimension_numbers = #tpu.dot_dimension_numbers<[1], [0], [0], [1], [0, 0, 1, 1], [], []>} : vector<256x16xf32>, vector<16x3xf32>, vector<256x3xf32> -> vector<256x3xf32>
    %57 = arith.addf %47, %56 : vector<256x3xf32>
    %c0_i32_41 = arith.constant 0 : i32
    %58 = arith.addi %1, %c0_i32_41 : i32
    %c0_i32_42 = arith.constant 0 : i32
    %59 = arith.addi %58, %c0_i32_42 : i32
    %c0_43 = arith.constant 0 : index
    %60 = arith.index_cast %59 : i32 to index
    %c2_44 = arith.constant 2 : index
    %c0_45 = arith.constant 0 : index
    %61 = vector.load %arg2[%c0_43, %60, %c2_44, %c0_45] : memref<1x18x18x16xf32, #tpu.memory_space<vmem>>, vector<1x16x16x16xf32>
    %62 = vector.shape_cast %61 : vector<1x16x16x16xf32> to vector<16x16x16xf32>
    %63 = vector.shape_cast %62 : vector<16x16x16xf32> to vector<256x16xf32>
    %c5 = arith.constant 5 : index
    %c0_46 = arith.constant 0 : index
    %c0_47 = arith.constant 0 : index
    %64 = vector.load %arg3[%c5, %c0_46, %c0_47] : memref<16x16x3xf32, #tpu.memory_space<vmem>>, vector<1x16x3xf32>
    %65 = vector.shape_cast %64 : vector<1x16x3xf32> to vector<16x3xf32>
    %cst_48 = arith.constant dense<0.000000e+00> : vector<256x3xf32>
    %66 = tpu.matmul %63, %65, %cst_48 {dimension_numbers = #tpu.dot_dimension_numbers<[1], [0], [0], [1], [0, 0, 1, 1], [], []>} : vector<256x16xf32>, vector<16x3xf32>, vector<256x3xf32> -> vector<256x3xf32>
    %67 = arith.addf %57, %66 : vector<256x3xf32>
    %c1_i32_49 = arith.constant 1 : i32
    %68 = arith.addi %1, %c1_i32_49 : i32
    %c0_i32_50 = arith.constant 0 : i32
    %69 = arith.addi %68, %c0_i32_50 : i32
    %c0_51 = arith.constant 0 : index
    %70 = arith.index_cast %69 : i32 to index
    %c1_52 = arith.constant 1 : index
    %c0_53 = arith.constant 0 : index
    %71 = vector.load %arg2[%c0_51, %70, %c1_52, %c0_53] : memref<1x18x18x16xf32, #tpu.memory_space<vmem>>, vector<1x16x16x16xf32>
    %72 = vector.shape_cast %71 : vector<1x16x16x16xf32> to vector<16x16x16xf32>
    %73 = vector.shape_cast %72 : vector<16x16x16xf32> to vector<256x16xf32>
    %c6 = arith.constant 6 : index
    %c0_54 = arith.constant 0 : index
    %c0_55 = arith.constant 0 : index
    %74 = vector.load %arg3[%c6, %c0_54, %c0_55] : memref<16x16x3xf32, #tpu.memory_space<vmem>>, vector<1x16x3xf32>
    %75 = vector.shape_cast %74 : vector<1x16x3xf32> to vector<16x3xf32>
    %cst_56 = arith.constant dense<0.000000e+00> : vector<256x3xf32>
    %76 = tpu.matmul %73, %75, %cst_56 {dimension_numbers = #tpu.dot_dimension_numbers<[1], [0], [0], [1], [0, 0, 1, 1], [], []>} : vector<256x16xf32>, vector<16x3xf32>, vector<256x3xf32> -> vector<256x3xf32>
    %77 = arith.addf %67, %76 : vector<256x3xf32>
    %c1_i32_57 = arith.constant 1 : i32
    %78 = arith.addi %1, %c1_i32_57 : i32
    %c0_i32_58 = arith.constant 0 : i32
    %79 = arith.addi %78, %c0_i32_58 : i32
    %c0_59 = arith.constant 0 : index
    %80 = arith.index_cast %79 : i32 to index
    %c2_60 = arith.constant 2 : index
    %c0_61 = arith.constant 0 : index
    %81 = vector.load %arg2[%c0_59, %80, %c2_60, %c0_61] : memref<1x18x18x16xf32, #tpu.memory_space<vmem>>, vector<1x16x16x16xf32>
    %82 = vector.shape_cast %81 : vector<1x16x16x16xf32> to vector<16x16x16xf32>
    %83 = vector.shape_cast %82 : vector<16x16x16xf32> to vector<256x16xf32>
    %c7 = arith.constant 7 : index
    %c0_62 = arith.constant 0 : index
    %c0_63 = arith.constant 0 : index
    %84 = vector.load %arg3[%c7, %c0_62, %c0_63] : memref<16x16x3xf32, #tpu.memory_space<vmem>>, vector<1x16x3xf32>
    %85 = vector.shape_cast %84 : vector<1x16x3xf32> to vector<16x3xf32>
    %cst_64 = arith.constant dense<0.000000e+00> : vector<256x3xf32>
    %86 = tpu.matmul %83, %85, %cst_64 {dimension_numbers = #tpu.dot_dimension_numbers<[1], [0], [0], [1], [0, 0, 1, 1], [], []>} : vector<256x16xf32>, vector<16x3xf32>, vector<256x3xf32> -> vector<256x3xf32>
    %87 = arith.addf %77, %86 : vector<256x3xf32>
    %88 = vector.broadcast %2 : vector<1x3xf32> to vector<256x3xf32>
    %89 = arith.addf %87, %88 : vector<256x3xf32>
    %90 = vector.shape_cast %89 : vector<256x3xf32> to vector<16x16x3xf32>
    %91 = tpu.concatenate %46, %90 in 2 : vector<16x16x3xf32>, vector<16x16x3xf32> -> vector<16x16x6xf32>
    %c0_65 = arith.constant 0 : index
    %c0_66 = arith.constant 0 : index
    %c0_67 = arith.constant 0 : index
    %c0_68 = arith.constant 0 : index
    %c0_69 = arith.constant 0 : index
    %92 = vector.load %arg5[%c0_65, %c0_66, %c0_67, %c0_68, %c0_69] : memref<1x16x2x16x6xf32, #tpu.memory_space<vmem>>, vector<1x16x1x16x6xf32>
    %93 = vector.shape_cast %92 : vector<1x16x1x16x6xf32> to vector<16x16x6xf32>
    %94 = vector.shape_cast %91 : vector<16x16x6xf32> to vector<1x16x1x16x6xf32>
    tpu.vector_store %arg5[%c0_65, %c0_66, %c0_67, %c0_68, %c0_69], %94 {strides = array<i32>} : memref<1x16x2x16x6xf32, #tpu.memory_space<vmem>>, vector<1x16x1x16x6xf32>,
    %cst_70 = arith.constant 0.000000e+00 : f32
    %95 = vector.broadcast %cst_70 : f32 to vector<256x3xf32>
    %c0_i32_71 = arith.constant 0 : i32
    %96 = arith.addi %1, %c0_i32_71 : i32
    %c1_i32_72 = arith.constant 1 : i32
    %97 = arith.addi %96, %c1_i32_72 : i32
    %c0_73 = arith.constant 0 : index
    %98 = arith.index_cast %97 : i32 to index
    %c0_74 = arith.constant 0 : index
    %c0_75 = arith.constant 0 : index
    %99 = vector.load %arg2[%c0_73, %98, %c0_74, %c0_75] : memref<1x18x18x16xf32, #tpu.memory_space<vmem>>, vector<1x16x16x16xf32>
    %100 = vector.shape_cast %99 : vector<1x16x16x16xf32> to vector<16x16x16xf32>
    %101 = vector.shape_cast %100 : vector<16x16x16xf32> to vector<256x16xf32>
    %c8 = arith.constant 8 : index
    %c0_76 = arith.constant 0 : index
    %c0_77 = arith.constant 0 : index
    %102 = vector.load %arg3[%c8, %c0_76, %c0_77] : memref<16x16x3xf32, #tpu.memory_space<vmem>>, vector<1x16x3xf32>
    %103 = vector.shape_cast %102 : vector<1x16x3xf32> to vector<16x3xf32>
    %cst_78 = arith.constant dense<0.000000e+00> : vector<256x3xf32>
    %104 = tpu.matmul %101, %103, %cst_78 {dimension_numbers = #tpu.dot_dimension_numbers<[1], [0], [0], [1], [0, 0, 1, 1], [], []>} : vector<256x16xf32>, vector<16x3xf32>, vector<256x3xf32> -> vector<256x3xf32>
    %105 = arith.addf %95, %104 : vector<256x3xf32>
    %c0_i32_79 = arith.constant 0 : i32
    %106 = arith.addi %1, %c0_i32_79 : i32
    %c1_i32_80 = arith.constant 1 : i32
    %107 = arith.addi %106, %c1_i32_80 : i32
    %c0_81 = arith.constant 0 : index
    %108 = arith.index_cast %107 : i32 to index
    %c1_82 = arith.constant 1 : index
    %c0_83 = arith.constant 0 : index
    %109 = vector.load %arg2[%c0_81, %108, %c1_82, %c0_83] : memref<1x18x18x16xf32, #tpu.memory_space<vmem>>, vector<1x16x16x16xf32>
    %110 = vector.shape_cast %109 : vector<1x16x16x16xf32> to vector<16x16x16xf32>
    %111 = vector.shape_cast %110 : vector<16x16x16xf32> to vector<256x16xf32>
    %c9 = arith.constant 9 : index
    %c0_84 = arith.constant 0 : index
    %c0_85 = arith.constant 0 : index
    %112 = vector.load %arg3[%c9, %c0_84, %c0_85] : memref<16x16x3xf32, #tpu.memory_space<vmem>>, vector<1x16x3xf32>
    %113 = vector.shape_cast %112 : vector<1x16x3xf32> to vector<16x3xf32>
    %cst_86 = arith.constant dense<0.000000e+00> : vector<256x3xf32>
    %114 = tpu.matmul %111, %113, %cst_86 {dimension_numbers = #tpu.dot_dimension_numbers<[1], [0], [0], [1], [0, 0, 1, 1], [], []>} : vector<256x16xf32>, vector<16x3xf32>, vector<256x3xf32> -> vector<256x3xf32>
    %115 = arith.addf %105, %114 : vector<256x3xf32>
    %c1_i32_87 = arith.constant 1 : i32
    %116 = arith.addi %1, %c1_i32_87 : i32
    %c1_i32_88 = arith.constant 1 : i32
    %117 = arith.addi %116, %c1_i32_88 : i32
    %c0_89 = arith.constant 0 : index
    %118 = arith.index_cast %117 : i32 to index
    %c0_90 = arith.constant 0 : index
    %c0_91 = arith.constant 0 : index
    %119 = vector.load %arg2[%c0_89, %118, %c0_90, %c0_91] : memref<1x18x18x16xf32, #tpu.memory_space<vmem>>, vector<1x16x16x16xf32>
    %120 = vector.shape_cast %119 : vector<1x16x16x16xf32> to vector<16x16x16xf32>
    %121 = vector.shape_cast %120 : vector<16x16x16xf32> to vector<256x16xf32>
    %c10 = arith.constant 10 : index
    %c0_92 = arith.constant 0 : index
    %c0_93 = arith.constant 0 : index
    %122 = vector.load %arg3[%c10, %c0_92, %c0_93] : memref<16x16x3xf32, #tpu.memory_space<vmem>>, vector<1x16x3xf32>
    %123 = vector.shape_cast %122 : vector<1x16x3xf32> to vector<16x3xf32>
    %cst_94 = arith.constant dense<0.000000e+00> : vector<256x3xf32>
    %124 = tpu.matmul %121, %123, %cst_94 {dimension_numbers = #tpu.dot_dimension_numbers<[1], [0], [0], [1], [0, 0, 1, 1], [], []>} : vector<256x16xf32>, vector<16x3xf32>, vector<256x3xf32> -> vector<256x3xf32>
    %125 = arith.addf %115, %124 : vector<256x3xf32>
    %c1_i32_95 = arith.constant 1 : i32
    %126 = arith.addi %1, %c1_i32_95 : i32
    %c1_i32_96 = arith.constant 1 : i32
    %127 = arith.addi %126, %c1_i32_96 : i32
    %c0_97 = arith.constant 0 : index
    %128 = arith.index_cast %127 : i32 to index
    %c1_98 = arith.constant 1 : index
    %c0_99 = arith.constant 0 : index
    %129 = vector.load %arg2[%c0_97, %128, %c1_98, %c0_99] : memref<1x18x18x16xf32, #tpu.memory_space<vmem>>, vector<1x16x16x16xf32>
    %130 = vector.shape_cast %129 : vector<1x16x16x16xf32> to vector<16x16x16xf32>
    %131 = vector.shape_cast %130 : vector<16x16x16xf32> to vector<256x16xf32>
    %c11 = arith.constant 11 : index
    %c0_100 = arith.constant 0 : index
    %c0_101 = arith.constant 0 : index
    %132 = vector.load %arg3[%c11, %c0_100, %c0_101] : memref<16x16x3xf32, #tpu.memory_space<vmem>>, vector<1x16x3xf32>
    %133 = vector.shape_cast %132 : vector<1x16x3xf32> to vector<16x3xf32>
    %cst_102 = arith.constant dense<0.000000e+00> : vector<256x3xf32>
    %134 = tpu.matmul %131, %133, %cst_102 {dimension_numbers = #tpu.dot_dimension_numbers<[1], [0], [0], [1], [0, 0, 1, 1], [], []>} : vector<256x16xf32>, vector<16x3xf32>, vector<256x3xf32> -> vector<256x3xf32>
    %135 = arith.addf %125, %134 : vector<256x3xf32>
    %136 = vector.broadcast %2 : vector<1x3xf32> to vector<256x3xf32>
    %137 = arith.addf %135, %136 : vector<256x3xf32>
    %138 = vector.shape_cast %137 : vector<256x3xf32> to vector<16x16x3xf32>
    %cst_103 = arith.constant 0.000000e+00 : f32
    %139 = vector.broadcast %cst_103 : f32 to vector<256x3xf32>
    %c0_i32_104 = arith.constant 0 : i32
    %140 = arith.addi %1, %c0_i32_104 : i32
    %c1_i32_105 = arith.constant 1 : i32
    %141 = arith.addi %140, %c1_i32_105 : i32
    %c0_106 = arith.constant 0 : index
    %142 = arith.index_cast %141 : i32 to index
    %c1_107 = arith.constant 1 : index
    %c0_108 = arith.constant 0 : index
    %143 = vector.load %arg2[%c0_106, %142, %c1_107, %c0_108] : memref<1x18x18x16xf32, #tpu.memory_space<vmem>>, vector<1x16x16x16xf32>
    %144 = vector.shape_cast %143 : vector<1x16x16x16xf32> to vector<16x16x16xf32>
    %145 = vector.shape_cast %144 : vector<16x16x16xf32> to vector<256x16xf32>
    %c12 = arith.constant 12 : index
    %c0_109 = arith.constant 0 : index
    %c0_110 = arith.constant 0 : index
    %146 = vector.load %arg3[%c12, %c0_109, %c0_110] : memref<16x16x3xf32, #tpu.memory_space<vmem>>, vector<1x16x3xf32>
    %147 = vector.shape_cast %146 : vector<1x16x3xf32> to vector<16x3xf32>
    %cst_111 = arith.constant dense<0.000000e+00> : vector<256x3xf32>
    %148 = tpu.matmul %145, %147, %cst_111 {dimension_numbers = #tpu.dot_dimension_numbers<[1], [0], [0], [1], [0, 0, 1, 1], [], []>} : vector<256x16xf32>, vector<16x3xf32>, vector<256x3xf32> -> vector<256x3xf32>
    %149 = arith.addf %139, %148 : vector<256x3xf32>
    %c0_i32_112 = arith.constant 0 : i32
    %150 = arith.addi %1, %c0_i32_112 : i32
    %c1_i32_113 = arith.constant 1 : i32
    %151 = arith.addi %150, %c1_i32_113 : i32
    %c0_114 = arith.constant 0 : index
    %152 = arith.index_cast %151 : i32 to index
    %c2_115 = arith.constant 2 : index
    %c0_116 = arith.constant 0 : index
    %153 = vector.load %arg2[%c0_114, %152, %c2_115, %c0_116] : memref<1x18x18x16xf32, #tpu.memory_space<vmem>>, vector<1x16x16x16xf32>
    %154 = vector.shape_cast %153 : vector<1x16x16x16xf32> to vector<16x16x16xf32>
    %155 = vector.shape_cast %154 : vector<16x16x16xf32> to vector<256x16xf32>
    %c13 = arith.constant 13 : index
    %c0_117 = arith.constant 0 : index
    %c0_118 = arith.constant 0 : index
    %156 = vector.load %arg3[%c13, %c0_117, %c0_118] : memref<16x16x3xf32, #tpu.memory_space<vmem>>, vector<1x16x3xf32>
    %157 = vector.shape_cast %156 : vector<1x16x3xf32> to vector<16x3xf32>
    %cst_119 = arith.constant dense<0.000000e+00> : vector<256x3xf32>
    %158 = tpu.matmul %155, %157, %cst_119 {dimension_numbers = #tpu.dot_dimension_numbers<[1], [0], [0], [1], [0, 0, 1, 1], [], []>} : vector<256x16xf32>, vector<16x3xf32>, vector<256x3xf32> -> vector<256x3xf32>
    %159 = arith.addf %149, %158 : vector<256x3xf32>
    %c1_i32_120 = arith.constant 1 : i32
    %160 = arith.addi %1, %c1_i32_120 : i32
    %c1_i32_121 = arith.constant 1 : i32
    %161 = arith.addi %160, %c1_i32_121 : i32
    %c0_122 = arith.constant 0 : index
    %162 = arith.index_cast %161 : i32 to index
    %c1_123 = arith.constant 1 : index
    %c0_124 = arith.constant 0 : index
    %163 = vector.load %arg2[%c0_122, %162, %c1_123, %c0_124] : memref<1x18x18x16xf32, #tpu.memory_space<vmem>>, vector<1x16x16x16xf32>
    %164 = vector.shape_cast %163 : vector<1x16x16x16xf32> to vector<16x16x16xf32>
    %165 = vector.shape_cast %164 : vector<16x16x16xf32> to vector<256x16xf32>
    %c14 = arith.constant 14 : index
    %c0_125 = arith.constant 0 : index
    %c0_126 = arith.constant 0 : index
    %166 = vector.load %arg3[%c14, %c0_125, %c0_126] : memref<16x16x3xf32, #tpu.memory_space<vmem>>, vector<1x16x3xf32>
    %167 = vector.shape_cast %166 : vector<1x16x3xf32> to vector<16x3xf32>
    %cst_127 = arith.constant dense<0.000000e+00> : vector<256x3xf32>
    %168 = tpu.matmul %165, %167, %cst_127 {dimension_numbers = #tpu.dot_dimension_numbers<[1], [0], [0], [1], [0, 0, 1, 1], [], []>} : vector<256x16xf32>, vector<16x3xf32>, vector<256x3xf32> -> vector<256x3xf32>
    %169 = arith.addf %159, %168 : vector<256x3xf32>
    %c1_i32_128 = arith.constant 1 : i32
    %170 = arith.addi %1, %c1_i32_128 : i32
    %c1_i32_129 = arith.constant 1 : i32
    %171 = arith.addi %170, %c1_i32_129 : i32
    %c0_130 = arith.constant 0 : index
    %172 = arith.index_cast %171 : i32 to index
    %c2_131 = arith.constant 2 : index
    %c0_132 = arith.constant 0 : index
    %173 = vector.load %arg2[%c0_130, %172, %c2_131, %c0_132] : memref<1x18x18x16xf32, #tpu.memory_space<vmem>>, vector<1x16x16x16xf32>
    %174 = vector.shape_cast %173 : vector<1x16x16x16xf32> to vector<16x16x16xf32>
    %175 = vector.shape_cast %174 : vector<16x16x16xf32> to vector<256x16xf32>
    %c15 = arith.constant 15 : index
    %c0_133 = arith.constant 0 : index
    %c0_134 = arith.constant 0 : index
    %176 = vector.load %arg3[%c15, %c0_133, %c0_134] : memref<16x16x3xf32, #tpu.memory_space<vmem>>, vector<1x16x3xf32>
    %177 = vector.shape_cast %176 : vector<1x16x3xf32> to vector<16x3xf32>
    %cst_135 = arith.constant dense<0.000000e+00> : vector<256x3xf32>
    %178 = tpu.matmul %175, %177, %cst_135 {dimension_numbers = #tpu.dot_dimension_numbers<[1], [0], [0], [1], [0, 0, 1, 1], [], []>} : vector<256x16xf32>, vector<16x3xf32>, vector<256x3xf32> -> vector<256x3xf32>
    %179 = arith.addf %169, %178 : vector<256x3xf32>
    %180 = vector.broadcast %2 : vector<1x3xf32> to vector<256x3xf32>
    %181 = arith.addf %179, %180 : vector<256x3xf32>
    %182 = vector.shape_cast %181 : vector<256x3xf32> to vector<16x16x3xf32>
    %183 = tpu.concatenate %138, %182 in 2 : vector<16x16x3xf32>, vector<16x16x3xf32> -> vector<16x16x6xf32>
    %c0_136 = arith.constant 0 : index
    %c0_137 = arith.constant 0 : index
    %c1_138 = arith.constant 1 : index
    %c0_139 = arith.constant 0 : index
    %c0_140 = arith.constant 0 : index
    %184 = vector.load %arg5[%c0_136, %c0_137, %c1_138, %c0_139, %c0_140] : memref<1x16x2x16x6xf32, #tpu.memory_space<vmem>>, vector<1x16x1x16x6xf32>
    %185 = vector.shape_cast %184 : vector<1x16x1x16x6xf32> to vector<16x16x6xf32>
    %186 = vector.shape_cast %183 : vector<16x16x6xf32> to vector<1x16x1x16x6xf32>
    tpu.vector_store %arg5[%c0_136, %c0_137, %c1_138, %c0_139, %c0_140], %186 {strides = array<i32>} : memref<1x16x2x16x6xf32, #tpu.memory_space<vmem>>, vector<1x16x1x16x6xf32>,
    return
  }
  func.func @transform_0(%arg0: i32, %arg1: i32) -> (i32, i32, i32, i32) {
    %c0_i32 = arith.constant 0 : i32
    %c0_i32_0 = arith.constant 0 : i32
    %c0_i32_1 = arith.constant 0 : i32
    %c0_i32_2 = arith.constant 0 : i32
    return %arg0, %c0_i32, %c0_i32_0, %c0_i32_1 : i32, i32, i32, i32
  }
  func.func @transform_1(%arg0: i32, %arg1: i32) -> (i32, i32, i32) {
    %c0_i32 = arith.constant 0 : i32
    %c0_i32_0 = arith.constant 0 : i32
    %c0_i32_1 = arith.constant 0 : i32
    %c0_i32_2 = arith.constant 0 : i32
    return %c0_i32, %c0_i32_0, %c0_i32_1 : i32, i32, i32
  }
  func.func @transform_2(%arg0: i32, %arg1: i32) -> (i32, i32) {
    %c0_i32 = arith.constant 0 : i32
    %c0_i32_0 = arith.constant 0 : i32
    %c0_i32_1 = arith.constant 0 : i32
    return %c0_i32, %c0_i32_0 : i32, i32
  }
  func.func @transform_3(%arg0: i32, %arg1: i32) -> (i32, i32, i32, i32, i32) {
    %c0_i32 = arith.constant 0 : i32
    %c0_i32_0 = arith.constant 0 : i32
    %c0_i32_1 = arith.constant 0 : i32
    %c0_i32_2 = arith.constant 0 : i32
    return %arg0, %arg1, %c0_i32, %c0_i32_0, %c0_i32_1 : i32, i32, i32, i32, i32
  }
}

</mosaic_0001>

<bundles_post_ra>
// kernel: decoder_forward.4
= control target key start
LH: loop header
LB: loop body
LE: loop exit
PB: predicated region body
PF: predicated region fallthrough
CT: control target
= control target key end

     0   :  { %s3766_s12 = smov 0   ;;  %s3768_s13 = smov 0   ;;  %s4441_s0 = inlined_call_operand.vmem [shape: f32[2,10,10,32], index: 0, kind: input, shape index: {}]   ;;  %s4442_s1 = inlined_call_operand.vmem [shape: f32[16,32,16], index: 1, kind: input, shape index: {}]   ;;  %s4443_s2 = inlined_call_operand.vmem [shape: f32[1,16], index: 2, kind: input, shape index: {}]   ;;  %s4444_s3 = inlined_call_operand.vmem [shape: f32[2,8,2,8,32], index: 3, kind: output, shape index: {}]  }
   0x1   :  { %s3770_s14 = smov 0  }
   0x2 LB: > { %s25_s15 = sadd.s32 1, %s3739_s13  ;;  %p2683_p0 = scmp.ge.s32.totalorder %s3743_s14, 1  ;;  %s3743_s14 = sphi %s3770_s14, %s13_s14   ;;  %s3739_s13 = sphi %s3768_s13, %s4446_s13   ;;  %s3735_s12 = sphi %s3766_s12, %s4445_s12  }
   0x3   : > { %p27_p1 = scmp.ge.s32.totalorder %s25_s15, 2  ;;  %p151_p2 = scmp.lt.s32.totalorder %s3743_s14, 3 }
   0x5   : > { %s4448_s15 = smov (%p27_p1, %s25_s15), 0  ;;  %p152_p3 = pnand %p2683_p0, %p151_p2 }
   0x6   : > { %v2752_v0 = vld [vmem:[%s4442_s1 + $0xa0] sm:$0xff] (!%p152_p3)  ;;  %v2753_v1 = vld [vmem:[%s4442_s1 + $0xa8] sm:$0xff] (!%p152_p3)  ;;  %v2754_v2 = vld [vmem:[%s4442_s1 + $0xb0] sm:$0xff] (!%p152_p3)  ;;  %p180_p4 = scmp.lt.s32.totalorder (!%p152_p3), %s3735_s12, 1  ;;  %vm225_vm0 = vcmask (!%p152_p3), 261120   ;;  %s3745_s16 = smov (!%p152_p3), 16  }
   0x7   : > { %155 = sbr.rel (%p152_p3) target bundleno = 478 (0x1de), region = 32  ;;  %v3503_v3 = vpack.c.bf16 (!%p152_p3), %v2753_v1, %v2752_v0  ;;  %v2755_v4 = vld [vmem:[%s4442_s1 + $0xb8] sm:$0xff] (!%p152_p3)  ;;  %v2748_v6 = vld [vmem:[%s4442_s1 + $0x80] sm:$0xff] (!%p152_p3)  ;;  %v2749_v7 = vld [vmem:[%s4442_s1 + $0x88] sm:$0xff] (!%p152_p3)  ;;  %vm1377_vm1 = vcmask (!%p152_p3), 130048  }
   0x8   : > { %v3507_v5 = vpack.c.bf16 (!%p152_p3), %v2755_v4, %v2754_v2  ;;  %v3511_v8 = vpack.c.bf16 (!%p152_p3), %v2749_v7, %v2748_v6  ;;  %v2750_v9 = vld [vmem:[%s4442_s1 + $0x90] sm:$0xff] (!%p152_p3)  ;;  %v2751_v10 = vld [vmem:[%s4442_s1 + $0x98] sm:$0xff] (!%p152_p3)  ;;  %v2772_v16 = vld [vmem:[%s4442_s1 + $0xc0] sm:$0xff] (!%p152_p3) }
   0x9   : > { %3504 = vmatprep.subr.bf16.mxu1 (!%p152_p3), %v3503_v3  ;;  %v3515_v14 = vpack.c.bf16 (!%p152_p3), %v2751_v10, %v2750_v9  ;;  %v2773_v17 = vld [vmem:[%s4442_s1 + $0xc8] sm:$0xff] (!%p152_p3)  ;;  %v2687_v18 = vld [vmem:[%s4442_s1 + $0x20] sm:$0xff] (!%p152_p3)  ;;  %v2689_v24 = vld [vmem:[%s4442_s1 + $0x30] sm:$0xff] (!%p152_p3) }
   0xa   : > { %3506 = vmatpush3.bf16.msra.mxu1 (!%p152_p3), %v3503_v3  ;;  %v2688_v20 = vld [vmem:[%s4442_s1 + $0x28] sm:$0xff] (!%p152_p3)  ;;  %v3519_v22 = vpack.c.bf16 (!%p152_p3), %v2773_v17, %v2772_v16  ;;  %v2690_v25 = vld [vmem:[%s4442_s1 + $0x38] sm:$0xff] (!%p152_p3)  ;;  %v208_v27 = vld [vmem:[%s4442_s1] sm:$0xff] (!%p152_p3) }
   0xb   : > { %3508 = vmatprep.subr.bf16.mxu1 (!%p152_p3), %v3507_v5  ;;  %v3471_v23 = vpack.c.bf16 (!%p152_p3), %v2688_v20, %v2687_v18  ;;  %v3475_v26 = vpack.c.bf16 (!%p152_p3), %v2690_v25, %v2689_v24  ;;  %v209_v28 = vld [vmem:[%s4442_s1 + $0x8] sm:$0xff] (!%p152_p3)  ;;  %v210_v32 = vld [vmem:[%s4442_s1 + $0x10] sm:$0xff] (!%p152_p3)  ;;  %v211_v33 = vld [vmem:[%s4442_s1 + $0x18] sm:$0xff] (!%p152_p3) }
   0xc   : > { %v3479_v31 = vpack.c.bf16 (!%p152_p3), %v209_v28, %v208_v27  ;;  %v2774_v35 = vld [vmem:[%s4442_s1 + $0xd0] sm:$0xff] (!%p152_p3)  ;;  %v2775_v36 = vld [vmem:[%s4442_s1 + $0xd8] sm:$0xff] (!%p152_p3)  ;;  %v3483_v37 = vpack.c.bf16 (!%p152_p3), %v211_v33, %v210_v32  ;;  %v2715_v40 = vld [vmem:[%s4442_s1 + $0x40] sm:$0xff] (!%p152_p3) }
   0xd   : > { %3472 = vmatprep.subr.bf16.mxu0 (!%p152_p3), %v3471_v23  ;;  %v2716_v41 = vld [vmem:[%s4442_s1 + $0x48] sm:$0xff] (!%p152_p3)  ;;  %v3523_v42 = vpack.c.bf16 (!%p152_p3), %v2775_v36, %v2774_v35  ;;  %v2792_v43 = vld [vmem:[%s4442_s1 + $0xe0] sm:$0xff] (!%p152_p3)  ;;  %v2717_v53 = vld [vmem:[%s4442_s1 + $0x50] sm:$0xff] (!%p152_p3) }
   0xe   : > { %s4450_s12 = smov (!%p180_p4, %s3735_s12), 1  ;;  %3510 = vmatpush3.bf16.msra.mxu1 %v3507_v5  ;;  %3474 = vmatpush3.bf16.msra.mxu0 %v3471_v23  ;;  %v2793_v44 = vld [vmem:[%s4442_s1 + $0xe8] sm:$0xff]  ;;  %v3487_v45 = vpack.c.bf16 %v2716_v41, %v2715_v40  ;;  %v2718_v54 = vld [vmem:[%s4442_s1 + $0x58] sm:$0xff]  ;;  %v2794_v55 = vld [vmem:[%s4442_s1 + $0xf0] sm:$0xff] }
   0xf   : > { %s3695_s28 = smul.u32 160, %s4450_s12  ;;  %3512 = vmatprep.subr.bf16.mxu1 %v3511_v8  ;;  %3476 = vmatprep.subr.bf16.mxu0 %v3475_v26  ;;  %v3527_v48 = vpack.c.bf16 %v2793_v44, %v2792_v43  ;;  %v2795_v56 = vld [vmem:[%s4442_s1 + $0xf8] sm:$0xff]  ;;  %v3491_v59 = vpack.c.bf16 %v2718_v54, %v2717_v53  ;;  %v2735_v60 = vld [vmem:[%s4442_s1 + $0x60] sm:$0xff]  ;;  %v2736_v61 = vld [vmem:[%s4442_s1 + $0x68] sm:$0xff]  ;;  %s2958_s17 = sshll.u32 %s4450_s12, 7 }
  0x10   : > { %v3531_v62 = vpack.c.bf16 %v2795_v56, %v2794_v55  ;;  %v2896_v63 = vld [vmem:[%s4442_s1 + $0x1a0] sm:$0xff]  ;;  %v2897_v0 = vld [vmem:[%s4442_s1 + $0x1a8] sm:$0xff]  ;;  %v3495_v3 = vpack.c.bf16 %v2736_v61, %v2735_v60  ;;  %v2737_v9 = vld [vmem:[%s4442_s1 + $0x70] sm:$0xff]  ;;  %s4364_s20 = scalar_lea.vmem %s4444_s3, %s2958_s17 }
  0x11   : > { %s3808_s4 = scalar_lea.vmem %s4441_s0, %s3695_s28  ;;  %v3567_v4 = vpack.c.bf16 %v2897_v0, %v2896_v63  ;;  %v2738_v10 = vld [vmem:[%s4442_s1 + $0x78] sm:$0xff]  ;;  %v2824_v16 = vld [vmem:[%s4442_s1 + $0x120] sm:$0xff]  ;;  %v2825_v17 = vld [vmem:[%s4442_s1 + $0x128] sm:$0xff] }
  0x12   : > { %v814_v11 = vld [vmem:[%s3808_s4 + $0x2] sm:$0xff]  ;;  %v3819_v12 = vld [vmem:[%s3808_s4 + $0x12] sm:$0xff]  ;;  %3478 = vmatpush3.bf16.msra.mxu0 %v3475_v26  ;;  %v3535_v23 = vpack.c.bf16 %v2825_v17, %v2824_v16 }
  0x13   : > { %3239 = vmatprep.mubr.msk.f32.mxu1 %vm225_vm0, %v814_v11  ;;  %v3822_v13 = vld [vmem:[%s3808_s4 + $0x22] sm:$0xff]  ;;  %v3840_v19 = vld [vmem:[%s3808_s4 + $0x32] sm:$0xff]  ;;  %3480 = vmatprep.subr.bf16.mxu0 %v3479_v31 }
  0x14   : > { %v212_v15 = vld [vmem:[%s3808_s4 + $0x1] sm:$0xff]  ;;  %3240 = vmatmul.mubr.msk.f32.vlgmr.msra.gmra.mrb[0].mxu1 %vm225_vm0, %v3819_v12  ;;  %v3865_v29 = vld [vmem:[%s3808_s4 + $0x52] sm:$0xff] }
  0x15   : > { %3159 = vmatprep.mubr.msk.f32.mxu0 %vm225_vm0, %v212_v15  ;;  %3514 = vmatpush3.bf16.msra.mxu1 %v3511_v8  ;;  %v3846_v21 = vld [vmem:[%s3808_s4 + $0x42] sm:$0xff]  ;;  %v3881_v34 = vld [vmem:[%s3808_s4 + $0x72] sm:$0xff] }
  0x16   : > { %3242 = vmatprep.mubr.msk.f32.mxu1 %vm225_vm0, %v3822_v13  ;;  %3516 = vmatprep.subr.bf16.mxu1 %v3515_v14  ;;  %v3868_v30 = vld [vmem:[%s3808_s4 + $0x62] sm:$0xff]  ;;  %v3892_v38 = vld [vmem:[%s3808_s4 + $0x11] sm:$0xff] }
  0x17   : > { %v3896_v39 = vld [vmem:[%s3808_s4 + $0x21] sm:$0xff]  ;;  %3160 = vmatmul.mubr.msk.f32.vlgmr.msra.gmra.mrb[0].mxu0 %vm225_vm0, %v3892_v38  ;;  %v3919_v46 = vld [vmem:[%s3808_s4 + $0x31] sm:$0xff] }
  0x18   : > { %3243 = vmatmul.mubr.msk.f32.gmra.mrb[2].mxu1 %vm225_vm0, %v3840_v19  ;;  %3162 = vmatprep.mubr.msk.f32.mxu0 %vm225_vm0, %v3896_v39  ;;  %v3922_v47 = vld [vmem:[%s3808_s4 + $0x41] sm:$0xff]  ;;  %v3933_v49 = vld [vmem:[%s3808_s4 + $0x51] sm:$0xff] }
  0x19   : > { %3245 = vmatprep.mubr.msk.f32.mxu1 %vm225_vm0, %v3846_v21  ;;  %3518 = vmatpush3.bf16.msra.mxu1 %v3515_v14  ;;  %v3936_v50 = vld [vmem:[%s3808_s4 + $0x61] sm:$0xff]  ;;  %v3948_v52 = vld [vmem:[%s3808_s4 + $0x71] sm:$0xff] }
  0x1a   : > { %3520 = vmatprep.subr.bf16.mxu1 %v3519_v22  ;;  %3482 = vmatpush3.bf16.msra.mxu0 %v3479_v31  ;;  %v200_v51 = vld [vmem:[%s3808_s4] sm:$0xff]  ;;  %v3966_v57 = vld [vmem:[%s3808_s4 + $0x10] sm:$0xff]  ;;  %v2899_v14 = vld [vmem:[%s4442_s1 + $0x1b8] sm:$0xff] }
  0x1b   : > { %3484 = vmatprep.subr.bf16.mxu0 %v3483_v37  ;;  %3163 = vmatmul.mubr.msk.f32.gmra.mrb[2].mxu0 %vm225_vm0, %v3919_v46  ;;  %v3971_v58 = vld [vmem:[%s3808_s4 + $0x20] sm:$0xff]  ;;  %v3992_v1 = vld [vmem:[%s3808_s4 + $0x30] sm:$0xff]  ;;  %v2827_v28 = vld [vmem:[%s4442_s1 + $0x138] sm:$0xff] }
  0x1c   : > { %3246 = vmatmul.mubr.msk.f32.gmra.mrb[4].mxu1 %vm225_vm0, %v3865_v29  ;;  %3165 = vmatprep.mubr.msk.f32.mxu0 %vm225_vm0, %v3922_v47  ;;  %v3997_v2 = vld [vmem:[%s3808_s4 + $0x40] sm:$0xff]  ;;  %v4006_v5 = vld [vmem:[%s3808_s4 + $0x50] sm:$0xff]  ;;  %v2887_v32 = vld [vmem:[%s4442_s1 + $0x198] sm:$0xff] }
  0x1d   : > { %3248 = vmatprep.mubr.msk.f32.mxu1 %vm225_vm0, %v3868_v30  ;;  %v4011_v6 = vld [vmem:[%s3808_s4 + $0x60] sm:$0xff]  ;;  %v4020_v7 = vld [vmem:[%s3808_s4 + $0x70] sm:$0xff]  ;;  %v2813_v36 = vld [vmem:[%s4442_s1 + $0x108] sm:$0xff] }
  0x1e   : > { %3486 = vmatpush3.bf16.msra.mxu0 %v3483_v37  ;;  %v4027_v8 = vld [vmem:[%s3808_s4 + $0x81] sm:$0xff]  ;;  %v2898_v11 = vld [vmem:[%s4442_s1 + $0x1b0] sm:$0xff]  ;;  %v2815_v44 = vld [vmem:[%s4442_s1 + $0x118] sm:$0xff] }
  0x1f   : > { %3488 = vmatprep.subr.bf16.mxu0 %v3487_v45  ;;  %3166 = vmatmul.mubr.msk.f32.gmra.mrb[4].mxu0 %vm225_vm0, %v3933_v49  ;;  %v3571_v18 = vpack.c.bf16 %v2899_v14, %v2898_v11  ;;  %v2884_v20 = vld [vmem:[%s4442_s1 + $0x180] sm:$0xff]  ;;  %v2826_v27 = vld [vmem:[%s4442_s1 + $0x130] sm:$0xff]  ;;  %v2853_v54 = vld [vmem:[%s4442_s1 + $0x148] sm:$0xff] }
  0x20   : > { %3249 = vmatmul.mubr.msk.f32.gmra.mrb[6].mxu1 %vm225_vm0, %v3881_v34  ;;  %3168 = vmatprep.mubr.msk.f32.mxu0 %vm225_vm0, %v3936_v50  ;;  %v4082_v25 = vld [vmem:[%s3808_s4 + $0x80] sm:$0xff]  ;;  %v2886_v31 = vld [vmem:[%s4442_s1 + $0x190] sm:$0xff]  ;;  %v3539_v33 = vpack.c.bf16 %v2827_v28, %v2826_v27  ;;  %v2939_v0 = vld [vmem:[%s4442_s1 + $0x1f8] sm:$0xff] }
  0x21   : > { %3259 = vmatprep.mubr.msk.f32.mxu1 %vm225_vm0, %v212_v15  ;;  %v3499_v15 = vpack.c.bf16 %v2738_v10, %v2737_v9  ;;  %v4089_v26 = vld [vmem:[%s3808_s4 + $0x82] sm:$0xff]  ;;  %v3579_v37 = vpack.c.bf16 %v2887_v32, %v2886_v31  ;;  %v2814_v43 = vld [vmem:[%s4442_s1 + $0x110] sm:$0xff] }
  0x22   : > { %v2812_v35 = vld [vmem:[%s4442_s1 + $0x100] sm:$0xff]  ;;  %v2854_v61 = vld [vmem:[%s4442_s1 + $0x150] sm:$0xff]  ;;  %v2873_v9 = vld [vmem:[%s4442_s1 + $0x168] sm:$0xff] }
  0x23   : > { %3169 = vmatmul.mubr.msk.f32.gmra.mrb[6].mxu0 %vm225_vm0, %v3948_v52  ;;  %v2916_v40 = vld [vmem:[%s4442_s1 + $0x1c0] sm:$0xff]  ;;  %v3543_v41 = vpack.c.bf16 %v2813_v36, %v2812_v35  ;;  %v2938_v63 = vld [vmem:[%s4442_s1 + $0x1f0] sm:$0xff] }
  0x24   : > { %3260 = vmatmul.mubr.msk.f32.vlgmr.msra.gmra.mrb[0].mxu1 %vm225_vm0, %v3892_v38  ;;  %3179 = vmatprep.mubr.msk.f32.mxu0 %vm225_vm0, %v200_v51  ;;  %v3547_v51 = vpack.c.bf16 %v2815_v44, %v2814_v43  ;;  %v2852_v53 = vld [vmem:[%s4442_s1 + $0x140] sm:$0xff]  ;;  %v3595_v10 = vpack.c.bf16 %v2939_v0, %v2938_v63  ;;  %v2871_v11 = vld [vmem:[%s3808_s4 + $0x91] sm:$0xff] }
  0x25   : > { %3522 = vmatpush3.bf16.msra.mxu1 %v3519_v22  ;;  %3262 = vmatprep.mubr.msk.f32.mxu1 %vm225_vm0, %v3896_v39  ;;  %v2885_v22 = vld [vmem:[%s4442_s1 + $0x188] sm:$0xff]  ;;  %v2936_v56 = vld [vmem:[%s4442_s1 + $0x1e0] sm:$0xff]  ;;  %v2874_v14 = vld [vmem:[%s4442_s1 + $0x170] sm:$0xff] }
  0x26   : > { %3524 = vmatprep.subr.bf16.mxu1 %v3523_v42  ;;  %v3575_v24 = vpack.c.bf16 %v2885_v22, %v2884_v20 }
  0x27   : > { %3180 = vmatmul.mubr.msk.f32.vlgmr.msra.gmra.mrb[0].mxu0 %vm225_vm0, %v3966_v57 }
  0x28   : > { %3263 = vmatmul.mubr.msk.f32.gmra.mrb[2].mxu1 %vm225_vm0, %v3919_v46  ;;  %3182 = vmatprep.mubr.msk.f32.mxu0 %vm225_vm0, %v3971_v58 }
  0x29   : > { %3265 = vmatprep.mubr.msk.f32.mxu1 %vm225_vm0, %v3922_v47  ;;  %3526 = vmatpush3.bf16.msra.mxu1 %v3523_v42 }
  0x2a   : > { %3528 = vmatprep.subr.bf16.mxu1 %v3527_v48  ;;  %3490 = vmatpush3.bf16.msra.mxu0 %v3487_v45  ;;  %v2918_v45 = vld [vmem:[%s4442_s1 + $0x1d0] sm:$0xff] }
  0x2b   : > { %3492 = vmatprep.subr.bf16.mxu0 %v3491_v59  ;;  %3183 = vmatmul.mubr.msk.f32.gmra.mrb[2].mxu0 %vm225_vm0, %v3992_v1 }
  0x2c   : > { %3266 = vmatmul.mubr.msk.f32.gmra.mrb[4].mxu1 %vm225_vm0, %v3933_v49  ;;  %3185 = vmatprep.mubr.msk.f32.mxu0 %vm225_vm0, %v3997_v2 }
  0x2d   : > { %3268 = vmatprep.mubr.msk.f32.mxu1 %vm225_vm0, %v3936_v50 }
  0x2e   : > { %3494 = vmatpush3.bf16.msra.mxu0 %v3491_v59  ;;  %v3551_v59 = vpack.c.bf16 %v2853_v54, %v2852_v53 }
  0x2f   : > { %3496 = vmatprep.subr.bf16.mxu0 %v3495_v3  ;;  %3186 = vmatmul.mubr.msk.f32.gmra.mrb[4].mxu0 %vm225_vm0, %v4006_v5 }
  0x30   : > { %3269 = vmatmul.mubr.msk.f32.gmra.mrb[6].mxu1 %vm225_vm0, %v3948_v52  ;;  %3188 = vmatprep.mubr.msk.f32.mxu0 %vm225_vm0, %v4011_v6 }
  0x31   : > { %3279 = vmatprep.mubr.msk.f32.mxu1 %vm225_vm0, %v3892_v38 }
  0x33   : > { %3189 = vmatmul.mubr.msk.f32.gmra.mrb[6].mxu0 %vm225_vm0, %v4020_v7 }
  0x34   : > { %3280 = vmatmul.mubr.msk.f32.vlgmr.msra.gmra.mrb[0].mxu1 %vm225_vm0, %v3896_v39  ;;  %3199 = vmatprep.mubr.msk.f32.mxu0 %vm225_vm0, %v3966_v57 }
  0x35   : > { %3530 = vmatpush3.bf16.msra.mxu1 %v3527_v48  ;;  %3282 = vmatprep.mubr.msk.f32.mxu1 %vm225_vm0, %v3919_v46  ;;  %v2919_v48 = vld [vmem:[%s4442_s1 + $0x1d8] sm:$0xff] }
  0x36   : > { %3532 = vmatprep.subr.bf16.mxu1 %v3531_v62  ;;  %v3587_v55 = vpack.c.bf16 %v2919_v48, %v2918_v45 }
  0x37   : > { %3200 = vmatmul.mubr.msk.f32.vlgmr.msra.gmra.mrb[0].mxu0 %vm225_vm0, %v3971_v58 }
  0x38   : > { %3283 = vmatmul.mubr.msk.f32.gmra.mrb[2].mxu1 %vm225_vm0, %v3922_v47  ;;  %3202 = vmatprep.mubr.msk.f32.mxu0 %vm225_vm0, %v3992_v1 }
  0x39   : > { %3285 = vmatprep.mubr.msk.f32.mxu1 %vm225_vm0, %v3933_v49  ;;  %3534 = vmatpush3.bf16.msra.mxu1 %v3531_v62  ;;  %v2855_v62 = vld [vmem:[%s4442_s1 + $0x158] sm:$0xff] }
  0x3a   : > { %3568 = vmatprep.subr.bf16.mxu1 %v3567_v4  ;;  %3498 = vmatpush3.bf16.msra.mxu0 %v3495_v3  ;;  %v3555_v3 = vpack.c.bf16 %v2855_v62, %v2854_v61 }
  0x3b   : > { %3500 = vmatprep.subr.bf16.mxu0 %v3499_v15  ;;  %3203 = vmatmul.mubr.msk.f32.gmra.mrb[2].mxu0 %vm225_vm0, %v3997_v2 }
  0x3c   : > { %3286 = vmatmul.mubr.msk.f32.gmra.mrb[4].mxu1 %vm225_vm0, %v3936_v50  ;;  %3205 = vmatprep.mubr.msk.f32.mxu0 %vm225_vm0, %v4006_v5 }
  0x3d   : > { %3288 = vmatprep.mubr.msk.f32.mxu1 %vm225_vm0, %v3948_v52 }
  0x3e   : > { %3502 = vmatpush3.bf16.msra.mxu0 %v3499_v15  ;;  %v2875_v15 = vld [vmem:[%s4442_s1 + $0x178] sm:$0xff] }
  0x3f   : > { %3536 = vmatprep.subr.bf16.mxu0 %v3535_v23  ;;  %3206 = vmatmul.mubr.msk.f32.gmra.mrb[4].mxu0 %vm225_vm0, %v4011_v6  ;;  %v3563_v16 = vpack.c.bf16 %v2875_v15, %v2874_v14 }
  0x40   : > { %3289 = vmatmul.mubr.msk.f32.gmra.mrb[6].mxu1 %vm225_vm0, %v4027_v8  ;;  %3208 = vmatprep.mubr.msk.f32.mxu0 %vm225_vm0, %v4020_v7 }
  0x41   : > { %3299 = vmatprep.mubr.msk.f32.mxu1 %vm225_vm0, %v3819_v12 }
  0x43   : > { %3209 = vmatmul.mubr.msk.f32.gmra.mrb[6].mxu0 %vm225_vm0, %v4082_v25 }
  0x44   : > { %3300 = vmatmul.mubr.msk.f32.vlgmr.msra.gmra.mrb[0].mxu1 %vm225_vm0, %v3822_v13  ;;  %3219 = vmatprep.mubr.msk.f32.mxu0 %vm225_vm0, %v3892_v38 }
  0x45   : > { %3570 = vmatpush3.bf16.msra.mxu1 %v3567_v4  ;;  %3302 = vmatprep.mubr.msk.f32.mxu1 %vm225_vm0, %v3840_v19  ;;  %v2872_v4 = vld [vmem:[%s4442_s1 + $0x160] sm:$0xff] }
  0x46   : > { %3572 = vmatprep.subr.bf16.mxu1 %v3571_v18 }
  0x47   : > { %3220 = vmatmul.mubr.msk.f32.vlgmr.msra.gmra.mrb[0].mxu0 %vm225_vm0, %v3896_v39 }
  0x48   : > { %3303 = vmatmul.mubr.msk.f32.gmra.mrb[2].mxu1 %vm225_vm0, %v3846_v21  ;;  %3222 = vmatprep.mubr.msk.f32.mxu0 %vm225_vm0, %v3919_v46 }
  0x49   : > { %3305 = vmatprep.mubr.msk.f32.mxu1 %vm225_vm0, %v3865_v29  ;;  %3574 = vmatpush3.bf16.msra.mxu1 %v3571_v18 }
  0x4a   : > { %3576 = vmatprep.subr.bf16.mxu1 %v3575_v24  ;;  %3538 = vmatpush3.bf16.msra.mxu0 %v3535_v23 }
  0x4b   : > { %3540 = vmatprep.subr.bf16.mxu0 %v3539_v33  ;;  %3223 = vmatmul.mubr.msk.f32.gmra.mrb[2].mxu0 %vm225_vm0, %v3922_v47 }
  0x4c   : > { %3306 = vmatmul.mubr.msk.f32.gmra.mrb[4].mxu1 %vm225_vm0, %v3868_v30  ;;  %3225 = vmatprep.mubr.msk.f32.mxu0 %vm225_vm0, %v3933_v49 }
  0x4d   : > { %3308 = vmatprep.mubr.msk.f32.mxu1 %vm225_vm0, %v3881_v34 }
  0x4e   : > { %3542 = vmatpush3.bf16.msra.mxu0 %v3539_v33 }
  0x4f   : > { %3544 = vmatprep.subr.bf16.mxu0 %v3543_v41  ;;  %3226 = vmatmul.mubr.msk.f32.gmra.mrb[4].mxu0 %vm225_vm0, %v3936_v50 }
  0x50   : > { %3309 = vmatmul.mubr.msk.f32.gmra.mrb[6].mxu1 %vm225_vm0, %v4089_v26  ;;  %3228 = vmatprep.mubr.msk.f32.mxu0 %vm225_vm0, %v3948_v52 }
  0x51   : > { %3399 = vmatprep.mubr.msk.f32.mxu1 %vm225_vm0, %v3819_v12  ;;  %v2917_v12 = vld [vmem:[%s4442_s1 + $0x1c8] sm:$0xff] }
  0x52   : > { %v3583_v42 = vpack.c.bf16 %v2917_v12, %v2916_v40 }
  0x53   : > { %3229 = vmatmul.mubr.msk.f32.gmra.mrb[6].mxu0 %vm225_vm0, %v4027_v8 }
  0x54   : > { %3400 = vmatmul.mubr.msk.f32.vlgmr.msra.gmra.mrb[8].mxu1 %vm225_vm0, %v3822_v13  ;;  %3319 = vmatprep.mubr.msk.f32.mxu0 %vm225_vm0, %v3892_v38 }
  0x55   : > { %3578 = vmatpush3.bf16.msra.mxu1 %v3575_v24  ;;  %3402 = vmatprep.mubr.msk.f32.mxu1 %vm225_vm0, %v3840_v19 }
  0x56   : > { %3580 = vmatprep.subr.bf16.mxu1 %v3579_v37 }
  0x57   : > { %3320 = vmatmul.mubr.msk.f32.vlgmr.msra.gmra.mrb[8].mxu0 %vm225_vm0, %v3896_v39 }
  0x58   : > { %3403 = vmatmul.mubr.msk.f32.gmra.mrb[10].mxu1 %vm225_vm0, %v3846_v21  ;;  %3322 = vmatprep.mubr.msk.f32.mxu0 %vm225_vm0, %v3919_v46 }
  0x59   : > { %3405 = vmatprep.mubr.msk.f32.mxu1 %vm225_vm0, %v3865_v29  ;;  %3582 = vmatpush3.bf16.msra.mxu1 %v3579_v37 }
  0x5a   : > { %3584 = vmatprep.subr.bf16.mxu1 %v3583_v42  ;;  %3546 = vmatpush3.bf16.msra.mxu0 %v3543_v41 }
  0x5b   : > { %3548 = vmatprep.subr.bf16.mxu0 %v3547_v51  ;;  %3323 = vmatmul.mubr.msk.f32.gmra.mrb[10].mxu0 %vm225_vm0, %v3922_v47 }
  0x5c   : > { %3406 = vmatmul.mubr.msk.f32.gmra.mrb[12].mxu1 %vm225_vm0, %v3868_v30  ;;  %3325 = vmatprep.mubr.msk.f32.mxu0 %vm225_vm0, %v3933_v49 }
  0x5d   : > { %3408 = vmatprep.mubr.msk.f32.mxu1 %vm225_vm0, %v3881_v34 }
  0x5e   : > { %3550 = vmatpush3.bf16.msra.mxu0 %v3547_v51 }
  0x5f   : > { %3552 = vmatprep.subr.bf16.mxu0 %v3551_v59  ;;  %3326 = vmatmul.mubr.msk.f32.gmra.mrb[12].mxu0 %vm225_vm0, %v3936_v50 }
  0x60   : > { %3409 = vmatmul.mubr.msk.f32.gmra.mrb[14].mxu1 %vm225_vm0, %v4089_v26  ;;  %3328 = vmatprep.mubr.msk.f32.mxu0 %vm225_vm0, %v3948_v52 }
  0x61   : > { %3419 = vmatprep.mubr.msk.f32.mxu1 %vm225_vm0, %v3892_v38  ;;  %v2937_v38 = vld [vmem:[%s4442_s1 + $0x1e8] sm:$0xff] }
  0x62   : > { %v3591_v60 = vpack.c.bf16 %v2937_v38, %v2936_v56 }
  0x63   : > { %3329 = vmatmul.mubr.msk.f32.gmra.mrb[14].mxu0 %vm225_vm0, %v4027_v8 }
  0x64   : > { %3420 = vmatmul.mubr.msk.f32.vlgmr.msra.gmra.mrb[8].mxu1 %vm225_vm0, %v3896_v39  ;;  %3339 = vmatprep.mubr.msk.f32.mxu0 %vm225_vm0, %v3966_v57  ;;  %v3559_v57 = vpack.c.bf16 %v2873_v9, %v2872_v4 }
  0x65   : > { %3586 = vmatpush3.bf16.msra.mxu1 %v3583_v42  ;;  %3422 = vmatprep.mubr.msk.f32.mxu1 %vm225_vm0, %v3919_v46 }
  0x66   : > { %3588 = vmatprep.subr.bf16.mxu1 %v3587_v55 }
  0x67   : > { %3340 = vmatmul.mubr.msk.f32.vlgmr.msra.gmra.mrb[8].mxu0 %vm225_vm0, %v3971_v58 }
  0x68   : > { %3423 = vmatmul.mubr.msk.f32.gmra.mrb[10].mxu1 %vm225_vm0, %v3922_v47  ;;  %3342 = vmatprep.mubr.msk.f32.mxu0 %vm225_vm0, %v3992_v1 }
  0x69   : > { %3425 = vmatprep.mubr.msk.f32.mxu1 %vm225_vm0, %v3933_v49  ;;  %3590 = vmatpush3.bf16.msra.mxu1 %v3587_v55 }
  0x6a   : > { %3592 = vmatprep.subr.bf16.mxu1 %v3591_v60  ;;  %3554 = vmatpush3.bf16.msra.mxu0 %v3551_v59 }
  0x6b   : > { %3556 = vmatprep.subr.bf16.mxu0 %v3555_v3  ;;  %3343 = vmatmul.mubr.msk.f32.gmra.mrb[10].mxu0 %vm225_vm0, %v3997_v2 }
  0x6c   : > { %3426 = vmatmul.mubr.msk.f32.gmra.mrb[12].mxu1 %vm225_vm0, %v3936_v50  ;;  %3345 = vmatprep.mubr.msk.f32.mxu0 %vm225_vm0, %v4006_v5 }
  0x6d   : > { %3428 = vmatprep.mubr.msk.f32.mxu1 %vm225_vm0, %v3948_v52 }
  0x6e   : > { %3558 = vmatpush3.bf16.msra.mxu0 %v3555_v3 }
  0x6f   : > { %3560 = vmatprep.subr.bf16.mxu0 %v3559_v57  ;;  %3346 = vmatmul.mubr.msk.f32.gmra.mrb[12].mxu0 %vm225_vm0, %v4011_v6 }
  0x70   : > { %3429 = vmatmul.mubr.msk.f32.gmra.mrb[14].mxu1 %vm225_vm0, %v4027_v8  ;;  %3348 = vmatprep.mubr.msk.f32.mxu0 %vm225_vm0, %v4020_v7 }
  0x71   : > { %3439 = vmatprep.mubr.msk.f32.mxu1 %vm225_vm0, %v3896_v39 }
  0x73   : > { %3349 = vmatmul.mubr.msk.f32.gmra.mrb[14].mxu0 %vm225_vm0, %v4082_v25 }
  0x74   : > { %3440 = vmatmul.mubr.msk.f32.vlgmr.msra.gmra.mrb[8].mxu1 %vm225_vm0, %v3919_v46  ;;  %3359 = vmatprep.mubr.msk.f32.mxu0 %vm225_vm0, %v3971_v58 }
  0x75   : > { %3594 = vmatpush3.bf16.msra.mxu1 %v3591_v60  ;;  %3442 = vmatprep.mubr.msk.f32.mxu1 %vm225_vm0, %v3922_v47 }
  0x76   : > { %3596 = vmatprep.subr.bf16.mxu1 %v3595_v10 }
  0x77   : > { %3360 = vmatmul.mubr.msk.f32.vlgmr.msra.gmra.mrb[8].mxu0 %vm225_vm0, %v3992_v1 }
  0x78   : > { %3443 = vmatmul.mubr.msk.f32.gmra.mrb[10].mxu1 %vm225_vm0, %v3933_v49  ;;  %3362 = vmatprep.mubr.msk.f32.mxu0 %vm225_vm0, %v3997_v2 }
  0x79   : > { %3445 = vmatprep.mubr.msk.f32.mxu1 %vm225_vm0, %v3936_v50  ;;  %3598 = vmatpush3.bf16.msra.mxu1 %v3595_v10 }
  0x7a   : > { %3562 = vmatpush3.bf16.msra.mxu0 %v3559_v57 }
  0x7b   : > { %3564 = vmatprep.subr.bf16.mxu0 %v3563_v16  ;;  %3363 = vmatmul.mubr.msk.f32.gmra.mrb[10].mxu0 %vm225_vm0, %v4006_v5 }
  0x7c   : > { %3446 = vmatmul.mubr.msk.f32.gmra.mrb[12].mxu1 %vm225_vm0, %v3948_v52  ;;  %3365 = vmatprep.mubr.msk.f32.mxu0 %vm225_vm0, %v4011_v6 }
  0x7d   : > { %3448 = vmatprep.mubr.msk.f32.mxu1 %vm225_vm0, %v4027_v8 }
  0x7e   : > { %3566 = vmatpush3.bf16.msra.mxu0 %v3563_v16 }
  0x7f   : > { %3366 = vmatmul.mubr.msk.f32.gmra.mrb[12].mxu0 %vm225_vm0, %v4020_v7 }
  0x80   : > { %3449 = vmatmul.mubr.msk.f32.gmra.mrb[14].mxu1 %vm225_vm0, %v2871_v11  ;;  %3368 = vmatprep.mubr.msk.f32.mxu0 %vm225_vm0, %v4082_v25 }
  0x81   : > { %3459 = vmatprep.mubr.msk.f32.mxu1 %vm225_vm0, %v3822_v13  ;;  %v2851_v13 = vld [vmem:[%s3808_s4 + $0x90] sm:$0xff] }
  0x83   : > { %3369 = vmatmul.mubr.msk.f32.gmra.mrb[14].mxu0 %vm225_vm0, %v2851_v13 }
  0x84   : > { %3460 = vmatmul.mubr.msk.f32.vlgmr.msra.gmra.mrb[8].mxu1 %vm225_vm0, %v3840_v19  ;;  %v2935_v19 = vld [vmem:[%s3808_s4 + $0x92] sm:$0xff]  ;;  %3379 = vmatprep.mubr.msk.f32.mxu0 %vm225_vm0, %v3896_v39 }
  0x85   : > { %3462 = vmatprep.mubr.msk.f32.mxu1 %vm225_vm0, %v3846_v21  ;;  %v4313_v21 = vld [vmem:[%s4443_s2] ss:$0 sm:$0xff] }
  0x87   : > { %3380 = vmatmul.mubr.msk.f32.vlgmr.msra.gmra.mrb[8].mxu0 %vm225_vm0, %v3919_v46 }
  0x88   : > { %3463 = vmatmul.mubr.msk.f32.gmra.mrb[10].mxu1 %vm225_vm0, %v3865_v29  ;;  %3382 = vmatprep.mubr.msk.f32.mxu0 %vm225_vm0, %v3922_v47 }
  0x89   : > { %3465 = vmatprep.mubr.msk.f32.mxu1 %vm225_vm0, %v3868_v30 }
  0x8b   : > { %3383 = vmatmul.mubr.msk.f32.gmra.mrb[10].mxu0 %vm225_vm0, %v3933_v49 }
  0x8c   : > { %3466 = vmatmul.mubr.msk.f32.gmra.mrb[12].mxu1 %vm225_vm0, %v3881_v34  ;;  %3385 = vmatprep.mubr.msk.f32.mxu0 %vm225_vm0, %v3936_v50 }
  0x8d   : > { %3468 = vmatprep.mubr.msk.f32.mxu1 %vm225_vm0, %v4089_v26 }
  0x8f   : > { %3386 = vmatmul.mubr.msk.f32.gmra.mrb[12].mxu0 %vm225_vm0, %v3948_v52 }
  0x90   : > { %3469 = vmatmul.mubr.msk.f32.gmra.mrb[14].mxu1 %vm225_vm0, %v2935_v19  ;;  %3388 = vmatprep.mubr.msk.f32.mxu0 %vm225_vm0, %v4027_v8 }
  0x93   : > { %3389 = vmatmul.mubr.msk.f32.gmra.mrb[14].mxu0 %vm225_vm0, %v2871_v11 }
 0x117   : > { %v3301_v29 = vpop.f32.mrb[0].mxu1 }
 0x118   : > { %v1330_v30 = vadd.f32 %v3301_v29, %v4313_v21  ;;  %v1282_v34 = vpop.f32.mrb[1].mxu1 }
 0x119   : > { %v1329_v46 = vadd.f32 %v4313_v21, %v1282_v34 }
 0x11a   : > { %v1338_v39 = vmax.f32 %v1330_v30, 0.0  ;;  %v3221_v23 = vpop.f32.mrb[0].mxu0 }
 0x11b   : > { %v3304_v47 = vpop.f32.mrb[2].mxu1  ;;  %v1337_v52 = vmax.f32 %v1329_v46, 0.0  ;;  %v740_v26 = vpop.f32.mrb[1].mxu0  ;;  %v794_v30 = vadd.f32 %v3221_v23, %v4313_v21 }
 0x11c   : > { %v1332_v49 = vadd.f32 %v3304_v47, %v4313_v21  ;;  %1355 = vrot.lane.b32.xlu0 %v1338_v39, %s3745_s16  ;;  %v1292_v50 = vpop.f32.mrb[3].mxu1  ;;  %v793_v39 = vadd.f32 %v4313_v21, %v740_v26 }
 0x11d   : > { %v1331_v1 = vadd.f32 %v4313_v21, %v1292_v50  ;;  %v802_v34 = vmax.f32 %v794_v30, 0.0 }
 0x11e   : > { %v1340_v58 = vmax.f32 %v1332_v49, 0.0  ;;  %v3224_v28 = vpop.f32.mrb[2].mxu0  ;;  %v801_v50 = vmax.f32 %v793_v39, 0.0 }
 0x11f   : > { %v3307_v2 = vpop.f32.mrb[4].mxu1  ;;  %v1339_v7 = vmax.f32 %v1331_v1, 0.0  ;;  %v750_v32 = vpop.f32.mrb[3].mxu0  ;;  %v796_v46 = vadd.f32 %v3224_v28, %v4313_v21 }
 0x120   : > { %1353 = vrot.lane.b32.xlu0 %v1337_v52, %s3745_s16  ;;  %1359 = vrot.lane.b32.xlu1 %v1340_v58, %s3745_s16  ;;  %v1302_v5 = vpop.f32.mrb[5].mxu1  ;;  %v1334_v8 = vadd.f32 %v3307_v2, %v4313_v21  ;;  %v795_v58 = vadd.f32 %v4313_v21, %v750_v32 }
 0x121   : > { %v1333_v6 = vadd.f32 %v4313_v21, %v1302_v5  ;;  %v804_v52 = vmax.f32 %v796_v46, 0.0 }
 0x122   : > { %v1342_v24 = vmax.f32 %v1334_v8, 0.0  ;;  %v4331_v33 = vpop.f32.mrb[4].mxu0  ;;  %v803_v8 = vmax.f32 %v795_v58, 0.0 }
 0x123   : > { %v1341_v17 = vmax.f32 %v1333_v6, 0.0  ;;  %v3310_v18 = vpop.f32.mrb[6].mxu1  ;;  %v760_v35 = vpop.f32.mrb[5].mxu0 }
 0x124   : > { %1357 = vrot.lane.b32.xlu1 %v1339_v7, %s3745_s16  ;;  %v1312_v20 = vpop.f32.mrb[7].mxu1  ;;  %v1336_v25 = vadd.f32 %v3310_v18, %v4313_v21  ;;  %v797_v1 = vadd.f32 %v4313_v21, %v760_v35 }
 0x125   : > { %v1335_v22 = vadd.f32 %v4313_v21, %v1312_v20  ;;  %1361 = vrot.lane.b32.xlu0 %v1341_v17, %s3745_s16  ;;  %v798_v17 = vadd.f32 %v4331_v33, %v4313_v21 }
 0x126   : > { %v1344_v31 = vmax.f32 %v1336_v25, 0.0  ;;  %v4333_v36 = vpop.f32.mrb[6].mxu0  ;;  %v805_v18 = vmax.f32 %v797_v1, 0.0 }
 0x127   : > { %v1343_v27 = vmax.f32 %v1335_v22, 0.0  ;;  %v4335_v37 = vpop.f32.mrb[7].mxu0  ;;  %v806_v26 = vmax.f32 %v798_v17, 0.0 }
 0x128   : > { %1363 = vrot.lane.b32.xlu1 %v1342_v24, %s3745_s16  ;;  %v799_v20 = vadd.f32 %v4313_v21, %v4335_v37 }
 0x129   : > { %1365 = vrot.lane.b32.xlu0 %v1343_v27, %s3745_s16  ;;  %v800_v27 = vadd.f32 %v4333_v36, %v4313_v21 }
 0x12a   : > { %v807_v28 = vmax.f32 %v799_v20, 0.0 }
 0x12b   : > { %v808_v37 = vmax.f32 %v800_v27, 0.0 }
 0x12c   : > { %1367 = vrot.lane.b32.xlu1 %v1344_v31, %s3745_s16 }
 0x157   : > { %v3461_v40 = vpop.f32.mrb[8].mxu1 }
 0x158   : > { %v2518_v12 = vadd.f32 %v3461_v40, %v4313_v21  ;;  %v2470_v41 = vpop.f32.mrb[9].mxu1 }
 0x159   : > { %v2517_v42 = vadd.f32 %v4313_v21, %v2470_v41 }
 0x15a   : > { %v2526_v43 = vmax.f32 %v2518_v12, 0.0  ;;  %v3381_v9 = vpop.f32.mrb[8].mxu0 }
 0x15b   : > { %v2525_v44 = vmax.f32 %v2517_v42, 0.0  ;;  %v3464_v45 = vpop.f32.mrb[10].mxu1  ;;  %v1934_v57 = vpop.f32.mrb[9].mxu0  ;;  %v1982_v36 = vadd.f32 %v3381_v9, %v4313_v21 }
 0x15c   : > { %v2520_v48 = vadd.f32 %v3464_v45, %v4313_v21  ;;  %2543 = vrot.lane.b32.xlu1 %v2526_v43, %s3745_s16  ;;  %v2480_v51 = vpop.f32.mrb[11].mxu1  ;;  %v1981_v41 = vadd.f32 %v4313_v21, %v1934_v57 }
 0x15d   : > { %v2519_v53 = vadd.f32 %v4313_v21, %v2480_v51  ;;  %2541 = vrot.lane.b32.xlu0 %v2525_v44, %s3745_s16  ;;  %v1990_v42 = vmax.f32 %v1982_v36, 0.0 }
 0x15e   : > { %v2528_v54 = vmax.f32 %v2520_v48, 0.0  ;;  %v3384_v14 = vpop.f32.mrb[10].mxu0  ;;  %v1989_v44 = vmax.f32 %v1981_v41, 0.0 }
 0x15f   : > { %v2527_v55 = vmax.f32 %v2519_v53, 0.0  ;;  %v3467_v56 = vpop.f32.mrb[12].mxu1  ;;  %v1944_v15 = vpop.f32.mrb[11].mxu0  ;;  %v1984_v43 = vadd.f32 %v3384_v14, %v4313_v21 }
 0x160   : > { %v2522_v38 = vadd.f32 %v3467_v56, %v4313_v21  ;;  %2547 = vrot.lane.b32.xlu1 %v2528_v54, %s3745_s16  ;;  %v2490_v59 = vpop.f32.mrb[13].mxu1  ;;  %v1983_v45 = vadd.f32 %v4313_v21, %v1944_v15 }
 0x161   : > { %v2521_v60 = vadd.f32 %v4313_v21, %v2490_v59  ;;  %2545 = vrot.lane.b32.xlu0 %v2527_v55, %s3745_s16  ;;  %v1992_v55 = vmax.f32 %v1984_v43, 0.0 }
 0x162   : > { %v2530_v61 = vmax.f32 %v2522_v38, 0.0  ;;  %v3387_v16 = vpop.f32.mrb[12].mxu0  ;;  %v1991_v38 = vmax.f32 %v1983_v45, 0.0 }
 0x163   : > { %v2529_v62 = vmax.f32 %v2521_v60, 0.0  ;;  %v3470_v63 = vpop.f32.mrb[14].mxu1  ;;  %v1954_v13 = vpop.f32.mrb[13].mxu0  ;;  %v1986_v56 = vadd.f32 %v3387_v16, %v4313_v21 }
 0x164   : > { %v2524_v0 = vadd.f32 %v3470_v63, %v4313_v21  ;;  %2551 = vrot.lane.b32.xlu1 %v2530_v61, %s3745_s16  ;;  %v2500_v3 = vpop.f32.mrb[15].mxu1  ;;  %v1985_v59 = vadd.f32 %v4313_v21, %v1954_v13 }
 0x165   : > { %v2523_v4 = vadd.f32 %v4313_v21, %v2500_v3  ;;  %2549 = vrot.lane.b32.xlu0 %v2529_v62, %s3745_s16 }
 0x166   : > { %v2532_v10 = vmax.f32 %v2524_v0, 0.0  ;;  %v4353_v19 = vpop.f32.mrb[14].mxu0  ;;  %v1994_v0 = vmax.f32 %v1986_v56, 0.0 }
 0x167   : > { %v2531_v11 = vmax.f32 %v2523_v4, 0.0  ;;  %v4355_v29 = vpop.f32.mrb[15].mxu0  ;;  %v1988_v3 = vadd.f32 %v4353_v19, %v4313_v21  ;;  %v1993_v4 = vmax.f32 %v1985_v59, 0.0 }
 0x168   : > { %2555 = vrot.lane.b32.xlu1 %v2532_v10, %s3745_s16  ;;  %v1987_v9 = vadd.f32 %v4313_v21, %v4355_v29 }
 0x169   : > { %2553 = vrot.lane.b32.xlu0 %v2531_v11, %s3745_s16  ;;  %v1996_v15 = vmax.f32 %v1988_v3, 0.0 }
 0x16a   : > { %v1995_v16 = vmax.f32 %v1987_v9, 0.0 }
 0x18e   : > { %v1356_v47 = vpop.permute.xlu0 %1355 }
 0x18f   : > { %v1379_v49 = vsel %vm1377_vm1, %v802_v34, %v1356_v47 }
 0x190   : > { %1387 = vst.msk [vmem:[%s4364_s20 + $0x10] sm:$0xff] %vm225_vm0, %v1379_v49 }
 0x192   : > { %v1354_v2 = vpop.permute.xlu0 %1353  ;;  %v1360_v5 = vpop.permute.xlu1 %1359 }
 0x193   : > { %v1378_v6 = vsel %vm1377_vm1, %v801_v50, %v1354_v2  ;;  %v1381_v7 = vsel %vm1377_vm1, %v804_v52, %v1360_v5 }
 0x194   : > { %1386 = vst.msk [vmem:[%s4364_s20] sm:$0xff] %vm225_vm0, %v1378_v6  ;;  %1389 = vst.msk [vmem:[%s4364_s20 + $0x30] sm:$0xff] %vm225_vm0, %v1381_v7 }
 0x196   : > { %v1358_v22 = vpop.permute.xlu1 %1357 }
 0x197   : > { %v1380_v23 = vsel %vm1377_vm1, %v803_v8, %v1358_v22  ;;  %v1362_v24 = vpop.permute.xlu0 %1361 }
 0x198   : > { %1388 = vst.msk [vmem:[%s4364_s20 + $0x20] sm:$0xff] %vm225_vm0, %v1380_v23  ;;  %v1382_v25 = vsel %vm1377_vm1, %v805_v18, %v1362_v24 }
 0x199   : > { %1390 = vst.msk [vmem:[%s4364_s20 + $0x40] sm:$0xff] %vm225_vm0, %v1382_v25 }
 0x19a   : > { %v1364_v31 = vpop.permute.xlu1 %1363 }
 0x19b   : > { %v1383_v32 = vsel %vm1377_vm1, %v806_v26, %v1364_v31  ;;  %v1366_v33 = vpop.permute.xlu0 %1365 }
 0x19c   : > { %1391 = vst.msk [vmem:[%s4364_s20 + $0x50] sm:$0xff] %vm225_vm0, %v1383_v32  ;;  %v1384_v35 = vsel %vm1377_vm1, %v807_v28, %v1366_v33 }
 0x19d   : > { %1392 = vst.msk [vmem:[%s4364_s20 + $0x60] sm:$0xff] %vm225_vm0, %v1384_v35 }
 0x19e   : > { %v1368_v40 = vpop.permute.xlu1 %1367 }
 0x19f   : > { %v1385_v12 = vsel %vm1377_vm1, %v808_v37, %v1368_v40 }
 0x1a0   : > { %1393 = vst.msk [vmem:[%s4364_s20 + $0x70] sm:$0xff] %vm225_vm0, %v1385_v12 }
 0x1ce   : > { %v2544_v48 = vpop.permute.xlu1 %2543 }
 0x1cf   : > { %v2566_v51 = vsel %vm1377_vm1, %v1990_v42, %v2544_v48  ;;  %v2542_v53 = vpop.permute.xlu0 %2541 }
 0x1d0   : > { %2949 = vst.msk [vmem:[%s4364_s20 + $0x18] sm:$0xff] %vm225_vm0, %v2566_v51  ;;  %v2565_v54 = vsel %vm1377_vm1, %v1989_v44, %v2542_v53 }
 0x1d1   : > { %2948 = vst.msk [vmem:[%s4364_s20 + $0x8] sm:$0xff] %vm225_vm0, %v2565_v54 }
 0x1d2   : > { %v2548_v60 = vpop.permute.xlu1 %2547 }
 0x1d3   : > { %v2568_v61 = vsel %vm1377_vm1, %v1992_v55, %v2548_v60  ;;  %v2546_v62 = vpop.permute.xlu0 %2545 }
 0x1d4   : > { %2951 = vst.msk [vmem:[%s4364_s20 + $0x38] sm:$0xff] %vm225_vm0, %v2568_v61  ;;  %v2567_v63 = vsel %vm1377_vm1, %v1991_v38, %v2546_v62 }
 0x1d5   : > { %2950 = vst.msk [vmem:[%s4364_s20 + $0x28] sm:$0xff] %vm225_vm0, %v2567_v63 }
 0x1d6   : > { %v2552_v10 = vpop.permute.xlu1 %2551 }
 0x1d7   : > { %v2570_v57 = vsel %vm1377_vm1, %v1994_v0, %v2552_v10  ;;  %v2550_v11 = vpop.permute.xlu0 %2549 }
 0x1d8   : > { %2953 = vst.msk [vmem:[%s4364_s20 + $0x58] sm:$0xff] %vm225_vm0, %v2570_v57  ;;  %v2569_v14 = vsel %vm1377_vm1, %v1993_v4, %v2550_v11 }
 0x1d9   : > { %2952 = vst.msk [vmem:[%s4364_s20 + $0x48] sm:$0xff] %vm225_vm0, %v2569_v14 }
 0x1da   : > { %v2556_v13 = vpop.permute.xlu1 %2555 }
 0x1db   : > { %v2572_v19 = vsel %vm1377_vm1, %v1996_v15, %v2556_v13  ;;  %v2554_v30 = vpop.permute.xlu0 %2553 }
 0x1dc   : > { %2955 = vst.msk [vmem:[%s4364_s20 + $0x78] sm:$0xff] %vm225_vm0, %v2572_v19  ;;  %v2571_v21 = vsel %vm1377_vm1, %v1995_v16, %v2554_v30 }
 0x1dd   : > { %2954 = vst.msk [vmem:[%s4364_s20 + $0x68] sm:$0xff] %vm225_vm0, %v2571_v21 }
 0x1de PF: > { %s13_s14 = sadd.s32 1, %s3743_s14   ;;  %s4445_s12 = smov %s3739_s13 }
 0x1df   : > { %p10_p5 = scmp.ge.s32.totalorder %s13_s14, 4   ;;  %s4446_s13 = smov %s4448_s15 }
 0x1e1   :  { %12 = sbr.rel (!%p10_p5) target bundleno = 2 (0x2), region = 81 }

// kernel: decoder_forward.3
= control target key start
LH: loop header
LB: loop body
LE: loop exit
PB: predicated region body
PF: predicated region fallthrough
CT: control target
= control target key end

     0   :  { %s6439_s18 = smov 0   ;;  %s7484_s0 = inlined_call_operand.vmem [shape: f32[2,10,10,4], index: 0, kind: input, shape index: {}]   ;;  %s7485_s1 = inlined_call_operand.vmem [shape: f32[9,4,32], index: 1, kind: input, shape index: {}]   ;;  %s7486_s2 = inlined_call_operand.vmem [shape: f32[1,32], index: 2, kind: input, shape index: {}]   ;;  %s7487_s3 = inlined_call_operand.vmem [shape: f32[2,9,32,8], index: 3, kind: input, shape index: {}]   ;;  %s7488_s4 = inlined_call_operand.vmem [shape: f32[2,8,32], index: 4, kind: input, shape index: {}]   ;;  %s7489_s5 = inlined_call_operand.vmem [shape: f32[2,10,10,32], index: 5, kind: output, shape index: {}]  }
   0x1 LB: > { %s4845_s19 = sadd.s32 4294967295, %s6406_s18   ;;  %p4849_p0 = scmp.ge.s32.totalorder %s6406_s18, 1  ;;  %s6406_s18 = sphi %s6439_s18, %s15_s18  }
   0x2   : > { %p187_p1 = scmp.lt.s32.totalorder %s6406_s18, 3 }
   0x4   : > { %p188_p2 = pnand %p4849_p0, %p187_p1 }
   0x5   : > { %v4852_v0 = vld [vmem:[%s7485_s1 + $0x4] sm:$0xf] (!%p188_p2)  ;;  %vm269_vm0 = vcmask (!%p188_p2), 1043456   ;;  %p215_p3 = scmp.lt.s32.totalorder (!%p188_p2), %s4845_s19, 1  ;;  %v233_v1 = vld [vmem:[%s7485_s1] sm:$0xf] (!%p188_p2) }
   0x6   : > { %191 = sbr.rel (%p188_p2) target bundleno = 1473 (0x5c1), region = 40  ;;  %5536 = vmatprep.subr.msk.mxu0 (!%p188_p2), %vm269_vm0, %v4852_v0  ;;  %vm244_vm1 = vcmask (!%p188_p2), 31744   ;;  %v4871_v5 = vld [vmem:[%s7485_s1 + $0x8] sm:$0xf] (!%p188_p2)  ;;  %v4889_v14 = vld [vmem:[%s7485_s1 + $0xc] sm:$0xf] (!%p188_p2) }
   0x7   : > { %5537 = vmatpush3.msk.msra.mxu0 (!%p188_p2), %vm269_vm0, %v4852_v0  ;;  %v4907_v23 = vld [vmem:[%s7485_s1 + $0x10] sm:$0xf] (!%p188_p2)  ;;  %v4925_v29 = vld [vmem:[%s7485_s1 + $0x14] sm:$0xf] (!%p188_p2)  ;;  %v4943_v31 = vld [vmem:[%s7485_s1 + $0x18] sm:$0xf] (!%p188_p2) }
   0x8   : > { %5550 = vmatprep.subr.msk.mxu0 (!%p188_p2), %vm269_vm0, %v233_v1  ;;  %v4961_v33 = vld [vmem:[%s7485_s1 + $0x1c] sm:$0xf] (!%p188_p2)  ;;  %v4979_v35 = vld [vmem:[%s7485_s1 + $0x20] sm:$0xf] (!%p188_p2)  ;;  %vm1577_vm2 = vcmask (!%p188_p2), 261120   ;;  %vm1579_vm3 = vcmask (!%p188_p2), 254976  }
   0x9   : > { %v6408_v39 = vmov (!%p188_p2), 0.0   ;;  %v4990_v40 = vld [vmem:[%s7487_s3 + $0x20] sm:$0xff] (!%p188_p2)  ;;  %v4991_v41 = vld [vmem:[%s7487_s3 + $0x28] sm:$0xff] (!%p188_p2)  ;;  %v4992_v46 = vld [vmem:[%s7487_s3 + $0x30] sm:$0xff] (!%p188_p2)  ;;  %vm3023_vm4 = vcmask (!%p188_p2), 64512  }
   0xa   : > { %1583 = vst.msk [vmem:[#allocation2 + $0x20] sm:$0xff] (!%p188_p2), %vm1577_vm2, %v6408_v39  ;;  %1578 = vst.msk [vmem:[#allocation2] sm:$0xff] (!%p188_p2), %vm1577_vm2, %v6408_v39  ;;  %v6050_v42 = vpack.c.bf16 (!%p188_p2), %v4991_v41, %v4990_v40  ;;  %v5022_v43 = vld [vmem:[%s7487_s3 + $0x60] sm:$0xff] (!%p188_p2)  ;;  %v5023_v44 = vld [vmem:[%s7487_s3 + $0x68] sm:$0xff] (!%p188_p2) }
   0xb   : > { %1584 = vst.msk [vmem:[#allocation2 + $0x28] sm:$0x3] (!%p188_p2), %vm1579_vm3, %v6408_v39  ;;  %1580 = vst.msk [vmem:[#allocation2 + $0x8] sm:$0x3] (!%p188_p2), %vm1579_vm3, %v6408_v39  ;;  %v6074_v45 = vpack.c.bf16 (!%p188_p2), %v5023_v44, %v5022_v43  ;;  %v4993_v47 = vld [vmem:[%s7487_s3 + $0x38] sm:$0xff] (!%p188_p2)  ;;  %v5024_v49 = vld [vmem:[%s7487_s3 + $0x70] sm:$0xff] (!%p188_p2) }
   0xc   : > { %1581 = vst.msk [vmem:[#allocation2 + $0x10] sm:$0xff] (!%p188_p2), %vm1577_vm2, %v6408_v39  ;;  %1585 = vst.msk [vmem:[#allocation2 + $0x30] sm:$0xff] (!%p188_p2), %vm1577_vm2, %v6408_v39  ;;  %v6054_v48 = vpack.c.bf16 (!%p188_p2), %v4993_v47, %v4992_v46  ;;  %v5025_v50 = vld [vmem:[%s7487_s3 + $0x78] sm:$0xff] (!%p188_p2)  ;;  %v5034_v56 = vld [vmem:[%s7487_s3 + $0x80] sm:$0xff] (!%p188_p2) }
   0xd   : > { %s7491_s19 = smov (!%p215_p3, %s4845_s19), 1  ;;  %1582 = vst.msk [vmem:[#allocation2 + $0x18] sm:$0x3] %vm1579_vm3, %v6408_v39  ;;  %1586 = vst.msk [vmem:[#allocation2 + $0x38] sm:$0x3] %vm1579_vm3, %v6408_v39  ;;  %6075 = vmatprep.subr.bf16.mxu1 %v6074_v45  ;;  %v6078_v51 = vpack.c.bf16 %v5025_v50, %v5024_v49  ;;  %v5035_v59 = vld [vmem:[%s7487_s3 + $0x88] sm:$0xff] }
   0xe   : > { %s6390_s24 = smul.u32 160, %s7491_s19  ;;  %1587 = vst.msk [vmem:[#allocation2 + $0x40] sm:$0xff] %vm1577_vm2, %v6408_v39  ;;  %1589 = vst.msk [vmem:[#allocation2 + $0x50] sm:$0xff] %vm1577_vm2, %v6408_v39  ;;  %6077 = vmatpush3.bf16.msra.mxu1 %v6074_v45  ;;  %v6763_v60 = vpack.c.bf16 %v5035_v59, %v5034_v56  ;;  %v1624_v61 = vld [vmem:[%s7487_s3] sm:$0xff]  ;;  %v1625_v62 = vld [vmem:[%s7487_s3 + $0x8] sm:$0xff] }
   0xf   : > { %1588 = vst.msk [vmem:[#allocation2 + $0x48] sm:$0x3] %vm1579_vm3, %v6408_v39  ;;  %1590 = vst.msk [vmem:[#allocation2 + $0x58] sm:$0x3] %vm1579_vm3, %v6408_v39  ;;  %6079 = vmatprep.subr.bf16.mxu1 %v6078_v51  ;;  %v6058_v63 = vpack.c.bf16 %v1625_v62, %v1624_v61  ;;  %v5011_v40 = vld [vmem:[%s7487_s3 + $0x48] sm:$0xff] }
  0x10   : > { %s6464_s27 = scalar_lea.vmem %s7484_s0, %s6390_s24  ;;  %1591 = vst.msk [vmem:[#allocation2 + $0x60] sm:$0xff] %vm1577_vm2, %v6408_v39  ;;  %1593 = vst.msk [vmem:[#allocation2 + $0x70] sm:$0xff] %vm1577_vm2, %v6408_v39  ;;  %s6761_s17 = scalar_lea.vmem %s7489_s5, %s6390_s24 }
  0x11   : > { %v234_v2 = vld [vmem:[%s6464_s27 + $0x1] sm:$0xff]  ;;  %v6468_v3 = vld [vmem:[%s6464_s27 + $0x11] sm:$0xff]  ;;  %1592 = vst.msk [vmem:[#allocation2 + $0x68] sm:$0x3] %vm1579_vm3, %v6408_v39  ;;  %1594 = vst.msk [vmem:[#allocation2 + $0x78] sm:$0x3] %vm1579_vm3, %v6408_v39 }
  0x12   : > { %v6471_v4 = vld [vmem:[%s6464_s27 + $0x21] sm:$0xff]  ;;  %5538 = vmatprep.mubr.msk.f32.mxu0 %vm244_vm1, %v234_v2  ;;  %v6483_v6 = vld [vmem:[%s6464_s27 + $0x31] sm:$0xff]  ;;  %1595 = vst.msk [vmem:[#allocation2 + $0x80] sm:$0xff] %vm1577_vm2, %v6408_v39  ;;  %1597 = vst.msk [vmem:[#allocation2 + $0x90] sm:$0xff] %vm1577_vm2, %v6408_v39  ;;  %6081 = vmatpush3.bf16.msra.mxu1 %v6078_v51 }
  0x13   : > { %5539 = vmatmul.mubr.msk.f32.vlgmr.msra.gmra.mrb[0].mxu0 %vm244_vm1, %v6468_v3  ;;  %v6486_v7 = vld [vmem:[%s6464_s27 + $0x41] sm:$0xff]  ;;  %v6494_v8 = vld [vmem:[%s6464_s27 + $0x51] sm:$0xff]  ;;  %1596 = vst.msk [vmem:[#allocation2 + $0x88] sm:$0x3] %vm1579_vm3, %v6408_v39  ;;  %1598 = vst.msk [vmem:[#allocation2 + $0x98] sm:$0x3] %vm1579_vm3, %v6408_v39  ;;  %6083 = vmatprep.subr.bf16.mxu1 %v6763_v60 }
  0x14   : > { %5551 = vmatpush3.msk.msra.mxu0 %vm269_vm0, %v233_v1  ;;  %5541 = vmatprep.mubr.msk.f32.mxu0 %vm244_vm1, %v6471_v4  ;;  %v6497_v9 = vld [vmem:[%s6464_s27 + $0x61] sm:$0xff]  ;;  %v6504_v10 = vld [vmem:[%s6464_s27 + $0x71] sm:$0xff] }
  0x15   : > { %5564 = vmatprep.subr.msk.mxu0 %vm269_vm0, %v4871_v5  ;;  %v225_v11 = vld [vmem:[%s6464_s27] sm:$0xff]  ;;  %v226_v12 = vld [vmem:[%s6464_s27 + $0x10] sm:$0xff]  ;;  %v4731_v55 = vld [vmem:[#allocation2 + $0x8] sm:$0x3] }
  0x16   : > { %v6512_v13 = vld [vmem:[%s6464_s27 + $0x20] sm:$0xff]  ;;  %v6522_v15 = vld [vmem:[%s6464_s27 + $0x30] sm:$0xff]  ;;  %v4751_v58 = vmax.f32 %v4731_v55, 0.0 }
  0x17   : > { %5542 = vmatmul.mubr.msk.f32.gmra.mrb[2].mxu0 %vm244_vm1, %v6483_v6  ;;  %v6525_v16 = vld [vmem:[%s6464_s27 + $0x40] sm:$0xff]  ;;  %v6533_v17 = vld [vmem:[%s6464_s27 + $0x50] sm:$0xff] }
  0x18   : > { %5544 = vmatprep.mubr.msk.f32.mxu0 %vm244_vm1, %v6486_v7  ;;  %v6536_v18 = vld [vmem:[%s6464_s27 + $0x60] sm:$0xff]  ;;  %v6543_v19 = vld [vmem:[%s6464_s27 + $0x70] sm:$0xff]  ;;  %4771 = vst.msk [vmem:[%s6761_s17 + $0x8] sm:$0x3] %vm1579_vm3, %v4751_v58 }
  0x19   : > { %v510_v20 = vld [vmem:[%s6464_s27 + $0x2] sm:$0xff]  ;;  %v511_v21 = vld [vmem:[%s6464_s27 + $0x12] sm:$0xff] }
  0x1a   : > { %v6551_v22 = vld [vmem:[%s6464_s27 + $0x22] sm:$0xff]  ;;  %v6561_v24 = vld [vmem:[%s6464_s27 + $0x32] sm:$0xff] }
  0x1b   : > { %5545 = vmatmul.mubr.msk.f32.gmra.mrb[4].mxu0 %vm244_vm1, %v6494_v8  ;;  %v6564_v25 = vld [vmem:[%s6464_s27 + $0x42] sm:$0xff]  ;;  %v6572_v26 = vld [vmem:[%s6464_s27 + $0x52] sm:$0xff] }
  0x1c   : > { %5547 = vmatprep.mubr.msk.f32.mxu0 %vm244_vm1, %v6497_v9  ;;  %v6575_v27 = vld [vmem:[%s6464_s27 + $0x62] sm:$0xff]  ;;  %v6582_v28 = vld [vmem:[%s6464_s27 + $0x72] sm:$0xff] }
  0x1d   : > { %v4888_v30 = vld [vmem:[%s6464_s27 + $0x80] sm:$0xff]  ;;  %v4942_v36 = vld [vmem:[%s6464_s27 + $0x90] sm:$0xff]  ;;  %v4749_v2 = vld [vmem:[#allocation2 + $0x98] sm:$0x3] }
  0x1e   : > { %v4906_v32 = vld [vmem:[%s6464_s27 + $0x81] sm:$0xff]  ;;  %v4960_v37 = vld [vmem:[%s6464_s27 + $0x91] sm:$0xff] }
  0x1f   : > { %5548 = vmatmul.mubr.msk.f32.gmra.mrb[6].mxu0 %vm244_vm1, %v6504_v10  ;;  %v4924_v34 = vld [vmem:[%s6464_s27 + $0x82] sm:$0xff]  ;;  %v4978_v38 = vld [vmem:[%s6464_s27 + $0x92] sm:$0xff] }
  0x20   : > { %5552 = vmatprep.mubr.msk.f32.mxu0 %vm244_vm1, %v225_v11  ;;  %v6742_v52 = vld [vmem:[#allocation2 + $0x1] sm:$0xff]  ;;  %v2547_v0 = vld [vmem:[#allocation2 + $0x90] sm:$0xff] }
  0x21   : > { %v1636_v53 = vmax.f32 %v6742_v52, 0.0  ;;  %v4730_v54 = vld [vmem:[#allocation2] sm:$0xff]  ;;  %v6777_v1 = vmax.f32 %v2547_v0, 0.0 }
  0x22   : > { %v6751_v57 = vmax.f32 %v4730_v54, 0.0 }
  0x23   : > { %5553 = vmatmul.mubr.msk.f32.vlgmr.msra.gmra.mrb[0].mxu0 %vm244_vm1, %v226_v12  ;;  %4788 = vst.msk [vmem:[%s6761_s17 + $0x90] sm:$0xff] %vm1577_vm2, %v6777_v1 }
  0x24   : > { %5565 = vmatpush3.msk.msra.mxu0 %vm269_vm0, %v4871_v5  ;;  %5555 = vmatprep.mubr.msk.f32.mxu0 %vm244_vm1, %v6512_v13  ;;  %4770 = vst.msk [vmem:[%s6761_s17] sm:$0xff] %vm1577_vm2, %v6751_v57 }
  0x25   : > { %5578 = vmatprep.subr.msk.mxu0 %vm269_vm0, %v4889_v14 }
  0x27   : > { %5556 = vmatmul.mubr.msk.f32.gmra.mrb[2].mxu0 %vm244_vm1, %v6522_v15 }
  0x28   : > { %5558 = vmatprep.mubr.msk.f32.mxu0 %vm244_vm1, %v6525_v16 }
  0x2b   : > { %5559 = vmatmul.mubr.msk.f32.gmra.mrb[4].mxu0 %vm244_vm1, %v6533_v17 }
  0x2c   : > { %5561 = vmatprep.mubr.msk.f32.mxu0 %vm244_vm1, %v6536_v18 }
  0x2f   : > { %5562 = vmatmul.mubr.msk.f32.gmra.mrb[6].mxu0 %vm244_vm1, %v6543_v19 }
  0x30   : > { %5566 = vmatprep.mubr.msk.f32.mxu0 %vm244_vm1, %v510_v20 }
  0x33   : > { %5567 = vmatmul.mubr.msk.f32.vlgmr.msra.gmra.mrb[0].mxu0 %vm244_vm1, %v511_v21 }
  0x34   : > { %5579 = vmatpush3.msk.msra.mxu0 %vm269_vm0, %v4889_v14  ;;  %5569 = vmatprep.mubr.msk.f32.mxu0 %vm244_vm1, %v6551_v22 }
  0x35   : > { %5592 = vmatprep.subr.msk.mxu0 %vm269_vm0, %v4907_v23 }
  0x37   : > { %5570 = vmatmul.mubr.msk.f32.gmra.mrb[2].mxu0 %vm244_vm1, %v6561_v24 }
  0x38   : > { %5572 = vmatprep.mubr.msk.f32.mxu0 %vm244_vm1, %v6564_v25 }
  0x3b   : > { %5573 = vmatmul.mubr.msk.f32.gmra.mrb[4].mxu0 %vm244_vm1, %v6572_v26 }
  0x3c   : > { %5575 = vmatprep.mubr.msk.f32.mxu0 %vm244_vm1, %v6575_v27 }
  0x3f   : > { %5576 = vmatmul.mubr.msk.f32.gmra.mrb[6].mxu0 %vm244_vm1, %v6582_v28 }
  0x40   : > { %5580 = vmatprep.mubr.msk.f32.mxu0 %vm244_vm1, %v226_v12 }
  0x43   : > { %5581 = vmatmul.mubr.msk.f32.vlgmr.msra.gmra.mrb[0].mxu0 %vm244_vm1, %v6512_v13 }
  0x44   : > { %5593 = vmatpush3.msk.msra.mxu0 %vm269_vm0, %v4907_v23  ;;  %5583 = vmatprep.mubr.msk.f32.mxu0 %vm244_vm1, %v6522_v15 }
  0x45   : > { %5606 = vmatprep.subr.msk.mxu0 %vm269_vm0, %v4925_v29 }
  0x47   : > { %5584 = vmatmul.mubr.msk.f32.gmra.mrb[2].mxu0 %vm244_vm1, %v6525_v16 }
  0x48   : > { %5586 = vmatprep.mubr.msk.f32.mxu0 %vm244_vm1, %v6533_v17 }
  0x4b   : > { %5587 = vmatmul.mubr.msk.f32.gmra.mrb[4].mxu0 %vm244_vm1, %v6536_v18 }
  0x4c   : > { %5589 = vmatprep.mubr.msk.f32.mxu0 %vm244_vm1, %v6543_v19 }
  0x4f   : > { %5590 = vmatmul.mubr.msk.f32.gmra.mrb[6].mxu0 %vm244_vm1, %v4888_v30 }
  0x50   : > { %5594 = vmatprep.mubr.msk.f32.mxu0 %vm244_vm1, %v6468_v3  ;;  %v4769_v3 = vmax.f32 %v4749_v2, 0.0 }
  0x52   : > { %4789 = vst.msk [vmem:[%s6761_s17 + $0x98] sm:$0x3] %vm1579_vm3, %v4769_v3  ;;  %v5048_v3 = vld [vmem:[%s7487_s3 + $0xb0] sm:$0xff] }
  0x53   : > { %5595 = vmatmul.mubr.msk.f32.vlgmr.msra.gmra.mrb[0].mxu0 %vm244_vm1, %v6471_v4 }
  0x54   : > { %5607 = vmatpush3.msk.msra.mxu0 %vm269_vm0, %v4925_v29  ;;  %5597 = vmatprep.mubr.msk.f32.mxu0 %vm244_vm1, %v6483_v6 }
  0x55   : > { %5620 = vmatprep.subr.msk.mxu0 %vm269_vm0, %v4943_v31 }
  0x57   : > { %5598 = vmatmul.mubr.msk.f32.gmra.mrb[2].mxu0 %vm244_vm1, %v6486_v7 }
  0x58   : > { %5600 = vmatprep.mubr.msk.f32.mxu0 %vm244_vm1, %v6494_v8 }
  0x5b   : > { %5601 = vmatmul.mubr.msk.f32.gmra.mrb[4].mxu0 %vm244_vm1, %v6497_v9 }
  0x5c   : > { %5603 = vmatprep.mubr.msk.f32.mxu0 %vm244_vm1, %v6504_v10 }
  0x5f   : > { %5604 = vmatmul.mubr.msk.f32.gmra.mrb[6].mxu0 %vm244_vm1, %v4906_v32 }
  0x60   : > { %5608 = vmatprep.mubr.msk.f32.mxu0 %vm244_vm1, %v511_v21 }
  0x63   : > { %5609 = vmatmul.mubr.msk.f32.vlgmr.msra.gmra.mrb[0].mxu0 %vm244_vm1, %v6551_v22 }
  0x64   : > { %5621 = vmatpush3.msk.msra.mxu0 %vm269_vm0, %v4943_v31  ;;  %5611 = vmatprep.mubr.msk.f32.mxu0 %vm244_vm1, %v6561_v24 }
  0x65   : > { %5634 = vmatprep.subr.msk.mxu0 %vm269_vm0, %v4961_v33 }
  0x67   : > { %5612 = vmatmul.mubr.msk.f32.gmra.mrb[2].mxu0 %vm244_vm1, %v6564_v25 }
  0x68   : > { %5614 = vmatprep.mubr.msk.f32.mxu0 %vm244_vm1, %v6572_v26 }
  0x6b   : > { %5615 = vmatmul.mubr.msk.f32.gmra.mrb[4].mxu0 %vm244_vm1, %v6575_v27 }
  0x6c   : > { %5617 = vmatprep.mubr.msk.f32.mxu0 %vm244_vm1, %v6582_v28 }
  0x6f   : > { %5618 = vmatmul.mubr.msk.f32.gmra.mrb[6].mxu0 %vm244_vm1, %v4924_v34 }
  0x70   : > { %5622 = vmatprep.mubr.msk.f32.mxu0 %vm244_vm1, %v6512_v13 }
  0x73   : > { %5623 = vmatmul.mubr.msk.f32.vlgmr.msra.gmra.mrb[0].mxu0 %vm244_vm1, %v6522_v15 }
  0x74   : > { %5635 = vmatpush3.msk.msra.mxu0 %vm269_vm0, %v4961_v33  ;;  %5625 = vmatprep.mubr.msk.f32.mxu0 %vm244_vm1, %v6525_v16  ;;  %v5036_v16 = vld [vmem:[%s7487_s3 + $0x90] sm:$0xff] }
  0x75   : > { %5648 = vmatprep.subr.msk.mxu0 %vm269_vm0, %v4979_v35 }
  0x77   : > { %5626 = vmatmul.mubr.msk.f32.gmra.mrb[2].mxu0 %vm244_vm1, %v6533_v17  ;;  %v5037_v17 = vld [vmem:[%s7487_s3 + $0x98] sm:$0xff] }
  0x78   : > { %5628 = vmatprep.mubr.msk.f32.mxu0 %vm244_vm1, %v6536_v18  ;;  %v1626_v18 = vld [vmem:[%s7487_s3 + $0x10] sm:$0xff] }
  0x7b   : > { %5629 = vmatmul.mubr.msk.f32.gmra.mrb[4].mxu0 %vm244_vm1, %v6543_v19 }
  0x7c   : > { %5631 = vmatprep.mubr.msk.f32.mxu0 %vm244_vm1, %v4888_v30 }
  0x7f   : > { %5632 = vmatmul.mubr.msk.f32.gmra.mrb[6].mxu0 %vm244_vm1, %v4942_v36  ;;  %v5010_v36 = vld [vmem:[%s7487_s3 + $0x40] sm:$0xff] }
  0x80   : > { %5636 = vmatprep.mubr.msk.f32.mxu0 %vm244_vm1, %v6471_v4  ;;  %v4989_v4 = vld [vmem:[%s7486_s2] ss:$0 sm:$0xff] }
  0x83   : > { %5637 = vmatmul.mubr.msk.f32.vlgmr.msra.gmra.mrb[0].mxu0 %vm244_vm1, %v6483_v6 }
  0x84   : > { %5649 = vmatpush3.msk.msra.mxu0 %vm269_vm0, %v4979_v35  ;;  %5639 = vmatprep.mubr.msk.f32.mxu0 %vm244_vm1, %v6486_v7  ;;  %v5047_v35 = vld [vmem:[%s7487_s3 + $0xa8] sm:$0xff] }
  0x85   : > { %6051 = vmatprep.subr.bf16.mxu0 %v6050_v42 }
  0x87   : > { %5640 = vmatmul.mubr.msk.f32.gmra.mrb[2].mxu0 %vm244_vm1, %v6494_v8 }
  0x88   : > { %5642 = vmatprep.mubr.msk.f32.mxu0 %vm244_vm1, %v6497_v9 }
  0x8b   : > { %5643 = vmatmul.mubr.msk.f32.gmra.mrb[4].mxu0 %vm244_vm1, %v6504_v10 }
  0x8c   : > { %5645 = vmatprep.mubr.msk.f32.mxu0 %vm244_vm1, %v4906_v32 }
  0x8f   : > { %5646 = vmatmul.mubr.msk.f32.gmra.mrb[6].mxu0 %vm244_vm1, %v4960_v37 }
  0x90   : > { %5650 = vmatprep.mubr.msk.f32.mxu0 %vm244_vm1, %v6551_v22  ;;  %v1627_v22 = vld [vmem:[%s7487_s3 + $0x18] sm:$0xff] }
  0x91   : > { %v6062_v33 = vpack.c.bf16 %v1627_v22, %v1626_v18 }
  0x93   : > { %5651 = vmatmul.mubr.msk.f32.vlgmr.msra.gmra.mrb[0].mxu0 %vm244_vm1, %v6561_v24 }
  0x94   : > { %5653 = vmatprep.mubr.msk.f32.mxu0 %vm244_vm1, %v6564_v25  ;;  %6053 = vmatpush3.bf16.msra.mxu0 %v6050_v42 }
  0x95   : > { %6055 = vmatprep.subr.bf16.mxu0 %v6054_v48 }
  0x97   : > { %5654 = vmatmul.mubr.msk.f32.gmra.mrb[2].mxu0 %vm244_vm1, %v6572_v26 }
  0x98   : > { %5656 = vmatprep.mubr.msk.f32.mxu0 %vm244_vm1, %v6575_v27  ;;  %6057 = vmatpush3.bf16.msra.mxu0 %v6054_v48  ;;  %v6066_v48 = vpack.c.bf16 %v5011_v40, %v5010_v36 }
  0x99   : > { %6059 = vmatprep.subr.bf16.mxu0 %v6058_v63 }
  0x9b   : > { %5657 = vmatmul.mubr.msk.f32.gmra.mrb[4].mxu0 %vm244_vm1, %v6582_v28  ;;  %v6086_v28 = vpack.c.bf16 %v5037_v17, %v5036_v16 }
  0x9c   : > { %5659 = vmatprep.mubr.msk.f32.mxu0 %vm244_vm1, %v4924_v34  ;;  %v5046_v34 = vld [vmem:[%s7487_s3 + $0xa0] sm:$0xff] }
  0x9d   : > { %v6090_v47 = vpack.c.bf16 %v5047_v35, %v5046_v34 }
  0x9f   : > { %5660 = vmatmul.mubr.msk.f32.gmra.mrb[6].mxu0 %vm244_vm1, %v4978_v38 }
  0xa0   : > { %5670 = vmatprep.mubr.msk.f32.mxu0 %vm1577_vm2, %v1636_v53 }
 0x166   : > { %v5652_v5 = vpop.f32.mrb[0].mxu0 }
 0x167   : > { %v1570_v6 = vadd.f32 %v5652_v5, %v4989_v4  ;;  %v1515_v7 = vpop.f32.mrb[1].mxu0  ;;  %v5012_v5 = vld [vmem:[%s7487_s3 + $0x50] sm:$0xff] }
 0x168   : > { %v1569_v8 = vadd.f32 %v4989_v4, %v1515_v7 }
 0x169   : > { %1601 = vst.msk [vmem:[#allocation2 + $0x21] sm:$0xff] %vm1577_vm2, %v1570_v6  ;;  %v5013_v6 = vld [vmem:[%s7487_s3 + $0x58] sm:$0xff] }
 0x16a   : > { %1600 = vst.msk [vmem:[#allocation2 + $0x11] sm:$0xff] %vm1577_vm2, %v1569_v8  ;;  %v5655_v9 = vpop.f32.mrb[2].mxu0  ;;  %v6070_v8 = vpack.c.bf16 %v5013_v6, %v5012_v5 }
 0x16b   : > { %v1572_v10 = vadd.f32 %v5655_v9, %v4989_v4  ;;  %v1525_v11 = vpop.f32.mrb[3].mxu0  ;;  %v5058_v9 = vld [vmem:[%s7487_s3 + $0xc0] sm:$0xff] }
 0x16c   : > { %v1571_v12 = vadd.f32 %v4989_v4, %v1525_v11 }
 0x16d   : > { %1603 = vst.msk [vmem:[#allocation2 + $0x41] sm:$0xff] %vm1577_vm2, %v1572_v10  ;;  %v5059_v10 = vld [vmem:[%s7487_s3 + $0xc8] sm:$0xff] }
 0x16e   : > { %1602 = vst.msk [vmem:[#allocation2 + $0x31] sm:$0xff] %vm1577_vm2, %v1571_v12  ;;  %v5658_v13 = vpop.f32.mrb[4].mxu0  ;;  %v6098_v11 = vpack.c.bf16 %v5059_v10, %v5058_v9  ;;  %v6944_v12 = vld [vmem:[#allocation2 + $0x2] sm:$0xff] }
 0x16f   : > { %v1574_v14 = vadd.f32 %v5658_v13, %v4989_v4  ;;  %v1535_v15 = vpop.f32.mrb[5].mxu0 }
 0x170   : > { %v1573_v19 = vadd.f32 %v4989_v4, %v1535_v15  ;;  %v6800_v20 = vld [vmem:[#allocation2 + $0x21] sm:$0xff]  ;;  %v1915_v15 = vmax.f32 %v6944_v12, 0.0 }
 0x171   : > { %v2066_v21 = vld [vmem:[#allocation2 + $0x20] sm:$0xff]  ;;  %1605 = vst.msk [vmem:[#allocation2 + $0x61] sm:$0xff] %vm1577_vm2, %v1574_v14  ;;  %v6806_v23 = vld [vmem:[#allocation2 + $0x11] sm:$0xff]  ;;  %v6814_v31 = vmax.f32 %v6800_v20, 0.0 }
 0x172   : > { %v6808_v24 = vld [vmem:[#allocation2 + $0x10] sm:$0xff]  ;;  %1604 = vst.msk [vmem:[#allocation2 + $0x51] sm:$0xff] %vm1577_vm2, %v1573_v19  ;;  %v5661_v25 = vpop.f32.mrb[6].mxu0  ;;  %v1637_v26 = vmax.f32 %v6806_v23, 0.0  ;;  %v6816_v32 = vmax.f32 %v2066_v21, 0.0  ;;  %v1909_v18 = vld [vmem:[#allocation2 + $0x22] sm:$0xff] }
 0x173   : > { %v2073_v27 = vmax.f32 %v6808_v24, 0.0  ;;  %v1576_v29 = vadd.f32 %v5661_v25, %v4989_v4  ;;  %v1545_v30 = vpop.f32.mrb[7].mxu0  ;;  %v2381_v14 = vld [vmem:[#allocation2 + $0x12] sm:$0xff]  ;;  %v6973_v24 = vmax.f32 %v1909_v18, 0.0 }
 0x174   : > { %v1575_v37 = vadd.f32 %v4989_v4, %v1545_v30  ;;  %5671 = vmatmul.mubr.msk.f32.vlgmr.msra.gmra.mrb[8].mxu0 %vm1577_vm2, %v1637_v26  ;;  %v6833_v38 = vld [vmem:[#allocation2 + $0x41] sm:$0xff]  ;;  %v5049_v4 = vld [vmem:[%s7487_s3 + $0xb8] sm:$0xff]  ;;  %v2389_v17 = vmax.f32 %v2381_v14, 0.0  ;;  %v5060_v19 = vld [vmem:[%s7487_s3 + $0xd0] sm:$0xff] }
 0x175   : > { %5730 = vmatprep.mubr.msk.f32.mxu1 %vm1577_vm2, %v2073_v27  ;;  %v2068_v39 = vld [vmem:[#allocation2 + $0x40] sm:$0xff]  ;;  %1607 = vst.msk [vmem:[#allocation2 + $0x81] sm:$0xff] %vm1577_vm2, %v1576_v29  ;;  %5673 = vmatprep.mubr.msk.f32.mxu0 %vm1577_vm2, %v6814_v31  ;;  %v6843_v41 = vld [vmem:[#allocation2 + $0x31] sm:$0xff]  ;;  %v6853_v45 = vmax.f32 %v6833_v38, 0.0  ;;  %v6094_v7 = vpack.c.bf16 %v5049_v4, %v5048_v3  ;;  %v5071_v29 = vld [vmem:[%s7487_s3 + $0xe8] sm:$0xff] }
 0x176   : > { %5731 = vmatmul.mubr.msk.f32.vlgmr.msra.gmra.mrb[0].mxu1 %vm1577_vm2, %v6816_v32  ;;  %v2067_v42 = vld [vmem:[#allocation2 + $0x30] sm:$0xff]  ;;  %1606 = vst.msk [vmem:[#allocation2 + $0x71] sm:$0xff] %vm1577_vm2, %v1575_v37  ;;  %v6848_v43 = vmax.f32 %v6843_v41, 0.0  ;;  %6061 = vmatpush3.bf16.msra.mxu0 %v6058_v63  ;;  %v6855_v46 = vmax.f32 %v2068_v39, 0.0  ;;  %v5061_v21 = vld [vmem:[%s7487_s3 + $0xd8] sm:$0xff]  ;;  %v5083_v3 = vld [vmem:[%s7487_s3 + $0x108] sm:$0xff] }
 0x177   : > { %6085 = vmatpush3.bf16.msra.mxu1 %v6763_v60  ;;  %v6850_v44 = vmax.f32 %v2067_v42, 0.0  ;;  %6063 = vmatprep.subr.bf16.mxu0 %v6062_v33  ;;  %v2383_v22 = vld [vmem:[#allocation2 + $0x32] sm:$0xff]  ;;  %v6102_v25 = vpack.c.bf16 %v5061_v21, %v5060_v19 }
 0x178   : > { %6087 = vmatprep.subr.bf16.mxu1 %v6086_v28  ;;  %5674 = vmatmul.mubr.msk.f32.gmra.mrb[10].mxu0 %vm1577_vm2, %v6848_v43  ;;  %v6861_v49 = vld [vmem:[#allocation2 + $0x61] sm:$0xff] }
 0x179   : > { %5733 = vmatprep.mubr.msk.f32.mxu1 %vm1577_vm2, %v6850_v44  ;;  %v2070_v50 = vld [vmem:[#allocation2 + $0x60] sm:$0xff]  ;;  %5676 = vmatprep.mubr.msk.f32.mxu0 %vm1577_vm2, %v6853_v45  ;;  %v6867_v51 = vld [vmem:[#allocation2 + $0x51] sm:$0xff]  ;;  %v6875_v58 = vmax.f32 %v6861_v49, 0.0 }
 0x17a   : > { %5734 = vmatmul.mubr.msk.f32.gmra.mrb[2].mxu1 %vm1577_vm2, %v6855_v46  ;;  %v2069_v54 = vld [vmem:[#allocation2 + $0x50] sm:$0xff]  ;;  %v6870_v55 = vmax.f32 %v6867_v51, 0.0  ;;  %6065 = vmatpush3.bf16.msra.mxu0 %v6062_v33  ;;  %v6877_v59 = vmax.f32 %v2070_v50, 0.0  ;;  %v1913_v36 = vld [vmem:[#allocation2 + $0x62] sm:$0xff]  ;;  %v5073_v50 = vld [vmem:[%s7487_s3 + $0xf8] sm:$0xff] }
 0x17b   : > { %v6872_v56 = vmax.f32 %v2069_v54, 0.0  ;;  %6089 = vmatpush3.bf16.msra.mxu1 %v6086_v28  ;;  %6067 = vmatprep.subr.bf16.mxu0 %v6066_v48  ;;  %v5070_v28 = vld [vmem:[%s7487_s3 + $0xe0] sm:$0xff]  ;;  %v2385_v30 = vld [vmem:[#allocation2 + $0x52] sm:$0xff]  ;;  %v1921_v39 = vmax.f32 %v1913_v36, 0.0 }
 0x17c   : > { %6091 = vmatprep.subr.bf16.mxu1 %v6090_v47  ;;  %5677 = vmatmul.mubr.msk.f32.gmra.mrb[12].mxu0 %vm1577_vm2, %v6870_v55  ;;  %v6883_v60 = vld [vmem:[#allocation2 + $0x80] sm:$0xff]  ;;  %v6106_v34 = vpack.c.bf16 %v5071_v29, %v5070_v28  ;;  %v2393_v35 = vmax.f32 %v2385_v30, 0.0 }
 0x17d   : > { %5736 = vmatprep.mubr.msk.f32.mxu1 %vm1577_vm2, %v6872_v56  ;;  %5679 = vmatprep.mubr.msk.f32.mxu0 %vm1577_vm2, %v6875_v58  ;;  %v6889_v61 = vld [vmem:[#allocation2 + $0x71] sm:$0xff]  ;;  %v2080_v2 = vmax.f32 %v6883_v60, 0.0  ;;  %v6948_v13 = vld [vmem:[#allocation2 + $0x81] sm:$0xff] }
 0x17e   : > { %5737 = vmatmul.mubr.msk.f32.gmra.mrb[4].mxu1 %vm1577_vm2, %v6877_v59  ;;  %v2071_v62 = vld [vmem:[#allocation2 + $0x70] sm:$0xff]  ;;  %v6892_v63 = vmax.f32 %v6889_v61, 0.0  ;;  %v2238_v16 = vmax.f32 %v6948_v13, 0.0  ;;  %v2388_v42 = vld [vmem:[#allocation2 + $0x82] sm:$0xff] }
 0x17f   : > { %v6894_v0 = vmax.f32 %v2071_v62, 0.0  ;;  %v2387_v37 = vld [vmem:[#allocation2 + $0x72] sm:$0xff]  ;;  %v5082_v62 = vld [vmem:[%s7487_s3 + $0x100] sm:$0xff] }
 0x180   : > { %5680 = vmatmul.mubr.msk.f32.gmra.mrb[14].mxu0 %vm1577_vm2, %v6892_v63  ;;  %v2395_v40 = vmax.f32 %v2387_v37, 0.0  ;;  %v6114_v4 = vpack.c.bf16 %v5083_v3, %v5082_v62  ;;  %v5200_v62 = vld [vmem:[%s7487_s3 + $0x230] sm:$0xff]  ;;  %v5201_v3 = vld [vmem:[%s7487_s3 + $0x238] sm:$0xff] }
 0x181   : > { %5739 = vmatprep.mubr.msk.f32.mxu1 %vm1577_vm2, %v6894_v0  ;;  %5690 = vmatprep.mubr.msk.f32.mxu0 %vm1577_vm2, %v6751_v57 }
 0x182   : > { %5740 = vmatmul.mubr.msk.f32.gmra.mrb[6].mxu1 %vm1577_vm2, %v2080_v2 }
 0x183   : > { %5750 = vmatprep.mubr.msk.f32.mxu1 %vm1577_vm2, %v1637_v26  ;;  %v6976_v26 = vmax.f32 %v2383_v22, 0.0 }
 0x184   : > { %5691 = vmatmul.mubr.msk.f32.vlgmr.msra.gmra.mrb[8].mxu0 %vm1577_vm2, %v2073_v27  ;;  %v1911_v27 = vld [vmem:[#allocation2 + $0x42] sm:$0xff] }
 0x185   : > { %5693 = vmatprep.mubr.msk.f32.mxu0 %vm1577_vm2, %v6816_v32  ;;  %6069 = vmatpush3.bf16.msra.mxu0 %v6066_v48  ;;  %v1919_v33 = vmax.f32 %v1911_v27, 0.0  ;;  %v5072_v48 = vld [vmem:[%s7487_s3 + $0xf0] sm:$0xff] }
 0x186   : > { %5751 = vmatmul.mubr.msk.f32.vlgmr.msra.gmra.mrb[0].mxu1 %vm1577_vm2, %v6814_v31  ;;  %6071 = vmatprep.subr.bf16.mxu0 %v6070_v8  ;;  %v6110_v54 = vpack.c.bf16 %v5073_v50, %v5072_v48  ;;  %v5199_v50 = vld [vmem:[%s7487_s3 + $0x228] sm:$0xff] }
 0x187   : > { %6093 = vmatpush3.bf16.msra.mxu1 %v6090_v47  ;;  %5753 = vmatprep.mubr.msk.f32.mxu1 %vm1577_vm2, %v6848_v43  ;;  %v2396_v47 = vmax.f32 %v2388_v42, 0.0  ;;  %v5109_v42 = vld [vmem:[%s7487_s3 + $0x158] sm:$0xff] }
 0x188   : > { %6095 = vmatprep.subr.bf16.mxu1 %v6094_v7  ;;  %5694 = vmatmul.mubr.msk.f32.gmra.mrb[10].mxu0 %vm1577_vm2, %v6850_v44 }
 0x189   : > { %5696 = vmatprep.mubr.msk.f32.mxu0 %vm1577_vm2, %v6855_v46  ;;  %6073 = vmatpush3.bf16.msra.mxu0 %v6070_v8 }
 0x18a   : > { %5754 = vmatmul.mubr.msk.f32.gmra.mrb[2].mxu1 %vm1577_vm2, %v6853_v45 }
 0x18b   : > { %5756 = vmatprep.mubr.msk.f32.mxu1 %vm1577_vm2, %v6870_v55  ;;  %6097 = vmatpush3.bf16.msra.mxu1 %v6094_v7 }
 0x18c   : > { %6099 = vmatprep.subr.bf16.mxu1 %v6098_v11  ;;  %5697 = vmatmul.mubr.msk.f32.gmra.mrb[12].mxu0 %vm1577_vm2, %v6872_v56 }
 0x18d   : > { %5699 = vmatprep.mubr.msk.f32.mxu0 %vm1577_vm2, %v6877_v59 }
 0x18e   : > { %5757 = vmatmul.mubr.msk.f32.gmra.mrb[4].mxu1 %vm1577_vm2, %v6875_v58 }
 0x18f   : > { %5759 = vmatprep.mubr.msk.f32.mxu1 %vm1577_vm2, %v6892_v63 }
 0x190   : > { %5700 = vmatmul.mubr.msk.f32.gmra.mrb[14].mxu0 %vm1577_vm2, %v6894_v0 }
 0x191   : > { %5710 = vmatprep.mubr.msk.f32.mxu0 %vm1577_vm2, %v1915_v15 }
 0x192   : > { %5760 = vmatmul.mubr.msk.f32.gmra.mrb[6].mxu1 %vm1577_vm2, %v2238_v16 }
 0x193   : > { %5770 = vmatprep.mubr.msk.f32.mxu1 %vm1577_vm2, %v2389_v17 }
 0x194   : > { %5711 = vmatmul.mubr.msk.f32.vlgmr.msra.gmra.mrb[8].mxu0 %vm1577_vm2, %v2389_v17 }
 0x195   : > { %5713 = vmatprep.mubr.msk.f32.mxu0 %vm1577_vm2, %v6973_v24 }
 0x196   : > { %5771 = vmatmul.mubr.msk.f32.vlgmr.msra.gmra.mrb[0].mxu1 %vm1577_vm2, %v6973_v24 }
 0x197   : > { %6101 = vmatpush3.bf16.msra.mxu1 %v6098_v11  ;;  %5773 = vmatprep.mubr.msk.f32.mxu1 %vm1577_vm2, %v6976_v26 }
 0x198   : > { %6103 = vmatprep.subr.bf16.mxu1 %v6102_v25  ;;  %5714 = vmatmul.mubr.msk.f32.gmra.mrb[10].mxu0 %vm1577_vm2, %v6976_v26 }
 0x199   : > { %5716 = vmatprep.mubr.msk.f32.mxu0 %vm1577_vm2, %v1919_v33 }
 0x19a   : > { %5774 = vmatmul.mubr.msk.f32.gmra.mrb[2].mxu1 %vm1577_vm2, %v1919_v33 }
 0x19b   : > { %5776 = vmatprep.mubr.msk.f32.mxu1 %vm1577_vm2, %v2393_v35  ;;  %6105 = vmatpush3.bf16.msra.mxu1 %v6102_v25 }
 0x19c   : > { %6107 = vmatprep.subr.bf16.mxu1 %v6106_v34  ;;  %5717 = vmatmul.mubr.msk.f32.gmra.mrb[12].mxu0 %vm1577_vm2, %v2393_v35 }
 0x19d   : > { %5719 = vmatprep.mubr.msk.f32.mxu0 %vm1577_vm2, %v1921_v39 }
 0x19e   : > { %5777 = vmatmul.mubr.msk.f32.gmra.mrb[4].mxu1 %vm1577_vm2, %v1921_v39 }
 0x19f   : > { %5779 = vmatprep.mubr.msk.f32.mxu1 %vm1577_vm2, %v2395_v40 }
 0x1a0   : > { %5720 = vmatmul.mubr.msk.f32.gmra.mrb[14].mxu0 %vm1577_vm2, %v2395_v40 }
 0x1a2   : > { %5780 = vmatmul.mubr.msk.f32.gmra.mrb[6].mxu1 %vm1577_vm2, %v2396_v47 }
 0x1a3   : > { %5790 = vmatprep.mubr.msk.f32.mxu1 %vm1577_vm2, %v6816_v32  ;;  %v5084_v32 = vld [vmem:[%s7487_s3 + $0x110] sm:$0xff] }
 0x1a6   : > { %5791 = vmatmul.mubr.msk.f32.vlgmr.msra.gmra.mrb[0].mxu1 %vm1577_vm2, %v6850_v44  ;;  %v5085_v44 = vld [vmem:[%s7487_s3 + $0x118] sm:$0xff] }
 0x1a7   : > { %6109 = vmatpush3.bf16.msra.mxu1 %v6106_v34  ;;  %5793 = vmatprep.mubr.msk.f32.mxu1 %vm1577_vm2, %v6855_v46  ;;  %v6118_v46 = vpack.c.bf16 %v5085_v44, %v5084_v32  ;;  %v5102_v32 = vld [vmem:[%s7487_s3 + $0x120] sm:$0xff]  ;;  %v5103_v44 = vld [vmem:[%s7487_s3 + $0x128] sm:$0xff] }
 0x1a8   : > { %6111 = vmatprep.subr.bf16.mxu1 %v6110_v54 }
 0x1aa   : > { %5794 = vmatmul.mubr.msk.f32.gmra.mrb[2].mxu1 %vm1577_vm2, %v6872_v56  ;;  %v7046_v56 = vld [vmem:[#allocation2 + $0x91] sm:$0xff] }
 0x1ab   : > { %5796 = vmatprep.mubr.msk.f32.mxu1 %vm1577_vm2, %v6877_v59  ;;  %6113 = vmatpush3.bf16.msra.mxu1 %v6110_v54  ;;  %v5107_v59 = vld [vmem:[%s7487_s3 + $0x148] sm:$0xff] }
 0x1ac   : > { %6115 = vmatprep.subr.bf16.mxu1 %v6114_v4 }
 0x1ae   : > { %5797 = vmatmul.mubr.msk.f32.gmra.mrb[4].mxu1 %vm1577_vm2, %v6894_v0 }
 0x1af   : > { %5799 = vmatprep.mubr.msk.f32.mxu1 %vm1577_vm2, %v2080_v2 }
 0x1b2   : > { %5800 = vmatmul.mubr.msk.f32.gmra.mrb[6].mxu1 %vm1577_vm2, %v6777_v1 }
 0x1b3   : > { %5810 = vmatprep.mubr.msk.f32.mxu1 %vm1577_vm2, %v6814_v31  ;;  %v2713_v31 = vmax.f32 %v7046_v56, 0.0 }
 0x1b6   : > { %5811 = vmatmul.mubr.msk.f32.vlgmr.msra.gmra.mrb[0].mxu1 %vm1577_vm2, %v6848_v43  ;;  %v7064_v43 = vld [vmem:[#allocation2 + $0x92] sm:$0xff] }
 0x1b7   : > { %6117 = vmatpush3.bf16.msra.mxu1 %v6114_v4  ;;  %5813 = vmatprep.mubr.msk.f32.mxu1 %vm1577_vm2, %v6853_v45  ;;  %v2871_v45 = vmax.f32 %v7064_v43, 0.0  ;;  %v7114_v4 = vpack.c.bf16 %v5201_v3, %v5200_v62  ;;  %v5128_v62 = vld [vmem:[%s7487_s3 + $0x170] sm:$0xff]  ;;  %v5129_v3 = vld [vmem:[%s7487_s3 + $0x178] sm:$0xff] }
 0x1b8   : > { %6119 = vmatprep.subr.bf16.mxu1 %v6118_v46 }
 0x1ba   : > { %5814 = vmatmul.mubr.msk.f32.gmra.mrb[2].mxu1 %vm1577_vm2, %v6870_v55  ;;  %v3022_v55 = vld [vmem:[%s7488_s4] sm:$0xff] }
 0x1bb   : > { %5816 = vmatprep.mubr.msk.f32.mxu1 %vm1577_vm2, %v6875_v58  ;;  %6121 = vmatpush3.bf16.msra.mxu1 %v6118_v46  ;;  %v5106_v58 = vld [vmem:[%s7487_s3 + $0x140] sm:$0xff]  ;;  %v6130_v46 = vpack.c.bf16 %v5103_v44, %v5102_v32 }
 0x1bc   : > { %5842 = vmatprep.subr.mxu0 %v3022_v55  ;;  %v6122_v60 = vpack.c.bf16 %v5107_v59, %v5106_v58 }
 0x1bd   : > { %5843 = vmatpush3.msra.mxu0 %v3022_v55 }
 0x1be   : > { %5817 = vmatmul.mubr.msk.f32.gmra.mrb[4].mxu1 %vm1577_vm2, %v6892_v63  ;;  %6123 = vmatprep.subr.bf16.mxu1 %v6122_v60 }
 0x1bf   : > { %5819 = vmatprep.mubr.msk.f32.mxu1 %vm1577_vm2, %v2238_v16 }
 0x1c2   : > { %5820 = vmatmul.mubr.msk.f32.gmra.mrb[6].mxu1 %vm1577_vm2, %v2713_v31 }
 0x1c3   : > { %5830 = vmatprep.mubr.msk.f32.mxu1 %vm1577_vm2, %v6973_v24 }
 0x1c6   : > { %5831 = vmatmul.mubr.msk.f32.vlgmr.msra.gmra.mrb[0].mxu1 %vm1577_vm2, %v6976_v26 }
 0x1c7   : > { %5833 = vmatprep.mubr.msk.f32.mxu1 %vm1577_vm2, %v1919_v33  ;;  %6125 = vmatpush3.bf16.msra.mxu1 %v6122_v60 }
 0x1ca   : > { %5834 = vmatmul.mubr.msk.f32.gmra.mrb[2].mxu1 %vm1577_vm2, %v2393_v35 }
 0x1cb   : > { %5836 = vmatprep.mubr.msk.f32.mxu1 %vm1577_vm2, %v1921_v39 }
 0x1ce   : > { %5837 = vmatmul.mubr.msk.f32.gmra.mrb[4].mxu1 %vm1577_vm2, %v2395_v40  ;;  %v5108_v40 = vld [vmem:[%s7487_s3 + $0x150] sm:$0xff] }
 0x1cf   : > { %5839 = vmatprep.mubr.msk.f32.mxu1 %vm1577_vm2, %v2396_v47  ;;  %v5198_v47 = vld [vmem:[%s7487_s3 + $0x220] sm:$0xff]  ;;  %v6126_v48 = vpack.c.bf16 %v5109_v42, %v5108_v40 }
 0x1d0   : > { %v7104_v54 = vpack.c.bf16 %v5199_v50, %v5198_v47 }
 0x1d1   : > { %6127 = vmatprep.subr.bf16.mxu1 %v6126_v48 }
 0x1d2   : > { %5840 = vmatmul.mubr.msk.f32.gmra.mrb[6].mxu1 %vm1577_vm2, %v2871_v45  ;;  %6187 = vmatprep.subr.bf16.mxu0 %v7104_v54 }
 0x1d3   : > { %5864 = vmatprep.mubr.msk.f32.mxu1 %vm1577_vm2, %v1636_v53  ;;  %6129 = vmatpush3.bf16.msra.mxu1 %v6126_v48 }
 0x1d4   : > { %6131 = vmatprep.subr.bf16.mxu1 %v6130_v46 }
 0x267   : > { %v5712_v52 = vpop.f32.mrb[8].mxu0 }
 0x268   : > { %v2018_v63 = vpop.f32.mrb[9].mxu0 }
 0x26b   : > { %v5715_v53 = vpop.f32.mrb[10].mxu0 }
 0x26c   : > { %v2028_v0 = vpop.f32.mrb[11].mxu0 }
 0x26f   : > { %v5718_v2 = vpop.f32.mrb[12].mxu0 }
 0x270   : > { %v2038_v5 = vpop.f32.mrb[13].mxu0 }
 0x273   : > { %v5721_v6 = vpop.f32.mrb[14].mxu0 }
 0x274   : > { %v2048_v7 = vpop.f32.mrb[15].mxu0 }
 0x299   : > { %v5832_v8 = vpop.f32.mrb[0].mxu1 }
 0x29a   : > { %v6198_v9 = vadd.f32 %v5832_v8, %v5712_v52  ;;  %v2967_v10 = vpop.f32.mrb[1].mxu1 }
 0x29b   : > { %v6199_v11 = vadd.f32 %v2967_v10, %v2018_v63 }
 0x29c   : > { %v3015_v17 = vmax.f32 %v6198_v9, 0.0 }
 0x29d   : > { %v3014_v14 = vmax.f32 %v6199_v11, 0.0  ;;  %v5835_v16 = vpop.f32.mrb[2].mxu1 }
 0x29e   : > { %v6200_v18 = vadd.f32 %v5835_v16, %v5715_v53  ;;  %v2977_v19 = vpop.f32.mrb[3].mxu1 }
 0x29f   : > { %v6201_v21 = vadd.f32 %v2977_v19, %v2028_v0  ;;  %5844 = vmatprep.mubr.msk.f32.mxu0 %vm3023_vm4, %v3014_v14 }
 0x2a0   : > { %5845 = vmatmul.mubr.msk.f32.vlgmr.msra.gmra.mrb[16].mxu0 %vm3023_vm4, %v3015_v17  ;;  %v3017_v25 = vmax.f32 %v6200_v18, 0.0  ;;  %v5126_v17 = vld [vmem:[%s7487_s3 + $0x160] sm:$0xff] }
 0x2a1   : > { %v3016_v22 = vmax.f32 %v6201_v21, 0.0  ;;  %v5838_v24 = vpop.f32.mrb[4].mxu1  ;;  %6189 = vmatpush3.bf16.msra.mxu0 %v7104_v54  ;;  %v5127_v21 = vld [vmem:[%s7487_s3 + $0x168] sm:$0xff] }
 0x2a2   : > { %v6202_v26 = vadd.f32 %v5838_v24, %v5718_v2  ;;  %v2987_v27 = vpop.f32.mrb[5].mxu1  ;;  %6191 = vmatprep.subr.bf16.mxu0 %v7114_v4 }
 0x2a3   : > { %v6203_v28 = vadd.f32 %v2987_v27, %v2038_v5  ;;  %5847 = vmatprep.mubr.msk.f32.mxu0 %vm3023_vm4, %v3016_v22 }
 0x2a4   : > { %5848 = vmatmul.mubr.msk.f32.gmra.mrb[18].mxu0 %vm3023_vm4, %v3017_v25  ;;  %v3019_v33 = vmax.f32 %v6202_v26, 0.0 }
 0x2a5   : > { %v3018_v29 = vmax.f32 %v6203_v28, 0.0  ;;  %v5841_v30 = vpop.f32.mrb[6].mxu1  ;;  %6193 = vmatpush3.bf16.msra.mxu0 %v7114_v4  ;;  %v6138_v28 = vpack.c.bf16 %v5127_v21, %v5126_v17  ;;  %v5151_v17 = vld [vmem:[%s7487_s3 + $0x1a8] sm:$0xff]  ;;  %v5162_v21 = vld [vmem:[%s7487_s3 + $0x1c0] sm:$0xff] }
 0x2a6   : > { %v6204_v34 = vadd.f32 %v5841_v30, %v5721_v6  ;;  %v2997_v35 = vpop.f32.mrb[7].mxu1  ;;  %v5105_v6 = vld [vmem:[%s7487_s3 + $0x138] sm:$0xff] }
 0x2a7   : > { %v6205_v36 = vadd.f32 %v2997_v35, %v2048_v7  ;;  %5850 = vmatprep.mubr.msk.f32.mxu0 %vm3023_vm4, %v3018_v29 }
 0x2a8   : > { %5851 = vmatmul.mubr.msk.f32.gmra.mrb[20].mxu0 %vm3023_vm4, %v3019_v33  ;;  %v3021_v39 = vmax.f32 %v6204_v34, 0.0 }
 0x2a9   : > { %v3020_v37 = vmax.f32 %v6205_v36, 0.0 }
 0x2ab   : > { %5853 = vmatprep.mubr.msk.f32.mxu0 %vm3023_vm4, %v3020_v37 }
 0x2ac   : > { %5854 = vmatmul.mubr.msk.f32.gmra.mrb[22].mxu0 %vm3023_vm4, %v3021_v39 }
 0x373   : > { %v5846_v55 = vpop.f32.mrb[16].mxu0 }
 0x374   : > { %v3154_v58 = vadd.f32 %v5846_v55, %v6800_v20  ;;  %v3114_v59 = vpop.f32.mrb[17].mxu0 }
 0x375   : > { %v3153_v60 = vadd.f32 %v3114_v59, %v6806_v23  ;;  %v5104_v23 = vld [vmem:[%s7487_s3 + $0x130] sm:$0xff]  ;;  %v5138_v59 = vld [vmem:[%s7487_s3 + $0x180] sm:$0xff] }
 0x376   : > { %3162 = vst.msk [vmem:[#allocation2 + $0x21] sm:$0xff] %vm1577_vm2, %v3154_v58  ;;  %v6134_v11 = vpack.c.bf16 %v5105_v6, %v5104_v23 }
 0x377   : > { %3161 = vst.msk [vmem:[#allocation2 + $0x11] sm:$0xff] %vm1577_vm2, %v3153_v60  ;;  %v5849_v52 = vpop.f32.mrb[18].mxu0  ;;  %v5139_v60 = vld [vmem:[%s7487_s3 + $0x188] sm:$0xff] }
 0x378   : > { %v3156_v63 = vadd.f32 %v5849_v52, %v6833_v38  ;;  %v3124_v53 = vpop.f32.mrb[19].mxu0 }
 0x379   : > { %v3155_v0 = vadd.f32 %v3124_v53, %v6843_v41 }
 0x37a   : > { %3164 = vst.msk [vmem:[#allocation2 + $0x41] sm:$0xff] %vm1577_vm2, %v3156_v63  ;;  %v6146_v63 = vpack.c.bf16 %v5139_v60, %v5138_v59  ;;  %v5177_v59 = vld [vmem:[%s7487_s3 + $0x1f8] sm:$0xff] }
 0x37b   : > { %3163 = vst.msk [vmem:[#allocation2 + $0x31] sm:$0xff] %vm1577_vm2, %v3155_v0  ;;  %v5852_v2 = vpop.f32.mrb[20].mxu0 }
 0x37c   : > { %v3158_v20 = vadd.f32 %v5852_v2, %v6861_v49  ;;  %v3134_v5 = vpop.f32.mrb[21].mxu0 }
 0x37d   : > { %v3157_v38 = vadd.f32 %v3134_v5, %v6867_v51  ;;  %v4417_v7 = vld [vmem:[#allocation2 + $0x22] sm:$0xff] }
 0x37e   : > { %v7140_v41 = vld [vmem:[#allocation2 + $0x21] sm:$0xff]  ;;  %3166 = vst.msk [vmem:[#allocation2 + $0x61] sm:$0xff] %vm1577_vm2, %v3158_v20  ;;  %v7143_v8 = vmax.f32 %v4417_v7, 0.0  ;;  %v7145_v9 = vld [vmem:[#allocation2 + $0x11] sm:$0xff] }
 0x37f   : > { %3165 = vst.msk [vmem:[#allocation2 + $0x51] sm:$0xff] %vm1577_vm2, %v3157_v38  ;;  %v5855_v49 = vpop.f32.mrb[22].mxu0  ;;  %v3199_v10 = vmax.f32 %v7145_v9, 0.0  ;;  %v7153_v51 = vmax.f32 %v7140_v41, 0.0  ;;  %v3170_v50 = vld [vmem:[#allocation2 + $0x10] sm:$0xff]  ;;  %v3171_v32 = vld [vmem:[#allocation2 + $0x20] sm:$0xff] }
 0x380   : > { %v3160_v14 = vadd.f32 %v5855_v49, %v6948_v13  ;;  %v3144_v16 = vpop.f32.mrb[23].mxu0  ;;  %6024 = vmatprep.mubr.msk.f32.mxu0 %vm1577_vm2, %v7143_v8  ;;  %v3178_v44 = vmax.f32 %v3170_v50, 0.0  ;;  %v7232_v55 = vmax.f32 %v3171_v32, 0.0  ;;  %v7261_v38 = vld [vmem:[#allocation2 + $0x12] sm:$0xff]  ;;  %v5175_v32 = vld [vmem:[%s7487_s3 + $0x1e8] sm:$0xff] }
 0x381   : > { %v3159_v18 = vadd.f32 %v3144_v16, %v6889_v61  ;;  %5865 = vmatmul.mubr.msk.f32.vlgmr.msra.gmra.mrb[8].mxu1 %vm1577_vm2, %v3199_v10  ;;  %v7162_v19 = vld [vmem:[#allocation2 + $0x41] sm:$0xff]  ;;  %v5140_v7 = vld [vmem:[%s7487_s3 + $0x190] sm:$0xff]  ;;  %v5141_v49 = vld [vmem:[%s7487_s3 + $0x198] sm:$0xff] }
 0x382   : > { %v4419_v13 = vld [vmem:[#allocation2 + $0x42] sm:$0xff]  ;;  %3168 = vst.msk [vmem:[#allocation2 + $0x81] sm:$0xff] %vm1577_vm2, %v3160_v14  ;;  %6133 = vmatpush3.bf16.msra.mxu1 %v6130_v46  ;;  %5867 = vmatprep.mubr.msk.f32.mxu1 %vm1577_vm2, %v7153_v51  ;;  %v7170_v22 = vld [vmem:[#allocation2 + $0x31] sm:$0xff]  ;;  %v7179_v26 = vmax.f32 %v7162_v19, 0.0  ;;  %v6142_v46 = vpack.c.bf16 %v5129_v3, %v5128_v62  ;;  %v6150_v14 = vpack.c.bf16 %v5141_v49, %v5140_v7 }
 0x383   : > { %v4418_v61 = vld [vmem:[#allocation2 + $0x32] sm:$0xff]  ;;  %3167 = vst.msk [vmem:[#allocation2 + $0x71] sm:$0xff] %vm1577_vm2, %v3159_v18  ;;  %v7174_v24 = vmax.f32 %v7170_v22, 0.0  ;;  %6135 = vmatprep.subr.bf16.mxu1 %v6134_v11  ;;  %v7181_v27 = vmax.f32 %v4419_v13, 0.0  ;;  %v3173_v52 = vld [vmem:[#allocation2 + $0x40] sm:$0xff] }
 0x384   : > { %v7176_v25 = vmax.f32 %v4418_v61, 0.0  ;;  %v3172_v58 = vld [vmem:[#allocation2 + $0x30] sm:$0xff]  ;;  %v7245_v53 = vmax.f32 %v3173_v52, 0.0  ;;  %v5150_v16 = vld [vmem:[%s7487_s3 + $0x1a0] sm:$0xff]  ;;  %v5153_v18 = vld [vmem:[%s7487_s3 + $0x1b8] sm:$0xff] }
 0x385   : > { %5868 = vmatmul.mubr.msk.f32.gmra.mrb[10].mxu1 %vm1577_vm2, %v7174_v24  ;;  %v7187_v29 = vld [vmem:[#allocation2 + $0x61] sm:$0xff]  ;;  %v6154_v12 = vpack.c.bf16 %v5151_v17, %v5150_v16  ;;  %v5165_v50 = vld [vmem:[%s7487_s3 + $0x1d8] sm:$0xff] }
 0x386   : > { %6025 = vmatmul.mubr.msk.f32.vlgmr.msra.gmra.mrb[24].mxu0 %vm1577_vm2, %v7176_v25  ;;  %v4421_v30 = vld [vmem:[#allocation2 + $0x62] sm:$0xff]  ;;  %5870 = vmatprep.mubr.msk.f32.mxu1 %vm1577_vm2, %v7179_v26  ;;  %v7193_v33 = vld [vmem:[#allocation2 + $0x51] sm:$0xff]  ;;  %v7201_v37 = vmax.f32 %v7187_v29, 0.0 }
 0x387   : > { %6027 = vmatprep.mubr.msk.f32.mxu0 %vm1577_vm2, %v7181_v27  ;;  %v4420_v34 = vld [vmem:[#allocation2 + $0x52] sm:$0xff]  ;;  %v7196_v35 = vmax.f32 %v7193_v33, 0.0  ;;  %6137 = vmatpush3.bf16.msra.mxu1 %v6134_v11  ;;  %v7203_v39 = vmax.f32 %v4421_v30, 0.0  ;;  %v3175_v2 = vld [vmem:[#allocation2 + $0x60] sm:$0xff]  ;;  %v3478_v11 = vmax.f32 %v7261_v38, 0.0  ;;  %v5163_v61 = vld [vmem:[%s7487_s3 + $0x1c8] sm:$0xff] }
 0x388   : > { %v7198_v36 = vmax.f32 %v4420_v34, 0.0  ;;  %6139 = vmatprep.subr.bf16.mxu1 %v6138_v28  ;;  %v3174_v0 = vld [vmem:[#allocation2 + $0x50] sm:$0xff]  ;;  %v7253_v5 = vmax.f32 %v3175_v2, 0.0  ;;  %v5174_v3 = vld [vmem:[%s7487_s3 + $0x1e0] sm:$0xff] }
 0x389   : > { %5871 = vmatmul.mubr.msk.f32.gmra.mrb[12].mxu1 %vm1577_vm2, %v7196_v35  ;;  %v7251_v20 = vmax.f32 %v3174_v0, 0.0  ;;  %v3634_v30 = vld [vmem:[#allocation2 + $0x80] sm:$0xff] }
 0x38a   : > { %6028 = vmatmul.mubr.msk.f32.gmra.mrb[26].mxu0 %vm1577_vm2, %v7198_v36  ;;  %5873 = vmatprep.mubr.msk.f32.mxu1 %vm1577_vm2, %v7201_v37  ;;  %v7213_v40 = vld [vmem:[#allocation2 + $0x71] sm:$0xff]  ;;  %v3642_v34 = vmax.f32 %v3634_v30, 0.0  ;;  %v5186_v52 = vld [vmem:[%s7487_s3 + $0x200] sm:$0xff] }
 0x38b   : > { %6030 = vmatprep.mubr.msk.f32.mxu0 %vm1577_vm2, %v7203_v39  ;;  %v4422_v42 = vld [vmem:[#allocation2 + $0x72] sm:$0xff]  ;;  %v7216_v47 = vmax.f32 %v7213_v40, 0.0  ;;  %v3950_v2 = vld [vmem:[#allocation2 + $0x82] sm:$0xff] }
 0x38c   : > { %v7218_v48 = vmax.f32 %v4422_v42, 0.0  ;;  %v3176_v23 = vld [vmem:[#allocation2 + $0x70] sm:$0xff] }
 0x38d   : > { %5874 = vmatmul.mubr.msk.f32.gmra.mrb[14].mxu1 %vm1577_vm2, %v7216_v47  ;;  %v7259_v6 = vmax.f32 %v3176_v23, 0.0  ;;  %v5164_v42 = vld [vmem:[%s7487_s3 + $0x1d0] sm:$0xff] }
 0x38e   : > { %6031 = vmatmul.mubr.msk.f32.gmra.mrb[28].mxu0 %vm1577_vm2, %v7218_v48  ;;  %5884 = vmatprep.mubr.msk.f32.mxu1 %vm1577_vm2, %v6751_v57  ;;  %v7243_v57 = vmax.f32 %v3172_v58, 0.0  ;;  %v6166_v62 = vpack.c.bf16 %v5165_v50, %v5164_v42  ;;  %v5176_v58 = vld [vmem:[%s7487_s3 + $0x1f0] sm:$0xff] }
 0x38f   : > { %v6174_v60 = vpack.c.bf16 %v5177_v59, %v5176_v58 }
 0x391   : > { %5885 = vmatmul.mubr.msk.f32.vlgmr.msra.gmra.mrb[8].mxu1 %vm1577_vm2, %v3178_v44 }
 0x392   : > { %6141 = vmatpush3.bf16.msra.mxu1 %v6138_v28  ;;  %5887 = vmatprep.mubr.msk.f32.mxu1 %vm1577_vm2, %v7232_v55  ;;  %v6162_v28 = vpack.c.bf16 %v5163_v61, %v5162_v21 }
 0x393   : > { %6143 = vmatprep.subr.bf16.mxu1 %v6142_v46 }
 0x395   : > { %5888 = vmatmul.mubr.msk.f32.gmra.mrb[10].mxu1 %vm1577_vm2, %v7243_v57 }
 0x396   : > { %5890 = vmatprep.mubr.msk.f32.mxu1 %vm1577_vm2, %v7245_v53  ;;  %6145 = vmatpush3.bf16.msra.mxu1 %v6142_v46 }
 0x397   : > { %6147 = vmatprep.subr.bf16.mxu1 %v6146_v63 }
 0x399   : > { %5891 = vmatmul.mubr.msk.f32.gmra.mrb[12].mxu1 %vm1577_vm2, %v7251_v20 }
 0x39a   : > { %5893 = vmatprep.mubr.msk.f32.mxu1 %vm1577_vm2, %v7253_v5 }
 0x39d   : > { %5894 = vmatmul.mubr.msk.f32.gmra.mrb[14].mxu1 %vm1577_vm2, %v7259_v6 }
 0x39e   : > { %5904 = vmatprep.mubr.msk.f32.mxu1 %vm1577_vm2, %v1915_v15  ;;  %v5152_v15 = vld [vmem:[%s7487_s3 + $0x1b0] sm:$0xff] }
 0x39f   : > { %v6158_v13 = vpack.c.bf16 %v5153_v18, %v5152_v15 }
 0x3a1   : > { %5905 = vmatmul.mubr.msk.f32.vlgmr.msra.gmra.mrb[8].mxu1 %vm1577_vm2, %v3478_v11 }
 0x3a2   : > { %6149 = vmatpush3.bf16.msra.mxu1 %v6146_v63  ;;  %5907 = vmatprep.mubr.msk.f32.mxu1 %vm1577_vm2, %v7143_v8  ;;  %v5187_v63 = vld [vmem:[%s7487_s3 + $0x208] sm:$0xff] }
 0x3a3   : > { %6151 = vmatprep.subr.bf16.mxu1 %v6150_v14  ;;  %v6178_v0 = vpack.c.bf16 %v5187_v63, %v5186_v52 }
 0x3a5   : > { %5908 = vmatmul.mubr.msk.f32.gmra.mrb[10].mxu1 %vm1577_vm2, %v7176_v25 }
 0x3a6   : > { %5910 = vmatprep.mubr.msk.f32.mxu1 %vm1577_vm2, %v7181_v27  ;;  %6153 = vmatpush3.bf16.msra.mxu1 %v6150_v14 }
 0x3a7   : > { %6155 = vmatprep.subr.bf16.mxu1 %v6154_v12 }
 0x3a9   : > { %5911 = vmatmul.mubr.msk.f32.gmra.mrb[12].mxu1 %vm1577_vm2, %v7198_v36 }
 0x3aa   : > { %5913 = vmatprep.mubr.msk.f32.mxu1 %vm1577_vm2, %v7203_v39 }
 0x3ad   : > { %5914 = vmatmul.mubr.msk.f32.gmra.mrb[14].mxu1 %vm1577_vm2, %v7218_v48 }
 0x3ae   : > { %5924 = vmatprep.mubr.msk.f32.mxu1 %vm1577_vm2, %v3178_v44  ;;  %v6170_v44 = vpack.c.bf16 %v5175_v32, %v5174_v3 }
 0x3b1   : > { %5925 = vmatmul.mubr.msk.f32.vlgmr.msra.gmra.mrb[8].mxu1 %vm1577_vm2, %v7232_v55 }
 0x3b2   : > { %6157 = vmatpush3.bf16.msra.mxu1 %v6154_v12  ;;  %5927 = vmatprep.mubr.msk.f32.mxu1 %vm1577_vm2, %v7243_v57 }
 0x3b3   : > { %6159 = vmatprep.subr.bf16.mxu1 %v6158_v13 }
 0x3b5   : > { %5928 = vmatmul.mubr.msk.f32.gmra.mrb[10].mxu1 %vm1577_vm2, %v7245_v53 }
 0x3b6   : > { %5930 = vmatprep.mubr.msk.f32.mxu1 %vm1577_vm2, %v7251_v20  ;;  %6161 = vmatpush3.bf16.msra.mxu1 %v6158_v13 }
 0x3b7   : > { %6163 = vmatprep.subr.bf16.mxu1 %v6162_v28 }
 0x3b9   : > { %5931 = vmatmul.mubr.msk.f32.gmra.mrb[12].mxu1 %vm1577_vm2, %v7253_v5 }
 0x3ba   : > { %5933 = vmatprep.mubr.msk.f32.mxu1 %vm1577_vm2, %v7259_v6 }
 0x3bd   : > { %5934 = vmatmul.mubr.msk.f32.gmra.mrb[14].mxu1 %vm1577_vm2, %v3642_v34 }
 0x3be   : > { %5944 = vmatprep.mubr.msk.f32.mxu1 %vm1577_vm2, %v3199_v10  ;;  %v7343_v10 = vld [vmem:[#allocation2 + $0x81] sm:$0xff] }
 0x3bf   : > { %v3800_v46 = vmax.f32 %v7343_v10, 0.0 }
 0x3c1   : > { %5945 = vmatmul.mubr.msk.f32.vlgmr.msra.gmra.mrb[8].mxu1 %vm1577_vm2, %v7153_v51 }
 0x3c2   : > { %6165 = vmatpush3.bf16.msra.mxu1 %v6162_v28  ;;  %5947 = vmatprep.mubr.msk.f32.mxu1 %vm1577_vm2, %v7174_v24 }
 0x3c3   : > { %6167 = vmatprep.subr.bf16.mxu1 %v6166_v62 }
 0x3c5   : > { %5948 = vmatmul.mubr.msk.f32.gmra.mrb[10].mxu1 %vm1577_vm2, %v7179_v26 }
 0x3c6   : > { %5950 = vmatprep.mubr.msk.f32.mxu1 %vm1577_vm2, %v7196_v35  ;;  %6169 = vmatpush3.bf16.msra.mxu1 %v6166_v62 }
 0x3c7   : > { %6171 = vmatprep.subr.bf16.mxu1 %v6170_v44 }
 0x3c9   : > { %5951 = vmatmul.mubr.msk.f32.gmra.mrb[12].mxu1 %vm1577_vm2, %v7201_v37 }
 0x3ca   : > { %5953 = vmatprep.mubr.msk.f32.mxu1 %vm1577_vm2, %v7216_v47 }
 0x3cd   : > { %5954 = vmatmul.mubr.msk.f32.gmra.mrb[14].mxu1 %vm1577_vm2, %v3800_v46 }
 0x3ce   : > { %5964 = vmatprep.mubr.msk.f32.mxu1 %vm1577_vm2, %v3478_v11 }
 0x3d1   : > { %5965 = vmatmul.mubr.msk.f32.vlgmr.msra.gmra.mrb[8].mxu1 %vm1577_vm2, %v7143_v8  ;;  %v3958_v8 = vmax.f32 %v3950_v2, 0.0 }
 0x3d2   : > { %6173 = vmatpush3.bf16.msra.mxu1 %v6170_v44  ;;  %5967 = vmatprep.mubr.msk.f32.mxu1 %vm1577_vm2, %v7176_v25  ;;  %v5188_v25 = vld [vmem:[%s7487_s3 + $0x210] sm:$0xff] }
 0x3d3   : > { %6175 = vmatprep.subr.bf16.mxu1 %v6174_v60 }
 0x3d5   : > { %5968 = vmatmul.mubr.msk.f32.gmra.mrb[10].mxu1 %vm1577_vm2, %v7181_v27  ;;  %v5189_v27 = vld [vmem:[%s7487_s3 + $0x218] sm:$0xff] }
 0x3d6   : > { %5970 = vmatprep.mubr.msk.f32.mxu1 %vm1577_vm2, %v7198_v36  ;;  %6177 = vmatpush3.bf16.msra.mxu1 %v6174_v60  ;;  %v6182_v36 = vpack.c.bf16 %v5189_v27, %v5188_v25 }
 0x3d7   : > { %6179 = vmatprep.subr.bf16.mxu1 %v6178_v0 }
 0x3d9   : > { %5971 = vmatmul.mubr.msk.f32.gmra.mrb[12].mxu1 %vm1577_vm2, %v7203_v39 }
 0x3da   : > { %5973 = vmatprep.mubr.msk.f32.mxu1 %vm1577_vm2, %v7218_v48 }
 0x3dd   : > { %5974 = vmatmul.mubr.msk.f32.gmra.mrb[14].mxu1 %vm1577_vm2, %v3958_v8 }
 0x3de   : > { %5984 = vmatprep.mubr.msk.f32.mxu1 %vm1577_vm2, %v7232_v55 }
 0x3e1   : > { %5985 = vmatmul.mubr.msk.f32.vlgmr.msra.gmra.mrb[8].mxu1 %vm1577_vm2, %v7243_v57 }
 0x3e2   : > { %6181 = vmatpush3.bf16.msra.mxu1 %v6178_v0  ;;  %5987 = vmatprep.mubr.msk.f32.mxu1 %vm1577_vm2, %v7245_v53 }
 0x3e3   : > { %6183 = vmatprep.subr.bf16.mxu1 %v6182_v36 }
 0x3e5   : > { %5988 = vmatmul.mubr.msk.f32.gmra.mrb[10].mxu1 %vm1577_vm2, %v7251_v20 }
 0x3e6   : > { %5990 = vmatprep.mubr.msk.f32.mxu1 %vm1577_vm2, %v7253_v5  ;;  %6185 = vmatpush3.bf16.msra.mxu1 %v6182_v36 }
 0x3e7   : > { %6194 = vmatprep.subr.bf16.mxu1 %v7104_v54 }
 0x3e9   : > { %5991 = vmatmul.mubr.msk.f32.gmra.mrb[12].mxu1 %vm1577_vm2, %v7259_v6 }
 0x3ea   : > { %5993 = vmatprep.mubr.msk.f32.mxu1 %vm1577_vm2, %v3642_v34 }
 0x3ed   : > { %5994 = vmatmul.mubr.msk.f32.gmra.mrb[14].mxu1 %vm1577_vm2, %v6777_v1  ;;  %v5210_v1 = vld [vmem:[%s7488_s4 + $0x8] sm:$0xff] }
 0x3ee   : > { %6004 = vmatprep.mubr.msk.f32.mxu1 %vm1577_vm2, %v7153_v51  ;;  %6036 = vmatprep.subr.mxu0 %v5210_v1 }
 0x3ef   : > { %6037 = vmatpush3.msra.mxu0 %v5210_v1 }
 0x3f1   : > { %6005 = vmatmul.mubr.msk.f32.vlgmr.msra.gmra.mrb[8].mxu1 %vm1577_vm2, %v7174_v24 }
 0x3f2   : > { %6196 = vmatpush3.bf16.msra.mxu1 %v7104_v54  ;;  %6007 = vmatprep.mubr.msk.f32.mxu1 %vm1577_vm2, %v7179_v26 }
 0x3f3   : > { %6195 = vmatprep.subr.bf16.mxu1 %v7114_v4 }
 0x3f5   : > { %6008 = vmatmul.mubr.msk.f32.gmra.mrb[10].mxu1 %vm1577_vm2, %v7196_v35 }
 0x3f6   : > { %6010 = vmatprep.mubr.msk.f32.mxu1 %vm1577_vm2, %v7201_v37  ;;  %6197 = vmatpush3.bf16.msra.mxu1 %v7114_v4 }
 0x3f9   : > { %6011 = vmatmul.mubr.msk.f32.gmra.mrb[12].mxu1 %vm1577_vm2, %v7216_v47 }
 0x3fa   : > { %6013 = vmatprep.mubr.msk.f32.mxu1 %vm1577_vm2, %v3800_v46 }
 0x3fd   : > { %6014 = vmatmul.mubr.msk.f32.gmra.mrb[14].mxu1 %vm1577_vm2, %v2713_v31 }
 0x3fe   : > { %6033 = vmatprep.mubr.msk.f32.mxu1 %vm1577_vm2, %v3958_v8 }
 0x405   : > { %6034 = vmatmul.mubr.msk.f32.vlgmr.msra.gmra.mrb[14].mxu1 %vm1577_vm2, %v2871_v45 }
 0x459   : > { %v6026_v54 = vpop.f32.mrb[24].mxu0 }
 0x45a   : > { %v4528_v4 = vpop.f32.mrb[25].mxu0 }
 0x45d   : > { %v6029_v51 = vpop.f32.mrb[26].mxu0 }
 0x45e   : > { %v4538_v24 = vpop.f32.mrb[27].mxu0 }
 0x461   : > { %v6032_v26 = vpop.f32.mrb[28].mxu0 }
 0x462   : > { %v4548_v56 = vpop.f32.mrb[29].mxu0 }
 0x4c4   : > { %v6006_v35 = vpop.f32.mrb[8].mxu1 }
 0x4c5   : > { %v6206_v31 = vadd.f32 %v6026_v54, %v6006_v35  ;;  %v4370_v37 = vpop.f32.mrb[9].mxu1 }
 0x4c6   : > { %v6207_v39 = vadd.f32 %v4528_v4, %v4370_v37 }
 0x4c7   : > { %v4576_v48 = vmax.f32 %v6206_v31, 0.0 }
 0x4c8   : > { %v4575_v47 = vmax.f32 %v6207_v39, 0.0  ;;  %v6009_v43 = vpop.f32.mrb[10].mxu1 }
 0x4c9   : > { %v6208_v45 = vadd.f32 %v6029_v51, %v6009_v43  ;;  %v4380_v55 = vpop.f32.mrb[11].mxu1 }
 0x4ca   : > { %v6209_v57 = vadd.f32 %v4538_v24, %v4380_v55  ;;  %6038 = vmatprep.mubr.msk.f32.mxu0 %vm3023_vm4, %v4575_v47 }
 0x4cb   : > { %6039 = vmatmul.mubr.msk.f32.vlgmr.msra.gmra.mrb[30].mxu0 %vm3023_vm4, %v4576_v48  ;;  %v4578_v5 = vmax.f32 %v6208_v45, 0.0 }
 0x4cc   : > { %v4577_v53 = vmax.f32 %v6209_v57, 0.0  ;;  %v6012_v20 = vpop.f32.mrb[12].mxu1 }
 0x4cd   : > { %v6210_v23 = vadd.f32 %v6032_v26, %v6012_v20  ;;  %v4390_v6 = vpop.f32.mrb[13].mxu1 }
 0x4ce   : > { %v6211_v38 = vadd.f32 %v4548_v56, %v4390_v6  ;;  %6041 = vmatprep.mubr.msk.f32.mxu0 %vm3023_vm4, %v4577_v53 }
 0x4cf   : > { %6042 = vmatmul.mubr.msk.f32.gmra.mrb[32].mxu0 %vm3023_vm4, %v4578_v5  ;;  %v4580_v49 = vmax.f32 %v6210_v23, 0.0 }
 0x4d0   : > { %v4579_v7 = vmax.f32 %v6211_v38, 0.0 }
 0x4d2   : > { %6044 = vmatprep.mubr.msk.f32.mxu0 %vm3023_vm4, %v4579_v7 }
 0x4d3   : > { %6045 = vmatmul.mubr.msk.f32.gmra.mrb[34].mxu0 %vm3023_vm4, %v4580_v49 }
 0x4d8   : > { %v6035_v11 = vpop.f32.mrb[14].mxu1 }
 0x4d9   : > { %v4558_v14 = vpop.f32.mrb[15].mxu1  ;;  %v4582_v17 = vmax.f32 %v6035_v11, 0.0 }
 0x4da   : > { %v4581_v16 = vmax.f32 %v4558_v14, 0.0 }
 0x4dc   : > { %6047 = vmatprep.mubr.msk.f32.mxu0 %vm3023_vm4, %v4581_v16 }
 0x4dd   : > { %6048 = vmatmul.mubr.msk.f32.gmra.mrb[36].mxu0 %vm3023_vm4, %v4582_v17 }
 0x59e   : > { %v6040_v12 = vpop.f32.mrb[30].mxu0 }
 0x59f   : > { %v4715_v15 = vadd.f32 %v6040_v12, %v7140_v41  ;;  %v4675_v18 = vpop.f32.mrb[31].mxu0 }
 0x5a0   : > { %v4714_v13 = vadd.f32 %v4675_v18, %v7145_v9 }
 0x5a1   : > { %4723 = vst.msk [vmem:[#allocation2 + $0x21] sm:$0xff] %vm1577_vm2, %v4715_v15 }
 0x5a2   : > { %4722 = vst.msk [vmem:[#allocation2 + $0x11] sm:$0xff] %vm1577_vm2, %v4714_v13  ;;  %v6043_v21 = vpop.f32.mrb[32].mxu0 }
 0x5a3   : > { %v4717_v61 = vadd.f32 %v6043_v21, %v7162_v19  ;;  %v4685_v28 = vpop.f32.mrb[33].mxu0 }
 0x5a4   : > { %v4716_v30 = vadd.f32 %v4685_v28, %v7170_v22 }
 0x5a5   : > { %4725 = vst.msk [vmem:[#allocation2 + $0x41] sm:$0xff] %vm1577_vm2, %v4717_v61 }
 0x5a6   : > { %4724 = vst.msk [vmem:[#allocation2 + $0x31] sm:$0xff] %vm1577_vm2, %v4716_v30  ;;  %v6046_v41 = vpop.f32.mrb[34].mxu0 }
 0x5a7   : > { %v4719_v9 = vadd.f32 %v6046_v41, %v7187_v29  ;;  %v4695_v34 = vpop.f32.mrb[35].mxu0 }
 0x5a8   : > { %v4734_v42 = vld [vmem:[#allocation2 + $0x20] sm:$0xff]  ;;  %v4735_v50 = vld [vmem:[#allocation2 + $0x28] sm:$0x3]  ;;  %v4718_v62 = vadd.f32 %v4695_v34, %v7193_v33 }
 0x5a9   : > { %v4754_v19 = vmax.f32 %v4734_v42, 0.0  ;;  %v4755_v3 = vmax.f32 %v4735_v50, 0.0  ;;  %v4732_v32 = vld [vmem:[#allocation2 + $0x10] sm:$0xff]  ;;  %v4733_v22 = vld [vmem:[#allocation2 + $0x18] sm:$0x3]  ;;  %4727 = vst.msk [vmem:[#allocation2 + $0x61] sm:$0xff] %vm1577_vm2, %v4719_v9 }
 0x5aa   : > { %v4752_v44 = vmax.f32 %v4732_v32, 0.0  ;;  %v4753_v46 = vmax.f32 %v4733_v22, 0.0  ;;  %4726 = vst.msk [vmem:[#allocation2 + $0x51] sm:$0xff] %vm1577_vm2, %v4718_v62 }
 0x5ab   : > { %4774 = vst.msk [vmem:[%s6761_s17 + $0x20] sm:$0xff] %vm1577_vm2, %v4754_v19 }
 0x5ac   : > { %4775 = vst.msk [vmem:[%s6761_s17 + $0x28] sm:$0x3] %vm1579_vm3, %v4755_v3  ;;  %4773 = vst.msk [vmem:[%s6761_s17 + $0x18] sm:$0x3] %vm1579_vm3, %v4753_v46  ;;  %v4738_v29 = vld [vmem:[#allocation2 + $0x40] sm:$0xff] }
 0x5ad   : > { %4772 = vst.msk [vmem:[%s6761_s17 + $0x10] sm:$0xff] %vm1577_vm2, %v4752_v44  ;;  %v4739_v33 = vld [vmem:[#allocation2 + $0x48] sm:$0x3]  ;;  %v4758_v58 = vmax.f32 %v4738_v29, 0.0  ;;  %v4736_v60 = vld [vmem:[#allocation2 + $0x30] sm:$0xff] }
 0x5ae   : > { %v4759_v59 = vmax.f32 %v4739_v33, 0.0  ;;  %v4737_v52 = vld [vmem:[#allocation2 + $0x38] sm:$0x3]  ;;  %v4756_v63 = vmax.f32 %v4736_v60, 0.0 }
 0x5af   : > { %v4757_v0 = vmax.f32 %v4737_v52, 0.0  ;;  %4778 = vst.msk [vmem:[%s6761_s17 + $0x40] sm:$0xff] %vm1577_vm2, %v4758_v58 }
 0x5b0   : > { %4779 = vst.msk [vmem:[%s6761_s17 + $0x48] sm:$0x3] %vm1579_vm3, %v4759_v59  ;;  %v4742_v2 = vld [vmem:[#allocation2 + $0x60] sm:$0xff]  ;;  %v4743_v8 = vld [vmem:[#allocation2 + $0x68] sm:$0x3]  ;;  %v6049_v25 = vpop.f32.mrb[36].mxu0 }
 0x5b1   : > { %4776 = vst.msk [vmem:[%s6761_s17 + $0x30] sm:$0xff] %vm1577_vm2, %v4756_v63  ;;  %v4762_v27 = vmax.f32 %v4742_v2, 0.0  ;;  %v4763_v36 = vmax.f32 %v4743_v8, 0.0  ;;  %v4740_v1 = vld [vmem:[#allocation2 + $0x50] sm:$0xff]  ;;  %v4741_v54 = vld [vmem:[#allocation2 + $0x58] sm:$0x3]  ;;  %v4721_v4 = vadd.f32 %v6049_v25, %v7343_v10 }
 0x5b2   : > { %4777 = vst.msk [vmem:[%s6761_s17 + $0x38] sm:$0x3] %vm1579_vm3, %v4757_v0  ;;  %v4705_v51 = vpop.f32.mrb[37].mxu0  ;;  %v4760_v24 = vmax.f32 %v4740_v1, 0.0  ;;  %v4761_v26 = vmax.f32 %v4741_v54, 0.0 }
 0x5b3   : > { %v4720_v56 = vadd.f32 %v4705_v51, %v7213_v40  ;;  %4782 = vst.msk [vmem:[%s6761_s17 + $0x60] sm:$0xff] %vm1577_vm2, %v4762_v27  ;;  %4729 = vst.msk [vmem:[#allocation2 + $0x81] sm:$0xff] %vm1577_vm2, %v4721_v4 }
 0x5b4   : > { %4783 = vst.msk [vmem:[%s6761_s17 + $0x68] sm:$0x3] %vm1579_vm3, %v4763_v36  ;;  %4781 = vst.msk [vmem:[%s6761_s17 + $0x58] sm:$0x3] %vm1579_vm3, %v4761_v26 }
 0x5b5   : > { %4780 = vst.msk [vmem:[%s6761_s17 + $0x50] sm:$0xff] %vm1577_vm2, %v4760_v24  ;;  %4728 = vst.msk [vmem:[#allocation2 + $0x71] sm:$0xff] %vm1577_vm2, %v4720_v56 }
 0x5ba   : > { %v4746_v10 = vld [vmem:[#allocation2 + $0x80] sm:$0xff]  ;;  %v4747_v35 = vld [vmem:[#allocation2 + $0x88] sm:$0x3] }
 0x5bb   : > { %v4766_v31 = vmax.f32 %v4746_v10, 0.0  ;;  %v4767_v37 = vmax.f32 %v4747_v35, 0.0 }
 0x5bc   : > { %v4744_v40 = vld [vmem:[#allocation2 + $0x70] sm:$0xff]  ;;  %v4745_v39 = vld [vmem:[#allocation2 + $0x78] sm:$0x3] }
 0x5bd   : > { %v4764_v47 = vmax.f32 %v4744_v40, 0.0  ;;  %v4765_v43 = vmax.f32 %v4745_v39, 0.0  ;;  %4786 = vst.msk [vmem:[%s6761_s17 + $0x80] sm:$0xff] %vm1577_vm2, %v4766_v31 }
 0x5be   : > { %4787 = vst.msk [vmem:[%s6761_s17 + $0x88] sm:$0x3] %vm1579_vm3, %v4767_v37 }
 0x5bf   : > { %4784 = vst.msk [vmem:[%s6761_s17 + $0x70] sm:$0xff] %vm1577_vm2, %v4764_v47 }
 0x5c0   : > { %4785 = vst.msk [vmem:[%s6761_s17 + $0x78] sm:$0x3] %vm1579_vm3, %v4765_v43 }
 0x5c1 PF: > { %s15_s18 = sadd.s32 1, %s6406_s18  }
 0x5c2   : > { %p12_p4 = scmp.ge.s32.totalorder %s15_s18, 4  }
 0x5c4   :  { %14 = sbr.rel (!%p12_p4) target bundleno = 1 (0x1), region = 100 }

// kernel: decoder_forward.5
= control target key start
LH: loop header
LB: loop body
LE: loop exit
PB: predicated region body
PF: predicated region fallthrough
CT: control target
= control target key end

     0   :  { %s9034_s12 = smov 0   ;;  %s9036_s13 = smov 0   ;;  %s11219_s0 = inlined_call_operand.vmem [shape: f32[2,18,18,16], index: 0, kind: input, shape index: {}]   ;;  %s11220_s1 = inlined_call_operand.vmem [shape: f32[16,16,3], index: 1, kind: input, shape index: {}]   ;;  %s11221_s2 = inlined_call_operand.vmem [shape: f32[1,3], index: 2, kind: input, shape index: {}]   ;;  %s11222_s3 = inlined_call_operand.vmem [shape: f32[2,16,2,16,6], index: 3, kind: output, shape index: {}]  }
   0x1   :  { %s9038_s14 = smov 0  }
   0x2 LB: > { %s25_s15 = sadd.s32 1, %s9007_s13  ;;  %p6268_p0 = scmp.ge.s32.totalorder %s9011_s14, 1  ;;  %s9011_s14 = sphi %s9038_s14, %s13_s14   ;;  %s9007_s13 = sphi %s9036_s13, %s11477_s13   ;;  %s9003_s12 = sphi %s9034_s12, %s11476_s12  }
   0x3   : > { %p27_p1 = scmp.ge.s32.totalorder %s25_s15, 2  ;;  %p151_p2 = scmp.lt.s32.totalorder %s9011_s14, 3 }
   0x5   : > { %s11479_s15 = smov (%p27_p1, %s25_s15), 0  ;;  %p152_p3 = pnand %p6268_p0, %p151_p2 }
   0x7   : > { %155 = sbr.rel (%p152_p3) target bundleno = 863 (0x35f), region = 32 }
   0xe   : > { %v6473_v0 = vld [vmem:[%s11220_s1 + $0x50] sm:$0xff]  ;;  %v6474_v1 = vld [vmem:[%s11220_s1 + $0x58] sm:$0xff]  ;;  %p180_p4 = scmp.lt.s32.totalorder %s9003_s12, 1  ;;  %v6471_v5 = vld [vmem:[%s11220_s1 + $0x40] sm:$0xff]  ;;  %vm269_vm0 = vcmask 130048   ;;  %s9013_s18 = smov 3  }
   0xf   : > { %v6272_v2 = vld [vmem:[%s11220_s1 + $0x10] sm:$0xff]  ;;  %v8530_v3 = vpack.c.bf16 %v6474_v1, %v6473_v0  ;;  %v6273_v4 = vld [vmem:[%s11220_s1 + $0x18] sm:$0xff]  ;;  %v6472_v6 = vld [vmem:[%s11220_s1 + $0x48] sm:$0xff]  ;;  %vm3121_vm1 = vcmask 23552   ;;  %vm3154_vm2 = vcmask 48128  }
  0x10   : > { %v8514_v7 = vpack.c.bf16 %v6273_v4, %v6272_v2  ;;  %s11481_s12 = smov (!%p180_p4, %s9003_s12), 1  ;;  %v8534_v8 = vpack.c.bf16 %v6472_v6, %v6471_v5  ;;  %v232_v9 = vld [vmem:[%s11220_s1] sm:$0xff]  ;;  %v233_v10 = vld [vmem:[%s11220_s1 + $0x8] sm:$0xff] }
  0x11   : > { %8531 = vmatprep.subr.bf16.mxu1 %v8530_v3  ;;  %v8518_v11 = vpack.c.bf16 %v233_v10, %v232_v9  ;;  %s8962_s5 = smul.u32 432, %s11481_s12  ;;  %v6539_v12 = vld [vmem:[%s11220_s1 + $0x60] sm:$0xff]  ;;  %v6540_v13 = vld [vmem:[%s11220_s1 + $0x68] sm:$0xff]  ;;  %s7137_s19 = sshll.u32 %s11481_s12, 9 }
  0x12   : > { %8515 = vmatprep.subr.bf16.mxu0 %v8514_v7  ;;  %8533 = vmatpush3.bf16.msra.mxu1 %v8530_v3  ;;  %v6370_v14 = vld [vmem:[%s11220_s1 + $0x20] sm:$0xff]  ;;  %v6371_v15 = vld [vmem:[%s11220_s1 + $0x28] sm:$0xff]  ;;  %v9113_v22 = vpack.c.bf16 %v6540_v13, %v6539_v12  ;;  %s10757_s23 = scalar_lea.vmem %s11222_s3, %s7137_s19 }
  0x13   : > { %8517 = vmatpush3.bf16.msra.mxu0 %v8514_v7  ;;  %8535 = vmatprep.subr.bf16.mxu1 %v8534_v8  ;;  %s9094_s20 = scalar_lea.vmem %s11219_s0, %s8962_s5  ;;  %v9115_v23 = vpack.c.bf16 %v6371_v15, %v6370_v14 }
  0x14   : > { %8519 = vmatprep.subr.bf16.mxu0 %v8518_v11  ;;  %v9097_v16 = vld [vmem:[%s9094_s20 + $0x1] sm:$0xff]  ;;  %v9101_v18 = vld [vmem:[%s9094_s20 + $0x9] sm:$0xff]  ;;  %v9108_v20 = vld [vmem:[%s9094_s20 + $0x19] sm:$0xff] }
  0x15   : > { %v1732_v17 = vld [vmem:[%s9094_s20 + $0x2] sm:$0xff]  ;;  %7686 = vmatprep.mubr.msk.f32.mxu0 %vm269_vm0, %v9097_v16  ;;  %v1733_v19 = vld [vmem:[%s9094_s20 + $0xa] sm:$0xff]  ;;  %v9111_v21 = vld [vmem:[%s9094_s20 + $0x1a] sm:$0xff] }
  0x16   : > { %7894 = vmatprep.mubr.msk.f32.mxu1 %vm269_vm0, %v1732_v17  ;;  %11329 = vst [vmem:[#allocation2_spill] sm:$0xff] %v9111_v21  ;;  %7687 = vmatmul.mubr.msk.f32.vlgmr.msra.gmra.mrb[0].mxu0 %vm269_vm0, %v9101_v18  ;;  %v9123_v24 = vld [vmem:[%s9094_s20 + $0x21] sm:$0xff]  ;;  %v9131_v26 = vld [vmem:[%s9094_s20 + $0x31] sm:$0xff]  ;;  %v9147_v28 = vld [vmem:[%s9094_s20 + $0x39] sm:$0xff] }
  0x17   : > { %7895 = vmatmul.mubr.msk.f32.vlgmr.msra.gmra.mrb[0].mxu1 %vm269_vm0, %v1733_v19  ;;  %7689 = vmatprep.mubr.msk.f32.mxu0 %vm269_vm0, %v9108_v20  ;;  %v9126_v25 = vld [vmem:[%s9094_s20 + $0x22] sm:$0xff]  ;;  %v9134_v27 = vld [vmem:[%s9094_s20 + $0x32] sm:$0xff]  ;;  %v9150_v29 = vld [vmem:[%s9094_s20 + $0x3a] sm:$0xff] }
  0x18   : > { %8537 = vmatpush3.bf16.msra.mxu1 %v8534_v8  ;;  %11330 = vst [vmem:[#allocation3_spill] sm:$0xff] %v9126_v25  ;;  %7897 = vmatprep.mubr.msk.f32.mxu1 %vm269_vm0, %v9111_v21  ;;  %11331 = vst [vmem:[#allocation4_spill] sm:$0xff] %v9134_v27  ;;  %v9153_v30 = vld [vmem:[%s9094_s20 + $0x49] sm:$0xff]  ;;  %v9167_v32 = vld [vmem:[%s9094_s20 + $0x51] sm:$0xff] }
  0x19   : > { %8521 = vmatpush3.bf16.msra.mxu0 %v8518_v11  ;;  %8539 = vmatprep.subr.bf16.mxu1 %v9113_v22  ;;  %11332 = vst [vmem:[#allocation5_spill] sm:$0xff] %v9150_v29  ;;  %v9156_v31 = vld [vmem:[%s9094_s20 + $0x4a] sm:$0xff]  ;;  %v9170_v33 = vld [vmem:[%s9094_s20 + $0x52] sm:$0xff]  ;;  %v9173_v34 = vld [vmem:[%s9094_s20 + $0x61] sm:$0xff] }
  0x1a   : > { %8523 = vmatprep.subr.bf16.mxu0 %v9115_v23  ;;  %7690 = vmatmul.mubr.msk.f32.gmra.mrb[2].mxu0 %vm269_vm0, %v9123_v24  ;;  %11333 = vst [vmem:[#allocation6_spill] sm:$0xff] %v9156_v31  ;;  %11334 = vst [vmem:[#allocation7_spill] sm:$0xff] %v9170_v33  ;;  %v9176_v35 = vld [vmem:[%s9094_s20 + $0x62] sm:$0xff]  ;;  %v9190_v37 = vld [vmem:[%s9094_s20 + $0x6a] sm:$0xff] }
  0x1b   : > { %7898 = vmatmul.mubr.msk.f32.gmra.mrb[2].mxu1 %vm269_vm0, %v9126_v25  ;;  %7692 = vmatprep.mubr.msk.f32.mxu0 %vm269_vm0, %v9131_v26  ;;  %11335 = vst [vmem:[#allocation8_spill] sm:$0xff] %v9176_v35  ;;  %v9187_v36 = vld [vmem:[%s9094_s20 + $0x69] sm:$0xff]  ;;  %11336 = vst [vmem:[#allocation9_spill] sm:$0xff] %v9190_v37  ;;  %v9193_v38 = vld [vmem:[%s9094_s20 + $0x79] sm:$0xff] }
  0x1c   : > { %7900 = vmatprep.mubr.msk.f32.mxu1 %vm269_vm0, %v9134_v27  ;;  %v9196_v39 = vld [vmem:[%s9094_s20 + $0x7a] sm:$0xff]  ;;  %v9210_v41 = vld [vmem:[%s9094_s20 + $0x82] sm:$0xff]  ;;  %v9213_v42 = vld [vmem:[%s9094_s20 + $0x91] sm:$0xff] }
  0x1d   : > { %11337 = vst [vmem:[#allocation10_spill] sm:$0xff] %v9196_v39  ;;  %v9207_v40 = vld [vmem:[%s9094_s20 + $0x81] sm:$0xff]  ;;  %11338 = vst [vmem:[#allocation11_spill] sm:$0xff] %v9210_v41  ;;  %v9216_v43 = vld [vmem:[%s9094_s20 + $0x92] sm:$0xff] }
  0x1e   : > { %7693 = vmatmul.mubr.msk.f32.gmra.mrb[4].mxu0 %vm269_vm0, %v9147_v28  ;;  %11339 = vst [vmem:[#allocation12_spill] sm:$0xff] %v9216_v43  ;;  %v9227_v44 = vld [vmem:[%s9094_s20 + $0x99] sm:$0xff]  ;;  %v9233_v46 = vld [vmem:[%s9094_s20 + $0xa9] sm:$0xff]  ;;  %v9247_v48 = vld [vmem:[%s9094_s20 + $0xb1] sm:$0xff] }
  0x1f   : > { %7901 = vmatmul.mubr.msk.f32.gmra.mrb[4].mxu1 %vm269_vm0, %v9150_v29  ;;  %7695 = vmatprep.mubr.msk.f32.mxu0 %vm269_vm0, %v9153_v30  ;;  %v9230_v45 = vld [vmem:[%s9094_s20 + $0x9a] sm:$0xff]  ;;  %v9236_v47 = vld [vmem:[%s9094_s20 + $0xaa] sm:$0xff]  ;;  %v9250_v49 = vld [vmem:[%s9094_s20 + $0xb2] sm:$0xff] }
  0x20   : > { %7903 = vmatprep.mubr.msk.f32.mxu1 %vm269_vm0, %v9156_v31  ;;  %11340 = vst [vmem:[#allocation13_spill] sm:$0xff] %v9230_v45  ;;  %11341 = vst [vmem:[#allocation14_spill] sm:$0xff] %v9236_v47  ;;  %v9253_v50 = vld [vmem:[%s9094_s20 + $0xc1] sm:$0xff]  ;;  %v9267_v52 = vld [vmem:[%s9094_s20 + $0xc9] sm:$0xff] }
  0x21   : > { %11342 = vst [vmem:[#allocation15_spill] sm:$0xff] %v9250_v49  ;;  %v9256_v51 = vld [vmem:[%s9094_s20 + $0xc2] sm:$0xff]  ;;  %v9270_v53 = vld [vmem:[%s9094_s20 + $0xca] sm:$0xff]  ;;  %v9273_v54 = vld [vmem:[%s9094_s20 + $0xd9] sm:$0xff] }
  0x22   : > { %7696 = vmatmul.mubr.msk.f32.gmra.mrb[6].mxu0 %vm269_vm0, %v9167_v32  ;;  %11343 = vst [vmem:[#allocation16_spill] sm:$0xff] %v9256_v51  ;;  %11344 = vst [vmem:[#allocation17_spill] sm:$0xff] %v9270_v53  ;;  %v9276_v55 = vld [vmem:[%s9094_s20 + $0xda] sm:$0xff]  ;;  %v9290_v57 = vld [vmem:[%s9094_s20 + $0xe2] sm:$0xff] }
  0x23   : > { %7904 = vmatmul.mubr.msk.f32.gmra.mrb[6].mxu1 %vm269_vm0, %v9170_v33  ;;  %7698 = vmatprep.mubr.msk.f32.mxu0 %vm269_vm0, %v9173_v34  ;;  %11345 = vst [vmem:[#allocation18_spill] sm:$0xff] %v9276_v55  ;;  %v9287_v56 = vld [vmem:[%s9094_s20 + $0xe1] sm:$0xff]  ;;  %11346 = vst [vmem:[#allocation19_spill] sm:$0xff] %v9290_v57  ;;  %v9293_v58 = vld [vmem:[%s9094_s20 + $0xf1] sm:$0xff] }
  0x24   : > { %7906 = vmatprep.mubr.msk.f32.mxu1 %vm269_vm0, %v9176_v35  ;;  %v9296_v59 = vld [vmem:[%s9094_s20 + $0xf2] sm:$0xff]  ;;  %v9310_v61 = vld [vmem:[%s9094_s20 + $0xfa] sm:$0xff]  ;;  %v9313_v62 = vld [vmem:[%s9094_s20 + $0x109] sm:$0xff] }
  0x25   : > { %11347 = vst [vmem:[#allocation20_spill] sm:$0xff] %v9296_v59  ;;  %v9307_v60 = vld [vmem:[%s9094_s20 + $0xf9] sm:$0xff]  ;;  %11348 = vst [vmem:[#allocation21_spill] sm:$0xff] %v9310_v61  ;;  %v9316_v63 = vld [vmem:[%s9094_s20 + $0x10a] sm:$0xff] }
  0x26   : > { %7699 = vmatmul.mubr.msk.f32.gmra.mrb[8].mxu0 %vm269_vm0, %v9187_v36  ;;  %11349 = vst [vmem:[#allocation22_spill] sm:$0xff] %v9316_v63  ;;  %v9327_v0 = vld [vmem:[%s9094_s20 + $0x111] sm:$0xff]  ;;  %v9333_v2 = vld [vmem:[%s9094_s20 + $0x121] sm:$0xff]  ;;  %v9347_v4 = vld [vmem:[%s9094_s20 + $0x129] sm:$0xff] }
  0x27   : > { %7907 = vmatmul.mubr.msk.f32.gmra.mrb[8].mxu1 %vm269_vm0, %v9190_v37  ;;  %7701 = vmatprep.mubr.msk.f32.mxu0 %vm269_vm0, %v9193_v38  ;;  %v9330_v1 = vld [vmem:[%s9094_s20 + $0x112] sm:$0xff]  ;;  %v9336_v3 = vld [vmem:[%s9094_s20 + $0x122] sm:$0xff]  ;;  %v9350_v5 = vld [vmem:[%s9094_s20 + $0x12a] sm:$0xff] }
  0x28   : > { %7909 = vmatprep.mubr.msk.f32.mxu1 %vm269_vm0, %v9196_v39  ;;  %11350 = vst [vmem:[#allocation23_spill] sm:$0xff] %v9330_v1  ;;  %11351 = vst [vmem:[#allocation24_spill] sm:$0xff] %v9336_v3  ;;  %v9353_v6 = vld [vmem:[%s9094_s20 + $0x139] sm:$0xff]  ;;  %v9367_v8 = vld [vmem:[%s9094_s20 + $0x141] sm:$0xff] }
  0x29   : > { %11352 = vst [vmem:[#allocation25_spill] sm:$0xff] %v9350_v5  ;;  %v9356_v7 = vld [vmem:[%s9094_s20 + $0x13a] sm:$0xff]  ;;  %v9370_v9 = vld [vmem:[%s9094_s20 + $0x142] sm:$0xff]  ;;  %v9373_v10 = vld [vmem:[%s9094_s20 + $0x151] sm:$0xff] }
  0x2a   : > { %7702 = vmatmul.mubr.msk.f32.gmra.mrb[10].mxu0 %vm269_vm0, %v9207_v40  ;;  %11353 = vst [vmem:[#allocation26_spill] sm:$0xff] %v9356_v7  ;;  %11354 = vst [vmem:[#allocation27_spill] sm:$0xff] %v9370_v9  ;;  %v9376_v11 = vld [vmem:[%s9094_s20 + $0x152] sm:$0xff]  ;;  %v9390_v13 = vld [vmem:[%s9094_s20 + $0x15a] sm:$0xff] }
  0x2b   : > { %7910 = vmatmul.mubr.msk.f32.gmra.mrb[10].mxu1 %vm269_vm0, %v9210_v41  ;;  %7704 = vmatprep.mubr.msk.f32.mxu0 %vm269_vm0, %v9213_v42  ;;  %11355 = vst [vmem:[#allocation28_spill] sm:$0xff] %v9373_v10  ;;  %11356 = vst [vmem:[#allocation29_spill] sm:$0xff] %v9376_v11  ;;  %v9387_v12 = vld [vmem:[%s9094_s20 + $0x159] sm:$0xff]  ;;  %v9393_v14 = vld [vmem:[%s9094_s20 + $0x169] sm:$0xff] }
  0x2c   : > { %7912 = vmatprep.mubr.msk.f32.mxu1 %vm269_vm0, %v9216_v43  ;;  %11357 = vst [vmem:[#allocation30_spill] sm:$0xff] %v9390_v13  ;;  %11358 = vst [vmem:[#allocation31_spill] sm:$0xff] %v9393_v14  ;;  %v9396_v15 = vld [vmem:[%s9094_s20 + $0x16a] sm:$0xff]  ;;  %v9410_v19 = vld [vmem:[%s9094_s20 + $0x172] sm:$0xff] }
  0x2d   : > { %11359 = vst [vmem:[#allocation32_spill] sm:$0xff] %v9396_v15  ;;  %v9407_v17 = vld [vmem:[%s9094_s20 + $0x171] sm:$0xff]  ;;  %11361 = vst [vmem:[#allocation34_spill] sm:$0xff] %v9410_v19  ;;  %v9595_v41 = vld [vmem:[%s9094_s20 + $0x120] sm:$0xff] }
  0x2e   : > { %7705 = vmatmul.mubr.msk.f32.gmra.mrb[12].mxu0 %vm269_vm0, %v9227_v44  ;;  %11360 = vst [vmem:[#allocation33_spill] sm:$0xff] %v9407_v17  ;;  %v9592_v43 = vld [vmem:[%s9094_s20 + $0x110] sm:$0xff]  ;;  %11384 = vst [vmem:[#allocation57_spill] sm:$0xff] %v9595_v41  ;;  %v9606_v39 = vld [vmem:[%s9094_s20 + $0x128] sm:$0xff] }
  0x2f   : > { %7913 = vmatmul.mubr.msk.f32.gmra.mrb[12].mxu1 %vm269_vm0, %v9230_v45  ;;  %7707 = vmatprep.mubr.msk.f32.mxu0 %vm269_vm0, %v9233_v46  ;;  %v9581_v45 = vld [vmem:[%s9094_s20 + $0x108] sm:$0xff]  ;;  %11383 = vst [vmem:[#allocation56_spill] sm:$0xff] %v9592_v43  ;;  %11385 = vst [vmem:[#allocation58_spill] sm:$0xff] %v9606_v39  ;;  %v9609_v37 = vld [vmem:[%s9094_s20 + $0x138] sm:$0xff] }
  0x30   : > { %7915 = vmatprep.mubr.msk.f32.mxu1 %vm269_vm0, %v9236_v47  ;;  %v9578_v47 = vld [vmem:[%s9094_s20 + $0xf8] sm:$0xff]  ;;  %11382 = vst [vmem:[#allocation55_spill] sm:$0xff] %v9581_v45  ;;  %11386 = vst [vmem:[#allocation59_spill] sm:$0xff] %v9609_v37  ;;  %v9620_v35 = vld [vmem:[%s9094_s20 + $0x140] sm:$0xff] }
  0x31   : > { %11381 = vst [vmem:[#allocation54_spill] sm:$0xff] %v9578_v47  ;;  %11387 = vst [vmem:[#allocation60_spill] sm:$0xff] %v9620_v35  ;;  %v9623_v33 = vld [vmem:[%s9094_s20 + $0x150] sm:$0xff]  ;;  %v9634_v31 = vld [vmem:[%s9094_s20 + $0x158] sm:$0xff] }
  0x32   : > { %7708 = vmatmul.mubr.msk.f32.gmra.mrb[14].mxu0 %vm269_vm0, %v9247_v48  ;;  %11388 = vst [vmem:[#allocation61_spill] sm:$0xff] %v9623_v33  ;;  %11389 = vst [vmem:[#allocation62_spill] sm:$0xff] %v9634_v31  ;;  %v9637_v29 = vld [vmem:[%s9094_s20 + $0x168] sm:$0xff]  ;;  %v9648_v27 = vld [vmem:[%s9094_s20 + $0x170] sm:$0xff] }
  0x33   : > { %7916 = vmatmul.mubr.msk.f32.gmra.mrb[14].mxu1 %vm269_vm0, %v9250_v49  ;;  %7710 = vmatprep.mubr.msk.f32.mxu0 %vm269_vm0, %v9253_v50  ;;  %v9567_v49 = vld [vmem:[%s9094_s20 + $0xf0] sm:$0xff]  ;;  %11390 = vst [vmem:[#allocation63_spill] sm:$0xff] %v9637_v29  ;;  %11391 = vst [vmem:[#allocation64_spill] sm:$0xff] %v9648_v27  ;;  %v6938_v21 = vld [vmem:[%s11220_s1 + $0xd8] sm:$0xff] }
  0x34   : > { %7918 = vmatprep.mubr.msk.f32.mxu1 %vm269_vm0, %v9256_v51  ;;  %v9564_v51 = vld [vmem:[%s9094_s20 + $0xe0] sm:$0xff]  ;;  %11380 = vst [vmem:[#allocation53_spill] sm:$0xff] %v9567_v49  ;;  %v6937_v25 = vld [vmem:[%s11220_s1 + $0xd0] sm:$0xff] }
  0x35   : > { %11379 = vst [vmem:[#allocation52_spill] sm:$0xff] %v9564_v51 }
  0x36   : > { %7711 = vmatmul.mubr.msk.f32.gmra.mrb[16].mxu0 %vm269_vm0, %v9267_v52 }
  0x37   : > { %7919 = vmatmul.mubr.msk.f32.gmra.mrb[16].mxu1 %vm269_vm0, %v9270_v53  ;;  %7713 = vmatprep.mubr.msk.f32.mxu0 %vm269_vm0, %v9273_v54  ;;  %v9553_v53 = vld [vmem:[%s9094_s20 + $0xd8] sm:$0xff] }
  0x38   : > { %7921 = vmatprep.mubr.msk.f32.mxu1 %vm269_vm0, %v9276_v55  ;;  %v9550_v55 = vld [vmem:[%s9094_s20 + $0xc8] sm:$0xff]  ;;  %11378 = vst [vmem:[#allocation51_spill] sm:$0xff] %v9553_v53 }
  0x39   : > { %11377 = vst [vmem:[#allocation50_spill] sm:$0xff] %v9550_v55 }
  0x3a   : > { %7714 = vmatmul.mubr.msk.f32.gmra.mrb[18].mxu0 %vm269_vm0, %v9287_v56 }
  0x3b   : > { %7922 = vmatmul.mubr.msk.f32.gmra.mrb[18].mxu1 %vm269_vm0, %v9290_v57  ;;  %7716 = vmatprep.mubr.msk.f32.mxu0 %vm269_vm0, %v9293_v58  ;;  %v9539_v57 = vld [vmem:[%s9094_s20 + $0xc0] sm:$0xff] }
  0x3c   : > { %7924 = vmatprep.mubr.msk.f32.mxu1 %vm269_vm0, %v9296_v59  ;;  %v9536_v59 = vld [vmem:[%s9094_s20 + $0xb0] sm:$0xff]  ;;  %11376 = vst [vmem:[#allocation49_spill] sm:$0xff] %v9539_v57 }
  0x3d   : > { %11375 = vst [vmem:[#allocation48_spill] sm:$0xff] %v9536_v59 }
  0x3e   : > { %7717 = vmatmul.mubr.msk.f32.gmra.mrb[20].mxu0 %vm269_vm0, %v9307_v60 }
  0x3f   : > { %7925 = vmatmul.mubr.msk.f32.gmra.mrb[20].mxu1 %vm269_vm0, %v9310_v61  ;;  %7719 = vmatprep.mubr.msk.f32.mxu0 %vm269_vm0, %v9313_v62  ;;  %v9525_v61 = vld [vmem:[%s9094_s20 + $0xa8] sm:$0xff] }
  0x40   : > { %7927 = vmatprep.mubr.msk.f32.mxu1 %vm269_vm0, %v9316_v63  ;;  %v9522_v63 = vld [vmem:[%s9094_s20 + $0x98] sm:$0xff]  ;;  %11374 = vst [vmem:[#allocation47_spill] sm:$0xff] %v9525_v61 }
  0x41   : > { %11373 = vst [vmem:[#allocation46_spill] sm:$0xff] %v9522_v63 }
  0x42   : > { %7720 = vmatmul.mubr.msk.f32.gmra.mrb[22].mxu0 %vm269_vm0, %v9327_v0 }
  0x43   : > { %7928 = vmatmul.mubr.msk.f32.gmra.mrb[22].mxu1 %vm269_vm0, %v9330_v1  ;;  %7722 = vmatprep.mubr.msk.f32.mxu0 %vm269_vm0, %v9333_v2 }
  0x44   : > { %7930 = vmatprep.mubr.msk.f32.mxu1 %vm269_vm0, %v9336_v3 }
  0x46   : > { %7723 = vmatmul.mubr.msk.f32.gmra.mrb[24].mxu0 %vm269_vm0, %v9347_v4 }
  0x47   : > { %7931 = vmatmul.mubr.msk.f32.gmra.mrb[24].mxu1 %vm269_vm0, %v9350_v5  ;;  %7725 = vmatprep.mubr.msk.f32.mxu0 %vm269_vm0, %v9353_v6  ;;  %v201_v5 = vld [vmem:[%s9094_s20 + $0x8] sm:$0xff] }
  0x48   : > { %7933 = vmatprep.mubr.msk.f32.mxu1 %vm269_vm0, %v9356_v7  ;;  %v6437_v7 = vld [vmem:[%s11220_s1 + $0x38] sm:$0xff] }
  0x4a   : > { %7726 = vmatmul.mubr.msk.f32.gmra.mrb[26].mxu0 %vm269_vm0, %v9367_v8 }
  0x4b   : > { %7934 = vmatmul.mubr.msk.f32.gmra.mrb[26].mxu1 %vm269_vm0, %v9370_v9  ;;  %7728 = vmatprep.mubr.msk.f32.mxu0 %vm269_vm0, %v9373_v10  ;;  %v6605_v9 = vld [vmem:[%s11220_s1 + $0x70] sm:$0xff] }
  0x4c   : > { %7936 = vmatprep.mubr.msk.f32.mxu1 %vm269_vm0, %v9376_v11  ;;  %v200_v11 = vld [vmem:[%s9094_s20] sm:$0xff] }
  0x4e   : > { %7729 = vmatmul.mubr.msk.f32.gmra.mrb[28].mxu0 %vm269_vm0, %v9387_v12 }
  0x4f   : > { %7937 = vmatmul.mubr.msk.f32.gmra.mrb[28].mxu1 %vm269_vm0, %v9390_v13  ;;  %7731 = vmatprep.mubr.msk.f32.mxu0 %vm269_vm0, %v9393_v14  ;;  %v6436_v13 = vld [vmem:[%s11220_s1 + $0x30] sm:$0xff] }
  0x50   : > { %7939 = vmatprep.mubr.msk.f32.mxu1 %vm269_vm0, %v9396_v15  ;;  %v6606_v15 = vld [vmem:[%s11220_s1 + $0x78] sm:$0xff]  ;;  %v9438_v1 = vpack.c.bf16 %v6437_v7, %v6436_v13  ;;  %v9452_v7 = vld [vmem:[%s9094_s20 + $0x30] sm:$0xff]  ;;  %v9508_v13 = vld [vmem:[%s9094_s20 + $0x80] sm:$0xff] }
  0x51   : > { %v9436_v3 = vpack.c.bf16 %v6606_v15, %v6605_v9  ;;  %11364 = vst [vmem:[#allocation37_spill] sm:$0xff] %v9452_v7  ;;  %v9494_v9 = vld [vmem:[%s9094_s20 + $0x68] sm:$0xff]  ;;  %11371 = vst [vmem:[#allocation44_spill] sm:$0xff] %v9508_v13  ;;  %v9511_v15 = vld [vmem:[%s9094_s20 + $0x90] sm:$0xff] }
  0x52   : > { %7732 = vmatmul.mubr.msk.f32.gmra.mrb[30].mxu0 %vm269_vm0, %v9407_v17  ;;  %11369 = vst [vmem:[#allocation42_spill] sm:$0xff] %v9494_v9  ;;  %11372 = vst [vmem:[#allocation45_spill] sm:$0xff] %v9511_v15 }
  0x53   : > { %7940 = vmatmul.mubr.msk.f32.gmra.mrb[30].mxu1 %vm269_vm0, %v9410_v19  ;;  %7738 = vmatprep.mubr.msk.f32.mxu0 %vm269_vm0, %v200_v11  ;;  %v9434_v19 = vld [vmem:[%s9094_s20 + $0x18] sm:$0xff] }
  0x54   : > { %7946 = vmatprep.mubr.msk.f32.mxu1 %vm269_vm0, %v9097_v16  ;;  %11362 = vst [vmem:[#allocation35_spill] sm:$0xff] %v9434_v19  ;;  %v9447_v16 = vld [vmem:[%s9094_s20 + $0x20] sm:$0xff]  ;;  %v9497_v11 = vld [vmem:[%s9094_s20 + $0x78] sm:$0xff] }
  0x55   : > { %11363 = vst [vmem:[#allocation36_spill] sm:$0xff] %v9447_v16  ;;  %11370 = vst [vmem:[#allocation43_spill] sm:$0xff] %v9497_v11 }
  0x56   : > { %7739 = vmatmul.mubr.msk.f32.vlgmr.msra.gmra.mrb[0].mxu0 %vm269_vm0, %v201_v5  ;;  %v9483_v5 = vld [vmem:[%s9094_s20 + $0x60] sm:$0xff] }
  0x57   : > { %7947 = vmatmul.mubr.msk.f32.vlgmr.msra.gmra.mrb[0].mxu1 %vm269_vm0, %v9101_v18  ;;  %7741 = vmatprep.mubr.msk.f32.mxu0 %vm269_vm0, %v9434_v19  ;;  %v9466_v18 = vld [vmem:[%s9094_s20 + $0x38] sm:$0xff]  ;;  %11368 = vst [vmem:[#allocation41_spill] sm:$0xff] %v9483_v5 }
  0x58   : > { %8541 = vmatpush3.bf16.msra.mxu1 %v9113_v22  ;;  %7949 = vmatprep.mubr.msk.f32.mxu1 %vm269_vm0, %v9108_v20  ;;  %11365 = vst [vmem:[#allocation38_spill] sm:$0xff] %v9466_v18  ;;  %v9469_v22 = vld [vmem:[%s9094_s20 + $0x48] sm:$0xff] }
  0x59   : > { %8525 = vmatpush3.bf16.msra.mxu0 %v9115_v23  ;;  %8543 = vmatprep.subr.bf16.mxu1 %v9436_v3  ;;  %11366 = vst [vmem:[#allocation39_spill] sm:$0xff] %v9469_v22  ;;  %v9480_v23 = vld [vmem:[%s9094_s20 + $0x50] sm:$0xff] }
  0x5a   : > { %8527 = vmatprep.subr.bf16.mxu0 %v9438_v1  ;;  %7742 = vmatmul.mubr.msk.f32.gmra.mrb[2].mxu0 %vm269_vm0, %v9447_v16  ;;  %11367 = vst [vmem:[#allocation40_spill] sm:$0xff] %v9480_v23 }
  0x5b   : > { %7950 = vmatmul.mubr.msk.f32.gmra.mrb[2].mxu1 %vm269_vm0, %v9123_v24  ;;  %7744 = vmatprep.mubr.msk.f32.mxu0 %vm269_vm0, %v9452_v7 }
  0x5c   : > { %7952 = vmatprep.mubr.msk.f32.mxu1 %vm269_vm0, %v9131_v26 }
  0x5e   : > { %7745 = vmatmul.mubr.msk.f32.gmra.mrb[4].mxu0 %vm269_vm0, %v9466_v18 }
  0x5f   : > { %7953 = vmatmul.mubr.msk.f32.gmra.mrb[4].mxu1 %vm269_vm0, %v9147_v28  ;;  %7747 = vmatprep.mubr.msk.f32.mxu0 %vm269_vm0, %v9469_v22 }
  0x60   : > { %7955 = vmatprep.mubr.msk.f32.mxu1 %vm269_vm0, %v9153_v30 }
  0x62   : > { %7748 = vmatmul.mubr.msk.f32.gmra.mrb[6].mxu0 %vm269_vm0, %v9480_v23 }
  0x63   : > { %7956 = vmatmul.mubr.msk.f32.gmra.mrb[6].mxu1 %vm269_vm0, %v9167_v32  ;;  %7750 = vmatprep.mubr.msk.f32.mxu0 %vm269_vm0, %v9483_v5 }
  0x64   : > { %7958 = vmatprep.mubr.msk.f32.mxu1 %vm269_vm0, %v9173_v34 }
  0x66   : > { %7751 = vmatmul.mubr.msk.f32.gmra.mrb[8].mxu0 %vm269_vm0, %v9494_v9 }
  0x67   : > { %7959 = vmatmul.mubr.msk.f32.gmra.mrb[8].mxu1 %vm269_vm0, %v9187_v36  ;;  %7753 = vmatprep.mubr.msk.f32.mxu0 %vm269_vm0, %v9497_v11 }
  0x68   : > { %7961 = vmatprep.mubr.msk.f32.mxu1 %vm269_vm0, %v9193_v38 }
  0x6a   : > { %7754 = vmatmul.mubr.msk.f32.gmra.mrb[10].mxu0 %vm269_vm0, %v9508_v13 }
  0x6b   : > { %7962 = vmatmul.mubr.msk.f32.gmra.mrb[10].mxu1 %vm269_vm0, %v9207_v40  ;;  %7756 = vmatprep.mubr.msk.f32.mxu0 %vm269_vm0, %v9511_v15 }
  0x6c   : > { %7964 = vmatprep.mubr.msk.f32.mxu1 %vm269_vm0, %v9213_v42 }
  0x6e   : > { %7757 = vmatmul.mubr.msk.f32.gmra.mrb[12].mxu0 %vm269_vm0, %v9522_v63 }
  0x6f   : > { %7965 = vmatmul.mubr.msk.f32.gmra.mrb[12].mxu1 %vm269_vm0, %v9227_v44  ;;  %7759 = vmatprep.mubr.msk.f32.mxu0 %vm269_vm0, %v9525_v61 }
  0x70   : > { %7967 = vmatprep.mubr.msk.f32.mxu1 %vm269_vm0, %v9233_v46 }
  0x72   : > { %7760 = vmatmul.mubr.msk.f32.gmra.mrb[14].mxu0 %vm269_vm0, %v9536_v59 }
  0x73   : > { %7968 = vmatmul.mubr.msk.f32.gmra.mrb[14].mxu1 %vm269_vm0, %v9247_v48  ;;  %7762 = vmatprep.mubr.msk.f32.mxu0 %vm269_vm0, %v9539_v57 }
  0x74   : > { %7970 = vmatprep.mubr.msk.f32.mxu1 %vm269_vm0, %v9253_v50 }
  0x76   : > { %7763 = vmatmul.mubr.msk.f32.gmra.mrb[16].mxu0 %vm269_vm0, %v9550_v55 }
  0x77   : > { %7971 = vmatmul.mubr.msk.f32.gmra.mrb[16].mxu1 %vm269_vm0, %v9267_v52  ;;  %7765 = vmatprep.mubr.msk.f32.mxu0 %vm269_vm0, %v9553_v53 }
  0x78   : > { %7973 = vmatprep.mubr.msk.f32.mxu1 %vm269_vm0, %v9273_v54 }
  0x7a   : > { %7766 = vmatmul.mubr.msk.f32.gmra.mrb[18].mxu0 %vm269_vm0, %v9564_v51 }
  0x7b   : > { %7974 = vmatmul.mubr.msk.f32.gmra.mrb[18].mxu1 %vm269_vm0, %v9287_v56  ;;  %7768 = vmatprep.mubr.msk.f32.mxu0 %vm269_vm0, %v9567_v49 }
  0x7c   : > { %7976 = vmatprep.mubr.msk.f32.mxu1 %vm269_vm0, %v9293_v58 }
  0x7e   : > { %7769 = vmatmul.mubr.msk.f32.gmra.mrb[20].mxu0 %vm269_vm0, %v9578_v47 }
  0x7f   : > { %7977 = vmatmul.mubr.msk.f32.gmra.mrb[20].mxu1 %vm269_vm0, %v9307_v60  ;;  %7771 = vmatprep.mubr.msk.f32.mxu0 %vm269_vm0, %v9581_v45 }
  0x80   : > { %7979 = vmatprep.mubr.msk.f32.mxu1 %vm269_vm0, %v9313_v62 }
  0x82   : > { %7772 = vmatmul.mubr.msk.f32.gmra.mrb[22].mxu0 %vm269_vm0, %v9592_v43 }
  0x83   : > { %7980 = vmatmul.mubr.msk.f32.gmra.mrb[22].mxu1 %vm269_vm0, %v9327_v0  ;;  %7774 = vmatprep.mubr.msk.f32.mxu0 %vm269_vm0, %v9595_v41 }
  0x84   : > { %7982 = vmatprep.mubr.msk.f32.mxu1 %vm269_vm0, %v9333_v2 }
  0x86   : > { %7775 = vmatmul.mubr.msk.f32.gmra.mrb[24].mxu0 %vm269_vm0, %v9606_v39 }
  0x87   : > { %7983 = vmatmul.mubr.msk.f32.gmra.mrb[24].mxu1 %vm269_vm0, %v9347_v4  ;;  %7777 = vmatprep.mubr.msk.f32.mxu0 %vm269_vm0, %v9609_v37 }
  0x88   : > { %7985 = vmatprep.mubr.msk.f32.mxu1 %vm269_vm0, %v9353_v6 }
  0x8a   : > { %7778 = vmatmul.mubr.msk.f32.gmra.mrb[26].mxu0 %vm269_vm0, %v9620_v35 }
  0x8b   : > { %7986 = vmatmul.mubr.msk.f32.gmra.mrb[26].mxu1 %vm269_vm0, %v9367_v8  ;;  %7780 = vmatprep.mubr.msk.f32.mxu0 %vm269_vm0, %v9623_v33 }
  0x8c   : > { %7988 = vmatprep.mubr.msk.f32.mxu1 %vm269_vm0, %v9373_v10 }
  0x8e   : > { %7781 = vmatmul.mubr.msk.f32.gmra.mrb[28].mxu0 %vm269_vm0, %v9634_v31 }
  0x8f   : > { %7989 = vmatmul.mubr.msk.f32.gmra.mrb[28].mxu1 %vm269_vm0, %v9387_v12  ;;  %7783 = vmatprep.mubr.msk.f32.mxu0 %vm269_vm0, %v9637_v29  ;;  %v6706_v29 = vld [vmem:[%s11220_s1 + $0x98] sm:$0xff] }
  0x90   : > { %7991 = vmatprep.mubr.msk.f32.mxu1 %vm269_vm0, %v9393_v14  ;;  %v6705_v14 = vld [vmem:[%s11220_s1 + $0x90] sm:$0xff] }
  0x92   : > { %7784 = vmatmul.mubr.msk.f32.gmra.mrb[30].mxu0 %vm269_vm0, %v9648_v27  ;;  %v9670_v27 = vpack.c.bf16 %v6938_v21, %v6937_v25  ;;  %v11392_v21 = vld [vmem:[#allocation63_spill] sm:$0xff] }
  0x93   : > { %7992 = vmatmul.mubr.msk.f32.gmra.mrb[30].mxu1 %vm269_vm0, %v9407_v17  ;;  %7790 = vmatprep.mubr.msk.f32.mxu0 %vm269_vm0, %v9434_v19  ;;  %v9672_v17 = vpack.c.bf16 %v6706_v29, %v6705_v14  ;;  %v11393_v25 = vld [vmem:[#allocation31_spill] sm:$0xff]  ;;  %v9791_v29 = vld [vmem:[%s9094_s20 + $0x180] sm:$0xff]  ;;  %v11397_v14 = vld [vmem:[#allocation33_spill] sm:$0xff] }
  0x94   : > { %7998 = vmatprep.mubr.msk.f32.mxu1 %vm269_vm0, %v9108_v20  ;;  %11394 = vst [vmem:[#allocation31_spill] sm:$0xff] %v9791_v29  ;;  %v9951_v19 = vld [vmem:[%s9094_s20 + $0x182] sm:$0xff] }
  0x96   : > { %7791 = vmatmul.mubr.msk.f32.vlgmr.msra.gmra.mrb[0].mxu0 %vm269_vm0, %v9447_v16  ;;  %v11428_v16 = vld [vmem:[#allocation32_spill] sm:$0xff] }
  0x97   : > { %7999 = vmatmul.mubr.msk.f32.vlgmr.msra.gmra.mrb[0].mxu1 %vm269_vm0, %v9123_v24  ;;  %7793 = vmatprep.mubr.msk.f32.mxu0 %vm269_vm0, %v9452_v7  ;;  %v11427_v7 = vld [vmem:[#allocation30_spill] sm:$0xff] }
  0x98   : > { %8545 = vmatpush3.bf16.msra.mxu1 %v9436_v3  ;;  %8001 = vmatprep.mubr.msk.f32.mxu1 %vm269_vm0, %v9131_v26  ;;  %v11396_v3 = vld [vmem:[#allocation64_spill] sm:$0xff] }
  0x99   : > { %8529 = vmatpush3.bf16.msra.mxu0 %v9438_v1  ;;  %8563 = vmatprep.subr.bf16.mxu1 %v9670_v27  ;;  %v9794_v1 = vld [vmem:[%s9094_s20 + $0x181] sm:$0xff] }
  0x9a   : > { %8547 = vmatprep.subr.bf16.mxu0 %v9672_v17  ;;  %7794 = vmatmul.mubr.msk.f32.gmra.mrb[2].mxu0 %vm269_vm0, %v9466_v18  ;;  %11395 = vst [vmem:[#allocation65_spill] sm:$0xff] %v9794_v1  ;;  %v11426_v18 = vld [vmem:[#allocation29_spill] sm:$0xff] }
  0x9b   : > { %8002 = vmatmul.mubr.msk.f32.gmra.mrb[2].mxu1 %vm269_vm0, %v9147_v28  ;;  %7796 = vmatprep.mubr.msk.f32.mxu0 %vm269_vm0, %v9469_v22  ;;  %v11425_v22 = vld [vmem:[#allocation27_spill] sm:$0xff] }
  0x9c   : > { %8004 = vmatprep.mubr.msk.f32.mxu1 %vm269_vm0, %v9153_v30 }
  0x9e   : > { %7797 = vmatmul.mubr.msk.f32.gmra.mrb[4].mxu0 %vm269_vm0, %v9480_v23  ;;  %v11424_v23 = vld [vmem:[#allocation26_spill] sm:$0xff] }
  0x9f   : > { %8005 = vmatmul.mubr.msk.f32.gmra.mrb[4].mxu1 %vm269_vm0, %v9167_v32  ;;  %7799 = vmatprep.mubr.msk.f32.mxu0 %vm269_vm0, %v9483_v5  ;;  %v11423_v5 = vld [vmem:[#allocation25_spill] sm:$0xff] }
  0xa0   : > { %8007 = vmatprep.mubr.msk.f32.mxu1 %vm269_vm0, %v9173_v34 }
  0xa2   : > { %7800 = vmatmul.mubr.msk.f32.gmra.mrb[6].mxu0 %vm269_vm0, %v9494_v9  ;;  %v11422_v9 = vld [vmem:[#allocation24_spill] sm:$0xff] }
  0xa3   : > { %8008 = vmatmul.mubr.msk.f32.gmra.mrb[6].mxu1 %vm269_vm0, %v9187_v36  ;;  %7802 = vmatprep.mubr.msk.f32.mxu0 %vm269_vm0, %v9497_v11  ;;  %v11421_v11 = vld [vmem:[#allocation23_spill] sm:$0xff] }
  0xa4   : > { %8010 = vmatprep.mubr.msk.f32.mxu1 %vm269_vm0, %v9193_v38 }
  0xa6   : > { %7803 = vmatmul.mubr.msk.f32.gmra.mrb[8].mxu0 %vm269_vm0, %v9508_v13  ;;  %v11420_v13 = vld [vmem:[#allocation22_spill] sm:$0xff] }
  0xa7   : > { %8011 = vmatmul.mubr.msk.f32.gmra.mrb[8].mxu1 %vm269_vm0, %v9207_v40  ;;  %7805 = vmatprep.mubr.msk.f32.mxu0 %vm269_vm0, %v9511_v15  ;;  %v11419_v15 = vld [vmem:[#allocation21_spill] sm:$0xff] }
  0xa8   : > { %8013 = vmatprep.mubr.msk.f32.mxu1 %vm269_vm0, %v9213_v42 }
  0xaa   : > { %7806 = vmatmul.mubr.msk.f32.gmra.mrb[10].mxu0 %vm269_vm0, %v9522_v63  ;;  %v11418_v63 = vld [vmem:[#allocation20_spill] sm:$0xff] }
  0xab   : > { %8014 = vmatmul.mubr.msk.f32.gmra.mrb[10].mxu1 %vm269_vm0, %v9227_v44  ;;  %7808 = vmatprep.mubr.msk.f32.mxu0 %vm269_vm0, %v9525_v61  ;;  %v11417_v61 = vld [vmem:[#allocation19_spill] sm:$0xff] }
  0xac   : > { %8016 = vmatprep.mubr.msk.f32.mxu1 %vm269_vm0, %v9233_v46 }
  0xae   : > { %7809 = vmatmul.mubr.msk.f32.gmra.mrb[12].mxu0 %vm269_vm0, %v9536_v59  ;;  %v11416_v59 = vld [vmem:[#allocation18_spill] sm:$0xff] }
  0xaf   : > { %8017 = vmatmul.mubr.msk.f32.gmra.mrb[12].mxu1 %vm269_vm0, %v9247_v48  ;;  %7811 = vmatprep.mubr.msk.f32.mxu0 %vm269_vm0, %v9539_v57  ;;  %v11415_v57 = vld [vmem:[#allocation17_spill] sm:$0xff] }
  0xb0   : > { %8019 = vmatprep.mubr.msk.f32.mxu1 %vm269_vm0, %v9253_v50 }
  0xb2   : > { %7812 = vmatmul.mubr.msk.f32.gmra.mrb[14].mxu0 %vm269_vm0, %v9550_v55  ;;  %v11414_v55 = vld [vmem:[#allocation16_spill] sm:$0xff] }
  0xb3   : > { %8020 = vmatmul.mubr.msk.f32.gmra.mrb[14].mxu1 %vm269_vm0, %v9267_v52  ;;  %7814 = vmatprep.mubr.msk.f32.mxu0 %vm269_vm0, %v9553_v53  ;;  %v11413_v53 = vld [vmem:[#allocation15_spill] sm:$0xff] }
  0xb4   : > { %8022 = vmatprep.mubr.msk.f32.mxu1 %vm269_vm0, %v9273_v54 }
  0xb6   : > { %7815 = vmatmul.mubr.msk.f32.gmra.mrb[16].mxu0 %vm269_vm0, %v9564_v51  ;;  %v11412_v51 = vld [vmem:[#allocation14_spill] sm:$0xff] }
  0xb7   : > { %8023 = vmatmul.mubr.msk.f32.gmra.mrb[16].mxu1 %vm269_vm0, %v9287_v56  ;;  %7817 = vmatprep.mubr.msk.f32.mxu0 %vm269_vm0, %v9567_v49  ;;  %v11411_v49 = vld [vmem:[#allocation13_spill] sm:$0xff] }
  0xb8   : > { %8025 = vmatprep.mubr.msk.f32.mxu1 %vm269_vm0, %v9293_v58 }
  0xba   : > { %7818 = vmatmul.mubr.msk.f32.gmra.mrb[18].mxu0 %vm269_vm0, %v9578_v47  ;;  %v11410_v47 = vld [vmem:[#allocation12_spill] sm:$0xff] }
  0xbb   : > { %8026 = vmatmul.mubr.msk.f32.gmra.mrb[18].mxu1 %vm269_vm0, %v9307_v60  ;;  %7820 = vmatprep.mubr.msk.f32.mxu0 %vm269_vm0, %v9581_v45  ;;  %v11409_v45 = vld [vmem:[#allocation11_spill] sm:$0xff] }
  0xbc   : > { %8028 = vmatprep.mubr.msk.f32.mxu1 %vm269_vm0, %v9313_v62 }
  0xbe   : > { %7821 = vmatmul.mubr.msk.f32.gmra.mrb[20].mxu0 %vm269_vm0, %v9592_v43  ;;  %v11402_v43 = vld [vmem:[#allocation4_spill] sm:$0xff] }
  0xbf   : > { %8029 = vmatmul.mubr.msk.f32.gmra.mrb[20].mxu1 %vm269_vm0, %v9327_v0  ;;  %7823 = vmatprep.mubr.msk.f32.mxu0 %vm269_vm0, %v9595_v41  ;;  %v11401_v41 = vld [vmem:[#allocation3_spill] sm:$0xff] }
  0xc0   : > { %8031 = vmatprep.mubr.msk.f32.mxu1 %vm269_vm0, %v9333_v2 }
  0xc2   : > { %7824 = vmatmul.mubr.msk.f32.gmra.mrb[22].mxu0 %vm269_vm0, %v9606_v39 }
  0xc3   : > { %8032 = vmatmul.mubr.msk.f32.gmra.mrb[22].mxu1 %vm269_vm0, %v9347_v4  ;;  %7826 = vmatprep.mubr.msk.f32.mxu0 %vm269_vm0, %v9609_v37  ;;  %v11400_v37 = vld [vmem:[#allocation2_spill] sm:$0xff] }
  0xc4   : > { %8034 = vmatprep.mubr.msk.f32.mxu1 %vm269_vm0, %v9353_v6  ;;  %11429 = vst [vmem:[#allocation2_spill] sm:$0xff] %v9951_v19 }
  0xc6   : > { %7827 = vmatmul.mubr.msk.f32.gmra.mrb[24].mxu0 %vm269_vm0, %v9620_v35  ;;  %v6672_v35 = vld [vmem:[%s11220_s1 + $0x88] sm:$0xff] }
  0xc7   : > { %8035 = vmatmul.mubr.msk.f32.gmra.mrb[24].mxu1 %vm269_vm0, %v9367_v8  ;;  %7829 = vmatprep.mubr.msk.f32.mxu0 %vm269_vm0, %v9623_v33  ;;  %v6903_v33 = vld [vmem:[%s11220_s1 + $0xc0] sm:$0xff] }
  0xc8   : > { %8037 = vmatprep.mubr.msk.f32.mxu1 %vm269_vm0, %v9373_v10 }
  0xca   : > { %7830 = vmatmul.mubr.msk.f32.gmra.mrb[26].mxu0 %vm269_vm0, %v9634_v31  ;;  %v9808_v31 = vld [vmem:[%s9094_s20 + $0x189] sm:$0xff] }
  0xcb   : > { %8038 = vmatmul.mubr.msk.f32.gmra.mrb[26].mxu1 %vm269_vm0, %v9387_v12  ;;  %7832 = vmatprep.mubr.msk.f32.mxu0 %vm269_vm0, %v11392_v21  ;;  %v9805_v21 = vld [vmem:[%s9094_s20 + $0x188] sm:$0xff]  ;;  %11399 = vst [vmem:[#allocation66_spill] sm:$0xff] %v9808_v31 }
  0xcc   : > { %8040 = vmatprep.mubr.msk.f32.mxu1 %vm269_vm0, %v11393_v25  ;;  %11398 = vst [vmem:[#allocation33_spill] sm:$0xff] %v9805_v21 }
  0xce   : > { %7833 = vmatmul.mubr.msk.f32.gmra.mrb[28].mxu0 %vm269_vm0, %v11396_v3  ;;  %v6671_v3 = vld [vmem:[%s11220_s1 + $0x80] sm:$0xff] }
  0xcf   : > { %8041 = vmatmul.mubr.msk.f32.gmra.mrb[28].mxu1 %vm269_vm0, %v11397_v14  ;;  %7835 = vmatprep.mubr.msk.f32.mxu0 %vm269_vm0, %v9791_v29  ;;  %v6904_v29 = vld [vmem:[%s11220_s1 + $0xc8] sm:$0xff]  ;;  %v9832_v39 = vpack.c.bf16 %v6672_v35, %v6671_v3  ;;  %v11408_v3 = vld [vmem:[#allocation10_spill] sm:$0xff] }
  0xd0   : > { %8043 = vmatprep.mubr.msk.f32.mxu1 %vm269_vm0, %v9794_v1  ;;  %v11405_v35 = vld [vmem:[#allocation7_spill] sm:$0xff] }
  0xd2   : > { %7836 = vmatmul.mubr.msk.f32.gmra.mrb[30].mxu0 %vm269_vm0, %v9805_v21  ;;  %v9830_v21 = vpack.c.bf16 %v6904_v29, %v6903_v33  ;;  %v11403_v33 = vld [vmem:[#allocation5_spill] sm:$0xff] }
  0xd3   : > { %8044 = vmatmul.mubr.msk.f32.gmra.mrb[30].mxu1 %vm269_vm0, %v9808_v31  ;;  %7842 = vmatprep.mubr.msk.f32.mxu0 %vm269_vm0, %v9108_v20  ;;  %v11407_v29 = vld [vmem:[#allocation9_spill] sm:$0xff] }
  0xd4   : > { %8050 = vmatprep.mubr.msk.f32.mxu1 %vm269_vm0, %v11400_v37 }
  0xd6   : > { %7843 = vmatmul.mubr.msk.f32.vlgmr.msra.gmra.mrb[0].mxu0 %vm269_vm0, %v9123_v24 }
  0xd7   : > { %8051 = vmatmul.mubr.msk.f32.vlgmr.msra.gmra.mrb[0].mxu1 %vm269_vm0, %v11401_v41  ;;  %7845 = vmatprep.mubr.msk.f32.mxu0 %vm269_vm0, %v9131_v26 }
  0xd8   : > { %8565 = vmatpush3.bf16.msra.mxu1 %v9670_v27  ;;  %8053 = vmatprep.mubr.msk.f32.mxu1 %vm269_vm0, %v11402_v43  ;;  %v11404_v27 = vld [vmem:[#allocation6_spill] sm:$0xff] }
  0xd9   : > { %8549 = vmatpush3.bf16.msra.mxu0 %v9672_v17  ;;  %8567 = vmatprep.subr.bf16.mxu1 %v9830_v21  ;;  %v11406_v17 = vld [vmem:[#allocation8_spill] sm:$0xff] }
  0xda   : > { %8551 = vmatprep.subr.bf16.mxu0 %v9832_v39  ;;  %7846 = vmatmul.mubr.msk.f32.gmra.mrb[2].mxu0 %vm269_vm0, %v9147_v28 }
  0xdb   : > { %8054 = vmatmul.mubr.msk.f32.gmra.mrb[2].mxu1 %vm269_vm0, %v11403_v33  ;;  %7848 = vmatprep.mubr.msk.f32.mxu0 %vm269_vm0, %v9153_v30 }
  0xdc   : > { %8056 = vmatprep.mubr.msk.f32.mxu1 %vm269_vm0, %v11404_v27 }
  0xde   : > { %7849 = vmatmul.mubr.msk.f32.gmra.mrb[4].mxu0 %vm269_vm0, %v9167_v32 }
  0xdf   : > { %8057 = vmatmul.mubr.msk.f32.gmra.mrb[4].mxu1 %vm269_vm0, %v11405_v35  ;;  %7851 = vmatprep.mubr.msk.f32.mxu0 %vm269_vm0, %v9173_v34 }
  0xe0   : > { %8059 = vmatprep.mubr.msk.f32.mxu1 %vm269_vm0, %v11406_v17 }
  0xe2   : > { %7852 = vmatmul.mubr.msk.f32.gmra.mrb[6].mxu0 %vm269_vm0, %v9187_v36 }
  0xe3   : > { %8060 = vmatmul.mubr.msk.f32.gmra.mrb[6].mxu1 %vm269_vm0, %v11407_v29  ;;  %7854 = vmatprep.mubr.msk.f32.mxu0 %vm269_vm0, %v9193_v38 }
  0xe4   : > { %8062 = vmatprep.mubr.msk.f32.mxu1 %vm269_vm0, %v11408_v3 }
  0xe6   : > { %7855 = vmatmul.mubr.msk.f32.gmra.mrb[8].mxu0 %vm269_vm0, %v9207_v40 }
  0xe7   : > { %8063 = vmatmul.mubr.msk.f32.gmra.mrb[8].mxu1 %vm269_vm0, %v11409_v45  ;;  %7857 = vmatprep.mubr.msk.f32.mxu0 %vm269_vm0, %v9213_v42 }
  0xe8   : > { %8065 = vmatprep.mubr.msk.f32.mxu1 %vm269_vm0, %v11410_v47 }
  0xea   : > { %7858 = vmatmul.mubr.msk.f32.gmra.mrb[10].mxu0 %vm269_vm0, %v9227_v44 }
  0xeb   : > { %8066 = vmatmul.mubr.msk.f32.gmra.mrb[10].mxu1 %vm269_vm0, %v11411_v49  ;;  %7860 = vmatprep.mubr.msk.f32.mxu0 %vm269_vm0, %v9233_v46 }
  0xec   : > { %8068 = vmatprep.mubr.msk.f32.mxu1 %vm269_vm0, %v11412_v51 }
  0xee   : > { %7861 = vmatmul.mubr.msk.f32.gmra.mrb[12].mxu0 %vm269_vm0, %v9247_v48 }
  0xef   : > { %8069 = vmatmul.mubr.msk.f32.gmra.mrb[12].mxu1 %vm269_vm0, %v11413_v53  ;;  %7863 = vmatprep.mubr.msk.f32.mxu0 %vm269_vm0, %v9253_v50 }
  0xf0   : > { %8071 = vmatprep.mubr.msk.f32.mxu1 %vm269_vm0, %v11414_v55 }
  0xf2   : > { %7864 = vmatmul.mubr.msk.f32.gmra.mrb[14].mxu0 %vm269_vm0, %v9267_v52 }
  0xf3   : > { %8072 = vmatmul.mubr.msk.f32.gmra.mrb[14].mxu1 %vm269_vm0, %v11415_v57  ;;  %7866 = vmatprep.mubr.msk.f32.mxu0 %vm269_vm0, %v9273_v54 }
  0xf4   : > { %8074 = vmatprep.mubr.msk.f32.mxu1 %vm269_vm0, %v11416_v59 }
  0xf6   : > { %7867 = vmatmul.mubr.msk.f32.gmra.mrb[16].mxu0 %vm269_vm0, %v9287_v56 }
  0xf7   : > { %8075 = vmatmul.mubr.msk.f32.gmra.mrb[16].mxu1 %vm269_vm0, %v11417_v61  ;;  %7869 = vmatprep.mubr.msk.f32.mxu0 %vm269_vm0, %v9293_v58 }
  0xf8   : > { %8077 = vmatprep.mubr.msk.f32.mxu1 %vm269_vm0, %v11418_v63 }
  0xfa   : > { %7870 = vmatmul.mubr.msk.f32.gmra.mrb[18].mxu0 %vm269_vm0, %v9307_v60 }
  0xfb   : > { %8078 = vmatmul.mubr.msk.f32.gmra.mrb[18].mxu1 %vm269_vm0, %v11419_v15  ;;  %7872 = vmatprep.mubr.msk.f32.mxu0 %vm269_vm0, %v9313_v62 }
  0xfc   : > { %8080 = vmatprep.mubr.msk.f32.mxu1 %vm269_vm0, %v11420_v13 }
  0xfe   : > { %7873 = vmatmul.mubr.msk.f32.gmra.mrb[20].mxu0 %vm269_vm0, %v9327_v0 }
  0xff   : > { %8081 = vmatmul.mubr.msk.f32.gmra.mrb[20].mxu1 %vm269_vm0, %v11421_v11  ;;  %7875 = vmatprep.mubr.msk.f32.mxu0 %vm269_vm0, %v9333_v2 }
 0x100   : > { %8083 = vmatprep.mubr.msk.f32.mxu1 %vm269_vm0, %v11422_v9 }
 0x102   : > { %7876 = vmatmul.mubr.msk.f32.gmra.mrb[22].mxu0 %vm269_vm0, %v9347_v4 }
 0x103   : > { %8084 = vmatmul.mubr.msk.f32.gmra.mrb[22].mxu1 %vm269_vm0, %v11423_v5  ;;  %7878 = vmatprep.mubr.msk.f32.mxu0 %vm269_vm0, %v9353_v6 }
 0x104   : > { %8086 = vmatprep.mubr.msk.f32.mxu1 %vm269_vm0, %v11424_v23 }
 0x106   : > { %7879 = vmatmul.mubr.msk.f32.gmra.mrb[24].mxu0 %vm269_vm0, %v9367_v8 }
 0x107   : > { %8087 = vmatmul.mubr.msk.f32.gmra.mrb[24].mxu1 %vm269_vm0, %v11425_v22  ;;  %7881 = vmatprep.mubr.msk.f32.mxu0 %vm269_vm0, %v9373_v10  ;;  %v11430_v10 = vld [vmem:[#allocation34_spill] sm:$0xff] }
 0x108   : > { %8089 = vmatprep.mubr.msk.f32.mxu1 %vm269_vm0, %v11426_v18 }
 0x10a   : > { %7882 = vmatmul.mubr.msk.f32.gmra.mrb[26].mxu0 %vm269_vm0, %v9387_v12 }
 0x10b   : > { %8090 = vmatmul.mubr.msk.f32.gmra.mrb[26].mxu1 %vm269_vm0, %v11427_v7  ;;  %7884 = vmatprep.mubr.msk.f32.mxu0 %vm269_vm0, %v11393_v25  ;;  %v9962_v7 = vld [vmem:[%s9094_s20 + $0x18a] sm:$0xff] }
 0x10c   : > { %8092 = vmatprep.mubr.msk.f32.mxu1 %vm269_vm0, %v11428_v16  ;;  %11431 = vst [vmem:[#allocation3_spill] sm:$0xff] %v9962_v7  ;;  %v7003_v16 = vld [vmem:[%s11220_s1 + $0xe0] sm:$0xff] }
 0x10e   : > { %7885 = vmatmul.mubr.msk.f32.gmra.mrb[28].mxu0 %vm269_vm0, %v11397_v14 }
 0x10f   : > { %8093 = vmatmul.mubr.msk.f32.gmra.mrb[28].mxu1 %vm269_vm0, %v11430_v10  ;;  %7887 = vmatprep.mubr.msk.f32.mxu0 %vm269_vm0, %v9794_v1  ;;  %v7004_v10 = vld [vmem:[%s11220_s1 + $0xe8] sm:$0xff] }
 0x110   : > { %8095 = vmatprep.mubr.msk.f32.mxu1 %vm269_vm0, %v9951_v19  ;;  %v6803_v19 = vld [vmem:[%s11220_s1 + $0xa0] sm:$0xff]  ;;  %v6804_v1 = vld [vmem:[%s11220_s1 + $0xa8] sm:$0xff] }
 0x112   : > { %7888 = vmatmul.mubr.msk.f32.gmra.mrb[30].mxu0 %vm269_vm0, %v9808_v31  ;;  %v9984_v31 = vpack.c.bf16 %v7004_v10, %v7003_v16  ;;  %v11442_v16 = vld [vmem:[#allocation37_spill] sm:$0xff] }
 0x113   : > { %8096 = vmatmul.mubr.msk.f32.gmra.mrb[30].mxu1 %vm269_vm0, %v9962_v7  ;;  %8102 = vmatprep.mubr.msk.f32.mxu0 %vm269_vm0, %v9108_v20  ;;  %v9986_v7 = vpack.c.bf16 %v6804_v1, %v6803_v19  ;;  %v11441_v19 = vld [vmem:[#allocation36_spill] sm:$0xff]  ;;  %v6776_v1 = vld [vmem:[%s9094_s20 + $0x68] sm:$0xff] }
 0x114   : > { %8310 = vmatprep.mubr.msk.f32.mxu1 %vm269_vm0, %v11400_v37  ;;  %v11432_v37 = vld [vmem:[#allocation28_spill] sm:$0xff] }
 0x116   : > { %8103 = vmatmul.mubr.msk.f32.vlgmr.msra.gmra.mrb[32].mxu0 %vm269_vm0, %v9123_v24 }
 0x117   : > { %8311 = vmatmul.mubr.msk.f32.vlgmr.msra.gmra.mrb[32].mxu1 %vm269_vm0, %v11401_v41  ;;  %8105 = vmatprep.mubr.msk.f32.mxu0 %vm269_vm0, %v9131_v26  ;;  %v11434_v41 = vld [vmem:[#allocation32_spill] sm:$0xff] }
 0x118   : > { %8569 = vmatpush3.bf16.msra.mxu1 %v9830_v21  ;;  %8313 = vmatprep.mubr.msk.f32.mxu1 %vm269_vm0, %v11402_v43  ;;  %v11435_v43 = vld [vmem:[#allocation34_spill] sm:$0xff] }
 0x119   : > { %8553 = vmatpush3.bf16.msra.mxu0 %v9832_v39  ;;  %8571 = vmatprep.subr.bf16.mxu1 %v9984_v31  ;;  %v11433_v39 = vld [vmem:[#allocation30_spill] sm:$0xff] }
 0x11a   : > { %8555 = vmatprep.subr.bf16.mxu0 %v9986_v7  ;;  %8106 = vmatmul.mubr.msk.f32.gmra.mrb[34].mxu0 %vm269_vm0, %v9147_v28  ;;  %v6775_v21 = vld [vmem:[%s9094_s20 + $0x60] sm:$0xff] }
 0x11b   : > { %8314 = vmatmul.mubr.msk.f32.gmra.mrb[34].mxu1 %vm269_vm0, %v11403_v33  ;;  %8108 = vmatprep.mubr.msk.f32.mxu0 %vm269_vm0, %v9153_v30  ;;  %v6777_v33 = vld [vmem:[%s9094_s20 + $0x78] sm:$0xff] }
 0x11c   : > { %8316 = vmatprep.mubr.msk.f32.mxu1 %vm269_vm0, %v11404_v27  ;;  %v10307_v27 = vld [vmem:[%s9094_s20 + $0x79] sm:$0xff] }
 0x11e   : > { %8109 = vmatmul.mubr.msk.f32.gmra.mrb[36].mxu0 %vm269_vm0, %v9167_v32 }
 0x11f   : > { %8317 = vmatmul.mubr.msk.f32.gmra.mrb[36].mxu1 %vm269_vm0, %v11405_v35  ;;  %8111 = vmatprep.mubr.msk.f32.mxu0 %vm269_vm0, %v9173_v34  ;;  %v6778_v35 = vld [vmem:[%s9094_s20 + $0x80] sm:$0xff] }
 0x120   : > { %8319 = vmatprep.mubr.msk.f32.mxu1 %vm269_vm0, %v11406_v17  ;;  %v10317_v17 = vld [vmem:[%s9094_s20 + $0x81] sm:$0xff] }
 0x122   : > { %8112 = vmatmul.mubr.msk.f32.gmra.mrb[38].mxu0 %vm269_vm0, %v9187_v36 }
 0x123   : > { %8320 = vmatmul.mubr.msk.f32.gmra.mrb[38].mxu1 %vm269_vm0, %v11407_v29  ;;  %8114 = vmatprep.mubr.msk.f32.mxu0 %vm269_vm0, %v9193_v38  ;;  %v6779_v29 = vld [vmem:[%s9094_s20 + $0x90] sm:$0xff] }
 0x124   : > { %8322 = vmatprep.mubr.msk.f32.mxu1 %vm269_vm0, %v11408_v3  ;;  %v10321_v3 = vld [vmem:[%s9094_s20 + $0x91] sm:$0xff] }
 0x126   : > { %8115 = vmatmul.mubr.msk.f32.gmra.mrb[40].mxu0 %vm269_vm0, %v9207_v40 }
 0x127   : > { %8323 = vmatmul.mubr.msk.f32.gmra.mrb[40].mxu1 %vm269_vm0, %v11409_v45  ;;  %8117 = vmatprep.mubr.msk.f32.mxu0 %vm269_vm0, %v9213_v42  ;;  %v11436_v45 = vld [vmem:[#allocation65_spill] sm:$0xff] }
 0x128   : > { %8325 = vmatprep.mubr.msk.f32.mxu1 %vm269_vm0, %v11410_v47  ;;  %v11437_v47 = vld [vmem:[#allocation2_spill] sm:$0xff] }
 0x12a   : > { %8118 = vmatmul.mubr.msk.f32.gmra.mrb[42].mxu0 %vm269_vm0, %v9227_v44 }
 0x12b   : > { %8326 = vmatmul.mubr.msk.f32.gmra.mrb[42].mxu1 %vm269_vm0, %v11411_v49  ;;  %8120 = vmatprep.mubr.msk.f32.mxu0 %vm269_vm0, %v9233_v46  ;;  %v7069_v49 = vld [vmem:[%s11220_s1 + $0xf0] sm:$0xff] }
 0x12c   : > { %8328 = vmatprep.mubr.msk.f32.mxu1 %vm269_vm0, %v11412_v51  ;;  %v11438_v51 = vld [vmem:[#allocation66_spill] sm:$0xff] }
 0x12e   : > { %8121 = vmatmul.mubr.msk.f32.gmra.mrb[44].mxu0 %vm269_vm0, %v9247_v48 }
 0x12f   : > { %8329 = vmatmul.mubr.msk.f32.gmra.mrb[44].mxu1 %vm269_vm0, %v11413_v53  ;;  %8123 = vmatprep.mubr.msk.f32.mxu0 %vm269_vm0, %v9253_v50  ;;  %v11439_v53 = vld [vmem:[#allocation3_spill] sm:$0xff] }
 0x130   : > { %8331 = vmatprep.mubr.msk.f32.mxu1 %vm269_vm0, %v11414_v55  ;;  %v7070_v55 = vld [vmem:[%s11220_s1 + $0xf8] sm:$0xff] }
 0x132   : > { %8124 = vmatmul.mubr.msk.f32.gmra.mrb[46].mxu0 %vm269_vm0, %v9267_v52 }
 0x133   : > { %8332 = vmatmul.mubr.msk.f32.gmra.mrb[46].mxu1 %vm269_vm0, %v11415_v57  ;;  %8126 = vmatprep.mubr.msk.f32.mxu0 %vm269_vm0, %v9273_v54  ;;  %v6869_v57 = vld [vmem:[%s11220_s1 + $0xb0] sm:$0xff] }
 0x134   : > { %8334 = vmatprep.mubr.msk.f32.mxu1 %vm269_vm0, %v11416_v59  ;;  %v6870_v59 = vld [vmem:[%s11220_s1 + $0xb8] sm:$0xff] }
 0x135   : > { %v10134_v10 = vpack.c.bf16 %v6870_v59, %v6869_v57 }
 0x136   : > { %8127 = vmatmul.mubr.msk.f32.gmra.mrb[48].mxu0 %vm269_vm0, %v9287_v56 }
 0x137   : > { %8335 = vmatmul.mubr.msk.f32.gmra.mrb[48].mxu1 %vm269_vm0, %v11417_v61  ;;  %8129 = vmatprep.mubr.msk.f32.mxu0 %vm269_vm0, %v9293_v58  ;;  %v11440_v61 = vld [vmem:[#allocation35_spill] sm:$0xff] }
 0x138   : > { %8337 = vmatprep.mubr.msk.f32.mxu1 %vm269_vm0, %v11418_v63  ;;  %v10132_v63 = vpack.c.bf16 %v7070_v55, %v7069_v49  ;;  %v10350_v49 = vld [vmem:[%s9094_s20 + $0xb1] sm:$0xff] }
 0x13a   : > { %8130 = vmatmul.mubr.msk.f32.gmra.mrb[50].mxu0 %vm269_vm0, %v9307_v60 }
 0x13b   : > { %8338 = vmatmul.mubr.msk.f32.gmra.mrb[50].mxu1 %vm269_vm0, %v11419_v15  ;;  %8132 = vmatprep.mubr.msk.f32.mxu0 %vm269_vm0, %v9313_v62  ;;  %v10286_v15 = vld [vmem:[%s9094_s20 + $0x51] sm:$0xff] }
 0x13c   : > { %8340 = vmatprep.mubr.msk.f32.mxu1 %vm269_vm0, %v11420_v13  ;;  %v6774_v13 = vld [vmem:[%s9094_s20 + $0x50] sm:$0xff] }
 0x13e   : > { %8133 = vmatmul.mubr.msk.f32.gmra.mrb[52].mxu0 %vm269_vm0, %v9327_v0 }
 0x13f   : > { %8341 = vmatmul.mubr.msk.f32.gmra.mrb[52].mxu1 %vm269_vm0, %v11421_v11  ;;  %8135 = vmatprep.mubr.msk.f32.mxu0 %vm269_vm0, %v9333_v2  ;;  %v10277_v11 = vld [vmem:[%s9094_s20 + $0x49] sm:$0xff] }
 0x140   : > { %8343 = vmatprep.mubr.msk.f32.mxu1 %vm269_vm0, %v11422_v9  ;;  %v6773_v9 = vld [vmem:[%s9094_s20 + $0x48] sm:$0xff] }
 0x142   : > { %8136 = vmatmul.mubr.msk.f32.gmra.mrb[54].mxu0 %vm269_vm0, %v9347_v4 }
 0x143   : > { %8344 = vmatmul.mubr.msk.f32.gmra.mrb[54].mxu1 %vm269_vm0, %v11423_v5  ;;  %8138 = vmatprep.mubr.msk.f32.mxu0 %vm269_vm0, %v9353_v6  ;;  %v10273_v5 = vld [vmem:[%s9094_s20 + $0x39] sm:$0xff] }
 0x144   : > { %8346 = vmatprep.mubr.msk.f32.mxu1 %vm269_vm0, %v11424_v23  ;;  %v6772_v23 = vld [vmem:[%s9094_s20 + $0x38] sm:$0xff] }
 0x146   : > { %8139 = vmatmul.mubr.msk.f32.gmra.mrb[56].mxu0 %vm269_vm0, %v9367_v8 }
 0x147   : > { %8347 = vmatmul.mubr.msk.f32.gmra.mrb[56].mxu1 %vm269_vm0, %v11425_v22  ;;  %8141 = vmatprep.mubr.msk.f32.mxu0 %vm269_vm0, %v11432_v37  ;;  %v11471_v22 = vld [vmem:[#allocation33_spill] sm:$0xff] }
 0x148   : > { %8349 = vmatprep.mubr.msk.f32.mxu1 %vm269_vm0, %v11426_v18  ;;  %v10262_v18 = vld [vmem:[%s9094_s20 + $0x31] sm:$0xff] }
 0x14a   : > { %8142 = vmatmul.mubr.msk.f32.gmra.mrb[58].mxu0 %vm269_vm0, %v9387_v12 }
 0x14b   : > { %8350 = vmatmul.mubr.msk.f32.gmra.mrb[58].mxu1 %vm269_vm0, %v11433_v39  ;;  %8144 = vmatprep.mubr.msk.f32.mxu0 %vm269_vm0, %v11393_v25  ;;  %v10331_v39 = vld [vmem:[%s9094_s20 + $0x99] sm:$0xff] }
 0x14c   : > { %8352 = vmatprep.mubr.msk.f32.mxu1 %vm269_vm0, %v11434_v41  ;;  %v6781_v41 = vld [vmem:[%s9094_s20 + $0xa8] sm:$0xff] }
 0x14e   : > { %8145 = vmatmul.mubr.msk.f32.gmra.mrb[60].mxu0 %vm269_vm0, %v11397_v14 }
 0x14f   : > { %8353 = vmatmul.mubr.msk.f32.gmra.mrb[60].mxu1 %vm269_vm0, %v11435_v43  ;;  %8147 = vmatprep.mubr.msk.f32.mxu0 %vm269_vm0, %v11436_v45  ;;  %v10335_v43 = vld [vmem:[%s9094_s20 + $0xa9] sm:$0xff] }
 0x150   : > { %8355 = vmatprep.mubr.msk.f32.mxu1 %vm269_vm0, %v11437_v47  ;;  %v6782_v47 = vld [vmem:[%s9094_s20 + $0xb0] sm:$0xff] }
 0x152   : > { %8148 = vmatmul.mubr.msk.f32.gmra.mrb[62].mxu0 %vm269_vm0, %v11438_v51 }
 0x153   : > { %8356 = vmatmul.mubr.msk.f32.gmra.mrb[62].mxu1 %vm269_vm0, %v11439_v53  ;;  %8154 = vmatprep.mubr.msk.f32.mxu0 %vm269_vm0, %v11440_v61  ;;  %v10354_v53 = vld [vmem:[%s9094_s20 + $0xc1] sm:$0xff] }
 0x154   : > { %8362 = vmatprep.mubr.msk.f32.mxu1 %vm269_vm0, %v9108_v20  ;;  %v11443_v20 = vld [vmem:[#allocation38_spill] sm:$0xff] }
 0x156   : > { %8155 = vmatmul.mubr.msk.f32.vlgmr.msra.gmra.mrb[32].mxu0 %vm269_vm0, %v11441_v19  ;;  %v10369_v19 = vld [vmem:[%s9094_s20 + $0xc9] sm:$0xff] }
 0x157   : > { %8363 = vmatmul.mubr.msk.f32.vlgmr.msra.gmra.mrb[32].mxu1 %vm269_vm0, %v9123_v24  ;;  %8157 = vmatprep.mubr.msk.f32.mxu0 %vm269_vm0, %v11442_v16  ;;  %v11444_v24 = vld [vmem:[#allocation39_spill] sm:$0xff]  ;;  %v6785_v16 = vld [vmem:[%s9094_s20 + $0xd8] sm:$0xff] }
 0x158   : > { %8573 = vmatpush3.bf16.msra.mxu1 %v9984_v31  ;;  %8365 = vmatprep.mubr.msk.f32.mxu1 %vm269_vm0, %v9131_v26  ;;  %v11445_v31 = vld [vmem:[#allocation40_spill] sm:$0xff]  ;;  %v11446_v26 = vld [vmem:[#allocation41_spill] sm:$0xff] }
 0x159   : > { %8557 = vmatpush3.bf16.msra.mxu0 %v9986_v7  ;;  %8575 = vmatprep.subr.bf16.mxu1 %v10132_v63  ;;  %v11447_v7 = vld [vmem:[#allocation42_spill] sm:$0xff] }
 0x15a   : > { %8559 = vmatprep.subr.bf16.mxu0 %v10134_v10  ;;  %8158 = vmatmul.mubr.msk.f32.gmra.mrb[34].mxu0 %vm269_vm0, %v11443_v20  ;;  %v10374_v20 = vld [vmem:[%s9094_s20 + $0xd9] sm:$0xff] }
 0x15b   : > { %8366 = vmatmul.mubr.msk.f32.gmra.mrb[34].mxu1 %vm269_vm0, %v9147_v28  ;;  %8160 = vmatprep.mubr.msk.f32.mxu0 %vm269_vm0, %v11444_v24  ;;  %v11448_v28 = vld [vmem:[#allocation43_spill] sm:$0xff] }
 0x15c   : > { %8368 = vmatprep.mubr.msk.f32.mxu1 %vm269_vm0, %v9153_v30  ;;  %v11449_v30 = vld [vmem:[#allocation44_spill] sm:$0xff] }
 0x15e   : > { %8161 = vmatmul.mubr.msk.f32.gmra.mrb[36].mxu0 %vm269_vm0, %v11445_v31 }
 0x15f   : > { %8369 = vmatmul.mubr.msk.f32.gmra.mrb[36].mxu1 %vm269_vm0, %v9167_v32  ;;  %8163 = vmatprep.mubr.msk.f32.mxu0 %vm269_vm0, %v11446_v26  ;;  %v11450_v32 = vld [vmem:[#allocation45_spill] sm:$0xff] }
 0x160   : > { %8371 = vmatprep.mubr.msk.f32.mxu1 %vm269_vm0, %v9173_v34  ;;  %v11451_v34 = vld [vmem:[#allocation46_spill] sm:$0xff] }
 0x162   : > { %8164 = vmatmul.mubr.msk.f32.gmra.mrb[38].mxu0 %vm269_vm0, %v11447_v7 }
 0x163   : > { %8372 = vmatmul.mubr.msk.f32.gmra.mrb[38].mxu1 %vm269_vm0, %v9187_v36  ;;  %8166 = vmatprep.mubr.msk.f32.mxu0 %vm269_vm0, %v11448_v28  ;;  %v11452_v36 = vld [vmem:[#allocation47_spill] sm:$0xff] }
 0x164   : > { %8374 = vmatprep.mubr.msk.f32.mxu1 %vm269_vm0, %v9193_v38  ;;  %v11453_v38 = vld [vmem:[#allocation48_spill] sm:$0xff] }
 0x166   : > { %8167 = vmatmul.mubr.msk.f32.gmra.mrb[40].mxu0 %vm269_vm0, %v11449_v30 }
 0x167   : > { %8375 = vmatmul.mubr.msk.f32.gmra.mrb[40].mxu1 %vm269_vm0, %v9207_v40  ;;  %8169 = vmatprep.mubr.msk.f32.mxu0 %vm269_vm0, %v11450_v32  ;;  %v11454_v40 = vld [vmem:[#allocation49_spill] sm:$0xff]  ;;  %v6786_v32 = vld [vmem:[%s9094_s20 + $0xe0] sm:$0xff] }
 0x168   : > { %8377 = vmatprep.mubr.msk.f32.mxu1 %vm269_vm0, %v9213_v42  ;;  %v11455_v42 = vld [vmem:[#allocation50_spill] sm:$0xff] }
 0x16a   : > { %8170 = vmatmul.mubr.msk.f32.gmra.mrb[42].mxu0 %vm269_vm0, %v11451_v34  ;;  %v10390_v34 = vld [vmem:[%s9094_s20 + $0xe1] sm:$0xff] }
 0x16b   : > { %8378 = vmatmul.mubr.msk.f32.gmra.mrb[42].mxu1 %vm269_vm0, %v9227_v44  ;;  %8172 = vmatprep.mubr.msk.f32.mxu0 %vm269_vm0, %v11452_v36  ;;  %v11456_v44 = vld [vmem:[#allocation51_spill] sm:$0xff]  ;;  %v10395_v36 = vld [vmem:[%s9094_s20 + $0xf1] sm:$0xff] }
 0x16c   : > { %8380 = vmatprep.mubr.msk.f32.mxu1 %vm269_vm0, %v9233_v46  ;;  %v11457_v46 = vld [vmem:[#allocation52_spill] sm:$0xff] }
 0x16e   : > { %8173 = vmatmul.mubr.msk.f32.gmra.mrb[44].mxu0 %vm269_vm0, %v11453_v38  ;;  %v6787_v38 = vld [vmem:[%s9094_s20 + $0xf0] sm:$0xff] }
 0x16f   : > { %8381 = vmatmul.mubr.msk.f32.gmra.mrb[44].mxu1 %vm269_vm0, %v9247_v48  ;;  %8175 = vmatprep.mubr.msk.f32.mxu0 %vm269_vm0, %v11454_v40  ;;  %v11458_v48 = vld [vmem:[#allocation53_spill] sm:$0xff] }
 0x170   : > { %8383 = vmatprep.mubr.msk.f32.mxu1 %vm269_vm0, %v9253_v50  ;;  %v11459_v50 = vld [vmem:[#allocation54_spill] sm:$0xff] }
 0x172   : > { %8176 = vmatmul.mubr.msk.f32.gmra.mrb[46].mxu0 %vm269_vm0, %v11455_v42 }
 0x173   : > { %8384 = vmatmul.mubr.msk.f32.gmra.mrb[46].mxu1 %vm269_vm0, %v9267_v52  ;;  %8178 = vmatprep.mubr.msk.f32.mxu0 %vm269_vm0, %v11456_v44  ;;  %v11460_v52 = vld [vmem:[#allocation55_spill] sm:$0xff] }
 0x174   : > { %8386 = vmatprep.mubr.msk.f32.mxu1 %vm269_vm0, %v9273_v54  ;;  %v11461_v54 = vld [vmem:[#allocation56_spill] sm:$0xff] }
 0x176   : > { %8179 = vmatmul.mubr.msk.f32.gmra.mrb[48].mxu0 %vm269_vm0, %v11457_v46 }
 0x177   : > { %8387 = vmatmul.mubr.msk.f32.gmra.mrb[48].mxu1 %vm269_vm0, %v9287_v56  ;;  %8181 = vmatprep.mubr.msk.f32.mxu0 %vm269_vm0, %v11458_v48  ;;  %v11462_v56 = vld [vmem:[#allocation57_spill] sm:$0xff] }
 0x178   : > { %8389 = vmatprep.mubr.msk.f32.mxu1 %vm269_vm0, %v9293_v58  ;;  %v11463_v58 = vld [vmem:[#allocation58_spill] sm:$0xff] }
 0x17a   : > { %8182 = vmatmul.mubr.msk.f32.gmra.mrb[50].mxu0 %vm269_vm0, %v11459_v50 }
 0x17b   : > { %8390 = vmatmul.mubr.msk.f32.gmra.mrb[50].mxu1 %vm269_vm0, %v9307_v60  ;;  %8184 = vmatprep.mubr.msk.f32.mxu0 %vm269_vm0, %v11460_v52  ;;  %v11464_v60 = vld [vmem:[#allocation59_spill] sm:$0xff]  ;;  %v6788_v52 = vld [vmem:[%s9094_s20 + $0xf8] sm:$0xff] }
 0x17c   : > { %8392 = vmatprep.mubr.msk.f32.mxu1 %vm269_vm0, %v9313_v62  ;;  %v11465_v62 = vld [vmem:[#allocation60_spill] sm:$0xff] }
 0x17e   : > { %8185 = vmatmul.mubr.msk.f32.gmra.mrb[52].mxu0 %vm269_vm0, %v11461_v54  ;;  %v10412_v54 = vld [vmem:[%s9094_s20 + $0xf9] sm:$0xff] }
 0x17f   : > { %8393 = vmatmul.mubr.msk.f32.gmra.mrb[52].mxu1 %vm269_vm0, %v9327_v0  ;;  %8187 = vmatprep.mubr.msk.f32.mxu0 %vm269_vm0, %v11462_v56  ;;  %v11466_v0 = vld [vmem:[#allocation61_spill] sm:$0xff]  ;;  %v10416_v56 = vld [vmem:[%s9094_s20 + $0x109] sm:$0xff] }
 0x180   : > { %8395 = vmatprep.mubr.msk.f32.mxu1 %vm269_vm0, %v9333_v2  ;;  %v11467_v2 = vld [vmem:[#allocation62_spill] sm:$0xff] }
 0x182   : > { %8188 = vmatmul.mubr.msk.f32.gmra.mrb[54].mxu0 %vm269_vm0, %v11463_v58  ;;  %v6789_v58 = vld [vmem:[%s9094_s20 + $0x108] sm:$0xff] }
 0x183   : > { %8396 = vmatmul.mubr.msk.f32.gmra.mrb[54].mxu1 %vm269_vm0, %v9347_v4  ;;  %8190 = vmatprep.mubr.msk.f32.mxu0 %vm269_vm0, %v11464_v60  ;;  %v11468_v4 = vld [vmem:[#allocation63_spill] sm:$0xff] }
 0x184   : > { %8398 = vmatprep.mubr.msk.f32.mxu1 %vm269_vm0, %v9353_v6  ;;  %v11469_v6 = vld [vmem:[#allocation64_spill] sm:$0xff] }
 0x186   : > { %8191 = vmatmul.mubr.msk.f32.gmra.mrb[56].mxu0 %vm269_vm0, %v11465_v62 }
 0x187   : > { %8399 = vmatmul.mubr.msk.f32.gmra.mrb[56].mxu1 %vm269_vm0, %v9367_v8  ;;  %8193 = vmatprep.mubr.msk.f32.mxu0 %vm269_vm0, %v11466_v0  ;;  %v11470_v8 = vld [vmem:[#allocation31_spill] sm:$0xff] }
 0x188   : > { %8401 = vmatprep.mubr.msk.f32.mxu1 %vm269_vm0, %v11432_v37  ;;  %v6780_v37 = vld [vmem:[%s9094_s20 + $0x98] sm:$0xff] }
 0x18a   : > { %8194 = vmatmul.mubr.msk.f32.gmra.mrb[58].mxu0 %vm269_vm0, %v11467_v2 }
 0x18b   : > { %8402 = vmatmul.mubr.msk.f32.gmra.mrb[58].mxu1 %vm269_vm0, %v9387_v12  ;;  %8196 = vmatprep.mubr.msk.f32.mxu0 %vm269_vm0, %v11468_v4  ;;  %v6771_v12 = vld [vmem:[%s9094_s20 + $0x30] sm:$0xff] }
 0x18c   : > { %8404 = vmatprep.mubr.msk.f32.mxu1 %vm269_vm0, %v11393_v25  ;;  %v10292_v25 = vld [vmem:[%s9094_s20 + $0x61] sm:$0xff] }
 0x18e   : > { %8197 = vmatmul.mubr.msk.f32.gmra.mrb[60].mxu0 %vm269_vm0, %v11469_v6 }
 0x18f   : > { %8405 = vmatmul.mubr.msk.f32.gmra.mrb[60].mxu1 %vm269_vm0, %v11397_v14  ;;  %8199 = vmatprep.mubr.msk.f32.mxu0 %vm269_vm0, %v11470_v8  ;;  %v10303_v14 = vld [vmem:[%s9094_s20 + $0x69] sm:$0xff] }
 0x190   : > { %8407 = vmatprep.mubr.msk.f32.mxu1 %vm269_vm0, %v11436_v45  ;;  %v10343_v45 = vld [vmem:[%s11221_s2] ss:$0 sm:$0xff]  ;;  %v6790_v8 = vld [vmem:[%s9094_s20 + $0x110] sm:$0xff] }
 0x192   : > { %8200 = vmatmul.mubr.msk.f32.gmra.mrb[62].mxu0 %vm269_vm0, %v11471_v22  ;;  %v10438_v22 = vld [vmem:[%s9094_s20 + $0x121] sm:$0xff] }
 0x193   : > { %8408 = vmatmul.mubr.msk.f32.gmra.mrb[62].mxu1 %vm269_vm0, %v11438_v51  ;;  %8206 = vmatprep.mubr.msk.f32.mxu0 %vm269_vm0, %v6771_v12  ;;  %v6783_v51 = vld [vmem:[%s9094_s20 + $0xc0] sm:$0xff]  ;;  %v10434_v12 = vld [vmem:[%s9094_s20 + $0x111] sm:$0xff] }
 0x194   : > { %8414 = vmatprep.mubr.msk.f32.mxu1 %vm269_vm0, %v10262_v18 }
 0x196   : > { %8207 = vmatmul.mubr.msk.f32.vlgmr.msra.gmra.mrb[32].mxu0 %vm269_vm0, %v6772_v23  ;;  %v6791_v23 = vld [vmem:[%s9094_s20 + $0x120] sm:$0xff] }
 0x197   : > { %8415 = vmatmul.mubr.msk.f32.vlgmr.msra.gmra.mrb[32].mxu1 %vm269_vm0, %v10273_v5  ;;  %8209 = vmatprep.mubr.msk.f32.mxu0 %vm269_vm0, %v6773_v9 }
 0x198   : > { %8577 = vmatpush3.bf16.msra.mxu1 %v10132_v63  ;;  %8417 = vmatprep.mubr.msk.f32.mxu1 %vm269_vm0, %v10277_v11 }
 0x199   : > { %8561 = vmatpush3.bf16.msra.mxu0 %v10134_v10  ;;  %v6784_v10 = vld [vmem:[%s9094_s20 + $0xc8] sm:$0xff] }
 0x19a   : > { %8210 = vmatmul.mubr.msk.f32.gmra.mrb[34].mxu0 %vm269_vm0, %v6774_v13 }
 0x19b   : > { %8418 = vmatmul.mubr.msk.f32.gmra.mrb[34].mxu1 %vm269_vm0, %v10286_v15  ;;  %8212 = vmatprep.mubr.msk.f32.mxu0 %vm269_vm0, %v6775_v21 }
 0x19c   : > { %8420 = vmatprep.mubr.msk.f32.mxu1 %vm269_vm0, %v10292_v25 }
 0x19e   : > { %8213 = vmatmul.mubr.msk.f32.gmra.mrb[36].mxu0 %vm269_vm0, %v6776_v1 }
 0x19f   : > { %8421 = vmatmul.mubr.msk.f32.gmra.mrb[36].mxu1 %vm269_vm0, %v10303_v14  ;;  %8215 = vmatprep.mubr.msk.f32.mxu0 %vm269_vm0, %v6777_v33 }
 0x1a0   : > { %8423 = vmatprep.mubr.msk.f32.mxu1 %vm269_vm0, %v10307_v27 }
 0x1a2   : > { %8216 = vmatmul.mubr.msk.f32.gmra.mrb[38].mxu0 %vm269_vm0, %v6778_v35 }
 0x1a3   : > { %8424 = vmatmul.mubr.msk.f32.gmra.mrb[38].mxu1 %vm269_vm0, %v10317_v17  ;;  %8218 = vmatprep.mubr.msk.f32.mxu0 %vm269_vm0, %v6779_v29  ;;  %v6792_v29 = vld [vmem:[%s9094_s20 + $0x128] sm:$0xff] }
 0x1a4   : > { %8426 = vmatprep.mubr.msk.f32.mxu1 %vm269_vm0, %v10321_v3 }
 0x1a6   : > { %8219 = vmatmul.mubr.msk.f32.gmra.mrb[40].mxu0 %vm269_vm0, %v6780_v37  ;;  %v10456_v37 = vld [vmem:[%s9094_s20 + $0x129] sm:$0xff] }
 0x1a7   : > { %8427 = vmatmul.mubr.msk.f32.gmra.mrb[40].mxu1 %vm269_vm0, %v10331_v39  ;;  %8221 = vmatprep.mubr.msk.f32.mxu0 %vm269_vm0, %v6781_v41  ;;  %v10460_v41 = vld [vmem:[%s9094_s20 + $0x139] sm:$0xff] }
 0x1a8   : > { %8429 = vmatprep.mubr.msk.f32.mxu1 %vm269_vm0, %v10335_v43 }
 0x1a9   : > { %v10356_v55 = vpop.f32.mrb[0].mxu0 }
 0x1aa   : > { %v8052_v57 = vpop.f32.mrb[0].mxu1  ;;  %v10359_v61 = vpop.f32.mrb[1].mxu0  ;;  %8222 = vmatmul.mubr.msk.f32.gmra.mrb[42].mxu0 %vm269_vm0, %v6782_v47  ;;  %v6793_v47 = vld [vmem:[%s9094_s20 + $0x138] sm:$0xff] }
 0x1ab   : > { %v2962_v59 = vadd.f32 %v8052_v57, %v10343_v45  ;;  %v2770_v63 = vpop.f32.mrb[1].mxu1  ;;  %8430 = vmatmul.mubr.msk.f32.gmra.mrb[42].mxu1 %vm269_vm0, %v10350_v49  ;;  %8224 = vmatprep.mubr.msk.f32.mxu0 %vm269_vm0, %v6783_v51 }
 0x1ac   : > { %8432 = vmatprep.mubr.msk.f32.mxu1 %vm269_vm0, %v10354_v53  ;;  %v2961_v26 = vadd.f32 %v10343_v45, %v2770_v63 }
 0x1ad   : > { %3027 = vrot.lane.b32.xlu0 %v2962_v59, %s9013_s18  ;;  %v10376_v24 = vpop.f32.mrb[2].mxu0 }
 0x1ae   : > { %v8055_v31 = vpop.f32.mrb[2].mxu1  ;;  %v10380_v28 = vpop.f32.mrb[3].mxu0  ;;  %8225 = vmatmul.mubr.msk.f32.gmra.mrb[44].mxu0 %vm269_vm0, %v6784_v10 }
 0x1af   : > { %v2964_v7 = vadd.f32 %v8055_v31, %v10343_v45  ;;  %v2780_v30 = vpop.f32.mrb[3].mxu1  ;;  %8433 = vmatmul.mubr.msk.f32.gmra.mrb[44].mxu1 %vm269_vm0, %v10369_v19  ;;  %8227 = vmatprep.mubr.msk.f32.mxu0 %vm269_vm0, %v6785_v16  ;;  %v6794_v31 = vld [vmem:[%s9094_s20 + $0x140] sm:$0xff] }
 0x1b0   : > { %8435 = vmatprep.mubr.msk.f32.mxu1 %vm269_vm0, %v10374_v20  ;;  %v2963_v44 = vadd.f32 %v10343_v45, %v2780_v30  ;;  %v6795_v30 = vld [vmem:[%s9094_s20 + $0x150] sm:$0xff] }
 0x1b1   : > { %3025 = vrot.lane.b32.xlu0 %v2961_v26, %s9013_s18  ;;  %3031 = vrot.lane.b32.xlu1 %v2964_v7, %s9013_s18  ;;  %v10398_v40 = vpop.f32.mrb[4].mxu0  ;;  %v10478_v26 = vld [vmem:[%s9094_s20 + $0x141] sm:$0xff]  ;;  %v10482_v7 = vld [vmem:[%s9094_s20 + $0x151] sm:$0xff] }
 0x1b2   : > { %v8058_v42 = vpop.f32.mrb[4].mxu1  ;;  %v10401_v46 = vpop.f32.mrb[5].mxu0  ;;  %8228 = vmatmul.mubr.msk.f32.gmra.mrb[46].mxu0 %vm269_vm0, %v6786_v32 }
 0x1b3   : > { %v2790_v48 = vpop.f32.mrb[5].mxu1  ;;  %8436 = vmatmul.mubr.msk.f32.gmra.mrb[46].mxu1 %vm269_vm0, %v10390_v34  ;;  %8230 = vmatprep.mubr.msk.f32.mxu0 %vm269_vm0, %v6787_v38  ;;  %v2966_v0 = vadd.f32 %v8058_v42, %v10343_v45 }
 0x1b4   : > { %v2965_v50 = vadd.f32 %v10343_v45, %v2790_v48  ;;  %8438 = vmatprep.mubr.msk.f32.mxu1 %vm269_vm0, %v10395_v36 }
 0x1b5   : > { %3029 = vrot.lane.b32.xlu1 %v2963_v44, %s9013_s18  ;;  %v10420_v60 = vpop.f32.mrb[6].mxu0 }
 0x1b6   : > { %3033 = vrot.lane.b32.xlu0 %v2965_v50, %s9013_s18  ;;  %v8061_v62 = vpop.f32.mrb[6].mxu1  ;;  %v10423_v2 = vpop.f32.mrb[7].mxu0  ;;  %8231 = vmatmul.mubr.msk.f32.gmra.mrb[48].mxu0 %vm269_vm0, %v6788_v52  ;;  %v6796_v52 = vld [vmem:[%s9094_s20 + $0x158] sm:$0xff] }
 0x1b7   : > { %v2800_v4 = vpop.f32.mrb[7].mxu1  ;;  %8439 = vmatmul.mubr.msk.f32.gmra.mrb[48].mxu1 %vm269_vm0, %v10412_v54  ;;  %8233 = vmatprep.mubr.msk.f32.mxu0 %vm269_vm0, %v6789_v58  ;;  %v2968_v21 = vadd.f32 %v8061_v62, %v10343_v45  ;;  %v10500_v58 = vld [vmem:[%s9094_s20 + $0x159] sm:$0xff]  ;;  %v10504_v62 = vld [vmem:[%s9094_s20 + $0x169] sm:$0xff] }
 0x1b8   : > { %v2967_v6 = vadd.f32 %v10343_v45, %v2800_v4  ;;  %8441 = vmatprep.mubr.msk.f32.mxu1 %vm269_vm0, %v10416_v56 }
 0x1b9   : > { %3035 = vrot.lane.b32.xlu1 %v2966_v0, %s9013_s18  ;;  %v10442_v9 = vpop.f32.mrb[8].mxu0  ;;  %v6797_v0 = vld [vmem:[%s9094_s20 + $0x168] sm:$0xff] }
 0x1ba   : > { %3037 = vrot.lane.b32.xlu0 %v2967_v6, %s9013_s18  ;;  %v8064_v13 = vpop.f32.mrb[8].mxu1  ;;  %v10445_v1 = vpop.f32.mrb[9].mxu0  ;;  %8234 = vmatmul.mubr.msk.f32.gmra.mrb[50].mxu0 %vm269_vm0, %v6790_v8 }
 0x1bb   : > { %v2810_v33 = vpop.f32.mrb[9].mxu1  ;;  %8442 = vmatmul.mubr.msk.f32.gmra.mrb[50].mxu1 %vm269_vm0, %v10434_v12  ;;  %8236 = vmatprep.mubr.msk.f32.mxu0 %vm269_vm0, %v6791_v23  ;;  %v2970_v59 = vadd.f32 %v8064_v13, %v10343_v45 }
 0x1bc   : > { %v2969_v35 = vadd.f32 %v10343_v45, %v2810_v33  ;;  %8444 = vmatprep.mubr.msk.f32.mxu1 %vm269_vm0, %v10438_v22  ;;  %v6798_v33 = vld [vmem:[%s9094_s20 + $0x170] sm:$0xff] }
 0x1bd   : > { %3039 = vrot.lane.b32.xlu1 %v2968_v21, %s9013_s18  ;;  %v10464_v51 = vpop.f32.mrb[10].mxu0 }
 0x1be   : > { %3041 = vrot.lane.b32.xlu0 %v2969_v35, %s9013_s18  ;;  %v8067_v57 = vpop.f32.mrb[10].mxu1  ;;  %v10467_v63 = vpop.f32.mrb[11].mxu0  ;;  %8237 = vmatmul.mubr.msk.f32.gmra.mrb[52].mxu0 %vm269_vm0, %v6792_v29  ;;  %v10522_v35 = vld [vmem:[%s9094_s20 + $0x171] sm:$0xff]  ;;  %v10526_v29 = vld [vmem:[%s9094_s20 + $0x181] sm:$0xff] }
 0x1bf   : > { %v2820_v10 = vpop.f32.mrb[11].mxu1  ;;  %8445 = vmatmul.mubr.msk.f32.gmra.mrb[52].mxu1 %vm269_vm0, %v10456_v37  ;;  %8239 = vmatprep.mubr.msk.f32.mxu0 %vm269_vm0, %v6793_v47  ;;  %v2972_v42 = vadd.f32 %v8067_v57, %v10343_v45  ;;  %v6799_v47 = vld [vmem:[%s9094_s20 + $0x180] sm:$0xff] }
 0x1c0   : > { %v2971_v16 = vadd.f32 %v10343_v45, %v2820_v10  ;;  %8447 = vmatprep.mubr.msk.f32.mxu1 %vm269_vm0, %v10460_v41 }
 0x1c1   : > { %3043 = vrot.lane.b32.xlu1 %v2970_v59, %s9013_s18  ;;  %v10486_v32 = vpop.f32.mrb[12].mxu0 }
 0x1c2   : > { %3045 = vrot.lane.b32.xlu0 %v2971_v16, %s9013_s18  ;;  %v8070_v38 = vpop.f32.mrb[12].mxu1  ;;  %v10489_v44 = vpop.f32.mrb[13].mxu0  ;;  %8240 = vmatmul.mubr.msk.f32.gmra.mrb[54].mxu0 %vm269_vm0, %v6794_v31 }
 0x1c3   : > { %v2830_v48 = vpop.f32.mrb[13].mxu1  ;;  %8448 = vmatmul.mubr.msk.f32.gmra.mrb[54].mxu1 %vm269_vm0, %v10478_v26  ;;  %8242 = vmatprep.mubr.msk.f32.mxu0 %vm269_vm0, %v6795_v30  ;;  %v2974_v8 = vadd.f32 %v8070_v38, %v10343_v45  ;;  %v6800_v38 = vld [vmem:[%s9094_s20 + $0x188] sm:$0xff] }
 0x1c4   : > { %v2973_v50 = vadd.f32 %v10343_v45, %v2830_v48  ;;  %8450 = vmatprep.mubr.msk.f32.mxu1 %vm269_vm0, %v10482_v7  ;;  %v10548_v48 = vld [vmem:[%s9094_s20 + $0x199] sm:$0xff] }
 0x1c5   : > { %3047 = vrot.lane.b32.xlu1 %v2972_v42, %s9013_s18  ;;  %v10508_v4 = vpop.f32.mrb[14].mxu0  ;;  %v10544_v42 = vld [vmem:[%s9094_s20 + $0x189] sm:$0xff] }
 0x1c6   : > { %3049 = vrot.lane.b32.xlu0 %v2973_v50, %s9013_s18  ;;  %v8073_v6 = vpop.f32.mrb[14].mxu1  ;;  %v10511_v23 = vpop.f32.mrb[15].mxu0  ;;  %8243 = vmatmul.mubr.msk.f32.gmra.mrb[56].mxu0 %vm269_vm0, %v6796_v52  ;;  %v6801_v50 = vld [vmem:[%s9094_s20 + $0x198] sm:$0xff] }
 0x1c7   : > { %v2840_v13 = vpop.f32.mrb[15].mxu1  ;;  %8451 = vmatmul.mubr.msk.f32.gmra.mrb[56].mxu1 %vm269_vm0, %v10500_v58  ;;  %8245 = vmatprep.mubr.msk.f32.mxu0 %vm269_vm0, %v6797_v0  ;;  %v2976_v10 = vadd.f32 %v8073_v6, %v10343_v45 }
 0x1c8   : > { %v2975_v21 = vadd.f32 %v10343_v45, %v2840_v13  ;;  %8453 = vmatprep.mubr.msk.f32.mxu1 %vm269_vm0, %v10504_v62 }
 0x1c9   : > { %3051 = vrot.lane.b32.xlu1 %v2974_v8, %s9013_s18  ;;  %v10530_v57 = vpop.f32.mrb[16].mxu0 }
 0x1ca   : > { %3053 = vrot.lane.b32.xlu0 %v2975_v21, %s9013_s18  ;;  %v8076_v59 = vpop.f32.mrb[16].mxu1  ;;  %v10533_v16 = vpop.f32.mrb[17].mxu0  ;;  %8246 = vmatmul.mubr.msk.f32.gmra.mrb[58].mxu0 %vm269_vm0, %v6798_v33  ;;  %v6802_v33 = vld [vmem:[%s9094_s20 + $0x1a0] sm:$0xff] }
 0x1cb   : > { %v2850_v31 = vpop.f32.mrb[17].mxu1  ;;  %8454 = vmatmul.mubr.msk.f32.gmra.mrb[58].mxu1 %vm269_vm0, %v10522_v35  ;;  %8248 = vmatprep.mubr.msk.f32.mxu0 %vm269_vm0, %v6799_v47  ;;  %v2978_v6 = vadd.f32 %v8076_v59, %v10343_v45  ;;  %v10566_v47 = vld [vmem:[%s9094_s20 + $0x1a1] sm:$0xff]  ;;  %v7037_v59 = vld [vmem:[%s9094_s20 + $0x32] sm:$0xff] }
 0x1cc   : > { %v2977_v30 = vadd.f32 %v10343_v45, %v2850_v31  ;;  %8456 = vmatprep.mubr.msk.f32.mxu1 %vm269_vm0, %v10526_v29 }
 0x1cd   : > { %3055 = vrot.lane.b32.xlu1 %v2976_v10, %s9013_s18  ;;  %v10552_v52 = vpop.f32.mrb[18].mxu0 }
 0x1ce   : > { %3057 = vrot.lane.b32.xlu0 %v2977_v30, %s9013_s18  ;;  %v8079_v0 = vpop.f32.mrb[18].mxu1  ;;  %v10555_v8 = vpop.f32.mrb[19].mxu0  ;;  %8249 = vmatmul.mubr.msk.f32.gmra.mrb[60].mxu0 %vm269_vm0, %v6800_v38 }
 0x1cf   : > { %v2860_v13 = vpop.f32.mrb[19].mxu1  ;;  %8457 = vmatmul.mubr.msk.f32.gmra.mrb[60].mxu1 %vm269_vm0, %v10544_v42  ;;  %8251 = vmatprep.mubr.msk.f32.mxu0 %vm269_vm0, %v6801_v50  ;;  %v2980_v30 = vadd.f32 %v8079_v0, %v10343_v45  ;;  %v7039_v0 = vld [vmem:[%s9094_s20 + $0x4a] sm:$0xff] }
 0x1d0   : > { %v2979_v21 = vadd.f32 %v10343_v45, %v2860_v13  ;;  %8459 = vmatprep.mubr.msk.f32.mxu1 %vm269_vm0, %v10548_v48 }
 0x1d1   : > { %3059 = vrot.lane.b32.xlu1 %v2978_v6, %s9013_s18  ;;  %v10571_v10 = vpop.f32.mrb[20].mxu0  ;;  %v7038_v6 = vld [vmem:[%s9094_s20 + $0x3a] sm:$0xff] }
 0x1d2   : > { %3061 = vrot.lane.b32.xlu0 %v2979_v21, %s9013_s18  ;;  %11472 = vst [vmem:[#allocation4_spill] sm:$0xff] %v10571_v10  ;;  %v8082_v31 = vpop.f32.mrb[20].mxu1  ;;  %v10574_v38 = vpop.f32.mrb[21].mxu0  ;;  %8252 = vmatmul.mubr.msk.f32.gmra.mrb[62].mxu0 %vm269_vm0, %v6802_v33 }
 0x1d3   : > { %11473 = vst [vmem:[#allocation5_spill] sm:$0xff] %v10574_v38  ;;  %v2870_v13 = vpop.f32.mrb[21].mxu1  ;;  %8460 = vmatmul.mubr.msk.f32.gmra.mrb[62].mxu1 %vm269_vm0, %v10566_v47  ;;  %8258 = vmatprep.mubr.msk.f32.mxu0 %vm269_vm0, %v10262_v18  ;;  %v2982_v10 = vadd.f32 %v8082_v31, %v10343_v45  ;;  %v7041_v31 = vld [vmem:[%s9094_s20 + $0x62] sm:$0xff] }
 0x1d4   : > { %v2981_v50 = vadd.f32 %v10343_v45, %v2870_v13  ;;  %8466 = vmatprep.mubr.msk.f32.mxu1 %vm269_vm0, %v7037_v59  ;;  %v7040_v59 = vld [vmem:[%s9094_s20 + $0x52] sm:$0xff] }
 0x1d5   : > { %3063 = vrot.lane.b32.xlu1 %v2980_v30, %s9013_s18  ;;  %v10587_v21 = vpop.f32.mrb[22].mxu0 }
 0x1d6   : > { %3065 = vrot.lane.b32.xlu0 %v2981_v50, %s9013_s18  ;;  %v8085_v33 = vpop.f32.mrb[22].mxu1  ;;  %v10590_v38 = vpop.f32.mrb[23].mxu0  ;;  %8259 = vmatmul.mubr.msk.f32.vlgmr.msra.gmra.mrb[32].mxu0 %vm269_vm0, %v10273_v5 }
 0x1d7   : > { %v2880_v13 = vpop.f32.mrb[23].mxu1  ;;  %8467 = vmatmul.mubr.msk.f32.vlgmr.msra.gmra.mrb[32].mxu1 %vm269_vm0, %v7038_v6  ;;  %8261 = vmatprep.mubr.msk.f32.mxu0 %vm269_vm0, %v10277_v11  ;;  %v2984_v50 = vadd.f32 %v8085_v33, %v10343_v45 }
 0x1d8   : > { %v2983_v18 = vadd.f32 %v10343_v45, %v2880_v13  ;;  %8469 = vmatprep.mubr.msk.f32.mxu1 %vm269_vm0, %v7039_v0  ;;  %v7043_v0 = vld [vmem:[%s9094_s20 + $0x7a] sm:$0xff] }
 0x1d9   : > { %3067 = vrot.lane.b32.xlu1 %v2982_v10, %s9013_s18  ;;  %v10603_v30 = vpop.f32.mrb[24].mxu0  ;;  %v7042_v10 = vld [vmem:[%s9094_s20 + $0x6a] sm:$0xff] }
 0x1da   : > { %3069 = vrot.lane.b32.xlu0 %v2983_v18, %s9013_s18  ;;  %v8088_v5 = vpop.f32.mrb[24].mxu1  ;;  %v10606_v6 = vpop.f32.mrb[25].mxu0  ;;  %8262 = vmatmul.mubr.msk.f32.gmra.mrb[34].mxu0 %vm269_vm0, %v10286_v15 }
 0x1db   : > { %v2890_v13 = vpop.f32.mrb[25].mxu1  ;;  %8470 = vmatmul.mubr.msk.f32.gmra.mrb[34].mxu1 %vm269_vm0, %v7040_v59  ;;  %8264 = vmatprep.mubr.msk.f32.mxu0 %vm269_vm0, %v10292_v25  ;;  %v2986_v18 = vadd.f32 %v8088_v5, %v10343_v45  ;;  %v7045_v5 = vld [vmem:[%s9094_s20 + $0x92] sm:$0xff] }
 0x1dc   : > { %v2985_v11 = vadd.f32 %v10343_v45, %v2890_v13  ;;  %8472 = vmatprep.mubr.msk.f32.mxu1 %vm269_vm0, %v7041_v31  ;;  %v7044_v31 = vld [vmem:[%s9094_s20 + $0x82] sm:$0xff] }
 0x1dd   : > { %3071 = vrot.lane.b32.xlu1 %v2984_v50, %s9013_s18  ;;  %v10619_v33 = vpop.f32.mrb[26].mxu0 }
 0x1de   : > { %3073 = vrot.lane.b32.xlu0 %v2985_v11, %s9013_s18  ;;  %v8091_v15 = vpop.f32.mrb[26].mxu1  ;;  %v10622_v59 = vpop.f32.mrb[27].mxu0  ;;  %8265 = vmatmul.mubr.msk.f32.gmra.mrb[36].mxu0 %vm269_vm0, %v10303_v14 }
 0x1df   : > { %v2900_v13 = vpop.f32.mrb[27].mxu1  ;;  %8473 = vmatmul.mubr.msk.f32.gmra.mrb[36].mxu1 %vm269_vm0, %v7042_v10  ;;  %8267 = vmatprep.mubr.msk.f32.mxu0 %vm269_vm0, %v10307_v27  ;;  %v2988_v11 = vadd.f32 %v8091_v15, %v10343_v45  ;;  %v7047_v15 = vld [vmem:[%s9094_s20 + $0xaa] sm:$0xff] }
 0x1e0   : > { %v2987_v25 = vadd.f32 %v10343_v45, %v2900_v13  ;;  %8475 = vmatprep.mubr.msk.f32.mxu1 %vm269_vm0, %v7043_v0  ;;  %v7046_v0 = vld [vmem:[%s9094_s20 + $0x9a] sm:$0xff] }
 0x1e1   : > { %3075 = vrot.lane.b32.xlu1 %v2986_v18, %s9013_s18  ;;  %v10635_v50 = vpop.f32.mrb[28].mxu0 }
 0x1e2   : > { %3077 = vrot.lane.b32.xlu0 %v2987_v25, %s9013_s18  ;;  %v8094_v14 = vpop.f32.mrb[28].mxu1  ;;  %v10638_v10 = vpop.f32.mrb[29].mxu0  ;;  %8268 = vmatmul.mubr.msk.f32.gmra.mrb[38].mxu0 %vm269_vm0, %v10317_v17 }
 0x1e3   : > { %v2910_v13 = vpop.f32.mrb[29].mxu1  ;;  %8476 = vmatmul.mubr.msk.f32.gmra.mrb[38].mxu1 %vm269_vm0, %v7044_v31  ;;  %8270 = vmatprep.mubr.msk.f32.mxu0 %vm269_vm0, %v10321_v3  ;;  %v2990_v25 = vadd.f32 %v8094_v14, %v10343_v45  ;;  %v7049_v14 = vld [vmem:[%s9094_s20 + $0xc2] sm:$0xff] }
 0x1e4   : > { %v2989_v27 = vadd.f32 %v10343_v45, %v2910_v13  ;;  %8478 = vmatprep.mubr.msk.f32.mxu1 %vm269_vm0, %v7045_v5  ;;  %v7051_v13 = vld [vmem:[%s9094_s20 + $0xda] sm:$0xff] }
 0x1e5   : > { %3079 = vrot.lane.b32.xlu1 %v2988_v11, %s9013_s18  ;;  %v10651_v18 = vpop.f32.mrb[30].mxu0  ;;  %v7048_v11 = vld [vmem:[%s9094_s20 + $0xb2] sm:$0xff] }
 0x1e6   : > { %3081 = vrot.lane.b32.xlu0 %v2989_v27, %s9013_s18  ;;  %v8097_v17 = vpop.f32.mrb[30].mxu1  ;;  %v10654_v31 = vpop.f32.mrb[31].mxu0  ;;  %8271 = vmatmul.mubr.msk.f32.gmra.mrb[40].mxu0 %vm269_vm0, %v10331_v39  ;;  %v7055_v27 = vld [vmem:[%s9094_s20 + $0x10a] sm:$0xff] }
 0x1e7   : > { %v2920_v5 = vpop.f32.mrb[31].mxu1  ;;  %8479 = vmatmul.mubr.msk.f32.gmra.mrb[40].mxu1 %vm269_vm0, %v7046_v0  ;;  %8273 = vmatprep.mubr.msk.f32.mxu0 %vm269_vm0, %v10335_v43  ;;  %v2992_v39 = vadd.f32 %v8097_v17, %v10343_v45  ;;  %v7050_v43 = vld [vmem:[%s9094_s20 + $0xca] sm:$0xff] }
 0x1e8   : > { %v2991_v3 = vadd.f32 %v10343_v45, %v2920_v5  ;;  %8481 = vmatprep.mubr.msk.f32.mxu1 %vm269_vm0, %v7047_v15 }
 0x1e9   : > { %3083 = vrot.lane.b32.xlu1 %v2990_v25, %s9013_s18  ;;  %v1699_v25 = vadd.f32 %v10343_v45, %v10380_v28  ;;  %v1703_v28 = vadd.f32 %v10343_v45, %v10423_v2 }
 0x1ea   : > { %3085 = vrot.lane.b32.xlu0 %v2991_v3, %s9013_s18  ;;  %8274 = vmatmul.mubr.msk.f32.gmra.mrb[42].mxu0 %vm269_vm0, %v10350_v49  ;;  %v7052_v49 = vld [vmem:[%s9094_s20 + $0xe2] sm:$0xff] }
 0x1eb   : > { %8482 = vmatmul.mubr.msk.f32.gmra.mrb[42].mxu1 %vm269_vm0, %v7048_v11  ;;  %8276 = vmatprep.mubr.msk.f32.mxu0 %vm269_vm0, %v10354_v53  ;;  %v7053_v53 = vld [vmem:[%s9094_s20 + $0xf2] sm:$0xff] }
 0x1ec   : > { %8484 = vmatprep.mubr.msk.f32.mxu1 %vm269_vm0, %v7049_v14  ;;  %v1702_v14 = vadd.f32 %v10398_v40, %v10343_v45  ;;  %v1705_v40 = vadd.f32 %v10343_v45, %v10445_v1 }
 0x1ed   : > { %3087 = vrot.lane.b32.xlu1 %v2992_v39, %s9013_s18 }
 0x1ee   : > { %8277 = vmatmul.mubr.msk.f32.gmra.mrb[44].mxu0 %vm269_vm0, %v10369_v19  ;;  %v7054_v19 = vld [vmem:[%s9094_s20 + $0xfa] sm:$0xff] }
 0x1ef   : > { %8485 = vmatmul.mubr.msk.f32.gmra.mrb[44].mxu1 %vm269_vm0, %v7050_v43  ;;  %8279 = vmatprep.mubr.msk.f32.mxu0 %vm269_vm0, %v10374_v20  ;;  %v7056_v20 = vld [vmem:[%s9094_s20 + $0x112] sm:$0xff] }
 0x1f0   : > { %8487 = vmatprep.mubr.msk.f32.mxu1 %vm269_vm0, %v7051_v13 }
 0x1f2   : > { %8280 = vmatmul.mubr.msk.f32.gmra.mrb[46].mxu0 %vm269_vm0, %v10390_v34  ;;  %v7057_v34 = vld [vmem:[%s9094_s20 + $0x122] sm:$0xff] }
 0x1f3   : > { %8488 = vmatmul.mubr.msk.f32.gmra.mrb[46].mxu1 %vm269_vm0, %v7052_v49  ;;  %8282 = vmatprep.mubr.msk.f32.mxu0 %vm269_vm0, %v10395_v36  ;;  %v7058_v36 = vld [vmem:[%s9094_s20 + $0x12a] sm:$0xff]  ;;  %v1704_v49 = vadd.f32 %v10420_v60, %v10343_v45  ;;  %v1707_v60 = vadd.f32 %v10343_v45, %v10467_v63 }
 0x1f4   : > { %8490 = vmatprep.mubr.msk.f32.mxu1 %vm269_vm0, %v7053_v53 }
 0x1f6   : > { %8283 = vmatmul.mubr.msk.f32.gmra.mrb[48].mxu0 %vm269_vm0, %v10412_v54  ;;  %v7059_v54 = vld [vmem:[%s9094_s20 + $0x13a] sm:$0xff] }
 0x1f7   : > { %8491 = vmatmul.mubr.msk.f32.gmra.mrb[48].mxu1 %vm269_vm0, %v7054_v19  ;;  %8285 = vmatprep.mubr.msk.f32.mxu0 %vm269_vm0, %v10416_v56  ;;  %v7060_v56 = vld [vmem:[%s9094_s20 + $0x142] sm:$0xff] }
 0x1f8   : > { %8493 = vmatprep.mubr.msk.f32.mxu1 %vm269_vm0, %v7055_v27 }
 0x1fa   : > { %8286 = vmatmul.mubr.msk.f32.gmra.mrb[50].mxu0 %vm269_vm0, %v10434_v12  ;;  %v7061_v12 = vld [vmem:[%s9094_s20 + $0x152] sm:$0xff] }
 0x1fb   : > { %8494 = vmatmul.mubr.msk.f32.gmra.mrb[50].mxu1 %vm269_vm0, %v7056_v20  ;;  %8288 = vmatprep.mubr.msk.f32.mxu0 %vm269_vm0, %v10438_v22  ;;  %v7062_v22 = vld [vmem:[%s9094_s20 + $0x15a] sm:$0xff]  ;;  %v1706_v20 = vadd.f32 %v10442_v9, %v10343_v45  ;;  %v1709_v9 = vadd.f32 %v10343_v45, %v10489_v44 }
 0x1fc   : > { %8496 = vmatprep.mubr.msk.f32.mxu1 %vm269_vm0, %v7057_v34 }
 0x1fe   : > { %8289 = vmatmul.mubr.msk.f32.gmra.mrb[52].mxu0 %vm269_vm0, %v10456_v37  ;;  %v7063_v37 = vld [vmem:[%s9094_s20 + $0x16a] sm:$0xff] }
 0x1ff   : > { %8497 = vmatmul.mubr.msk.f32.gmra.mrb[52].mxu1 %vm269_vm0, %v7058_v36  ;;  %8291 = vmatprep.mubr.msk.f32.mxu0 %vm269_vm0, %v10460_v41  ;;  %v7064_v41 = vld [vmem:[%s9094_s20 + $0x172] sm:$0xff] }
 0x200   : > { %8499 = vmatprep.mubr.msk.f32.mxu1 %vm269_vm0, %v7059_v54 }
 0x202   : > { %8292 = vmatmul.mubr.msk.f32.gmra.mrb[54].mxu0 %vm269_vm0, %v10478_v26  ;;  %v7065_v26 = vld [vmem:[%s9094_s20 + $0x182] sm:$0xff] }
 0x203   : > { %8500 = vmatmul.mubr.msk.f32.gmra.mrb[54].mxu1 %vm269_vm0, %v7060_v56  ;;  %8294 = vmatprep.mubr.msk.f32.mxu0 %vm269_vm0, %v10482_v7  ;;  %v7066_v7 = vld [vmem:[%s9094_s20 + $0x18a] sm:$0xff]  ;;  %v1708_v56 = vadd.f32 %v10464_v51, %v10343_v45  ;;  %v1711_v51 = vadd.f32 %v10343_v45, %v10511_v23 }
 0x204   : > { %8502 = vmatprep.mubr.msk.f32.mxu1 %vm269_vm0, %v7061_v12 }
 0x206   : > { %8295 = vmatmul.mubr.msk.f32.gmra.mrb[56].mxu0 %vm269_vm0, %v10500_v58  ;;  %v7067_v58 = vld [vmem:[%s9094_s20 + $0x19a] sm:$0xff] }
 0x207   : > { %8503 = vmatmul.mubr.msk.f32.gmra.mrb[56].mxu1 %vm269_vm0, %v7062_v22  ;;  %8297 = vmatprep.mubr.msk.f32.mxu0 %vm269_vm0, %v10504_v62  ;;  %v7068_v62 = vld [vmem:[%s9094_s20 + $0x1a2] sm:$0xff] }
 0x208   : > { %8505 = vmatprep.mubr.msk.f32.mxu1 %vm269_vm0, %v7063_v37 }
 0x20a   : > { %8298 = vmatmul.mubr.msk.f32.gmra.mrb[58].mxu0 %vm269_vm0, %v10522_v35  ;;  %v1698_v35 = vadd.f32 %v10356_v55, %v10343_v45  ;;  %v1700_v55 = vadd.f32 %v10376_v24, %v10343_v45 }
 0x20b   : > { %8506 = vmatmul.mubr.msk.f32.gmra.mrb[58].mxu1 %vm269_vm0, %v7064_v41  ;;  %8300 = vmatprep.mubr.msk.f32.mxu0 %vm269_vm0, %v10526_v29  ;;  %v1710_v41 = vadd.f32 %v10486_v32, %v10343_v45  ;;  %v1713_v32 = vadd.f32 %v10343_v45, %v10533_v16 }
 0x20c   : > { %8508 = vmatprep.mubr.msk.f32.mxu1 %vm269_vm0, %v7065_v26 }
 0x20e   : > { %8301 = vmatmul.mubr.msk.f32.gmra.mrb[60].mxu0 %vm269_vm0, %v10544_v42 }
 0x20f   : > { %8509 = vmatmul.mubr.msk.f32.gmra.mrb[60].mxu1 %vm269_vm0, %v7066_v7  ;;  %8303 = vmatprep.mubr.msk.f32.mxu0 %vm269_vm0, %v10548_v48  ;;  %v1697_v48 = vadd.f32 %v10343_v45, %v10359_v61  ;;  %v1701_v61 = vadd.f32 %v10343_v45, %v10401_v46 }
 0x210   : > { %8511 = vmatprep.mubr.msk.f32.mxu1 %vm269_vm0, %v7067_v58 }
 0x212   : > { %8304 = vmatmul.mubr.msk.f32.gmra.mrb[62].mxu0 %vm269_vm0, %v10566_v47 }
 0x213   : > { %8512 = vmatmul.mubr.msk.f32.gmra.mrb[62].mxu1 %vm269_vm0, %v7068_v62  ;;  %v1712_v62 = vadd.f32 %v10508_v4, %v10343_v45  ;;  %v1715_v4 = vadd.f32 %v10343_v45, %v10555_v8 }
 0x21f   : > { %v3028_v29 = vpop.permute.xlu0 %3027 }
 0x220   : > { %v3123_v42 = vsel %vm3121_vm1, %v1698_v35, %v3028_v29 }
 0x221   : > { %3156 = vst.msk [vmem:[%s10757_s23 + $0x8] sm:$0xff] %vm3154_vm2, %v3123_v42 }
 0x223   : > { %v3026_v47 = vpop.permute.xlu0 %3025  ;;  %v3032_v0 = vpop.permute.xlu1 %3031 }
 0x224   : > { %v3122_v15 = vsel %vm3121_vm1, %v1697_v48, %v3026_v47  ;;  %v3125_v17 = vsel %vm3121_vm1, %v1700_v55, %v3032_v0  ;;  %v1714_v48 = vadd.f32 %v10530_v57, %v10343_v45  ;;  %v11474_v57 = vld [vmem:[#allocation5_spill] sm:$0xff] }
 0x225   : > { %3155 = vst.msk [vmem:[%s10757_s23] sm:$0xff] %vm3154_vm2, %v3122_v15  ;;  %3158 = vst.msk [vmem:[%s10757_s23 + $0x28] sm:$0xff] %vm3154_vm2, %v3125_v17  ;;  %v1716_v15 = vadd.f32 %v10552_v52, %v10343_v45  ;;  %v1717_v17 = vadd.f32 %v10343_v45, %v11474_v57  ;;  %v1719_v52 = vadd.f32 %v10343_v45, %v10590_v38 }
 0x227   : > { %v3030_v5 = vpop.permute.xlu1 %3029 }
 0x228   : > { %v3124_v24 = vsel %vm3121_vm1, %v1699_v25, %v3030_v5  ;;  %v3034_v3 = vpop.permute.xlu0 %3033 }
 0x229   : > { %3157 = vst.msk [vmem:[%s10757_s23 + $0x20] sm:$0xff] %vm3154_vm2, %v3124_v24  ;;  %v3126_v11 = vsel %vm3121_vm1, %v1701_v61, %v3034_v3  ;;  %v11475_v24 = vld [vmem:[#allocation4_spill] sm:$0xff] }
 0x22a   : > { %3159 = vst.msk [vmem:[%s10757_s23 + $0x40] sm:$0xff] %vm3154_vm2, %v3126_v11  ;;  %v1718_v3 = vadd.f32 %v11475_v24, %v10343_v45 }
 0x22b   : > { %v3036_v39 = vpop.permute.xlu1 %3035 }
 0x22c   : > { %v3127_v46 = vsel %vm3121_vm1, %v1702_v14, %v3036_v39  ;;  %v3038_v43 = vpop.permute.xlu0 %3037 }
 0x22d   : > { %3160 = vst.msk [vmem:[%s10757_s23 + $0x48] sm:$0xff] %vm3154_vm2, %v3127_v46  ;;  %v3128_v13 = vsel %vm3121_vm1, %v1703_v28, %v3038_v43  ;;  %v1720_v46 = vadd.f32 %v10587_v21, %v10343_v45  ;;  %v1721_v43 = vadd.f32 %v10343_v45, %v10606_v6  ;;  %v1723_v21 = vadd.f32 %v10343_v45, %v10622_v59 }
 0x22e   : > { %3161 = vst.msk [vmem:[%s10757_s23 + $0x60] sm:$0xff] %vm3154_vm2, %v3128_v13 }
 0x22f   : > { %v3040_v53 = vpop.permute.xlu1 %3039 }
 0x230   : > { %v3129_v2 = vsel %vm3121_vm1, %v1704_v49, %v3040_v53  ;;  %v3042_v19 = vpop.permute.xlu0 %3041  ;;  %v1722_v53 = vadd.f32 %v10603_v30, %v10343_v45  ;;  %v1725_v30 = vadd.f32 %v10343_v45, %v10638_v10 }
 0x231   : > { %3162 = vst.msk [vmem:[%s10757_s23 + $0x68] sm:$0xff] %vm3154_vm2, %v3129_v2  ;;  %v3130_v27 = vsel %vm3121_vm1, %v1705_v40, %v3042_v19 }
 0x232   : > { %3163 = vst.msk [vmem:[%s10757_s23 + $0x80] sm:$0xff] %vm3154_vm2, %v3130_v27 }
 0x233   : > { %v3044_v34 = vpop.permute.xlu1 %3043 }
 0x234   : > { %v3131_v1 = vsel %vm3121_vm1, %v1706_v20, %v3044_v34  ;;  %v3046_v36 = vpop.permute.xlu0 %3045  ;;  %v1724_v20 = vadd.f32 %v10619_v33, %v10343_v45  ;;  %v1727_v33 = vadd.f32 %v10343_v45, %v10654_v31 }
 0x235   : > { %3164 = vst.msk [vmem:[%s10757_s23 + $0x88] sm:$0xff] %vm3154_vm2, %v3131_v1  ;;  %v3132_v54 = vsel %vm3121_vm1, %v1707_v60, %v3046_v36  ;;  %v1726_v36 = vadd.f32 %v10635_v50, %v10343_v45 }
 0x236   : > { %3165 = vst.msk [vmem:[%s10757_s23 + $0xa0] sm:$0xff] %vm3154_vm2, %v3132_v54 }
 0x237   : > { %v3048_v12 = vpop.permute.xlu1 %3047 }
 0x238   : > { %v3133_v63 = vsel %vm3121_vm1, %v1708_v56, %v3048_v12  ;;  %v3050_v22 = vpop.permute.xlu0 %3049  ;;  %v1728_v12 = vadd.f32 %v10651_v18, %v10343_v45 }
 0x239   : > { %3166 = vst.msk [vmem:[%s10757_s23 + $0xa8] sm:$0xff] %vm3154_vm2, %v3133_v63  ;;  %v3134_v37 = vsel %vm3121_vm1, %v1709_v9, %v3050_v22 }
 0x23a   : > { %3167 = vst.msk [vmem:[%s10757_s23 + $0xc0] sm:$0xff] %vm3154_vm2, %v3134_v37 }
 0x23b   : > { %v3052_v26 = vpop.permute.xlu1 %3051 }
 0x23c   : > { %v3135_v44 = vsel %vm3121_vm1, %v1710_v41, %v3052_v26  ;;  %v3054_v7 = vpop.permute.xlu0 %3053 }
 0x23d   : > { %3168 = vst.msk [vmem:[%s10757_s23 + $0xc8] sm:$0xff] %vm3154_vm2, %v3135_v44  ;;  %v3136_v58 = vsel %vm3121_vm1, %v1711_v51, %v3054_v7 }
 0x23e   : > { %3169 = vst.msk [vmem:[%s10757_s23 + $0xe0] sm:$0xff] %vm3154_vm2, %v3136_v58 }
 0x23f   : > { %v3056_v35 = vpop.permute.xlu1 %3055 }
 0x240   : > { %v3137_v23 = vsel %vm3121_vm1, %v1712_v62, %v3056_v35  ;;  %v3058_v29 = vpop.permute.xlu0 %3057 }
 0x241   : > { %3170 = vst.msk [vmem:[%s10757_s23 + $0xe8] sm:$0xff] %vm3154_vm2, %v3137_v23  ;;  %v3138_v42 = vsel %vm3121_vm1, %v1713_v32, %v3058_v29 }
 0x242   : > { %3171 = vst.msk [vmem:[%s10757_s23 + $0x100] sm:$0xff] %vm3154_vm2, %v3138_v42 }
 0x243   : > { %v3060_v55 = vpop.permute.xlu1 %3059 }
 0x244   : > { %v3139_v16 = vsel %vm3121_vm1, %v1714_v48, %v3060_v55  ;;  %v3062_v47 = vpop.permute.xlu0 %3061 }
 0x245   : > { %3172 = vst.msk [vmem:[%s10757_s23 + $0x108] sm:$0xff] %vm3154_vm2, %v3139_v16  ;;  %v3140_v0 = vsel %vm3121_vm1, %v1715_v4, %v3062_v47 }
 0x246   : > { %3173 = vst.msk [vmem:[%s10757_s23 + $0x120] sm:$0xff] %vm3154_vm2, %v3140_v0 }
 0x247   : > { %v3064_v25 = vpop.permute.xlu1 %3063 }
 0x248   : > { %v3141_v8 = vsel %vm3121_vm1, %v1716_v15, %v3064_v25  ;;  %v3066_v61 = vpop.permute.xlu0 %3065 }
 0x249   : > { %3174 = vst.msk [vmem:[%s10757_s23 + $0x128] sm:$0xff] %vm3154_vm2, %v3141_v8  ;;  %v3142_v5 = vsel %vm3121_vm1, %v1717_v17, %v3066_v61 }
 0x24a   : > { %3175 = vst.msk [vmem:[%s10757_s23 + $0x140] sm:$0xff] %vm3154_vm2, %v3142_v5 }
 0x24b   : > { %v3068_v11 = vpop.permute.xlu1 %3067 }
 0x24c   : > { %v3143_v14 = vsel %vm3121_vm1, %v1718_v3, %v3068_v11  ;;  %v3070_v28 = vpop.permute.xlu0 %3069 }
 0x24d   : > { %3176 = vst.msk [vmem:[%s10757_s23 + $0x148] sm:$0xff] %vm3154_vm2, %v3143_v14  ;;  %v3144_v39 = vsel %vm3121_vm1, %v1719_v52, %v3070_v28 }
 0x24e   : > { %3177 = vst.msk [vmem:[%s10757_s23 + $0x160] sm:$0xff] %vm3154_vm2, %v3144_v39 }
 0x24f   : > { %v3072_v13 = vpop.permute.xlu1 %3071 }
 0x250   : > { %v3145_v38 = vsel %vm3121_vm1, %v1720_v46, %v3072_v13  ;;  %v3074_v49 = vpop.permute.xlu0 %3073 }
 0x251   : > { %3178 = vst.msk [vmem:[%s10757_s23 + $0x168] sm:$0xff] %vm3154_vm2, %v3145_v38  ;;  %v3146_v40 = vsel %vm3121_vm1, %v1721_v43, %v3074_v49 }
 0x252   : > { %3179 = vst.msk [vmem:[%s10757_s23 + $0x180] sm:$0xff] %vm3154_vm2, %v3146_v40 }
 0x253   : > { %v3076_v2 = vpop.permute.xlu1 %3075 }
 0x254   : > { %v3147_v6 = vsel %vm3121_vm1, %v1722_v53, %v3076_v2  ;;  %v3078_v19 = vpop.permute.xlu0 %3077 }
 0x255   : > { %3180 = vst.msk [vmem:[%s10757_s23 + $0x188] sm:$0xff] %vm3154_vm2, %v3147_v6  ;;  %v3148_v27 = vsel %vm3121_vm1, %v1723_v21, %v3078_v19 }
 0x256   : > { %3181 = vst.msk [vmem:[%s10757_s23 + $0x1a0] sm:$0xff] %vm3154_vm2, %v3148_v27 }
 0x257   : > { %v3080_v60 = vpop.permute.xlu1 %3079 }
 0x258   : > { %v3149_v59 = vsel %vm3121_vm1, %v1724_v20, %v3080_v60  ;;  %v3082_v34 = vpop.permute.xlu0 %3081 }
 0x259   : > { %3182 = vst.msk [vmem:[%s10757_s23 + $0x1a8] sm:$0xff] %vm3154_vm2, %v3149_v59  ;;  %v3150_v1 = vsel %vm3121_vm1, %v1725_v30, %v3082_v34 }
 0x25a   : > { %3183 = vst.msk [vmem:[%s10757_s23 + $0x1c0] sm:$0xff] %vm3154_vm2, %v3150_v1  ;;  %v10989_v1 = vld [vmem:[%s11221_s2] ss:$0 sm:$0xff] }
 0x25b   : > { %v3084_v54 = vpop.permute.xlu1 %3083 }
 0x25c   : > { %v3151_v10 = vsel %vm3121_vm1, %v1726_v36, %v3084_v54  ;;  %v3086_v56 = vpop.permute.xlu0 %3085 }
 0x25d   : > { %3184 = vst.msk [vmem:[%s10757_s23 + $0x1c8] sm:$0xff] %vm3154_vm2, %v3151_v10  ;;  %v3152_v9 = vsel %vm3121_vm1, %v1727_v33, %v3086_v56 }
 0x25e   : > { %3185 = vst.msk [vmem:[%s10757_s23 + $0x1e0] sm:$0xff] %vm3154_vm2, %v3152_v9 }
 0x25f   : > { %v3088_v63 = vpop.permute.xlu1 %3087 }
 0x260   : > { %v3153_v50 = vsel %vm3121_vm1, %v1728_v12, %v3088_v63 }
 0x261   : > { %3186 = vst.msk [vmem:[%s10757_s23 + $0x1e8] sm:$0xff] %vm3154_vm2, %v3153_v50 }
 0x2a9   : > { %v10917_v22 = vpop.f32.mrb[32].mxu0 }
 0x2aa   : > { %v8468_v31 = vpop.f32.mrb[32].mxu1  ;;  %v10920_v41 = vpop.f32.mrb[33].mxu0 }
 0x2ab   : > { %v5943_v37 = vadd.f32 %v8468_v31, %v10343_v45  ;;  %v5751_v51 = vpop.f32.mrb[33].mxu1 }
 0x2ac   : > { %v5942_v26 = vadd.f32 %v10343_v45, %v5751_v51 }
 0x2ad   : > { %6008 = vrot.lane.b32.xlu1 %v5943_v37, %s9013_s18  ;;  %v10925_v44 = vpop.f32.mrb[34].mxu0 }
 0x2ae   : > { %v8471_v18 = vpop.f32.mrb[34].mxu1  ;;  %6006 = vrot.lane.b32.xlu0 %v5942_v26, %s9013_s18  ;;  %v10928_v58 = vpop.f32.mrb[35].mxu0 }
 0x2af   : > { %v5945_v7 = vadd.f32 %v8471_v18, %v10343_v45  ;;  %v5761_v62 = vpop.f32.mrb[35].mxu1 }
 0x2b0   : > { %v5944_v32 = vadd.f32 %v10343_v45, %v5761_v62 }
 0x2b1   : > { %6012 = vrot.lane.b32.xlu1 %v5945_v7, %s9013_s18  ;;  %v10933_v23 = vpop.f32.mrb[36].mxu0 }
 0x2b2   : > { %v8474_v35 = vpop.f32.mrb[36].mxu1  ;;  %6010 = vrot.lane.b32.xlu0 %v5944_v32, %s9013_s18  ;;  %v10936_v42 = vpop.f32.mrb[37].mxu0 }
 0x2b3   : > { %v5947_v29 = vadd.f32 %v8474_v35, %v10343_v45  ;;  %v5771_v48 = vpop.f32.mrb[37].mxu1 }
 0x2b4   : > { %v5946_v4 = vadd.f32 %v10343_v45, %v5771_v48 }
 0x2b5   : > { %6016 = vrot.lane.b32.xlu1 %v5947_v29, %s9013_s18  ;;  %v10941_v16 = vpop.f32.mrb[38].mxu0 }
 0x2b6   : > { %v8477_v55 = vpop.f32.mrb[38].mxu1  ;;  %6014 = vrot.lane.b32.xlu0 %v5946_v4, %s9013_s18  ;;  %v10944_v0 = vpop.f32.mrb[39].mxu0 }
 0x2b7   : > { %v5949_v47 = vadd.f32 %v8477_v55, %v10343_v45  ;;  %v5781_v15 = vpop.f32.mrb[39].mxu1 }
 0x2b8   : > { %v5948_v57 = vadd.f32 %v10343_v45, %v5781_v15 }
 0x2b9   : > { %6020 = vrot.lane.b32.xlu1 %v5949_v47, %s9013_s18  ;;  %v10949_v25 = vpop.f32.mrb[40].mxu0 }
 0x2ba   : > { %v8480_v17 = vpop.f32.mrb[40].mxu1  ;;  %6018 = vrot.lane.b32.xlu0 %v5948_v57, %s9013_s18  ;;  %v10952_v61 = vpop.f32.mrb[41].mxu0 }
 0x2bb   : > { %v5951_v8 = vadd.f32 %v8480_v17, %v10343_v45  ;;  %v5791_v5 = vpop.f32.mrb[41].mxu1 }
 0x2bc   : > { %v5950_v24 = vadd.f32 %v10343_v45, %v5791_v5 }
 0x2bd   : > { %6024 = vrot.lane.b32.xlu1 %v5951_v8, %s9013_s18  ;;  %v10957_v52 = vpop.f32.mrb[42].mxu0 }
 0x2be   : > { %v8483_v3 = vpop.f32.mrb[42].mxu1  ;;  %6022 = vrot.lane.b32.xlu0 %v5950_v24, %s9013_s18  ;;  %v10960_v14 = vpop.f32.mrb[43].mxu0 }
 0x2bf   : > { %v5953_v11 = vadd.f32 %v8483_v3, %v10343_v45  ;;  %v5801_v28 = vpop.f32.mrb[43].mxu1 }
 0x2c0   : > { %v5952_v39 = vadd.f32 %v10343_v45, %v5801_v28 }
 0x2c1   : > { %6028 = vrot.lane.b32.xlu1 %v5953_v11, %s9013_s18  ;;  %v10965_v43 = vpop.f32.mrb[44].mxu0 }
 0x2c2   : > { %v8486_v46 = vpop.f32.mrb[44].mxu1  ;;  %6026 = vrot.lane.b32.xlu0 %v5952_v39, %s9013_s18  ;;  %v10968_v38 = vpop.f32.mrb[45].mxu0 }
 0x2c3   : > { %v5955_v13 = vadd.f32 %v8486_v46, %v10343_v45  ;;  %v5811_v49 = vpop.f32.mrb[45].mxu1 }
 0x2c4   : > { %v5954_v40 = vadd.f32 %v10343_v45, %v5811_v49 }
 0x2c5   : > { %6032 = vrot.lane.b32.xlu1 %v5955_v13, %s9013_s18  ;;  %v10973_v21 = vpop.f32.mrb[46].mxu0 }
 0x2c6   : > { %v8489_v53 = vpop.f32.mrb[46].mxu1  ;;  %6030 = vrot.lane.b32.xlu0 %v5954_v40, %s9013_s18  ;;  %v10976_v6 = vpop.f32.mrb[47].mxu0 }
 0x2c7   : > { %v5957_v2 = vadd.f32 %v8489_v53, %v10343_v45  ;;  %v5821_v19 = vpop.f32.mrb[47].mxu1 }
 0x2c8   : > { %v5956_v27 = vadd.f32 %v10343_v45, %v5821_v19 }
 0x2c9   : > { %6036 = vrot.lane.b32.xlu1 %v5957_v2, %s9013_s18  ;;  %v10981_v30 = vpop.f32.mrb[48].mxu0 }
 0x2ca   : > { %v8492_v20 = vpop.f32.mrb[48].mxu1  ;;  %6034 = vrot.lane.b32.xlu0 %v5956_v27, %s9013_s18  ;;  %v10984_v59 = vpop.f32.mrb[49].mxu0 }
 0x2cb   : > { %v5959_v60 = vadd.f32 %v8492_v20, %v10343_v45  ;;  %v5831_v34 = vpop.f32.mrb[49].mxu1 }
 0x2cc   : > { %v5958_v36 = vadd.f32 %v10989_v1, %v5831_v34  ;;  %v4678_v34 = vadd.f32 %v10989_v1, %v10920_v41 }
 0x2cd   : > { %6040 = vrot.lane.b32.xlu1 %v5959_v60, %s9013_s18  ;;  %v10994_v54 = vpop.f32.mrb[50].mxu0  ;;  %v4679_v60 = vadd.f32 %v10989_v1, %v10917_v22  ;;  %v4680_v22 = vadd.f32 %v10989_v1, %v10928_v58 }
 0x2ce   : > { %v8495_v33 = vpop.f32.mrb[50].mxu1  ;;  %6038 = vrot.lane.b32.xlu0 %v5958_v36, %s9013_s18  ;;  %v10997_v45 = vpop.f32.mrb[51].mxu0 }
 0x2cf   : > { %v5961_v10 = vadd.f32 %v10989_v1, %v8495_v33  ;;  %v5841_v56 = vpop.f32.mrb[51].mxu1 }
 0x2d0   : > { %v5960_v9 = vadd.f32 %v10989_v1, %v5841_v56 }
 0x2d1   : > { %6044 = vrot.lane.b32.xlu1 %v5961_v10, %s9013_s18  ;;  %v11002_v63 = vpop.f32.mrb[52].mxu0 }
 0x2d2   : > { %v8498_v12 = vpop.f32.mrb[52].mxu1  ;;  %6042 = vrot.lane.b32.xlu0 %v5960_v9, %s9013_s18  ;;  %v11005_v31 = vpop.f32.mrb[53].mxu0  ;;  %v4681_v9 = vadd.f32 %v10989_v1, %v10925_v44  ;;  %v4682_v44 = vadd.f32 %v10989_v1, %v10936_v42 }
 0x2d3   : > { %v5963_v50 = vadd.f32 %v10989_v1, %v8498_v12  ;;  %v5851_v37 = vpop.f32.mrb[53].mxu1 }
 0x2d4   : > { %v5962_v51 = vadd.f32 %v10989_v1, %v5851_v37 }
 0x2d5   : > { %6048 = vrot.lane.b32.xlu1 %v5963_v50, %s9013_s18  ;;  %v11010_v18 = vpop.f32.mrb[54].mxu0 }
 0x2d6   : > { %v8501_v26 = vpop.f32.mrb[54].mxu1  ;;  %6046 = vrot.lane.b32.xlu0 %v5962_v51, %s9013_s18  ;;  %v11013_v62 = vpop.f32.mrb[55].mxu0  ;;  %v4683_v51 = vadd.f32 %v10989_v1, %v10933_v23  ;;  %v4684_v23 = vadd.f32 %v10989_v1, %v10944_v0 }
 0x2d7   : > { %v5965_v7 = vadd.f32 %v10989_v1, %v8501_v26  ;;  %v5861_v32 = vpop.f32.mrb[55].mxu1 }
 0x2d8   : > { %v5964_v35 = vadd.f32 %v10989_v1, %v5861_v32 }
 0x2d9   : > { %6052 = vrot.lane.b32.xlu1 %v5965_v7, %s9013_s18  ;;  %v11018_v48 = vpop.f32.mrb[56].mxu0 }
 0x2da   : > { %v8504_v29 = vpop.f32.mrb[56].mxu1  ;;  %6050 = vrot.lane.b32.xlu0 %v5964_v35, %s9013_s18  ;;  %v11021_v55 = vpop.f32.mrb[57].mxu0  ;;  %v4685_v35 = vadd.f32 %v10989_v1, %v10941_v16  ;;  %v4686_v16 = vadd.f32 %v10989_v1, %v10952_v61 }
 0x2db   : > { %v5967_v4 = vadd.f32 %v10989_v1, %v8504_v29  ;;  %v5871_v47 = vpop.f32.mrb[57].mxu1 }
 0x2dc   : > { %v5966_v15 = vadd.f32 %v10989_v1, %v5871_v47 }
 0x2dd   : > { %6056 = vrot.lane.b32.xlu1 %v5967_v4, %s9013_s18  ;;  %v11026_v17 = vpop.f32.mrb[58].mxu0 }
 0x2de   : > { %v8507_v57 = vpop.f32.mrb[58].mxu1  ;;  %6054 = vrot.lane.b32.xlu0 %v5966_v15, %s9013_s18  ;;  %v11029_v5 = vpop.f32.mrb[59].mxu0  ;;  %v4687_v15 = vadd.f32 %v10989_v1, %v10949_v25  ;;  %v4688_v25 = vadd.f32 %v10989_v1, %v10960_v14 }
 0x2df   : > { %v5969_v8 = vadd.f32 %v10989_v1, %v8507_v57  ;;  %v5881_v24 = vpop.f32.mrb[59].mxu1 }
 0x2e0   : > { %v5968_v3 = vadd.f32 %v10989_v1, %v5881_v24 }
 0x2e1   : > { %6060 = vrot.lane.b32.xlu1 %v5969_v8, %s9013_s18  ;;  %v11034_v28 = vpop.f32.mrb[60].mxu0 }
 0x2e2   : > { %v8510_v11 = vpop.f32.mrb[60].mxu1  ;;  %6058 = vrot.lane.b32.xlu0 %v5968_v3, %s9013_s18  ;;  %v11037_v46 = vpop.f32.mrb[61].mxu0  ;;  %v4689_v3 = vadd.f32 %v10989_v1, %v10957_v52  ;;  %v4690_v52 = vadd.f32 %v10989_v1, %v10968_v38 }
 0x2e3   : > { %v5971_v39 = vadd.f32 %v10989_v1, %v8510_v11  ;;  %v5891_v13 = vpop.f32.mrb[61].mxu1 }
 0x2e4   : > { %v5970_v49 = vadd.f32 %v10989_v1, %v5891_v13 }
 0x2e5   : > { %6064 = vrot.lane.b32.xlu1 %v5971_v39, %s9013_s18  ;;  %v11042_v53 = vpop.f32.mrb[62].mxu0 }
 0x2e6   : > { %v8513_v40 = vpop.f32.mrb[62].mxu1  ;;  %6062 = vrot.lane.b32.xlu0 %v5970_v49, %s9013_s18  ;;  %v11045_v19 = vpop.f32.mrb[63].mxu0  ;;  %v4691_v49 = vadd.f32 %v10989_v1, %v10965_v43  ;;  %v4692_v43 = vadd.f32 %v10989_v1, %v10976_v6 }
 0x2e7   : > { %v5973_v2 = vadd.f32 %v10989_v1, %v8513_v40  ;;  %v5901_v27 = vpop.f32.mrb[63].mxu1 }
 0x2e8   : > { %v5972_v20 = vadd.f32 %v10989_v1, %v5901_v27 }
 0x2e9   : > { %6068 = vrot.lane.b32.xlu1 %v5973_v2, %s9013_s18 }
 0x2ea   : > { %6066 = vrot.lane.b32.xlu0 %v5972_v20, %s9013_s18  ;;  %v4693_v20 = vadd.f32 %v10989_v1, %v10973_v21  ;;  %v4694_v21 = vadd.f32 %v10989_v1, %v10984_v59 }
 0x31f   : > { %v6009_v36 = vpop.permute.xlu1 %6008 }
 0x320   : > { %v6103_v33 = vsel %vm3121_vm1, %v4679_v60, %v6009_v36  ;;  %v6007_v10 = vpop.permute.xlu0 %6006 }
 0x321   : > { %7104 = vst.msk [vmem:[%s10757_s23 + $0x18] sm:$0xff] %vm3154_vm2, %v6103_v33  ;;  %v6102_v56 = vsel %vm3121_vm1, %v4678_v34, %v6007_v10  ;;  %v4695_v33 = vadd.f32 %v10989_v1, %v10981_v30  ;;  %v4696_v30 = vadd.f32 %v10989_v1, %v10997_v45 }
 0x322   : > { %7103 = vst.msk [vmem:[%s10757_s23 + $0x10] sm:$0xff] %vm3154_vm2, %v6102_v56 }
 0x323   : > { %v6013_v12 = vpop.permute.xlu1 %6012 }
 0x324   : > { %v6105_v41 = vsel %vm3121_vm1, %v4681_v9, %v6013_v12  ;;  %v6011_v50 = vpop.permute.xlu0 %6010 }
 0x325   : > { %7106 = vst.msk [vmem:[%s10757_s23 + $0x38] sm:$0xff] %vm3154_vm2, %v6105_v41  ;;  %v6104_v37 = vsel %vm3121_vm1, %v4680_v22, %v6011_v50  ;;  %v4697_v22 = vadd.f32 %v10989_v1, %v10994_v54  ;;  %v4698_v54 = vadd.f32 %v10989_v1, %v11005_v31 }
 0x326   : > { %7105 = vst.msk [vmem:[%s10757_s23 + $0x30] sm:$0xff] %vm3154_vm2, %v6104_v37  ;;  %v4699_v37 = vadd.f32 %v10989_v1, %v11002_v63  ;;  %v4700_v63 = vadd.f32 %v10989_v1, %v11013_v62 }
 0x327   : > { %v6017_v26 = vpop.permute.xlu1 %6016 }
 0x328   : > { %v6107_v58 = vsel %vm3121_vm1, %v4683_v51, %v6017_v26  ;;  %v6015_v7 = vpop.permute.xlu0 %6014 }
 0x329   : > { %7108 = vst.msk [vmem:[%s10757_s23 + $0x58] sm:$0xff] %vm3154_vm2, %v6107_v58  ;;  %v6106_v32 = vsel %vm3121_vm1, %v4682_v44, %v6015_v7  ;;  %v4701_v58 = vadd.f32 %v10989_v1, %v11010_v18  ;;  %v4702_v18 = vadd.f32 %v10989_v1, %v11021_v55 }
 0x32a   : > { %7107 = vst.msk [vmem:[%s10757_s23 + $0x50] sm:$0xff] %vm3154_vm2, %v6106_v32 }
 0x32b   : > { %v6021_v29 = vpop.permute.xlu1 %6020 }
 0x32c   : > { %v6109_v42 = vsel %vm3121_vm1, %v4685_v35, %v6021_v29  ;;  %v6019_v4 = vpop.permute.xlu0 %6018 }
 0x32d   : > { %7110 = vst.msk [vmem:[%s10757_s23 + $0x78] sm:$0xff] %vm3154_vm2, %v6109_v42  ;;  %v6108_v47 = vsel %vm3121_vm1, %v4684_v23, %v6019_v4  ;;  %v4703_v23 = vadd.f32 %v10989_v1, %v11018_v48  ;;  %v4704_v48 = vadd.f32 %v10989_v1, %v11029_v5 }
 0x32e   : > { %7109 = vst.msk [vmem:[%s10757_s23 + $0x70] sm:$0xff] %vm3154_vm2, %v6108_v47  ;;  %v4705_v47 = vadd.f32 %v10989_v1, %v11026_v17  ;;  %v4706_v17 = vadd.f32 %v10989_v1, %v11037_v46 }
 0x32f   : > { %v6025_v57 = vpop.permute.xlu1 %6024 }
 0x330   : > { %v6111_v0 = vsel %vm3121_vm1, %v4687_v15, %v6025_v57  ;;  %v6023_v8 = vpop.permute.xlu0 %6022 }
 0x331   : > { %7112 = vst.msk [vmem:[%s10757_s23 + $0x98] sm:$0xff] %vm3154_vm2, %v6111_v0  ;;  %v6110_v24 = vsel %vm3121_vm1, %v4686_v16, %v6023_v8  ;;  %v4707_v0 = vadd.f32 %v10989_v1, %v11034_v28  ;;  %v4708_v28 = vadd.f32 %v10989_v1, %v11045_v19 }
 0x332   : > { %7111 = vst.msk [vmem:[%s10757_s23 + $0x90] sm:$0xff] %vm3154_vm2, %v6110_v24 }
 0x333   : > { %v6029_v11 = vpop.permute.xlu1 %6028 }
 0x334   : > { %v6113_v61 = vsel %vm3121_vm1, %v4689_v3, %v6029_v11  ;;  %v6027_v39 = vpop.permute.xlu0 %6026 }
 0x335   : > { %7114 = vst.msk [vmem:[%s10757_s23 + $0xb8] sm:$0xff] %vm3154_vm2, %v6113_v61  ;;  %v6112_v13 = vsel %vm3121_vm1, %v4688_v25, %v6027_v39  ;;  %v4709_v25 = vadd.f32 %v10989_v1, %v11042_v53 }
 0x336   : > { %7113 = vst.msk [vmem:[%s10757_s23 + $0xb0] sm:$0xff] %vm3154_vm2, %v6112_v13 }
 0x337   : > { %v6033_v40 = vpop.permute.xlu1 %6032 }
 0x338   : > { %v6115_v14 = vsel %vm3121_vm1, %v4691_v49, %v6033_v40  ;;  %v6031_v2 = vpop.permute.xlu0 %6030 }
 0x339   : > { %7116 = vst.msk [vmem:[%s10757_s23 + $0xd8] sm:$0xff] %vm3154_vm2, %v6115_v14  ;;  %v6114_v27 = vsel %vm3121_vm1, %v4690_v52, %v6031_v2 }
 0x33a   : > { %7115 = vst.msk [vmem:[%s10757_s23 + $0xd0] sm:$0xff] %vm3154_vm2, %v6114_v27 }
 0x33b   : > { %v6037_v60 = vpop.permute.xlu1 %6036 }
 0x33c   : > { %v6117_v38 = vsel %vm3121_vm1, %v4693_v20, %v6037_v60  ;;  %v6035_v34 = vpop.permute.xlu0 %6034 }
 0x33d   : > { %7118 = vst.msk [vmem:[%s10757_s23 + $0xf8] sm:$0xff] %vm3154_vm2, %v6117_v38  ;;  %v6116_v36 = vsel %vm3121_vm1, %v4692_v43, %v6035_v34 }
 0x33e   : > { %7117 = vst.msk [vmem:[%s10757_s23 + $0xf0] sm:$0xff] %vm3154_vm2, %v6116_v36 }
 0x33f   : > { %v6041_v10 = vpop.permute.xlu1 %6040 }
 0x340   : > { %v6119_v6 = vsel %vm3121_vm1, %v4695_v33, %v6041_v10  ;;  %v6039_v56 = vpop.permute.xlu0 %6038 }
 0x341   : > { %7120 = vst.msk [vmem:[%s10757_s23 + $0x118] sm:$0xff] %vm3154_vm2, %v6119_v6  ;;  %v6118_v9 = vsel %vm3121_vm1, %v4694_v21, %v6039_v56 }
 0x342   : > { %7119 = vst.msk [vmem:[%s10757_s23 + $0x110] sm:$0xff] %vm3154_vm2, %v6118_v9 }
 0x343   : > { %v6045_v12 = vpop.permute.xlu1 %6044 }
 0x344   : > { %v6121_v59 = vsel %vm3121_vm1, %v4697_v22, %v6045_v12  ;;  %v6043_v41 = vpop.permute.xlu0 %6042 }
 0x345   : > { %7122 = vst.msk [vmem:[%s10757_s23 + $0x138] sm:$0xff] %vm3154_vm2, %v6121_v59  ;;  %v6120_v50 = vsel %vm3121_vm1, %v4696_v30, %v6043_v41 }
 0x346   : > { %7121 = vst.msk [vmem:[%s10757_s23 + $0x130] sm:$0xff] %vm3154_vm2, %v6120_v50 }
 0x347   : > { %v6049_v51 = vpop.permute.xlu1 %6048 }
 0x348   : > { %v6123_v45 = vsel %vm3121_vm1, %v4699_v37, %v6049_v51  ;;  %v6047_v44 = vpop.permute.xlu0 %6046 }
 0x349   : > { %7124 = vst.msk [vmem:[%s10757_s23 + $0x158] sm:$0xff] %vm3154_vm2, %v6123_v45  ;;  %v6122_v26 = vsel %vm3121_vm1, %v4698_v54, %v6047_v44 }
 0x34a   : > { %7123 = vst.msk [vmem:[%s10757_s23 + $0x150] sm:$0xff] %vm3154_vm2, %v6122_v26 }
 0x34b   : > { %v6053_v7 = vpop.permute.xlu1 %6052 }
 0x34c   : > { %v6125_v31 = vsel %vm3121_vm1, %v4701_v58, %v6053_v7  ;;  %v6051_v32 = vpop.permute.xlu0 %6050 }
 0x34d   : > { %7126 = vst.msk [vmem:[%s10757_s23 + $0x178] sm:$0xff] %vm3154_vm2, %v6125_v31  ;;  %v6124_v35 = vsel %vm3121_vm1, %v4700_v63, %v6051_v32 }
 0x34e   : > { %7125 = vst.msk [vmem:[%s10757_s23 + $0x170] sm:$0xff] %vm3154_vm2, %v6124_v35 }
 0x34f   : > { %v6057_v29 = vpop.permute.xlu1 %6056 }
 0x350   : > { %v6127_v62 = vsel %vm3121_vm1, %v4703_v23, %v6057_v29  ;;  %v6055_v42 = vpop.permute.xlu0 %6054 }
 0x351   : > { %7128 = vst.msk [vmem:[%s10757_s23 + $0x198] sm:$0xff] %vm3154_vm2, %v6127_v62  ;;  %v6126_v4 = vsel %vm3121_vm1, %v4702_v18, %v6055_v42 }
 0x352   : > { %7127 = vst.msk [vmem:[%s10757_s23 + $0x190] sm:$0xff] %vm3154_vm2, %v6126_v4 }
 0x353   : > { %v6061_v15 = vpop.permute.xlu1 %6060 }
 0x354   : > { %v6129_v55 = vsel %vm3121_vm1, %v4705_v47, %v6061_v15  ;;  %v6059_v16 = vpop.permute.xlu0 %6058 }
 0x355   : > { %7130 = vst.msk [vmem:[%s10757_s23 + $0x1b8] sm:$0xff] %vm3154_vm2, %v6129_v55  ;;  %v6128_v57 = vsel %vm3121_vm1, %v4704_v48, %v6059_v16 }
 0x356   : > { %7129 = vst.msk [vmem:[%s10757_s23 + $0x1b0] sm:$0xff] %vm3154_vm2, %v6128_v57 }
 0x357   : > { %v6065_v8 = vpop.permute.xlu1 %6064 }
 0x358   : > { %v6131_v5 = vsel %vm3121_vm1, %v4707_v0, %v6065_v8  ;;  %v6063_v24 = vpop.permute.xlu0 %6062 }
 0x359   : > { %7132 = vst.msk [vmem:[%s10757_s23 + $0x1d8] sm:$0xff] %vm3154_vm2, %v6131_v5  ;;  %v6130_v3 = vsel %vm3121_vm1, %v4706_v17, %v6063_v24 }
 0x35a   : > { %7131 = vst.msk [vmem:[%s10757_s23 + $0x1d0] sm:$0xff] %vm3154_vm2, %v6130_v3 }
 0x35b   : > { %v6069_v11 = vpop.permute.xlu1 %6068 }
 0x35c   : > { %v6133_v61 = vsel %vm3121_vm1, %v4709_v25, %v6069_v11  ;;  %v6067_v46 = vpop.permute.xlu0 %6066 }
 0x35d   : > { %7134 = vst.msk [vmem:[%s10757_s23 + $0x1f8] sm:$0xff] %vm3154_vm2, %v6133_v61  ;;  %v6132_v39 = vsel %vm3121_vm1, %v4708_v28, %v6067_v46 }
 0x35e   : > { %7133 = vst.msk [vmem:[%s10757_s23 + $0x1f0] sm:$0xff] %vm3154_vm2, %v6132_v39 }
 0x35f PF: > { %s13_s14 = sadd.s32 1, %s9011_s14   ;;  %s11476_s12 = smov %s9007_s13 }
 0x360   : > { %p10_p5 = scmp.ge.s32.totalorder %s13_s14, 4   ;;  %s11477_s13 = smov %s11479_s15 }
 0x362   :  { %12 = sbr.rel (!%p10_p5) target bundleno = 2 (0x2), region = 81 }

</bundles_post_ra>
